<compile_context>
chip_gen: v6e
topology: v6e:2x2x1
jax: 0.10.0
libtpu: 0.0.40
codegen_flags: <defaults>
</compile_context>

<pallas_src>
import functools

import jax
import jax.numpy as jnp
from jax.experimental import pallas as pl
from jax.experimental.pallas import tpu as pltpu


def _round_up(n, m):
    return ((n + m - 1) // m) * m


# ------------------------------ fused kernel --------------------------------

def _fcn_kernel(x_ref, w1_ref, b1_ref, w2_ref, b2_ref, w3_ref, b3_ref,
                w4_ref, b4_ref, fc1w_ref, fc1b_ref, fc2w_ref, fc2b_ref,
                o_ref,
                act1_ref, z1_ref, acc2_ref, m1_ref, act2_ref,
                act3_ref, z4_ref, acc4_ref, m2_ref,
                *, bt, H, W, Wp, Wp2):
    f32 = jnp.float32
    bf16 = jnp.bfloat16

    h2, w2 = (H - 2) // 2, (W - 2) // 2        # pool1 output spatial
    w3s = (w2 - 2) // 2                        # pool2 output width (height == 1)
    c2o = w2_ref.shape[1] // 9                 # conv2 out channels (32)
    c4o = w4_ref.shape[1] // 9                 # conv4 out channels (64)

    n1 = bt * H * Wp                           # canvas-1 rows (pitch Wp)
    n2 = bt * h2 * Wp2                         # canvas-2 rows (pitch Wp2)
    nacc2 = n1 - (2 * Wp + 2)                  # conv2 accumulator rows
    nm1 = nacc2 - (Wp + 1)                     # pool1 neighborhood-max rows
    nacc4 = n2 - (2 * Wp2 + 2)                 # conv4 accumulator rows
    nm2 = nacc4 - (Wp2 + 1)                    # pool2 neighborhood-max rows

    # ---- conv1: 1x1, Cin=1 -> 32, + ReLU (pure VPU broadcast fma) ----------
    act1_ref[...] = jnp.maximum(x_ref[...] * w1_ref[...] + b1_ref[...],
                                0.0).astype(bf16)

    # ---- conv2: one wide-N bf16 matmul, then 9 shifted slice-adds (VPU) ----
    z1_ref[...] = jnp.dot(act1_ref[...], w2_ref[...], preferred_element_type=f32)
    acc = z1_ref[pl.ds(0, nacc2), pl.ds(0, c2o)]
    for t in range(1, 9):
        ky, kx = divmod(t, 3)
        acc = acc + z1_ref[pl.ds(ky * Wp + kx, nacc2), pl.ds(t * c2o, c2o)]
    acc2_ref[...] = acc

    # ---- maxpool1: 4-way neighborhood max (conv2 bias + ReLU folded) -------
    nmax1 = jnp.maximum(
        jnp.maximum(acc2_ref[pl.ds(0, nm1), :], acc2_ref[pl.ds(1, nm1), :]),
        jnp.maximum(acc2_ref[pl.ds(Wp, nm1), :], acc2_ref[pl.ds(Wp + 1, nm1), :]))
    m1_ref[...] = jnp.maximum(nmax1 + b2_ref[...], 0.0)

    # stride-2 picks of the pooled positions -> act2 canvas (aligned pitch Wp2).
    act2_ref[...] = jnp.zeros_like(act2_ref)   # deterministic padding columns
    for b in range(bt):
        for oy in range(h2):
            src = b * H * Wp + 2 * oy * Wp
            dst = (b * h2 + oy) * Wp2
            act2_ref[pl.ds(dst, w2), :] = (
                m1_ref[pl.ds(src, w2, stride=2), :].astype(bf16))

    # ---- conv3: 1x1 + ReLU (one MXU matmul over the whole canvas) ----------
    act3_ref[...] = jnp.maximum(
        jnp.dot(act2_ref[...], w3_ref[...], preferred_element_type=f32)
        + b3_ref[...], 0.0).astype(bf16)

    # ---- conv4: one wide-N bf16 matmul, then 9 shifted slice-adds ----------
    z4_ref[...] = jnp.dot(act3_ref[...], w4_ref[...], preferred_element_type=f32)
    acc4 = z4_ref[pl.ds(0, nacc4), pl.ds(0, c4o)]
    for t in range(1, 9):
        ky, kx = divmod(t, 3)
        acc4 = acc4 + z4_ref[pl.ds(ky * Wp2 + kx, nacc4), pl.ds(t * c4o, c4o)]
    acc4_ref[...] = acc4

    # ---- maxpool2: 4-way neighborhood max (conv4 bias + ReLU folded) -------
    nmax2 = jnp.maximum(
        jnp.maximum(acc4_ref[pl.ds(0, nm2), :], acc4_ref[pl.ds(1, nm2), :]),
        jnp.maximum(acc4_ref[pl.ds(Wp2, nm2), :], acc4_ref[pl.ds(Wp2 + 1, nm2), :]))
    m2_ref[...] = jnp.maximum(nmax2 + b4_ref[...], 0.0)

    # ---- flatten (NCHW .view folded into fc1 weight rows) + fc1 + fc2 ------
    # pooled position s of image b lives at m2 row b*h2*Wp2 + 2*s.
    flat = jnp.concatenate(
        [m2_ref[pl.ds(2 * s, bt, stride=h2 * Wp2), :] for s in range(w3s)],
        axis=-1).astype(bf16)                                   # (bt, w3s*c4o)
    hid = jnp.dot(flat, fc1w_ref[...], preferred_element_type=f32) + fc1b_ref[...]
    # TODO(synk): nn.Dropout is identity at inference; training dropout not implemented.
    o_ref[...] = (jnp.dot(hid.astype(bf16), fc2w_ref[...],
                          preferred_element_type=f32) + fc2b_ref[...])


# ------------------------------ JAX wrappers ---------------------------------

def prepare_params(p):
    """One-time weight re-arrangement + bf16 cast (layout plumbing off the hot path)."""
    f32, bf16 = jnp.float32, jnp.bfloat16
    co1 = p["conv1_w"].shape[0]
    w1r = p["conv1_w"].reshape(1, co1).astype(f32)             # (1, 32)  VPU operand
    b1r = p["conv1_b"].reshape(1, -1).astype(f32)

    def conv3x3_wide(w):       # (Co, Ci, 3, 3) -> (Ci, 9*Co), tap t = ky*3 + kx
        co, ci = w.shape[0], w.shape[1]
        return jnp.transpose(w, (1, 2, 3, 0)).reshape(ci, 9 * co).astype(bf16)

    w2r = conv3x3_wide(p["conv2_w"])                           # (32, 288)
    b2r = p["conv2_b"].reshape(1, -1).astype(f32)
    w3r = jnp.transpose(p["conv3_w"][:, :, 0, 0], (1, 0)).astype(bf16)   # (32, 64)
    b3r = p["conv3_b"].reshape(1, -1).astype(f32)
    w4r = conv3x3_wide(p["conv4_w"])                           # (64, 576)
    b4r = p["conv4_b"].reshape(1, -1).astype(f32)

    # fc1: PyTorch flatten index k = c*spatial + s (NCHW view); reorder rows to s*C + c
    nf, kf = p["fc1_w"].shape
    c4 = p["conv4_w"].shape[0]
    sp = kf // c4
    fc1wr = jnp.transpose(p["fc1_w"].reshape(nf, c4, sp),
                          (2, 1, 0)).reshape(sp * c4, nf).astype(bf16)   # (320, 512)
    fc1br = p["fc1_b"].reshape(1, -1).astype(f32)
    fc2wr = jnp.transpose(p["fc2_w"], (1, 0)).astype(bf16)     # (512, 8)
    fc2br = p["fc2_b"].reshape(1, -1).astype(f32)
    return (w1r, b1r, w2r, b2r, w3r, b3r, w4r, b4r, fc1wr, fc1br, fc2wr, fc2br)


def fcn_forward(x_nchw, prep, *, batch_tile=None):
    """Forward pass of FCN.  x_nchw: (B, 1, H, W) float32 -> (B, 8)."""
    (w1r, b1r, w2r, b2r, w3r, b3r, w4r, b4r,
     fc1wr, fc1br, fc2wr, fc2br) = prep
    B, cin, H, W = x_nchw.shape
    assert cin == 1, "FCN expects in_channels=1"

    h2, w2 = (H - 2) // 2, (W - 2) // 2
    h3, w3s = (h2 - 2) // 2, (w2 - 2) // 2
    assert H >= 3 and W >= 3 and h2 >= 3 and w2 >= 3
    assert h3 == 1, "fc1 expects a (1, 5)-style final spatial map"
    Wp = _round_up(W, 8)                # 8-sublane-aligned canvas row pitch
    Wp2 = _round_up(w2, 8)

    c1 = w1r.shape[1]
    c2o = w2r.shape[1] // 9
    c3o = w3r.shape[1]
    c4o = w4r.shape[1] // 9
    assert w2r.shape[0] == c1 and w3r.shape[0] == c2o and w4r.shape[0] == c3o
    assert fc1wr.shape[0] == h3 * w3s * c4o, "input spatial size incompatible with fc1"

    # batch tile: one grid step for small B; multiples of 8 otherwise (block rule).
    if batch_tile is None:
        batch_tile = B if B <= 8 else (8 if B % 8 == 0 else B)
    bt = batch_tile
    assert B % bt == 0 and (bt == B or bt % 8 == 0)
    grid = (B // bt,)

    n1t, n2t = bt * H * Wp, bt * h2 * Wp2
    nacc2 = n1t - (2 * Wp + 2)
    nm1 = nacc2 - (Wp + 1)
    nacc4 = n2t - (2 * Wp2 + 2)
    nm2 = nacc4 - (Wp2 + 1)
    # pooled picks must stay inside the (truncated) neighborhood-max canvases
    assert (bt - 1) * H * Wp + 2 * (h2 - 1) * Wp + 2 * (w2 - 1) < nm1
    assert (bt - 1) * h2 * Wp2 + 2 * (w3s - 1) < nm2

    # (B,1,H,W) -> zero-pad width to Wp -> pixel-row canvas (B*H*Wp, 1)
    xp = jnp.pad(x_nchw.astype(jnp.float32),
                 ((0, 0), (0, 0), (0, 0), (0, Wp - W)))
    x2d = xp.reshape(B * H * Wp, 1)

    full = lambda a: pl.BlockSpec(a.shape, lambda i: (0, 0))
    weights = (w1r, b1r, w2r, b2r, w3r, b3r, w4r, b4r, fc1wr, fc1br, fc2wr, fc2br)
    nf2 = fc2wr.shape[1]
    kern = functools.partial(_fcn_kernel, bt=bt, H=H, W=W, Wp=Wp, Wp2=Wp2)

    return pl.pallas_call(
        kern,
        out_shape=jax.ShapeDtypeStruct((B, nf2), jnp.float32),
        grid=grid,
        in_specs=[pl.BlockSpec((n1t, 1), lambda i: (i, 0))]
                 + [full(a) for a in weights],
        out_specs=pl.BlockSpec((bt, nf2), lambda i: (i, 0)),
        scratch_shapes=[
            pltpu.VMEM((n1t, c1), jnp.bfloat16),              # act1 canvas (bf16)
            pltpu.VMEM((n1t, 9 * c2o), jnp.float32),          # z1: wide conv2 matmul
            pltpu.VMEM((nacc2, c2o), jnp.float32),            # acc2
            pltpu.VMEM((nm1, c2o), jnp.float32),              # m1: pool1 max canvas
            pltpu.VMEM((n2t, c2o), jnp.bfloat16),             # act2 canvas (bf16)
            pltpu.VMEM((n2t, c3o), jnp.bfloat16),             # act3 canvas (bf16)
            pltpu.VMEM((n2t, 9 * c4o), jnp.float32),          # z4: wide conv4 matmul
            pltpu.VMEM((nacc4, c4o), jnp.float32),            # acc4
            pltpu.VMEM((nm2, c4o), jnp.float32),              # m2: pool2 max canvas
        ],
        compiler_params=pltpu.CompilerParams(
            dimension_semantics=("parallel",)),
    )(x2d, *weights)


# --------------------------- reference & test glue ---------------------------

def init_params(key):
    """Deterministic synthetic parameters with the module's __init__ shapes."""
    ks = jax.random.split(key, 12)
    n = lambda k, shape, s=0.05: s * jax.random.normal(k, shape, jnp.float32)
    return {
        "conv1_w": n(ks[0], (32, 1, 1, 1)),   "conv1_b": n(ks[1], (32,)),
        "conv2_w": n(ks[2], (32, 32, 3, 3)),  "conv2_b": n(ks[3], (32,)),
        "conv3_w": n(ks[4], (64, 32, 1, 1)),  "conv3_b": n(ks[5], (64,)),
        "conv4_w": n(ks[6], (64, 64, 3, 3)),  "conv4_b": n(ks[7], (64,)),
        "fc1_w":   n(ks[8], (512, 320)),      "fc1_b":  n(ks[9], (512,)),
        "fc2_w":   n(ks[10], (8, 512)),       "fc2_b":  n(ks[11], (8,)),
    }


def fcn_reference(x, p):
    """Plain-JAX (XLA, f32) reference mirroring the PyTorch forward."""
    dn = ("NCHW", "OIHW", "NCHW")

    def conv(y, w, b):
        y = jax.lax.conv_general_dilated(y, w, (1, 1), "VALID", dimension_numbers=dn)
        return jax.nn.relu(y + b.reshape(1, -1, 1, 1))

    def mp(y):
        return jax.lax.reduce_window(y, -jnp.inf, jax.lax.max,
                                     (1, 1, 2, 2), (1, 1, 2, 2), "VALID")

    y = conv(x, p["conv1_w"], p["conv1_b"])
    y = conv(y, p["conv2_w"], p["conv2_b"])
    y = mp(y)
    y = conv(y, p["conv3_w"], p["conv3_b"])
    y = conv(y, p["conv4_w"], p["conv4_b"])
    y = mp(y)
    y = y.reshape(y.shape[0], -1)                       # NCHW flatten
    y = y @ p["fc1_w"].T + p["fc1_b"]
    y = y @ p["fc2_w"].T + p["fc2_b"]
    return y


if __name__ == "__main__":
    key = jax.random.PRNGKey(0)
    k_in, k_par = jax.random.split(key)

    # Input chosen so the spatial path ends at (1, 5): 10x26 -> conv2 8x24 ->
    # pool 4x12 -> conv4 2x10 -> pool 1x5  => flatten 64*1*5 = 320.
    x = jax.random.normal(k_in, (2, 1, 10, 26), jnp.float32)   # NCHW like PyTorch
    params = init_params(k_par)
    prep = prepare_params(params)

    out = jax.jit(fcn_forward)(x, prep)
    out = jax.block_until_ready(out)
    ref = jax.block_until_ready(fcn_reference(x, params))

    assert out.shape == (2, 8) and out.dtype == jnp.float32
    err = float(jnp.max(jnp.abs(out - ref)))
    assert err < 5e-2, f"kernel mismatch vs reference: max abs err {err}"
    print("KERNEL_OK")
</pallas_src>

<mosaic_0001>
module attributes {stable_mosaic.version = 11 : i64} {
  func.func @_fcn_kernel(%arg0: i32, %arg1: memref<640x1xf32, #tpu.memory_space<vmem>>, %arg2: memref<1x32xf32, #tpu.memory_space<vmem>>, %arg3: memref<1x32xf32, #tpu.memory_space<vmem>>, %arg4: memref<32x288xbf16, #tpu.memory_space<vmem>>, %arg5: memref<1x32xf32, #tpu.memory_space<vmem>>, %arg6: memref<32x64xbf16, #tpu.memory_space<vmem>>, %arg7: memref<1x64xf32, #tpu.memory_space<vmem>>, %arg8: memref<64x576xbf16, #tpu.memory_space<vmem>>, %arg9: memref<1x64xf32, #tpu.memory_space<vmem>>, %arg10: memref<320x512xbf16, #tpu.memory_space<vmem>>, %arg11: memref<1x512xf32, #tpu.memory_space<vmem>>, %arg12: memref<512x8xbf16, #tpu.memory_space<vmem>>, %arg13: memref<1x8xf32, #tpu.memory_space<vmem>>, %arg14: memref<2x8xf32, #tpu.memory_space<vmem>>, %arg15: memref<640x32xbf16, #tpu.memory_space<vmem>>, %arg16: memref<640x288xf32, #tpu.memory_space<vmem>>, %arg17: memref<574x32xf32, #tpu.memory_space<vmem>>, %arg18: memref<541x32xf32, #tpu.memory_space<vmem>>, %arg19: memref<128x32xbf16, #tpu.memory_space<vmem>>, %arg20: memref<128x64xbf16, #tpu.memory_space<vmem>>, %arg21: memref<128x576xf32, #tpu.memory_space<vmem>>, %arg22: memref<94x64xf32, #tpu.memory_space<vmem>>, %arg23: memref<77x64xf32, #tpu.memory_space<vmem>>) attributes {dimension_semantics = [#tpu.dimension_semantics<parallel>], iteration_bounds = array<i64: 1>, scalar_prefetch = 0 : i64, scratch_operands = 9 : i64, tpu.core_type = #tpu.core_type<tc>, window_params = [{transform_indices = @transform_0, window_bounds = array<i64: 640, 1>}, {pipeline_mode = #tpu.pipeline_mode<synchronous>, transform_indices = @transform_1, window_bounds = array<i64: 1, 32>}, {pipeline_mode = #tpu.pipeline_mode<synchronous>, transform_indices = @transform_2, window_bounds = array<i64: 1, 32>}, {pipeline_mode = #tpu.pipeline_mode<synchronous>, transform_indices = @transform_3, window_bounds = array<i64: 32, 288>}, {pipeline_mode = #tpu.pipeline_mode<synchronous>, transform_indices = @transform_4, window_bounds = array<i64: 1, 32>}, {pipeline_mode = #tpu.pipeline_mode<synchronous>, transform_indices = @transform_5, window_bounds = array<i64: 32, 64>}, {pipeline_mode = #tpu.pipeline_mode<synchronous>, transform_indices = @transform_6, window_bounds = array<i64: 1, 64>}, {pipeline_mode = #tpu.pipeline_mode<synchronous>, transform_indices = @transform_7, window_bounds = array<i64: 64, 576>}, {pipeline_mode = #tpu.pipeline_mode<synchronous>, transform_indices = @transform_8, window_bounds = array<i64: 1, 64>}, {pipeline_mode = #tpu.pipeline_mode<synchronous>, transform_indices = @transform_9, window_bounds = array<i64: 320, 512>}, {pipeline_mode = #tpu.pipeline_mode<synchronous>, transform_indices = @transform_10, window_bounds = array<i64: 1, 512>}, {pipeline_mode = #tpu.pipeline_mode<synchronous>, transform_indices = @transform_11, window_bounds = array<i64: 512, 8>}, {pipeline_mode = #tpu.pipeline_mode<synchronous>, transform_indices = @transform_12, window_bounds = array<i64: 1, 8>}, {transform_indices = @transform_13, window_bounds = array<i64: 2, 8>}]} {
    %c0 = arith.constant 0 : index
    %c0_0 = arith.constant 0 : index
    %0 = vector.load %arg1[%c0, %c0_0] : memref<640x1xf32, #tpu.memory_space<vmem>>, vector<640x1xf32>
    %c0_1 = arith.constant 0 : index
    %c0_2 = arith.constant 0 : index
    %1 = vector.load %arg2[%c0_1, %c0_2] : memref<1x32xf32, #tpu.memory_space<vmem>>, vector<1x32xf32>
    %2 = vector.broadcast %0 : vector<640x1xf32> to vector<640x32xf32>
    %3 = vector.broadcast %1 : vector<1x32xf32> to vector<640x32xf32>
    %4 = arith.mulf %2, %3 : vector<640x32xf32>
    %c0_3 = arith.constant 0 : index
    %c0_4 = arith.constant 0 : index
    %5 = vector.load %arg3[%c0_3, %c0_4] : memref<1x32xf32, #tpu.memory_space<vmem>>, vector<1x32xf32>
    %6 = vector.broadcast %5 : vector<1x32xf32> to vector<640x32xf32>
    %7 = arith.addf %4, %6 : vector<640x32xf32>
    %cst = arith.constant 0.000000e+00 : f32
    %8 = vector.broadcast %cst : f32 to vector<640x32xf32>
    %9 = arith.maximumf %7, %8 : vector<640x32xf32>
    %10 = arith.truncf %9 : vector<640x32xf32> to vector<640x32xbf16>
    %c0_5 = arith.constant 0 : index
    %c0_6 = arith.constant 0 : index
    %11 = vector.load %arg15[%c0_5, %c0_6] : memref<640x32xbf16, #tpu.memory_space<vmem>>, vector<640x32xbf16>
    tpu.vector_store %arg15[%c0_5, %c0_6], %10 {strides = array<i32>} : memref<640x32xbf16, #tpu.memory_space<vmem>>, vector<640x32xbf16>,
    %c0_7 = arith.constant 0 : index
    %c0_8 = arith.constant 0 : index
    %12 = vector.load %arg15[%c0_7, %c0_8] : memref<640x32xbf16, #tpu.memory_space<vmem>>, vector<640x32xbf16>
    %c0_9 = arith.constant 0 : index
    %c0_10 = arith.constant 0 : index
    %13 = vector.load %arg4[%c0_9, %c0_10] : memref<32x288xbf16, #tpu.memory_space<vmem>>, vector<32x288xbf16>
    %cst_11 = arith.constant dense<0.000000e+00> : vector<640x288xf32>
    %14 = tpu.matmul %12, %13, %cst_11 {dimension_numbers = #tpu.dot_dimension_numbers<[1], [0], [0], [1], [0, 0, 1, 1], [], []>} : vector<640x32xbf16>, vector<32x288xbf16>, vector<640x288xf32> -> vector<640x288xf32>
    %c0_12 = arith.constant 0 : index
    %c0_13 = arith.constant 0 : index
    %15 = vector.load %arg16[%c0_12, %c0_13] : memref<640x288xf32, #tpu.memory_space<vmem>>, vector<640x288xf32>
    tpu.vector_store %arg16[%c0_12, %c0_13], %14 {strides = array<i32>} : memref<640x288xf32, #tpu.memory_space<vmem>>, vector<640x288xf32>,
    %c0_14 = arith.constant 0 : index
    %c0_15 = arith.constant 0 : index
    %16 = vector.load %arg16[%c0_14, %c0_15] : memref<640x288xf32, #tpu.memory_space<vmem>>, vector<574x32xf32>
    %c1 = arith.constant 1 : index
    %c32 = arith.constant 32 : index
    %17 = vector.load %arg16[%c1, %c32] : memref<640x288xf32, #tpu.memory_space<vmem>>, vector<574x32xf32>
    %18 = arith.addf %16, %17 : vector<574x32xf32>
    %c2 = arith.constant 2 : index
    %c64 = arith.constant 64 : index
    %19 = vector.load %arg16[%c2, %c64] : memref<640x288xf32, #tpu.memory_space<vmem>>, vector<574x32xf32>
    %20 = arith.addf %18, %19 : vector<574x32xf32>
    %c32_16 = arith.constant 32 : index
    %c96 = arith.constant 96 : index
    %21 = vector.load %arg16[%c32_16, %c96] : memref<640x288xf32, #tpu.memory_space<vmem>>, vector<574x32xf32>
    %22 = arith.addf %20, %21 : vector<574x32xf32>
    %c33 = arith.constant 33 : index
    %c128 = arith.constant 128 : index
    %23 = vector.load %arg16[%c33, %c128] : memref<640x288xf32, #tpu.memory_space<vmem>>, vector<574x32xf32>
    %24 = arith.addf %22, %23 : vector<574x32xf32>
    %c34 = arith.constant 34 : index
    %c160 = arith.constant 160 : index
    %25 = vector.load %arg16[%c34, %c160] : memref<640x288xf32, #tpu.memory_space<vmem>>, vector<574x32xf32>
    %26 = arith.addf %24, %25 : vector<574x32xf32>
    %c64_17 = arith.constant 64 : index
    %c192 = arith.constant 192 : index
    %27 = vector.load %arg16[%c64_17, %c192] : memref<640x288xf32, #tpu.memory_space<vmem>>, vector<574x32xf32>
    %28 = arith.addf %26, %27 : vector<574x32xf32>
    %c65 = arith.constant 65 : index
    %c224 = arith.constant 224 : index
    %29 = vector.load %arg16[%c65, %c224] : memref<640x288xf32, #tpu.memory_space<vmem>>, vector<574x32xf32>
    %30 = arith.addf %28, %29 : vector<574x32xf32>
    %c66 = arith.constant 66 : index
    %c256 = arith.constant 256 : index
    %31 = vector.load %arg16[%c66, %c256] : memref<640x288xf32, #tpu.memory_space<vmem>>, vector<574x32xf32>
    %32 = arith.addf %30, %31 : vector<574x32xf32>
    %c0_18 = arith.constant 0 : index
    %c0_19 = arith.constant 0 : index
    %33 = vector.load %arg17[%c0_18, %c0_19] : memref<574x32xf32, #tpu.memory_space<vmem>>, vector<574x32xf32>
    tpu.vector_store %arg17[%c0_18, %c0_19], %32 {strides = array<i32>} : memref<574x32xf32, #tpu.memory_space<vmem>>, vector<574x32xf32>,
    %c0_20 = arith.constant 0 : index
    %c0_21 = arith.constant 0 : index
    %34 = vector.load %arg17[%c0_20, %c0_21] : memref<574x32xf32, #tpu.memory_space<vmem>>, vector<541x32xf32>
    %c1_22 = arith.constant 1 : index
    %c0_23 = arith.constant 0 : index
    %35 = vector.load %arg17[%c1_22, %c0_23] : memref<574x32xf32, #tpu.memory_space<vmem>>, vector<541x32xf32>
    %36 = arith.maximumf %34, %35 : vector<541x32xf32>
    %c32_24 = arith.constant 32 : index
    %c0_25 = arith.constant 0 : index
    %37 = vector.load %arg17[%c32_24, %c0_25] : memref<574x32xf32, #tpu.memory_space<vmem>>, vector<541x32xf32>
    %c33_26 = arith.constant 33 : index
    %c0_27 = arith.constant 0 : index
    %38 = vector.load %arg17[%c33_26, %c0_27] : memref<574x32xf32, #tpu.memory_space<vmem>>, vector<541x32xf32>
    %39 = arith.maximumf %37, %38 : vector<541x32xf32>
    %40 = arith.maximumf %36, %39 : vector<541x32xf32>
    %c0_28 = arith.constant 0 : index
    %c0_29 = arith.constant 0 : index
    %41 = vector.load %arg5[%c0_28, %c0_29] : memref<1x32xf32, #tpu.memory_space<vmem>>, vector<1x32xf32>
    %42 = vector.broadcast %41 : vector<1x32xf32> to vector<541x32xf32>
    %43 = arith.addf %40, %42 : vector<541x32xf32>
    %cst_30 = arith.constant 0.000000e+00 : f32
    %44 = vector.broadcast %cst_30 : f32 to vector<541x32xf32>
    %45 = arith.maximumf %43, %44 : vector<541x32xf32>
    %c0_31 = arith.constant 0 : index
    %c0_32 = arith.constant 0 : index
    %46 = vector.load %arg18[%c0_31, %c0_32] : memref<541x32xf32, #tpu.memory_space<vmem>>, vector<541x32xf32>
    tpu.vector_store %arg18[%c0_31, %c0_32], %45 {strides = array<i32>} : memref<541x32xf32, #tpu.memory_space<vmem>>, vector<541x32xf32>,
    %cst_33 = arith.constant 0.000000e+00 : bf16
    %47 = vector.broadcast %cst_33 : bf16 to vector<128x32xbf16>
    %c0_34 = arith.constant 0 : index
    %c0_35 = arith.constant 0 : index
    %48 = vector.load %arg19[%c0_34, %c0_35] : memref<128x32xbf16, #tpu.memory_space<vmem>>, vector<128x32xbf16>
    tpu.vector_store %arg19[%c0_34, %c0_35], %47 {strides = array<i32>} : memref<128x32xbf16, #tpu.memory_space<vmem>>, vector<128x32xbf16>,
    %c0_36 = arith.constant 0 : index
    %c0_37 = arith.constant 0 : index
    %49 = tpu.strided_load %arg18[%c0_36, %c0_37] {strides = array<i32: 2, 1>} : memref<541x32xf32, #tpu.memory_space<vmem>>, vector<12x32xf32>
    %50 = arith.truncf %49 : vector<12x32xf32> to vector<12x32xbf16>
    %c0_38 = arith.constant 0 : index
    %c0_39 = arith.constant 0 : index
    %51 = vector.load %arg19[%c0_38, %c0_39] : memref<128x32xbf16, #tpu.memory_space<vmem>>, vector<12x32xbf16>
    tpu.vector_store %arg19[%c0_38, %c0_39], %50 {strides = array<i32>} : memref<128x32xbf16, #tpu.memory_space<vmem>>, vector<12x32xbf16>,
    %c64_40 = arith.constant 64 : index
    %c0_41 = arith.constant 0 : index
    %52 = tpu.strided_load %arg18[%c64_40, %c0_41] {strides = array<i32: 2, 1>} : memref<541x32xf32, #tpu.memory_space<vmem>>, vector<12x32xf32>
    %53 = arith.truncf %52 : vector<12x32xf32> to vector<12x32xbf16>
    %c16 = arith.constant 16 : index
    %c0_42 = arith.constant 0 : index
    %54 = vector.load %arg19[%c16, %c0_42] : memref<128x32xbf16, #tpu.memory_space<vmem>>, vector<12x32xbf16>
    tpu.vector_store %arg19[%c16, %c0_42], %53 {strides = array<i32>} : memref<128x32xbf16, #tpu.memory_space<vmem>>, vector<12x32xbf16>,
    %c128_43 = arith.constant 128 : index
    %c0_44 = arith.constant 0 : index
    %55 = tpu.strided_load %arg18[%c128_43, %c0_44] {strides = array<i32: 2, 1>} : memref<541x32xf32, #tpu.memory_space<vmem>>, vector<12x32xf32>
    %56 = arith.truncf %55 : vector<12x32xf32> to vector<12x32xbf16>
    %c32_45 = arith.constant 32 : index
    %c0_46 = arith.constant 0 : index
    %57 = vector.load %arg19[%c32_45, %c0_46] : memref<128x32xbf16, #tpu.memory_space<vmem>>, vector<12x32xbf16>
    tpu.vector_store %arg19[%c32_45, %c0_46], %56 {strides = array<i32>} : memref<128x32xbf16, #tpu.memory_space<vmem>>, vector<12x32xbf16>,
    %c192_47 = arith.constant 192 : index
    %c0_48 = arith.constant 0 : index
    %58 = tpu.strided_load %arg18[%c192_47, %c0_48] {strides = array<i32: 2, 1>} : memref<541x32xf32, #tpu.memory_space<vmem>>, vector<12x32xf32>
    %59 = arith.truncf %58 : vector<12x32xf32> to vector<12x32xbf16>
    %c48 = arith.constant 48 : index
    %c0_49 = arith.constant 0 : index
    %60 = vector.load %arg19[%c48, %c0_49] : memref<128x32xbf16, #tpu.memory_space<vmem>>, vector<12x32xbf16>
    tpu.vector_store %arg19[%c48, %c0_49], %59 {strides = array<i32>} : memref<128x32xbf16, #tpu.memory_space<vmem>>, vector<12x32xbf16>,
    %c320 = arith.constant 320 : index
    %c0_50 = arith.constant 0 : index
    %61 = tpu.strided_load %arg18[%c320, %c0_50] {strides = array<i32: 2, 1>} : memref<541x32xf32, #tpu.memory_space<vmem>>, vector<12x32xf32>
    %62 = arith.truncf %61 : vector<12x32xf32> to vector<12x32xbf16>
    %c64_51 = arith.constant 64 : index
    %c0_52 = arith.constant 0 : index
    %63 = vector.load %arg19[%c64_51, %c0_52] : memref<128x32xbf16, #tpu.memory_space<vmem>>, vector<12x32xbf16>
    tpu.vector_store %arg19[%c64_51, %c0_52], %62 {strides = array<i32>} : memref<128x32xbf16, #tpu.memory_space<vmem>>, vector<12x32xbf16>,
    %c384 = arith.constant 384 : index
    %c0_53 = arith.constant 0 : index
    %64 = tpu.strided_load %arg18[%c384, %c0_53] {strides = array<i32: 2, 1>} : memref<541x32xf32, #tpu.memory_space<vmem>>, vector<12x32xf32>
    %65 = arith.truncf %64 : vector<12x32xf32> to vector<12x32xbf16>
    %c80 = arith.constant 80 : index
    %c0_54 = arith.constant 0 : index
    %66 = vector.load %arg19[%c80, %c0_54] : memref<128x32xbf16, #tpu.memory_space<vmem>>, vector<12x32xbf16>
    tpu.vector_store %arg19[%c80, %c0_54], %65 {strides = array<i32>} : memref<128x32xbf16, #tpu.memory_space<vmem>>, vector<12x32xbf16>,
    %c448 = arith.constant 448 : index
    %c0_55 = arith.constant 0 : index
    %67 = tpu.strided_load %arg18[%c448, %c0_55] {strides = array<i32: 2, 1>} : memref<541x32xf32, #tpu.memory_space<vmem>>, vector<12x32xf32>
    %68 = arith.truncf %67 : vector<12x32xf32> to vector<12x32xbf16>
    %c96_56 = arith.constant 96 : index
    %c0_57 = arith.constant 0 : index
    %69 = vector.load %arg19[%c96_56, %c0_57] : memref<128x32xbf16, #tpu.memory_space<vmem>>, vector<12x32xbf16>
    tpu.vector_store %arg19[%c96_56, %c0_57], %68 {strides = array<i32>} : memref<128x32xbf16, #tpu.memory_space<vmem>>, vector<12x32xbf16>,
    %c512 = arith.constant 512 : index
    %c0_58 = arith.constant 0 : index
    %70 = tpu.strided_load %arg18[%c512, %c0_58] {strides = array<i32: 2, 1>} : memref<541x32xf32, #tpu.memory_space<vmem>>, vector<12x32xf32>
    %71 = arith.truncf %70 : vector<12x32xf32> to vector<12x32xbf16>
    %c112 = arith.constant 112 : index
    %c0_59 = arith.constant 0 : index
    %72 = vector.load %arg19[%c112, %c0_59] : memref<128x32xbf16, #tpu.memory_space<vmem>>, vector<12x32xbf16>
    tpu.vector_store %arg19[%c112, %c0_59], %71 {strides = array<i32>} : memref<128x32xbf16, #tpu.memory_space<vmem>>, vector<12x32xbf16>,
    %c0_60 = arith.constant 0 : index
    %c0_61 = arith.constant 0 : index
    %73 = vector.load %arg19[%c0_60, %c0_61] : memref<128x32xbf16, #tpu.memory_space<vmem>>, vector<128x32xbf16>
    %c0_62 = arith.constant 0 : index
    %c0_63 = arith.constant 0 : index
    %74 = vector.load %arg6[%c0_62, %c0_63] : memref<32x64xbf16, #tpu.memory_space<vmem>>, vector<32x64xbf16>
    %cst_64 = arith.constant dense<0.000000e+00> : vector<128x64xf32>
    %75 = tpu.matmul %73, %74, %cst_64 {dimension_numbers = #tpu.dot_dimension_numbers<[1], [0], [0], [1], [0, 0, 1, 1], [], []>} : vector<128x32xbf16>, vector<32x64xbf16>, vector<128x64xf32> -> vector<128x64xf32>
    %c0_65 = arith.constant 0 : index
    %c0_66 = arith.constant 0 : index
    %76 = vector.load %arg7[%c0_65, %c0_66] : memref<1x64xf32, #tpu.memory_space<vmem>>, vector<1x64xf32>
    %77 = vector.broadcast %76 : vector<1x64xf32> to vector<128x64xf32>
    %78 = arith.addf %75, %77 : vector<128x64xf32>
    %cst_67 = arith.constant 0.000000e+00 : f32
    %79 = vector.broadcast %cst_67 : f32 to vector<128x64xf32>
    %80 = arith.maximumf %78, %79 : vector<128x64xf32>
    %81 = arith.truncf %80 : vector<128x64xf32> to vector<128x64xbf16>
    %c0_68 = arith.constant 0 : index
    %c0_69 = arith.constant 0 : index
    %82 = vector.load %arg20[%c0_68, %c0_69] : memref<128x64xbf16, #tpu.memory_space<vmem>>, vector<128x64xbf16>
    tpu.vector_store %arg20[%c0_68, %c0_69], %81 {strides = array<i32>} : memref<128x64xbf16, #tpu.memory_space<vmem>>, vector<128x64xbf16>,
    %c0_70 = arith.constant 0 : index
    %c0_71 = arith.constant 0 : index
    %83 = vector.load %arg20[%c0_70, %c0_71] : memref<128x64xbf16, #tpu.memory_space<vmem>>, vector<128x64xbf16>
    %c0_72 = arith.constant 0 : index
    %c0_73 = arith.constant 0 : index
    %84 = vector.load %arg8[%c0_72, %c0_73] : memref<64x576xbf16, #tpu.memory_space<vmem>>, vector<64x576xbf16>
    %cst_74 = arith.constant dense<0.000000e+00> : vector<128x576xf32>
    %85 = tpu.matmul %83, %84, %cst_74 {dimension_numbers = #tpu.dot_dimension_numbers<[1], [0], [0], [1], [0, 0, 1, 1], [], []>} : vector<128x64xbf16>, vector<64x576xbf16>, vector<128x576xf32> -> vector<128x576xf32>
    %c0_75 = arith.constant 0 : index
    %c0_76 = arith.constant 0 : index
    %86 = vector.load %arg21[%c0_75, %c0_76] : memref<128x576xf32, #tpu.memory_space<vmem>>, vector<128x576xf32>
    tpu.vector_store %arg21[%c0_75, %c0_76], %85 {strides = array<i32>} : memref<128x576xf32, #tpu.memory_space<vmem>>, vector<128x576xf32>,
    %c0_77 = arith.constant 0 : index
    %c0_78 = arith.constant 0 : index
    %87 = vector.load %arg21[%c0_77, %c0_78] : memref<128x576xf32, #tpu.memory_space<vmem>>, vector<94x64xf32>
    %c1_79 = arith.constant 1 : index
    %c64_80 = arith.constant 64 : index
    %88 = vector.load %arg21[%c1_79, %c64_80] : memref<128x576xf32, #tpu.memory_space<vmem>>, vector<94x64xf32>
    %89 = arith.addf %87, %88 : vector<94x64xf32>
    %c2_81 = arith.constant 2 : index
    %c128_82 = arith.constant 128 : index
    %90 = vector.load %arg21[%c2_81, %c128_82] : memref<128x576xf32, #tpu.memory_space<vmem>>, vector<94x64xf32>
    %91 = arith.addf %89, %90 : vector<94x64xf32>
    %c16_83 = arith.constant 16 : index
    %c192_84 = arith.constant 192 : index
    %92 = vector.load %arg21[%c16_83, %c192_84] : memref<128x576xf32, #tpu.memory_space<vmem>>, vector<94x64xf32>
    %93 = arith.addf %91, %92 : vector<94x64xf32>
    %c17 = arith.constant 17 : index
    %c256_85 = arith.constant 256 : index
    %94 = vector.load %arg21[%c17, %c256_85] : memref<128x576xf32, #tpu.memory_space<vmem>>, vector<94x64xf32>
    %95 = arith.addf %93, %94 : vector<94x64xf32>
    %c18 = arith.constant 18 : index
    %c320_86 = arith.constant 320 : index
    %96 = vector.load %arg21[%c18, %c320_86] : memref<128x576xf32, #tpu.memory_space<vmem>>, vector<94x64xf32>
    %97 = arith.addf %95, %96 : vector<94x64xf32>
    %c32_87 = arith.constant 32 : index
    %c384_88 = arith.constant 384 : index
    %98 = vector.load %arg21[%c32_87, %c384_88] : memref<128x576xf32, #tpu.memory_space<vmem>>, vector<94x64xf32>
    %99 = arith.addf %97, %98 : vector<94x64xf32>
    %c33_89 = arith.constant 33 : index
    %c448_90 = arith.constant 448 : index
    %100 = vector.load %arg21[%c33_89, %c448_90] : memref<128x576xf32, #tpu.memory_space<vmem>>, vector<94x64xf32>
    %101 = arith.addf %99, %100 : vector<94x64xf32>
    %c34_91 = arith.constant 34 : index
    %c512_92 = arith.constant 512 : index
    %102 = vector.load %arg21[%c34_91, %c512_92] : memref<128x576xf32, #tpu.memory_space<vmem>>, vector<94x64xf32>
    %103 = arith.addf %101, %102 : vector<94x64xf32>
    %c0_93 = arith.constant 0 : index
    %c0_94 = arith.constant 0 : index
    %104 = vector.load %arg22[%c0_93, %c0_94] : memref<94x64xf32, #tpu.memory_space<vmem>>, vector<94x64xf32>
    tpu.vector_store %arg22[%c0_93, %c0_94], %103 {strides = array<i32>} : memref<94x64xf32, #tpu.memory_space<vmem>>, vector<94x64xf32>,
    %c0_95 = arith.constant 0 : index
    %c0_96 = arith.constant 0 : index
    %105 = vector.load %arg22[%c0_95, %c0_96] : memref<94x64xf32, #tpu.memory_space<vmem>>, vector<77x64xf32>
    %c1_97 = arith.constant 1 : index
    %c0_98 = arith.constant 0 : index
    %106 = vector.load %arg22[%c1_97, %c0_98] : memref<94x64xf32, #tpu.memory_space<vmem>>, vector<77x64xf32>
    %107 = arith.maximumf %105, %106 : vector<77x64xf32>
    %c16_99 = arith.constant 16 : index
    %c0_100 = arith.constant 0 : index
    %108 = vector.load %arg22[%c16_99, %c0_100] : memref<94x64xf32, #tpu.memory_space<vmem>>, vector<77x64xf32>
    %c17_101 = arith.constant 17 : index
    %c0_102 = arith.constant 0 : index
    %109 = vector.load %arg22[%c17_101, %c0_102] : memref<94x64xf32, #tpu.memory_space<vmem>>, vector<77x64xf32>
    %110 = arith.maximumf %108, %109 : vector<77x64xf32>
    %111 = arith.maximumf %107, %110 : vector<77x64xf32>
    %c0_103 = arith.constant 0 : index
    %c0_104 = arith.constant 0 : index
    %112 = vector.load %arg9[%c0_103, %c0_104] : memref<1x64xf32, #tpu.memory_space<vmem>>, vector<1x64xf32>
    %113 = vector.broadcast %112 : vector<1x64xf32> to vector<77x64xf32>
    %114 = arith.addf %111, %113 : vector<77x64xf32>
    %cst_105 = arith.constant 0.000000e+00 : f32
    %115 = vector.broadcast %cst_105 : f32 to vector<77x64xf32>
    %116 = arith.maximumf %114, %115 : vector<77x64xf32>
    %c0_106 = arith.constant 0 : index
    %c0_107 = arith.constant 0 : index
    %117 = vector.load %arg23[%c0_106, %c0_107] : memref<77x64xf32, #tpu.memory_space<vmem>>, vector<77x64xf32>
    tpu.vector_store %arg23[%c0_106, %c0_107], %116 {strides = array<i32>} : memref<77x64xf32, #tpu.memory_space<vmem>>, vector<77x64xf32>,
    %c0_108 = arith.constant 0 : index
    %c0_109 = arith.constant 0 : index
    %118 = tpu.strided_load %arg23[%c0_108, %c0_109] {strides = array<i32: 64, 1>} : memref<77x64xf32, #tpu.memory_space<vmem>>, vector<2x64xf32>
    %c2_110 = arith.constant 2 : index
    %c0_111 = arith.constant 0 : index
    %119 = tpu.strided_load %arg23[%c2_110, %c0_111] {strides = array<i32: 64, 1>} : memref<77x64xf32, #tpu.memory_space<vmem>>, vector<2x64xf32>
    %c4 = arith.constant 4 : index
    %c0_112 = arith.constant 0 : index
    %120 = tpu.strided_load %arg23[%c4, %c0_112] {strides = array<i32: 64, 1>} : memref<77x64xf32, #tpu.memory_space<vmem>>, vector<2x64xf32>
    %c6 = arith.constant 6 : index
    %c0_113 = arith.constant 0 : index
    %121 = tpu.strided_load %arg23[%c6, %c0_113] {strides = array<i32: 64, 1>} : memref<77x64xf32, #tpu.memory_space<vmem>>, vector<2x64xf32>
    %c8 = arith.constant 8 : index
    %c0_114 = arith.constant 0 : index
    %122 = tpu.strided_load %arg23[%c8, %c0_114] {strides = array<i32: 64, 1>} : memref<77x64xf32, #tpu.memory_space<vmem>>, vector<2x64xf32>
    %123 = tpu.concatenate %118, %119, %120, %121, %122 in 1 : vector<2x64xf32>, vector<2x64xf32>, vector<2x64xf32>, vector<2x64xf32>, vector<2x64xf32> -> vector<2x320xf32>
    %124 = arith.truncf %123 : vector<2x320xf32> to vector<2x320xbf16>
    %c0_115 = arith.constant 0 : index
    %c0_116 = arith.constant 0 : index
    %125 = vector.load %arg10[%c0_115, %c0_116] : memref<320x512xbf16, #tpu.memory_space<vmem>>, vector<320x512xbf16>
    %cst_117 = arith.constant dense<0.000000e+00> : vector<2x512xf32>
    %126 = tpu.matmul %124, %125, %cst_117 {dimension_numbers = #tpu.dot_dimension_numbers<[1], [0], [0], [1], [0, 0, 1, 1], [], []>} : vector<2x320xbf16>, vector<320x512xbf16>, vector<2x512xf32> -> vector<2x512xf32>
    %c0_118 = arith.constant 0 : index
    %c0_119 = arith.constant 0 : index
    %127 = vector.load %arg11[%c0_118, %c0_119] : memref<1x512xf32, #tpu.memory_space<vmem>>, vector<1x512xf32>
    %128 = vector.broadcast %127 : vector<1x512xf32> to vector<2x512xf32>
    %129 = arith.addf %126, %128 : vector<2x512xf32>
    %130 = arith.truncf %129 : vector<2x512xf32> to vector<2x512xbf16>
    %c0_120 = arith.constant 0 : index
    %c0_121 = arith.constant 0 : index
    %131 = vector.load %arg12[%c0_120, %c0_121] : memref<512x8xbf16, #tpu.memory_space<vmem>>, vector<512x8xbf16>
    %cst_122 = arith.constant dense<0.000000e+00> : vector<2x8xf32>
    %132 = tpu.matmul %130, %131, %cst_122 {dimension_numbers = #tpu.dot_dimension_numbers<[1], [0], [0], [1], [0, 0, 1, 1], [], []>} : vector<2x512xbf16>, vector<512x8xbf16>, vector<2x8xf32> -> vector<2x8xf32>
    %c0_123 = arith.constant 0 : index
    %c0_124 = arith.constant 0 : index
    %133 = vector.load %arg13[%c0_123, %c0_124] : memref<1x8xf32, #tpu.memory_space<vmem>>, vector<1x8xf32>
    %134 = vector.broadcast %133 : vector<1x8xf32> to vector<2x8xf32>
    %135 = arith.addf %132, %134 : vector<2x8xf32>
    %c0_125 = arith.constant 0 : index
    %c0_126 = arith.constant 0 : index
    %136 = vector.load %arg14[%c0_125, %c0_126] : memref<2x8xf32, #tpu.memory_space<vmem>>, vector<2x8xf32>
    tpu.vector_store %arg14[%c0_125, %c0_126], %135 {strides = array<i32>} : memref<2x8xf32, #tpu.memory_space<vmem>>, vector<2x8xf32>,
    return
  }
  func.func @transform_0(%arg0: i32) -> (i32, i32) {
    %c0_i32 = arith.constant 0 : i32
    %c0_i32_0 = arith.constant 0 : i32
    return %arg0, %c0_i32 : i32, i32
  }
  func.func @transform_1(%arg0: i32) -> (i32, i32) {
    %c0_i32 = arith.constant 0 : i32
    %c0_i32_0 = arith.constant 0 : i32
    %c0_i32_1 = arith.constant 0 : i32
    return %c0_i32, %c0_i32_0 : i32, i32
  }
  func.func @transform_2(%arg0: i32) -> (i32, i32) {
    %c0_i32 = arith.constant 0 : i32
    %c0_i32_0 = arith.constant 0 : i32
    %c0_i32_1 = arith.constant 0 : i32
    return %c0_i32, %c0_i32_0 : i32, i32
  }
  func.func @transform_3(%arg0: i32) -> (i32, i32) {
    %c0_i32 = arith.constant 0 : i32
    %c0_i32_0 = arith.constant 0 : i32
    %c0_i32_1 = arith.constant 0 : i32
    return %c0_i32, %c0_i32_0 : i32, i32
  }
  func.func @transform_4(%arg0: i32) -> (i32, i32) {
    %c0_i32 = arith.constant 0 : i32
    %c0_i32_0 = arith.constant 0 : i32
    %c0_i32_1 = arith.constant 0 : i32
    return %c0_i32, %c0_i32_0 : i32, i32
  }
  func.func @transform_5(%arg0: i32) -> (i32, i32) {
    %c0_i32 = arith.constant 0 : i32
    %c0_i32_0 = arith.constant 0 : i32
    %c0_i32_1 = arith.constant 0 : i32
    return %c0_i32, %c0_i32_0 : i32, i32
  }
  func.func @transform_6(%arg0: i32) -> (i32, i32) {
    %c0_i32 = arith.constant 0 : i32
    %c0_i32_0 = arith.constant 0 : i32
    %c0_i32_1 = arith.constant 0 : i32
    return %c0_i32, %c0_i32_0 : i32, i32
  }
  func.func @transform_7(%arg0: i32) -> (i32, i32) {
    %c0_i32 = arith.constant 0 : i32
    %c0_i32_0 = arith.constant 0 : i32
    %c0_i32_1 = arith.constant 0 : i32
    return %c0_i32, %c0_i32_0 : i32, i32
  }
  func.func @transform_8(%arg0: i32) -> (i32, i32) {
    %c0_i32 = arith.constant 0 : i32
    %c0_i32_0 = arith.constant 0 : i32
    %c0_i32_1 = arith.constant 0 : i32
    return %c0_i32, %c0_i32_0 : i32, i32
  }
  func.func @transform_9(%arg0: i32) -> (i32, i32) {
    %c0_i32 = arith.constant 0 : i32
    %c0_i32_0 = arith.constant 0 : i32
    %c0_i32_1 = arith.constant 0 : i32
    return %c0_i32, %c0_i32_0 : i32, i32
  }
  func.func @transform_10(%arg0: i32) -> (i32, i32) {
    %c0_i32 = arith.constant 0 : i32
    %c0_i32_0 = arith.constant 0 : i32
    %c0_i32_1 = arith.constant 0 : i32
    return %c0_i32, %c0_i32_0 : i32, i32
  }
  func.func @transform_11(%arg0: i32) -> (i32, i32) {
    %c0_i32 = arith.constant 0 : i32
    %c0_i32_0 = arith.constant 0 : i32
    %c0_i32_1 = arith.constant 0 : i32
    return %c0_i32, %c0_i32_0 : i32, i32
  }
  func.func @transform_12(%arg0: i32) -> (i32, i32) {
    %c0_i32 = arith.constant 0 : i32
    %c0_i32_0 = arith.constant 0 : i32
    %c0_i32_1 = arith.constant 0 : i32
    return %c0_i32, %c0_i32_0 : i32, i32
  }
  func.func @transform_13(%arg0: i32) -> (i32, i32) {
    %c0_i32 = arith.constant 0 : i32
    %c0_i32_0 = arith.constant 0 : i32
    return %arg0, %c0_i32 : i32, i32
  }
}

</mosaic_0001>

<bundles_post_ra>
// kernel: fcn_forward.1
= control target key start
LH: loop header
LB: loop body
LE: loop exit
PB: predicated region body
PF: predicated region fallthrough
CT: control target
= control target key end

     0   :  { %vm1100_vm0 = vcmask 257024   ;;  %v16023_v2 = vmov 0   ;;  %s16005_s0 = inlined_call_operand.vmem [shape: f32[640,1], index: 0, kind: input, shape index: {}]   ;;  %s16006_s1 = inlined_call_operand.vmem [shape: f32[1,32], index: 1, kind: input, shape index: {}]   ;;  %s16007_s2 = inlined_call_operand.vmem [shape: f32[1,32], index: 2, kind: input, shape index: {}]   ;;  %s16008_s3 = inlined_call_operand.vmem [shape: bf16[32,288], index: 3, kind: input, shape index: {}]   ;;  %s16009_s4 = inlined_call_operand.vmem [shape: f32[1,32], index: 4, kind: input, shape index: {}]   ;;  %s16010_s5 = inlined_call_operand.vmem [shape: bf16[32,64], index: 5, kind: input, shape index: {}]   ;;  %s16011_s6 = inlined_call_operand.vmem [shape: f32[1,64], index: 6, kind: input, shape index: {}]   ;;  %s16012_s7 = inlined_call_operand.vmem [shape: bf16[64,576], index: 7, kind: input, shape index: {}]   ;;  %s16013_s8 = inlined_call_operand.vmem [shape: f32[1,64], index: 8, kind: input, shape index: {}]   ;;  %s16014_s9 = inlined_call_operand.vmem [shape: bf16[320,512], index: 9, kind: input, shape index: {}]   ;;  %s16015_s10 = inlined_call_operand.vmem [shape: f32[1,512], index: 10, kind: input, shape index: {}]   ;;  %s16016_s11 = inlined_call_operand.vmem [shape: bf16[512,8], index: 11, kind: input, shape index: {}]   ;;  %s16017_s12 = inlined_call_operand.vmem [shape: f32[1,8], index: 12, kind: input, shape index: {}]   ;;  %s16018_s13 = inlined_call_operand.hbm [shape: f32[2,8], index: 13, kind: output, shape index: {}]  }
   0x1   :  { %v48_v0 = vld [vmem:[%s16005_s0 + $0x10] sm:$0xff]  ;;  %v46_v1 = vld [vmem:[%s16005_s0] sm:$0xff]  ;;  %9960 = vset.pattern.permute.xlu1 %v16023_v2  ;;  %9959 = vset.pattern.permute.xlu0 %v16023_v2  ;;  %6427 = vst.msk [vmem:[#allocation6] sm:$0xf] %vm1100_vm0, %v16023_v2  ;;  %6428 = vst.msk [vmem:[#allocation6 + $0x4] sm:$0xf] %vm1100_vm0, %v16023_v2 }
   0x2   :  { %6429 = vst.msk [vmem:[#allocation6 + $0x8] sm:$0xf] %vm1100_vm0, %v16023_v2  ;;  %6430 = vst.msk [vmem:[#allocation6 + $0xc] sm:$0xf] %vm1100_vm0, %v16023_v2  ;;  %139 = vperm.xlu1 %9960, %v48_v0   ;;  %129 = vperm.xlu0 %9959, %v46_v1   ;;  %v49_v3 = vld [vmem:[%s16005_s0 + $0x18] sm:$0xff]  ;;  %v47_v4 = vld [vmem:[%s16005_s0 + $0x8] sm:$0xff] }
   0x3   :  { %6431 = vst.msk [vmem:[#allocation6 + $0x10] sm:$0xf] %vm1100_vm0, %v16023_v2  ;;  %6432 = vst.msk [vmem:[#allocation6 + $0x14] sm:$0xf] %vm1100_vm0, %v16023_v2  ;;  %1654 = vmatprep.mubr.bf16.mxu0 %v16023_v2  ;;  %2034 = vmatprep.mubr.bf16.mxu1 %v16023_v2  ;;  %v51_v5 = vld [vmem:[%s16005_s0 + $0x28] sm:$0xff]  ;;  %v50_v6 = vld [vmem:[%s16005_s0 + $0x20] sm:$0xff] }
   0x4   :  { %6433 = vst.msk [vmem:[#allocation6 + $0x18] sm:$0xf] %vm1100_vm0, %v16023_v2  ;;  %6434 = vst.msk [vmem:[#allocation6 + $0x1c] sm:$0xf] %vm1100_vm0, %v16023_v2  ;;  %v53_v7 = vld [vmem:[%s16005_s0 + $0x38] sm:$0xff]  ;;  %v52_v8 = vld [vmem:[%s16005_s0 + $0x30] sm:$0xff] }
   0x5   :  { %6435 = vst.msk [vmem:[#allocation6 + $0x20] sm:$0xf] %vm1100_vm0, %v16023_v2  ;;  %6436 = vst.msk [vmem:[#allocation6 + $0x24] sm:$0xf] %vm1100_vm0, %v16023_v2  ;;  %v55_v9 = vld [vmem:[%s16005_s0 + $0x48] sm:$0xff]  ;;  %v54_v10 = vld [vmem:[%s16005_s0 + $0x40] sm:$0xff] }
   0x6   :  { %6437 = vst.msk [vmem:[#allocation6 + $0x28] sm:$0xf] %vm1100_vm0, %v16023_v2  ;;  %6438 = vst.msk [vmem:[#allocation6 + $0x2c] sm:$0xf] %vm1100_vm0, %v16023_v2  ;;  %144 = vperm.xlu1 %9960, %v49_v3   ;;  %134 = vperm.xlu0 %9959, %v47_v4   ;;  %v57_v11 = vld [vmem:[%s16005_s0 + $0x58] sm:$0xff]  ;;  %v56_v12 = vld [vmem:[%s16005_s0 + $0x50] sm:$0xff] }
   0x7   :  { %6439 = vst.msk [vmem:[#allocation6 + $0x30] sm:$0xf] %vm1100_vm0, %v16023_v2  ;;  %6440 = vst.msk [vmem:[#allocation6 + $0x34] sm:$0xf] %vm1100_vm0, %v16023_v2  ;;  %v59_v13 = vld [vmem:[%s16005_s0 + $0x68] sm:$0xff]  ;;  %v58_v14 = vld [vmem:[%s16005_s0 + $0x60] sm:$0xff] }
   0x8   :  { %6441 = vst.msk [vmem:[#allocation6 + $0x38] sm:$0xf] %vm1100_vm0, %v16023_v2  ;;  %6442 = vst.msk [vmem:[#allocation6 + $0x3c] sm:$0xf] %vm1100_vm0, %v16023_v2  ;;  %v9966_v15 = vld [vmem:[%s16008_s3 + $0x1c] ss:$12 sps:$4 sm:$0xff]  }
   0x9   :  { %v9968_v16 = vld [vmem:[%s16008_s3 + $0x18] ss:$12 sps:$4 sm:$0xff]   ;;  %v60_v19 = vld [vmem:[%s16005_s0 + $0x70] sm:$0xff]  ;;  %1634 = vmatprep.subr.bf16.mxu0 %v9966_v15  ;;  %9950 = vmatprep.subr.bf16.mxu1 %v9966_v15  ;;  %v9971_v20 = vld [vmem:[%s16008_s3] ss:$12 sps:$4 sm:$0xff]  }
   0xa   :  { %154 = vperm.xlu1 %9960, %v51_v5   ;;  %149 = vperm.xlu0 %9959, %v50_v6   ;;  %v9969_v17 = vld [vmem:[%s16008_s3 + $0x4] ss:$12 sps:$4 sm:$0xff]   ;;  %v61_v18 = vld [vmem:[%s16005_s0 + $0x78] sm:$0xff]  ;;  %v63_v21 = vld [vmem:[%s16005_s0 + $0x88] sm:$0xff] }
   0xb   :  { %1635 = vmatpush1.bf16.msra.mxu0 %v9968_v16  ;;  %9952 = vmatpush1.bf16.msra.mxu1 %v9968_v16  ;;  %v62_v22 = vld [vmem:[%s16005_s0 + $0x80] sm:$0xff]  ;;  %v65_v23 = vld [vmem:[%s16005_s0 + $0x98] sm:$0xff]  ;;  %v64_v24 = vld [vmem:[%s16005_s0 + $0x90] sm:$0xff] }
   0xc   :  { %1636 = vmatprep.subr.bf16.mxu0 %v9969_v17  ;;  %9951 = vmatprep.subr.bf16.mxu1 %v9969_v17  ;;  %v67_v25 = vld [vmem:[%s16005_s0 + $0xa8] sm:$0xff]  ;;  %v66_v26 = vld [vmem:[%s16005_s0 + $0xa0] sm:$0xff]  ;;  %v69_v27 = vld [vmem:[%s16005_s0 + $0xb8] sm:$0xff] }
   0xd   :  { %v68_v28 = vld [vmem:[%s16005_s0 + $0xb0] sm:$0xff]  ;;  %v71_v29 = vld [vmem:[%s16005_s0 + $0xc8] sm:$0xff]  ;;  %v70_v30 = vld [vmem:[%s16005_s0 + $0xc0] sm:$0xff] }
   0xe   :  { %164 = vperm.xlu1 %9960, %v53_v7   ;;  %159 = vperm.xlu0 %9959, %v52_v8   ;;  %v73_v31 = vld [vmem:[%s16005_s0 + $0xd8] sm:$0xff]  ;;  %v72_v32 = vld [vmem:[%s16005_s0 + $0xd0] sm:$0xff]  ;;  %v75_v33 = vld [vmem:[%s16005_s0 + $0xe8] sm:$0xff] }
   0xf   :  { %1637 = vmatpush1.bf16.msra.mxu0 %v9971_v20  ;;  %9953 = vmatpush1.bf16.msra.mxu1 %v9971_v20  ;;  %v74_v34 = vld [vmem:[%s16005_s0 + $0xe0] sm:$0xff]  ;;  %v77_v35 = vld [vmem:[%s16005_s0 + $0xf8] sm:$0xff]  ;;  %v76_v36 = vld [vmem:[%s16005_s0 + $0xf0] sm:$0xff] }
  0x10   :  { %v79_v37 = vld [vmem:[%s16005_s0 + $0x108] sm:$0xff]  ;;  %v78_v38 = vld [vmem:[%s16005_s0 + $0x100] sm:$0xff]  ;;  %v81_v39 = vld [vmem:[%s16005_s0 + $0x118] sm:$0xff] }
  0x11   :  { %v80_v40 = vld [vmem:[%s16005_s0 + $0x110] sm:$0xff]  ;;  %v83_v41 = vld [vmem:[%s16005_s0 + $0x128] sm:$0xff]  ;;  %v82_v42 = vld [vmem:[%s16005_s0 + $0x120] sm:$0xff] }
  0x12   :  { %174 = vperm.xlu1 %9960, %v55_v9   ;;  %169 = vperm.xlu0 %9959, %v54_v10   ;;  %v85_v43 = vld [vmem:[%s16005_s0 + $0x138] sm:$0xff]  ;;  %v84_v44 = vld [vmem:[%s16005_s0 + $0x130] sm:$0xff]  ;;  %v87_v45 = vld [vmem:[%s16005_s0 + $0x148] sm:$0xff] }
  0x13   :  { %v86_v46 = vld [vmem:[%s16005_s0 + $0x140] sm:$0xff]  ;;  %v89_v47 = vld [vmem:[%s16005_s0 + $0x158] sm:$0xff]  ;;  %v88_v48 = vld [vmem:[%s16005_s0 + $0x150] sm:$0xff] }
  0x14   :  { %v91_v49 = vld [vmem:[%s16005_s0 + $0x168] sm:$0xff]  ;;  %v90_v50 = vld [vmem:[%s16005_s0 + $0x160] sm:$0xff] }
  0x16   :  { %184 = vperm.xlu1 %9960, %v57_v11   ;;  %179 = vperm.xlu0 %9959, %v56_v12  }
  0x1a   :  { %194 = vperm.xlu1 %9960, %v59_v13   ;;  %189 = vperm.xlu0 %9959, %v58_v14  }
  0x1e   :  { %204 = vperm.xlu1 %9960, %v61_v18   ;;  %199 = vperm.xlu0 %9959, %v60_v19  }
  0x22   :  { %214 = vperm.xlu1 %9960, %v63_v21   ;;  %209 = vperm.xlu0 %9959, %v62_v22  }
  0x26   :  { %224 = vperm.xlu1 %9960, %v65_v23   ;;  %219 = vperm.xlu0 %9959, %v64_v24  }
  0x2a   :  { %234 = vperm.xlu1 %9960, %v67_v25   ;;  %229 = vperm.xlu0 %9959, %v66_v26  }
  0x2e   :  { %244 = vperm.xlu1 %9960, %v69_v27   ;;  %239 = vperm.xlu0 %9959, %v68_v28  }
  0x32   :  { %254 = vperm.xlu1 %9960, %v71_v29   ;;  %249 = vperm.xlu0 %9959, %v70_v30  }
  0x36   :  { %264 = vperm.xlu1 %9960, %v73_v31   ;;  %259 = vperm.xlu0 %9959, %v72_v32  }
  0x3a   :  { %274 = vperm.xlu1 %9960, %v75_v33   ;;  %269 = vperm.xlu0 %9959, %v74_v34  }
  0x3e   :  { %284 = vperm.xlu1 %9960, %v77_v35   ;;  %279 = vperm.xlu0 %9959, %v76_v36  }
  0x42   :  { %294 = vperm.xlu1 %9960, %v79_v37   ;;  %289 = vperm.xlu0 %9959, %v78_v38  }
  0x46   :  { %304 = vperm.xlu1 %9960, %v81_v39   ;;  %299 = vperm.xlu0 %9959, %v80_v40  }
  0x4a   :  { %314 = vperm.xlu1 %9960, %v83_v41   ;;  %309 = vperm.xlu0 %9959, %v82_v42  }
  0x4e   :  { %324 = vperm.xlu1 %9960, %v85_v43   ;;  %319 = vperm.xlu0 %9959, %v84_v44  }
  0x52   :  { %334 = vperm.xlu1 %9960, %v87_v45   ;;  %329 = vperm.xlu0 %9959, %v86_v46  }
  0x56   :  { %344 = vperm.xlu1 %9960, %v89_v47   ;;  %339 = vperm.xlu0 %9959, %v88_v48  }
  0x57   :  { %18 = vsyncpa [#allocation12], 0  ;;  %v93_v51 = vld [vmem:[%s16005_s0 + $0x178] sm:$0xff]  ;;  %v92_v52 = vld [vmem:[%s16005_s0 + $0x170] sm:$0xff]  ;;  %vm1501_vm1 = vcmask 261120   ;;  %vm2794_vm2 = vcmask 1046528  }
  0x58   :  { %v95_v53 = vld [vmem:[%s16005_s0 + $0x188] sm:$0xff]  ;;  %v94_v54 = vld [vmem:[%s16005_s0 + $0x180] sm:$0xff]  ;;  %v97_v57 = vld [vmem:[%s16005_s0 + $0x198] sm:$0xff]  ;;  %vm3230_vm3 = vcmask 1045504   ;;  %s10357_s16 = smov 32   ;;  %vm6455_vm4 = vcmask 254976  }
  0x59   :  { %v123_v55 = vld [vmem:[%s16005_s0 + $0x268] sm:$0xff]  ;;  %v122_v56 = vld [vmem:[%s16005_s0 + $0x260] sm:$0xff]  ;;  %v96_v58 = vld [vmem:[%s16005_s0 + $0x190] sm:$0xff]  ;;  %vm6835_vm5 = vcmask 519168   ;;  %vm7036_vm6 = vcmask 523264   ;;  %vm5926_vm7 = vcmask 259072  }
  0x5a   :  { %354 = vperm.xlu1 %9960, %v91_v49   ;;  %349 = vperm.xlu0 %9959, %v90_v50   ;;  %v125_v59 = vld [vmem:[%s16005_s0 + $0x278] sm:$0xff]  ;;  %v124_v60 = vld [vmem:[%s16005_s0 + $0x270] sm:$0xff]  ;;  %v99_v61 = vld [vmem:[%s16005_s0 + $0x1a8] sm:$0xff]  ;;  %vm8021_vm8 = vcmask 521216   ;;  %vm8108_vm9 = vcmask 520192   ;;  %s10358_s21 = smov [#allocation11]  }
  0x5b   :  { %v98_v62 = vld [vmem:[%s16005_s0 + $0x1a0] sm:$0xff]  ;;  %v101_v63 = vld [vmem:[%s16005_s0 + $0x1b8] sm:$0xff]  ;;  %v100_v0 = vld [vmem:[%s16005_s0 + $0x1b0] sm:$0xff]  ;;  %s9166_s22 = sshll.u32 %s10358_s21, 4  ;;  %vm9158_vm10 = vcmask 58368   ;;  %s9167_s22 = int_to_ptr.vmem [resolvable:$true] %s9166_s22 }
  0x5c   :  { %v103_v1 = vld [vmem:[%s16005_s0 + $0x1c8] sm:$0xff]  ;;  %v102_v3 = vld [vmem:[%s16005_s0 + $0x1c0] sm:$0xff]  ;;  %v105_v6 = vld [vmem:[%s16005_s0 + $0x1d8] sm:$0xff]  ;;  %p10337_p1 = scmp.lt.s32.totalorder %s9167_s22, %s9167_s22 }
  0x5d   :  { %v10666_v4 = vld [vmem:[%s16008_s3 + $0x20] ss:$12 sps:$4 sm:$0xff]   ;;  %v104_v7 = vld [vmem:[%s16005_s0 + $0x1d0] sm:$0xff]  ;;  %v109_v23 = vld [vmem:[%s16005_s0 + $0x1f8] sm:$0xff] }
  0x5e   :  { %364 = vperm.xlu1 %9960, %v93_v51   ;;  %359 = vperm.xlu0 %9959, %v92_v52   ;;  %v10671_v5 = vld [vmem:[%s16006_s1] ss:$0 sm:$0xff]  ;;  %v107_v13 = vld [vmem:[%s16005_s0 + $0x1e8] sm:$0xff]  ;;  %v108_v24 = vld [vmem:[%s16005_s0 + $0x1f0] sm:$0xff] }
  0x5f   :  { %9822 = vmatprep.subr.bf16.mxu1 %v10666_v4  ;;  %v10683_v8 = vld [vmem:[%s16007_s2] ss:$0 sm:$0xff]  ;;  %v111_v35 = vld [vmem:[%s16005_s0 + $0x208] sm:$0xff]  ;;  %v113_v47 = vld [vmem:[%s16005_s0 + $0x218] sm:$0xff] }
  0x60   :  { %v106_v14 = vld [vmem:[%s16005_s0 + $0x1e0] sm:$0xff]  ;;  %v112_v48 = vld [vmem:[%s16005_s0 + $0x210] sm:$0xff] }
  0x61   :  { %v110_v36 = vld [vmem:[%s16005_s0 + $0x200] sm:$0xff] }
  0x62   :  { %374 = vperm.xlu1 %9960, %v95_v53   ;;  %369 = vperm.xlu0 %9959, %v94_v54  }
  0x66   :  { %514 = vperm.xlu1 %9960, %v123_v55   ;;  %509 = vperm.xlu0 %9959, %v122_v56  }
  0x6a   :  { %384 = vperm.xlu1 %9960, %v97_v57   ;;  %379 = vperm.xlu0 %9959, %v96_v58  }
  0x6e   :  { %524 = vperm.xlu1 %9960, %v125_v59   ;;  %519 = vperm.xlu0 %9959, %v124_v60   ;;  %v115_v59 = vld [vmem:[%s16005_s0 + $0x228] sm:$0xff]  ;;  %v114_v60 = vld [vmem:[%s16005_s0 + $0x220] sm:$0xff] }
  0x72   :  { %394 = vperm.xlu1 %9960, %v99_v61   ;;  %389 = vperm.xlu0 %9959, %v98_v62  }
  0x76   :  { %404 = vperm.xlu1 %9960, %v101_v63   ;;  %399 = vperm.xlu0 %9959, %v100_v0  }
  0x7a   :  { %414 = vperm.xlu1 %9960, %v103_v1   ;;  %409 = vperm.xlu0 %9959, %v102_v3  }
  0x7d   :  { %v140_v9 = vpop.permute.xlu1 %139  ;;  %v130_v10 = vpop.permute.xlu0 %129 }
  0x7e   :  { %v535_v11 = vmul.f32 %v10671_v5, %v140_v9  ;;  %v533_v12 = vmul.f32 %v10671_v5, %v130_v10  ;;  %424 = vperm.xlu1 %9960, %v105_v6   ;;  %419 = vperm.xlu0 %9959, %v104_v7  }
  0x80   :  { %v622_v15 = vadd.f32 %v10683_v8, %v535_v11  ;;  %v620_v16 = vadd.f32 %v10683_v8, %v533_v12  ;;  %v117_v12 = vld [vmem:[%s16005_s0 + $0x238] sm:$0xff] }
  0x81   :  { %v145_v17 = vpop.permute.xlu1 %144  ;;  %v135_v18 = vpop.permute.xlu0 %134 }
  0x82   :  { %v702_v19 = vmax.f32 %v622_v15, 0.0  ;;  %v700_v20 = vmax.f32 %v620_v16, 0.0  ;;  %v536_v21 = vmul.f32 %v10671_v5, %v145_v17  ;;  %v534_v22 = vmul.f32 %v10671_v5, %v135_v18  ;;  %434 = vperm.xlu1 %9960, %v107_v13   ;;  %429 = vperm.xlu0 %9959, %v106_v14   ;;  %v116_v13 = vld [vmem:[%s16005_s0 + $0x230] sm:$0xff] }
  0x84   :  { %v9604_v25 = vpack.c.bf16 %v702_v19, %v702_v19  ;;  %v9602_v26 = vpack.c.bf16 %v700_v20, %v700_v20  ;;  %v623_v27 = vadd.f32 %v10683_v8, %v536_v21  ;;  %v621_v28 = vadd.f32 %v10683_v8, %v534_v22 }
  0x85   :  { %v155_v29 = vpop.permute.xlu1 %154  ;;  %v150_v30 = vpop.permute.xlu0 %149 }
  0x86   :  { %1103 = vst.msk [vmem:[#allocation2 + $0x8] sm:$0xf] %vm1100_vm0, %v9604_v25  ;;  %1101 = vst.msk [vmem:[#allocation2] sm:$0xf] %vm1100_vm0, %v9602_v26  ;;  %v703_v31 = vmax.f32 %v623_v27, 0.0  ;;  %v701_v32 = vmax.f32 %v621_v28, 0.0  ;;  %v538_v33 = vmul.f32 %v10671_v5, %v155_v29  ;;  %v537_v34 = vmul.f32 %v10671_v5, %v150_v30  ;;  %444 = vperm.xlu1 %9960, %v109_v23  }
  0x87   :  { %439 = vperm.xlu0 %9959, %v108_v24   ;;  %v119_v24 = vld [vmem:[%s16005_s0 + $0x248] sm:$0xff]  ;;  %v118_v25 = vld [vmem:[%s16005_s0 + $0x240] sm:$0xff] }
  0x88   :  { %v9605_v37 = vpack.c.bf16 %v703_v31, %v703_v31  ;;  %v9603_v38 = vpack.c.bf16 %v701_v32, %v701_v32  ;;  %v625_v39 = vadd.f32 %v10683_v8, %v538_v33  ;;  %v624_v40 = vadd.f32 %v10683_v8, %v537_v34 }
  0x89   :  { %v165_v41 = vpop.permute.xlu1 %164  ;;  %v160_v42 = vpop.permute.xlu0 %159 }
  0x8a   :  { %1104 = vst.msk [vmem:[#allocation2 + $0xc] sm:$0xf] %vm1100_vm0, %v9605_v37  ;;  %1102 = vst.msk [vmem:[#allocation2 + $0x4] sm:$0xf] %vm1100_vm0, %v9603_v38  ;;  %v705_v43 = vmax.f32 %v625_v39, 0.0  ;;  %v704_v44 = vmax.f32 %v624_v40, 0.0  ;;  %v540_v45 = vmul.f32 %v10671_v5, %v165_v41  ;;  %v539_v46 = vmul.f32 %v10671_v5, %v160_v42  ;;  %454 = vperm.xlu1 %9960, %v111_v35  }
  0x8b   :  { %449 = vperm.xlu0 %9959, %v110_v36   ;;  %v121_v37 = vld [vmem:[%s16005_s0 + $0x258] sm:$0xff]  ;;  %v120_v38 = vld [vmem:[%s16005_s0 + $0x250] sm:$0xff] }
  0x8c   :  { %v9607_v49 = vpack.c.bf16 %v705_v43, %v705_v43  ;;  %v9606_v50 = vpack.c.bf16 %v704_v44, %v704_v44  ;;  %v627_v51 = vadd.f32 %v10683_v8, %v540_v45  ;;  %v626_v52 = vadd.f32 %v10683_v8, %v539_v46 }
  0x8d   :  { %v175_v53 = vpop.permute.xlu1 %174  ;;  %v170_v54 = vpop.permute.xlu0 %169 }
  0x8e   :  { %1106 = vst.msk [vmem:[#allocation2 + $0x14] sm:$0xf] %vm1100_vm0, %v9607_v49  ;;  %1105 = vst.msk [vmem:[#allocation2 + $0x10] sm:$0xf] %vm1100_vm0, %v9606_v50  ;;  %v707_v55 = vmax.f32 %v627_v51, 0.0  ;;  %v706_v56 = vmax.f32 %v626_v52, 0.0  ;;  %v542_v57 = vmul.f32 %v10671_v5, %v175_v53  ;;  %v541_v58 = vmul.f32 %v10671_v5, %v170_v54  ;;  %464 = vperm.xlu1 %9960, %v113_v47  }
  0x8f   :  { %459 = vperm.xlu0 %9959, %v112_v48  }
  0x90   :  { %v9609_v61 = vpack.c.bf16 %v707_v55, %v707_v55  ;;  %v9608_v62 = vpack.c.bf16 %v706_v56, %v706_v56  ;;  %v629_v63 = vadd.f32 %v10683_v8, %v542_v57  ;;  %v628_v0 = vadd.f32 %v10683_v8, %v541_v58 }
  0x91   :  { %v185_v1 = vpop.permute.xlu1 %184  ;;  %v180_v3 = vpop.permute.xlu0 %179  ;;  %v10741_v6 = vld [vmem:[#allocation2] sm:$0xff]   ;;  %v10770_v32 = vld [vmem:[#allocation2 + $0x8] sm:$0xff]  }
  0x92   :  { %1108 = vst.msk [vmem:[#allocation2 + $0x1c] sm:$0xf] %vm1100_vm0, %v9609_v61  ;;  %1107 = vst.msk [vmem:[#allocation2 + $0x18] sm:$0xf] %vm1100_vm0, %v9608_v62  ;;  %v709_v7 = vmax.f32 %v629_v63, 0.0  ;;  %v708_v9 = vmax.f32 %v628_v0, 0.0  ;;  %v544_v10 = vmul.f32 %v10671_v5, %v185_v1  ;;  %v543_v11 = vmul.f32 %v10671_v5, %v180_v3  ;;  %474 = vperm.xlu1 %9960, %v115_v59  }
  0x93   :  { %469 = vperm.xlu0 %9959, %v114_v60   ;;  %9302 = vmatmul.mubr.msk.bf16.vlgmr.msra.gmra.mxu0 %vm1501_vm1, %v10741_v6 }
  0x94   :  { %v9611_v14 = vpack.c.bf16 %v709_v7, %v709_v7  ;;  %v9610_v15 = vpack.c.bf16 %v708_v9, %v708_v9  ;;  %v631_v16 = vadd.f32 %v10683_v8, %v544_v10  ;;  %v630_v17 = vadd.f32 %v10683_v8, %v543_v11  ;;  %1664 = vmatprep.mubr.bf16.mxu0 %v16023_v2 }
  0x95   :  { %v195_v18 = vpop.permute.xlu1 %194  ;;  %v190_v19 = vpop.permute.xlu0 %189  ;;  %v10793_v55 = vld [vmem:[#allocation2 + $0x10] sm:$0xff]  }
  0x96   :  { %1110 = vst.msk [vmem:[#allocation2 + $0x24] sm:$0xf] %vm1100_vm0, %v9611_v14  ;;  %1109 = vst.msk [vmem:[#allocation2 + $0x20] sm:$0xf] %vm1100_vm0, %v9610_v15  ;;  %v711_v20 = vmax.f32 %v631_v16, 0.0  ;;  %v710_v21 = vmax.f32 %v630_v17, 0.0  ;;  %v546_v22 = vmul.f32 %v10671_v5, %v195_v18  ;;  %v545_v23 = vmul.f32 %v10671_v5, %v190_v19  ;;  %484 = vperm.xlu1 %9960, %v117_v12  }
  0x97   :  { %479 = vperm.xlu0 %9959, %v116_v13  }
  0x98   :  { %v9613_v26 = vpack.c.bf16 %v711_v20, %v711_v20  ;;  %v9612_v27 = vpack.c.bf16 %v710_v21, %v710_v21  ;;  %v633_v28 = vadd.f32 %v10683_v8, %v546_v22  ;;  %v632_v29 = vadd.f32 %v10683_v8, %v545_v23 }
  0x99   :  { %v205_v30 = vpop.permute.xlu1 %204  ;;  %v200_v31 = vpop.permute.xlu0 %199  ;;  %v10810_v17 = vld [vmem:[#allocation2 + $0x18] sm:$0xff]  }
  0x9a   :  { %1112 = vst.msk [vmem:[#allocation2 + $0x2c] sm:$0xf] %vm1100_vm0, %v9613_v26  ;;  %1111 = vst.msk [vmem:[#allocation2 + $0x28] sm:$0xf] %vm1100_vm0, %v9612_v27  ;;  %v713_v33 = vmax.f32 %v633_v28, 0.0  ;;  %v712_v34 = vmax.f32 %v632_v29, 0.0  ;;  %v548_v35 = vmul.f32 %v10671_v5, %v205_v30  ;;  %v547_v36 = vmul.f32 %v10671_v5, %v200_v31  ;;  %494 = vperm.xlu1 %9960, %v119_v24  }
  0x9b   :  { %489 = vperm.xlu0 %9959, %v118_v25   ;;  %9303 = vmatmul.mubr.msk.bf16.gmra.mxu0 %vm1501_vm1, %v10770_v32 }
  0x9c   :  { %v9615_v39 = vpack.c.bf16 %v713_v33, %v713_v33  ;;  %v9614_v40 = vpack.c.bf16 %v712_v34, %v712_v34  ;;  %v635_v41 = vadd.f32 %v10683_v8, %v548_v35  ;;  %v634_v42 = vadd.f32 %v10683_v8, %v547_v36  ;;  %1674 = vmatprep.mubr.bf16.mxu0 %v16023_v2 }
  0x9d   :  { %v215_v43 = vpop.permute.xlu1 %214  ;;  %v210_v44 = vpop.permute.xlu0 %209 }
  0x9e   :  { %1114 = vst.msk [vmem:[#allocation2 + $0x34] sm:$0xf] %vm1100_vm0, %v9615_v39  ;;  %1113 = vst.msk [vmem:[#allocation2 + $0x30] sm:$0xf] %vm1100_vm0, %v9614_v40  ;;  %v715_v45 = vmax.f32 %v635_v41, 0.0  ;;  %v714_v46 = vmax.f32 %v634_v42, 0.0  ;;  %v550_v47 = vmul.f32 %v10671_v5, %v215_v43  ;;  %v549_v48 = vmul.f32 %v10671_v5, %v210_v44  ;;  %504 = vperm.xlu1 %9960, %v121_v37  }
  0x9f   :  { %499 = vperm.xlu0 %9959, %v120_v38   ;;  %v10827_v39 = vld [vmem:[#allocation2 + $0x20] sm:$0xff]  }
  0xa0   :  { %v9617_v49 = vpack.c.bf16 %v715_v45, %v715_v45  ;;  %v9616_v50 = vpack.c.bf16 %v714_v46, %v714_v46  ;;  %v637_v51 = vadd.f32 %v10683_v8, %v550_v47  ;;  %v636_v52 = vadd.f32 %v10683_v8, %v549_v48 }
  0xa1   :  { %v225_v53 = vpop.permute.xlu1 %224  ;;  %v220_v54 = vpop.permute.xlu0 %219 }
  0xa2   :  { %1116 = vst.msk [vmem:[#allocation2 + $0x3c] sm:$0xf] %vm1100_vm0, %v9617_v49  ;;  %1115 = vst.msk [vmem:[#allocation2 + $0x38] sm:$0xf] %vm1100_vm0, %v9616_v50  ;;  %v717_v56 = vmax.f32 %v637_v51, 0.0  ;;  %v716_v57 = vmax.f32 %v636_v52, 0.0  ;;  %v552_v58 = vmul.f32 %v10671_v5, %v225_v53  ;;  %v551_v59 = vmul.f32 %v10671_v5, %v220_v54 }
  0xa3   :  { %9304 = vmatmul.mubr.msk.bf16.gmra.mxu0 %vm1501_vm1, %v10793_v55 }
  0xa4   :  { %v9619_v60 = vpack.c.bf16 %v717_v56, %v717_v56  ;;  %v9618_v61 = vpack.c.bf16 %v716_v57, %v716_v57  ;;  %v639_v62 = vadd.f32 %v10683_v8, %v552_v58  ;;  %v638_v63 = vadd.f32 %v10683_v8, %v551_v59  ;;  %1684 = vmatprep.mubr.bf16.mxu0 %v16023_v2 }
  0xa5   :  { %v235_v0 = vpop.permute.xlu1 %234  ;;  %v230_v1 = vpop.permute.xlu0 %229 }
  0xa6   :  { %1118 = vst.msk [vmem:[#allocation2 + $0x44] sm:$0xf] %vm1100_vm0, %v9619_v60  ;;  %1117 = vst.msk [vmem:[#allocation2 + $0x40] sm:$0xf] %vm1100_vm0, %v9618_v61  ;;  %v719_v3 = vmax.f32 %v639_v62, 0.0  ;;  %v718_v7 = vmax.f32 %v638_v63, 0.0  ;;  %v554_v9 = vmul.f32 %v10671_v5, %v235_v0  ;;  %v553_v10 = vmul.f32 %v10671_v5, %v230_v1 }
  0xa7   :  { %v10844_v61 = vld [vmem:[#allocation2 + $0x28] sm:$0xff]  }
  0xa8   :  { %v9621_v11 = vpack.c.bf16 %v719_v3, %v719_v3  ;;  %v9620_v12 = vpack.c.bf16 %v718_v7, %v718_v7  ;;  %v641_v13 = vadd.f32 %v10683_v8, %v554_v9  ;;  %v640_v14 = vadd.f32 %v10683_v8, %v553_v10 }
  0xa9   :  { %v245_v15 = vpop.permute.xlu1 %244  ;;  %v240_v16 = vpop.permute.xlu0 %239 }
  0xaa   :  { %1120 = vst.msk [vmem:[#allocation2 + $0x4c] sm:$0xf] %vm1100_vm0, %v9621_v11  ;;  %1119 = vst.msk [vmem:[#allocation2 + $0x48] sm:$0xf] %vm1100_vm0, %v9620_v12  ;;  %v721_v18 = vmax.f32 %v641_v13, 0.0  ;;  %v720_v19 = vmax.f32 %v640_v14, 0.0  ;;  %v556_v20 = vmul.f32 %v10671_v5, %v245_v15  ;;  %v555_v21 = vmul.f32 %v10671_v5, %v240_v16 }
  0xab   :  { %9305 = vmatmul.mubr.msk.bf16.gmra.mxu0 %vm1501_vm1, %v10810_v17 }
  0xac   :  { %v9623_v22 = vpack.c.bf16 %v721_v18, %v721_v18  ;;  %v9622_v23 = vpack.c.bf16 %v720_v19, %v720_v19  ;;  %v643_v24 = vadd.f32 %v10683_v8, %v556_v20  ;;  %v642_v25 = vadd.f32 %v10683_v8, %v555_v21  ;;  %1694 = vmatprep.mubr.bf16.mxu0 %v16023_v2 }
  0xad   :  { %v255_v26 = vpop.permute.xlu1 %254  ;;  %v250_v27 = vpop.permute.xlu0 %249 }
  0xae   :  { %1122 = vst.msk [vmem:[#allocation2 + $0x54] sm:$0xf] %vm1100_vm0, %v9623_v22  ;;  %1121 = vst.msk [vmem:[#allocation2 + $0x50] sm:$0xf] %vm1100_vm0, %v9622_v23  ;;  %v723_v28 = vmax.f32 %v643_v24, 0.0  ;;  %v722_v29 = vmax.f32 %v642_v25, 0.0  ;;  %v558_v30 = vmul.f32 %v10671_v5, %v255_v26  ;;  %v557_v31 = vmul.f32 %v10671_v5, %v250_v27 }
  0xaf   :  { %v10861_v24 = vld [vmem:[#allocation2 + $0x30] sm:$0xff]  }
  0xb0   :  { %v9625_v33 = vpack.c.bf16 %v723_v28, %v723_v28  ;;  %v9624_v34 = vpack.c.bf16 %v722_v29, %v722_v29  ;;  %v645_v35 = vadd.f32 %v10683_v8, %v558_v30  ;;  %v644_v36 = vadd.f32 %v10683_v8, %v557_v31 }
  0xb1   :  { %v265_v37 = vpop.permute.xlu1 %264  ;;  %v260_v38 = vpop.permute.xlu0 %259 }
  0xb2   :  { %1124 = vst.msk [vmem:[#allocation2 + $0x5c] sm:$0xf] %vm1100_vm0, %v9625_v33  ;;  %1123 = vst.msk [vmem:[#allocation2 + $0x58] sm:$0xf] %vm1100_vm0, %v9624_v34  ;;  %v725_v40 = vmax.f32 %v645_v35, 0.0  ;;  %v724_v41 = vmax.f32 %v644_v36, 0.0  ;;  %v560_v42 = vmul.f32 %v10671_v5, %v265_v37  ;;  %v559_v43 = vmul.f32 %v10671_v5, %v260_v38 }
  0xb3   :  { %9306 = vmatmul.mubr.msk.bf16.gmra.mxu0 %vm1501_vm1, %v10827_v39 }
  0xb4   :  { %v9627_v44 = vpack.c.bf16 %v725_v40, %v725_v40  ;;  %v9626_v45 = vpack.c.bf16 %v724_v41, %v724_v41  ;;  %v647_v46 = vadd.f32 %v10683_v8, %v560_v42  ;;  %v646_v47 = vadd.f32 %v10683_v8, %v559_v43  ;;  %1704 = vmatprep.mubr.bf16.mxu0 %v16023_v2 }
  0xb5   :  { %v275_v48 = vpop.permute.xlu1 %274  ;;  %v270_v49 = vpop.permute.xlu0 %269 }
  0xb6   :  { %1126 = vst.msk [vmem:[#allocation2 + $0x64] sm:$0xf] %vm1100_vm0, %v9627_v44  ;;  %1125 = vst.msk [vmem:[#allocation2 + $0x60] sm:$0xf] %vm1100_vm0, %v9626_v45  ;;  %v727_v50 = vmax.f32 %v647_v46, 0.0  ;;  %v726_v51 = vmax.f32 %v646_v47, 0.0  ;;  %v562_v52 = vmul.f32 %v10671_v5, %v275_v48  ;;  %v561_v53 = vmul.f32 %v10671_v5, %v270_v49 }
  0xb7   :  { %v10878_v47 = vld [vmem:[#allocation2 + $0x38] sm:$0xff]  }
  0xb8   :  { %v9629_v54 = vpack.c.bf16 %v727_v50, %v727_v50  ;;  %v9628_v56 = vpack.c.bf16 %v726_v51, %v726_v51  ;;  %v649_v57 = vadd.f32 %v10683_v8, %v562_v52  ;;  %v648_v58 = vadd.f32 %v10683_v8, %v561_v53 }
  0xb9   :  { %v285_v59 = vpop.permute.xlu1 %284  ;;  %v280_v60 = vpop.permute.xlu0 %279 }
  0xba   :  { %1128 = vst.msk [vmem:[#allocation2 + $0x6c] sm:$0xf] %vm1100_vm0, %v9629_v54  ;;  %1127 = vst.msk [vmem:[#allocation2 + $0x68] sm:$0xf] %vm1100_vm0, %v9628_v56  ;;  %v729_v62 = vmax.f32 %v649_v57, 0.0  ;;  %v728_v63 = vmax.f32 %v648_v58, 0.0  ;;  %v564_v0 = vmul.f32 %v10671_v5, %v285_v59  ;;  %v563_v1 = vmul.f32 %v10671_v5, %v280_v60 }
  0xbb   :  { %9307 = vmatmul.mubr.msk.bf16.gmra.mxu0 %vm1501_vm1, %v10844_v61 }
  0xbc   :  { %v9631_v3 = vpack.c.bf16 %v729_v62, %v729_v62  ;;  %v9630_v7 = vpack.c.bf16 %v728_v63, %v728_v63  ;;  %v651_v9 = vadd.f32 %v10683_v8, %v564_v0  ;;  %v650_v10 = vadd.f32 %v10683_v8, %v563_v1  ;;  %1714 = vmatprep.mubr.bf16.mxu0 %v16023_v2 }
  0xbd   :  { %v295_v11 = vpop.permute.xlu1 %294  ;;  %v290_v12 = vpop.permute.xlu0 %289 }
  0xbe   :  { %1130 = vst.msk [vmem:[#allocation2 + $0x74] sm:$0xf] %vm1100_vm0, %v9631_v3  ;;  %1129 = vst.msk [vmem:[#allocation2 + $0x70] sm:$0xf] %vm1100_vm0, %v9630_v7  ;;  %v731_v13 = vmax.f32 %v651_v9, 0.0  ;;  %v730_v14 = vmax.f32 %v650_v10, 0.0  ;;  %v566_v15 = vmul.f32 %v10671_v5, %v295_v11  ;;  %v565_v16 = vmul.f32 %v10671_v5, %v290_v12 }
  0xbf   :  { %v10895_v11 = vld [vmem:[#allocation2 + $0x40] sm:$0xff]  }
  0xc0   :  { %v9633_v18 = vpack.c.bf16 %v731_v13, %v731_v13  ;;  %v9632_v19 = vpack.c.bf16 %v730_v14, %v730_v14  ;;  %v653_v20 = vadd.f32 %v10683_v8, %v566_v15  ;;  %v652_v21 = vadd.f32 %v10683_v8, %v565_v16 }
  0xc1   :  { %v305_v22 = vpop.permute.xlu1 %304  ;;  %v300_v23 = vpop.permute.xlu0 %299 }
  0xc2   :  { %1132 = vst.msk [vmem:[#allocation2 + $0x7c] sm:$0xf] %vm1100_vm0, %v9633_v18  ;;  %1131 = vst.msk [vmem:[#allocation2 + $0x78] sm:$0xf] %vm1100_vm0, %v9632_v19  ;;  %v733_v25 = vmax.f32 %v653_v20, 0.0  ;;  %v732_v26 = vmax.f32 %v652_v21, 0.0  ;;  %v568_v27 = vmul.f32 %v10671_v5, %v305_v22  ;;  %v567_v28 = vmul.f32 %v10671_v5, %v300_v23 }
  0xc3   :  { %9308 = vmatmul.mubr.msk.bf16.gmra.mxu0 %vm1501_vm1, %v10861_v24 }
  0xc4   :  { %v9635_v29 = vpack.c.bf16 %v733_v25, %v733_v25  ;;  %v9634_v30 = vpack.c.bf16 %v732_v26, %v732_v26  ;;  %v655_v31 = vadd.f32 %v10683_v8, %v568_v27  ;;  %v654_v33 = vadd.f32 %v10683_v8, %v567_v28  ;;  %1724 = vmatprep.mubr.bf16.mxu0 %v16023_v2 }
  0xc5   :  { %v315_v34 = vpop.permute.xlu1 %314  ;;  %v310_v35 = vpop.permute.xlu0 %309 }
  0xc6   :  { %1134 = vst.msk [vmem:[#allocation2 + $0x84] sm:$0xf] %vm1100_vm0, %v9635_v29  ;;  %1133 = vst.msk [vmem:[#allocation2 + $0x80] sm:$0xf] %vm1100_vm0, %v9634_v30  ;;  %v735_v36 = vmax.f32 %v655_v31, 0.0  ;;  %v734_v37 = vmax.f32 %v654_v33, 0.0  ;;  %v570_v38 = vmul.f32 %v10671_v5, %v315_v34  ;;  %v569_v40 = vmul.f32 %v10671_v5, %v310_v35 }
  0xc7   :  { %v10912_v35 = vld [vmem:[#allocation2 + $0x48] sm:$0xff]  }
  0xc8   :  { %v9637_v41 = vpack.c.bf16 %v735_v36, %v735_v36  ;;  %v9636_v42 = vpack.c.bf16 %v734_v37, %v734_v37  ;;  %v657_v43 = vadd.f32 %v10683_v8, %v570_v38  ;;  %v656_v44 = vadd.f32 %v10683_v8, %v569_v40 }
  0xc9   :  { %v325_v45 = vpop.permute.xlu1 %324  ;;  %v320_v46 = vpop.permute.xlu0 %319 }
  0xca   :  { %1136 = vst.msk [vmem:[#allocation2 + $0x8c] sm:$0xf] %vm1100_vm0, %v9637_v41  ;;  %1135 = vst.msk [vmem:[#allocation2 + $0x88] sm:$0xf] %vm1100_vm0, %v9636_v42  ;;  %v737_v48 = vmax.f32 %v657_v43, 0.0  ;;  %v736_v49 = vmax.f32 %v656_v44, 0.0  ;;  %v572_v50 = vmul.f32 %v10671_v5, %v325_v45  ;;  %v571_v51 = vmul.f32 %v10671_v5, %v320_v46 }
  0xcb   :  { %9309 = vmatmul.mubr.msk.bf16.gmra.mxu0 %vm1501_vm1, %v10878_v47 }
  0xcc   :  { %v9639_v52 = vpack.c.bf16 %v737_v48, %v737_v48  ;;  %v9638_v53 = vpack.c.bf16 %v736_v49, %v736_v49  ;;  %v659_v54 = vadd.f32 %v10683_v8, %v572_v50  ;;  %v658_v56 = vadd.f32 %v10683_v8, %v571_v51  ;;  %1734 = vmatprep.mubr.bf16.mxu0 %v16023_v2 }
  0xcd   :  { %v335_v57 = vpop.permute.xlu1 %334  ;;  %v330_v58 = vpop.permute.xlu0 %329 }
  0xce   :  { %1138 = vst.msk [vmem:[#allocation2 + $0x94] sm:$0xf] %vm1100_vm0, %v9639_v52  ;;  %1137 = vst.msk [vmem:[#allocation2 + $0x90] sm:$0xf] %vm1100_vm0, %v9638_v53  ;;  %v739_v59 = vmax.f32 %v659_v54, 0.0  ;;  %v738_v60 = vmax.f32 %v658_v56, 0.0  ;;  %v574_v62 = vmul.f32 %v10671_v5, %v335_v57  ;;  %v573_v63 = vmul.f32 %v10671_v5, %v330_v58 }
  0xd0   :  { %v9641_v0 = vpack.c.bf16 %v739_v59, %v739_v59  ;;  %v9640_v1 = vpack.c.bf16 %v738_v60, %v738_v60  ;;  %v661_v3 = vadd.f32 %v10683_v8, %v574_v62  ;;  %v660_v7 = vadd.f32 %v10683_v8, %v573_v63  ;;  %v10929_v59 = vld [vmem:[#allocation2 + $0x50] sm:$0xff]  }
  0xd1   :  { %v345_v9 = vpop.permute.xlu1 %344  ;;  %v340_v10 = vpop.permute.xlu0 %339 }
  0xd2   :  { %1140 = vst.msk [vmem:[#allocation2 + $0x9c] sm:$0xf] %vm1100_vm0, %v9641_v0  ;;  %1139 = vst.msk [vmem:[#allocation2 + $0x98] sm:$0xf] %vm1100_vm0, %v9640_v1  ;;  %v741_v12 = vmax.f32 %v661_v3, 0.0  ;;  %v740_v13 = vmax.f32 %v660_v7, 0.0  ;;  %v576_v14 = vmul.f32 %v10671_v5, %v345_v9  ;;  %v575_v15 = vmul.f32 %v10671_v5, %v340_v10 }
  0xd3   :  { %9310 = vmatmul.mubr.msk.bf16.gmra.mxu0 %vm1501_vm1, %v10895_v11 }
  0xd4   :  { %v9643_v16 = vpack.c.bf16 %v741_v12, %v741_v12  ;;  %v9642_v18 = vpack.c.bf16 %v740_v13, %v740_v13  ;;  %v663_v19 = vadd.f32 %v10683_v8, %v576_v14  ;;  %v662_v20 = vadd.f32 %v10683_v8, %v575_v15  ;;  %1744 = vmatprep.mubr.bf16.mxu0 %v16023_v2 }
  0xd5   :  { %v355_v21 = vpop.permute.xlu1 %354  ;;  %v350_v22 = vpop.permute.xlu0 %349 }
  0xd6   :  { %1142 = vst.msk [vmem:[#allocation2 + $0xa4] sm:$0xf] %vm1100_vm0, %v9643_v16  ;;  %1141 = vst.msk [vmem:[#allocation2 + $0xa0] sm:$0xf] %vm1100_vm0, %v9642_v18  ;;  %v743_v23 = vmax.f32 %v663_v19, 0.0  ;;  %v742_v25 = vmax.f32 %v662_v20, 0.0  ;;  %v578_v26 = vmul.f32 %v10671_v5, %v355_v21  ;;  %v577_v27 = vmul.f32 %v10671_v5, %v350_v22 }
  0xd8   :  { %v9645_v28 = vpack.c.bf16 %v743_v23, %v743_v23  ;;  %v9644_v29 = vpack.c.bf16 %v742_v25, %v742_v25  ;;  %v665_v30 = vadd.f32 %v10683_v8, %v578_v26  ;;  %v664_v31 = vadd.f32 %v10683_v8, %v577_v27  ;;  %v10946_v25 = vld [vmem:[#allocation2 + $0x58] sm:$0xff]  }
  0xd9   :  { %v365_v33 = vpop.permute.xlu1 %364  ;;  %v360_v34 = vpop.permute.xlu0 %359 }
  0xda   :  { %1144 = vst.msk [vmem:[#allocation2 + $0xac] sm:$0xf] %vm1100_vm0, %v9645_v28  ;;  %1143 = vst.msk [vmem:[#allocation2 + $0xa8] sm:$0xf] %vm1100_vm0, %v9644_v29  ;;  %v745_v36 = vmax.f32 %v665_v30, 0.0  ;;  %v744_v37 = vmax.f32 %v664_v31, 0.0  ;;  %v580_v38 = vmul.f32 %v10671_v5, %v365_v33  ;;  %v579_v40 = vmul.f32 %v10671_v5, %v360_v34 }
  0xdb   :  { %9311 = vmatmul.mubr.msk.bf16.gmra.mxu0 %vm1501_vm1, %v10912_v35 }
  0xdc   :  { %v9647_v41 = vpack.c.bf16 %v745_v36, %v745_v36  ;;  %v9646_v42 = vpack.c.bf16 %v744_v37, %v744_v37  ;;  %v667_v43 = vadd.f32 %v10683_v8, %v580_v38  ;;  %v666_v44 = vadd.f32 %v10683_v8, %v579_v40  ;;  %1754 = vmatprep.mubr.bf16.mxu0 %v16023_v2 }
  0xdd   :  { %v375_v45 = vpop.permute.xlu1 %374  ;;  %v370_v46 = vpop.permute.xlu0 %369 }
  0xde   :  { %1146 = vst.msk [vmem:[#allocation2 + $0xb4] sm:$0xf] %vm1100_vm0, %v9647_v41  ;;  %1145 = vst.msk [vmem:[#allocation2 + $0xb0] sm:$0xf] %vm1100_vm0, %v9646_v42  ;;  %v747_v48 = vmax.f32 %v667_v43, 0.0  ;;  %v746_v49 = vmax.f32 %v666_v44, 0.0  ;;  %v582_v50 = vmul.f32 %v10671_v5, %v375_v45  ;;  %v581_v51 = vmul.f32 %v10671_v5, %v370_v46 }
  0xe0   :  { %v9649_v52 = vpack.c.bf16 %v747_v48, %v747_v48  ;;  %v9648_v53 = vpack.c.bf16 %v746_v49, %v746_v49  ;;  %v669_v54 = vadd.f32 %v10683_v8, %v582_v50  ;;  %v668_v56 = vadd.f32 %v10683_v8, %v581_v51  ;;  %v10963_v48 = vld [vmem:[#allocation2 + $0x60] sm:$0xff]  }
  0xe1   :  { %v515_v57 = vpop.permute.xlu1 %514  ;;  %v510_v58 = vpop.permute.xlu0 %509 }
  0xe2   :  { %1148 = vst.msk [vmem:[#allocation2 + $0xbc] sm:$0xf] %vm1100_vm0, %v9649_v52  ;;  %1147 = vst.msk [vmem:[#allocation2 + $0xb8] sm:$0xf] %vm1100_vm0, %v9648_v53  ;;  %v749_v60 = vmax.f32 %v669_v54, 0.0  ;;  %v748_v62 = vmax.f32 %v668_v56, 0.0  ;;  %v610_v63 = vmul.f32 %v10671_v5, %v515_v57  ;;  %v609_v0 = vmul.f32 %v10671_v5, %v510_v58 }
  0xe3   :  { %9312 = vmatmul.mubr.msk.bf16.gmra.mxu0 %vm1501_vm1, %v10929_v59  ;;  %v9989_v57 = vld [vmem:[%s16008_s3 + $0x8] ss:$12 sps:$4 sm:$0xff]  }
  0xe4   :  { %v9651_v1 = vpack.c.bf16 %v749_v60, %v749_v60  ;;  %v9650_v3 = vpack.c.bf16 %v748_v62, %v748_v62  ;;  %v697_v7 = vadd.f32 %v10683_v8, %v610_v63  ;;  %v696_v9 = vadd.f32 %v10683_v8, %v609_v0  ;;  %1764 = vmatprep.mubr.bf16.mxu0 %v16023_v2 }
  0xe5   :  { %v385_v10 = vpop.permute.xlu1 %384  ;;  %v380_v12 = vpop.permute.xlu0 %379 }
  0xe6   :  { %1150 = vst.msk [vmem:[#allocation2 + $0xc4] sm:$0xf] %vm1100_vm0, %v9651_v1  ;;  %1149 = vst.msk [vmem:[#allocation2 + $0xc0] sm:$0xf] %vm1100_vm0, %v9650_v3  ;;  %v777_v13 = vmax.f32 %v697_v7, 0.0  ;;  %v776_v14 = vmax.f32 %v696_v9, 0.0  ;;  %v584_v15 = vmul.f32 %v10671_v5, %v385_v10  ;;  %v583_v16 = vmul.f32 %v10671_v5, %v380_v12 }
  0xe8   :  { %v9679_v18 = vpack.c.bf16 %v777_v13, %v777_v13  ;;  %v9678_v19 = vpack.c.bf16 %v776_v14, %v776_v14  ;;  %v671_v20 = vadd.f32 %v10683_v8, %v584_v15  ;;  %v670_v21 = vadd.f32 %v10683_v8, %v583_v16  ;;  %v10989_v16 = vld [vmem:[#allocation2 + $0x68] sm:$0xff]  }
  0xe9   :  { %v525_v22 = vpop.permute.xlu1 %524  ;;  %v520_v23 = vpop.permute.xlu0 %519 }
  0xea   :  { %1178 = vst.msk [vmem:[#allocation2 + $0x134] sm:$0xf] %vm1100_vm0, %v9679_v18  ;;  %1177 = vst.msk [vmem:[#allocation2 + $0x130] sm:$0xf] %vm1100_vm0, %v9678_v19  ;;  %v751_v26 = vmax.f32 %v671_v20, 0.0  ;;  %v750_v27 = vmax.f32 %v670_v21, 0.0  ;;  %v612_v28 = vmul.f32 %v10671_v5, %v525_v22  ;;  %v611_v29 = vmul.f32 %v10671_v5, %v520_v23 }
  0xeb   :  { %9313 = vmatmul.mubr.msk.bf16.gmra.mxu0 %vm1501_vm1, %v10946_v25  ;;  %v10998_v21 = vld [vmem:[%s16006_s1] ss:$0 sm:$0xff]  ;;  %s10355_s1 = smov 96  }
  0xec   :  { %v9653_v30 = vpack.c.bf16 %v751_v26, %v751_v26  ;;  %v9652_v31 = vpack.c.bf16 %v750_v27, %v750_v27  ;;  %v699_v33 = vadd.f32 %v10683_v8, %v612_v28  ;;  %v698_v34 = vadd.f32 %v10683_v8, %v611_v29  ;;  %1774 = vmatprep.mubr.bf16.mxu0 %v16023_v2  ;;  %v11009_v27 = vld [vmem:[%s16007_s2] ss:$0 sm:$0xff]  ;;  %s10356_s2 = smov 64  }
  0xed   :  { %v395_v36 = vpop.permute.xlu1 %394  ;;  %v390_v37 = vpop.permute.xlu0 %389 }
  0xee   :  { %1152 = vst.msk [vmem:[#allocation2 + $0xcc] sm:$0xf] %vm1100_vm0, %v9653_v30  ;;  %1151 = vst.msk [vmem:[#allocation2 + $0xc8] sm:$0xf] %vm1100_vm0, %v9652_v31  ;;  %v779_v38 = vmax.f32 %v699_v33, 0.0  ;;  %v778_v40 = vmax.f32 %v698_v34, 0.0  ;;  %v586_v41 = vmul.f32 %v10671_v5, %v395_v36  ;;  %v585_v42 = vmul.f32 %v10671_v5, %v390_v37 }
  0xf0   :  { %v9681_v43 = vpack.c.bf16 %v779_v38, %v779_v38  ;;  %v9680_v44 = vpack.c.bf16 %v778_v40, %v778_v40  ;;  %v673_v45 = vadd.f32 %v10683_v8, %v586_v41  ;;  %v672_v46 = vadd.f32 %v10683_v8, %v585_v42 }
  0xf1   :  { %v405_v49 = vpop.permute.xlu1 %404  ;;  %v400_v50 = vpop.permute.xlu0 %399  ;;  %v10965_v51 = vld [vmem:[#allocation2 + $0x130] sm:$0xff]  }
  0xf2   :  { %1180 = vst.msk [vmem:[#allocation2 + $0x13c] sm:$0xf] %vm1100_vm0, %v9681_v43  ;;  %1179 = vst.msk [vmem:[#allocation2 + $0x138] sm:$0xf] %vm1100_vm0, %v9680_v44  ;;  %v753_v52 = vmax.f32 %v673_v45, 0.0  ;;  %v752_v53 = vmax.f32 %v672_v46, 0.0  ;;  %v588_v54 = vmul.f32 %v10671_v5, %v405_v49  ;;  %v587_v56 = vmul.f32 %v10671_v5, %v400_v50  ;;  %9340 = vmatmul.mubr.msk.bf16.vlgmr.msra.gmra.mxu1 %vm1501_vm1, %v10965_v51 }
  0xf3   :  { %9314 = vmatmul.mubr.msk.bf16.gmra.mxu0 %vm1501_vm1, %v10963_v48  ;;  %2044 = vmatprep.mubr.bf16.mxu1 %v16023_v2  ;;  %v11022_v44 = vld [vmem:[#allocation2 + $0x70] sm:$0xff]  }
  0xf4   :  { %v9655_v58 = vpack.c.bf16 %v753_v52, %v753_v52  ;;  %v9654_v60 = vpack.c.bf16 %v752_v53, %v752_v53  ;;  %v675_v62 = vadd.f32 %v10683_v8, %v588_v54  ;;  %v674_v63 = vadd.f32 %v10683_v8, %v587_v56  ;;  %1784 = vmatprep.mubr.bf16.mxu0 %v16023_v2 }
  0xf5   :  { %v415_v0 = vpop.permute.xlu1 %414  ;;  %v410_v1 = vpop.permute.xlu0 %409  ;;  %9823 = vmatpush3.bf16.msra.mxu1 %v10666_v4 }
  0xf6   :  { %1154 = vst.msk [vmem:[#allocation2 + $0xd4] sm:$0xf] %vm1100_vm0, %v9655_v58  ;;  %1153 = vst.msk [vmem:[#allocation2 + $0xd0] sm:$0xf] %vm1100_vm0, %v9654_v60  ;;  %v755_v3 = vmax.f32 %v675_v62, 0.0  ;;  %v754_v7 = vmax.f32 %v674_v63, 0.0  ;;  %v590_v9 = vmul.f32 %v10671_v5, %v415_v0  ;;  %v589_v10 = vmul.f32 %v10671_v5, %v410_v1  ;;  %9824 = vmatprep.subr.bf16.mxu1 %v9989_v57 }
  0xf8   :  { %v9657_v12 = vpack.c.bf16 %v755_v3, %v755_v3  ;;  %v9656_v13 = vpack.c.bf16 %v754_v7, %v754_v7  ;;  %v677_v14 = vadd.f32 %v10683_v8, %v590_v9  ;;  %v676_v15 = vadd.f32 %v10683_v8, %v589_v10  ;;  %v11043_v10 = vld [vmem:[#allocation2 + $0x78] sm:$0xff]  }
  0xf9   :  { %v425_v4 = vpop.permute.xlu1 %424  ;;  %v420_v18 = vpop.permute.xlu0 %419  ;;  %v10991_v19 = vld [vmem:[#allocation2 + $0x138] sm:$0xff]   ;;  %9825 = vmatpush3.bf16.msra.mxu1 %v9989_v57 }
  0xfa   :  { %1156 = vst.msk [vmem:[#allocation2 + $0xdc] sm:$0xf] %vm1100_vm0, %v9657_v12  ;;  %1155 = vst.msk [vmem:[#allocation2 + $0xd8] sm:$0xf] %vm1100_vm0, %v9656_v13  ;;  %v757_v20 = vmax.f32 %v677_v14, 0.0  ;;  %v756_v5 = vmax.f32 %v676_v15, 0.0  ;;  %v592_v8 = vmul.f32 %v10998_v21, %v425_v4  ;;  %v591_v22 = vmul.f32 %v10998_v21, %v420_v18  ;;  %9341 = vmatmul.mubr.msk.bf16.gmra.mxu1 %vm1501_vm1, %v10991_v19 }
  0xfb   :  { %9315 = vmatmul.mubr.msk.bf16.gmra.mxu0 %vm1501_vm1, %v10989_v16  ;;  %9826 = vmatprep.mubr.msk.bf16.mxu1 %vm1501_vm1, %v10741_v6 }
  0xfc   :  { %v9659_v23 = vpack.c.bf16 %v757_v20, %v757_v20  ;;  %v9658_v26 = vpack.c.bf16 %v756_v5, %v756_v5  ;;  %v679_v28 = vadd.f32 %v11009_v27, %v592_v8  ;;  %v678_v29 = vadd.f32 %v11009_v27, %v591_v22  ;;  %1794 = vmatprep.mubr.bf16.mxu0 %v16023_v2 }
  0xfd   :  { %v435_v30 = vpop.permute.xlu1 %434  ;;  %v430_v31 = vpop.permute.xlu0 %429 }
  0xfe   :  { %1158 = vst.msk [vmem:[#allocation2 + $0xe4] sm:$0xf] %vm1100_vm0, %v9659_v23  ;;  %1157 = vst.msk [vmem:[#allocation2 + $0xe0] sm:$0xf] %vm1100_vm0, %v9658_v26  ;;  %v759_v33 = vmax.f32 %v679_v28, 0.0  ;;  %v758_v34 = vmax.f32 %v678_v29, 0.0  ;;  %v594_v36 = vmul.f32 %v10998_v21, %v435_v30  ;;  %v593_v37 = vmul.f32 %v10998_v21, %v430_v31 }
 0x100   :  { %v9661_v38 = vpack.c.bf16 %v759_v33, %v759_v33  ;;  %v9660_v40 = vpack.c.bf16 %v758_v34, %v758_v34  ;;  %v681_v41 = vadd.f32 %v11009_v27, %v594_v36  ;;  %v680_v6 = vadd.f32 %v11009_v27, %v593_v37  ;;  %v11064_v36 = vld [vmem:[#allocation2 + $0x80] sm:$0xff]  }
 0x101   :  { %v445_v42 = vpop.permute.xlu1 %444 }
 0x102   :  { %v440_v43 = vpop.permute.xlu0 %439  ;;  %1160 = vst.msk [vmem:[#allocation2 + $0xec] sm:$0xf] %vm1100_vm0, %v9661_v38  ;;  %1159 = vst.msk [vmem:[#allocation2 + $0xe8] sm:$0xf] %vm1100_vm0, %v9660_v40  ;;  %v761_v45 = vmax.f32 %v681_v41, 0.0  ;;  %v760_v46 = vmax.f32 %v680_v6, 0.0  ;;  %v596_v49 = vmul.f32 %v10998_v21, %v445_v42  ;;  %9827 = vmatmul.mubr.msk.bf16.vlgmr.msra.gmra.mxu1 %vm1501_vm1, %v10770_v32 }
 0x103   :  { %v595_v50 = vmul.f32 %v10998_v21, %v440_v43  ;;  %9316 = vmatmul.mubr.msk.bf16.gmra.mxu0 %vm1501_vm1, %v11022_v44  ;;  %9830 = vmatprep.mubr.msk.bf16.mxu1 %vm1501_vm1, %v10793_v55 }
 0x104   :  { %v9663_v52 = vpack.c.bf16 %v761_v45, %v761_v45  ;;  %v9662_v53 = vpack.c.bf16 %v760_v46, %v760_v46  ;;  %v683_v54 = vadd.f32 %v11009_v27, %v596_v49  ;;  %1804 = vmatprep.mubr.bf16.mxu0 %v16023_v2 }
 0x105   :  { %v682_v56 = vadd.f32 %v11009_v27, %v595_v50  ;;  %v455_v57 = vpop.permute.xlu1 %454 }
 0x106   :  { %v450_v58 = vpop.permute.xlu0 %449  ;;  %1162 = vst.msk [vmem:[#allocation2 + $0xf4] sm:$0xf] %vm1100_vm0, %v9663_v52  ;;  %1161 = vst.msk [vmem:[#allocation2 + $0xf0] sm:$0xf] %vm1100_vm0, %v9662_v53  ;;  %v763_v60 = vmax.f32 %v683_v54, 0.0  ;;  %v598_v32 = vmul.f32 %v10998_v21, %v455_v57 }
 0x107   :  { %v762_v62 = vmax.f32 %v682_v56, 0.0  ;;  %v597_v63 = vmul.f32 %v10998_v21, %v450_v58 }
 0x108   :  { %v9665_v0 = vpack.c.bf16 %v763_v60, %v763_v60  ;;  %v685_v3 = vadd.f32 %v11009_v27, %v598_v32 }
 0x109   :  { %v9664_v1 = vpack.c.bf16 %v762_v62, %v762_v62  ;;  %v684_v55 = vadd.f32 %v11009_v27, %v597_v63  ;;  %v465_v7 = vpop.permute.xlu1 %464  ;;  %v9993_v62 = vld [vmem:[#allocation2 + $0x88] sm:$0xff]  }
 0x10a   :  { %v460_v9 = vpop.permute.xlu0 %459  ;;  %1164 = vst.msk [vmem:[#allocation2 + $0xfc] sm:$0xf] %vm1100_vm0, %v9665_v0  ;;  %v765_v12 = vmax.f32 %v685_v3, 0.0  ;;  %v600_v14 = vmul.f32 %v10998_v21, %v465_v7  ;;  %9831 = vmatmul.mubr.msk.bf16.gmra.mxu1 %vm1501_vm1, %v10810_v17 }
 0x10b   :  { %1163 = vst.msk [vmem:[#allocation2 + $0xf8] sm:$0xf] %vm1100_vm0, %v9664_v1  ;;  %v764_v13 = vmax.f32 %v684_v55, 0.0  ;;  %v599_v15 = vmul.f32 %v10998_v21, %v460_v9  ;;  %9317 = vmatmul.mubr.msk.bf16.gmra.mxu0 %vm1501_vm1, %v11043_v10  ;;  %9834 = vmatprep.mubr.msk.bf16.mxu1 %vm1501_vm1, %v10827_v39 }
 0x10c   :  { %v9667_v4 = vpack.c.bf16 %v765_v12, %v765_v12  ;;  %v687_v20 = vadd.f32 %v11009_v27, %v600_v14  ;;  %1814 = vmatprep.mubr.bf16.mxu0 %v16023_v2 }
 0x10d   :  { %v9666_v18 = vpack.c.bf16 %v764_v13, %v764_v13  ;;  %v686_v5 = vadd.f32 %v11009_v27, %v599_v15  ;;  %v475_v8 = vpop.permute.xlu1 %474 }
 0x10e   :  { %v470_v22 = vpop.permute.xlu0 %469  ;;  %1166 = vst.msk [vmem:[#allocation2 + $0x104] sm:$0xf] %vm1100_vm0, %v9667_v4  ;;  %v767_v23 = vmax.f32 %v687_v20, 0.0  ;;  %v602_v17 = vmul.f32 %v10998_v21, %v475_v8  ;;  %v10001_v4 = vld [vmem:[#allocation2 + $0xc8] sm:$0xff]  }
 0x10f   :  { %1165 = vst.msk [vmem:[#allocation2 + $0x100] sm:$0xf] %vm1100_vm0, %v9666_v18  ;;  %v766_v26 = vmax.f32 %v686_v5, 0.0  ;;  %v601_v28 = vmul.f32 %v10998_v21, %v470_v22 }
 0x110   :  { %v9669_v29 = vpack.c.bf16 %v767_v23, %v767_v23  ;;  %v689_v31 = vadd.f32 %v11009_v27, %v602_v17 }
 0x111   :  { %v9668_v30 = vpack.c.bf16 %v766_v26, %v766_v26  ;;  %v688_v39 = vadd.f32 %v11009_v27, %v601_v28  ;;  %v485_v33 = vpop.permute.xlu1 %484 }
 0x112   :  { %v480_v34 = vpop.permute.xlu0 %479  ;;  %1168 = vst.msk [vmem:[#allocation2 + $0x10c] sm:$0xf] %vm1100_vm0, %v9669_v29  ;;  %v769_v37 = vmax.f32 %v689_v31, 0.0  ;;  %v604_v40 = vmul.f32 %v10998_v21, %v485_v33  ;;  %9835 = vmatmul.mubr.msk.bf16.gmra.mxu1 %vm1501_vm1, %v10844_v61  ;;  %v10002_v33 = vld [vmem:[#allocation2 + $0xd0] sm:$0xff]  }
 0x113   :  { %1167 = vst.msk [vmem:[#allocation2 + $0x108] sm:$0xf] %vm1100_vm0, %v9668_v30  ;;  %v768_v38 = vmax.f32 %v688_v39, 0.0  ;;  %v603_v41 = vmul.f32 %v10998_v21, %v480_v34  ;;  %9318 = vmatmul.mubr.msk.bf16.gmra.mxu0 %vm1501_vm1, %v11064_v36  ;;  %9838 = vmatprep.mubr.msk.bf16.mxu1 %vm1501_vm1, %v10861_v24 }
 0x114   :  { %v9671_v6 = vpack.c.bf16 %v769_v37, %v769_v37  ;;  %v691_v43 = vadd.f32 %v11009_v27, %v604_v40  ;;  %1824 = vmatprep.mubr.bf16.mxu0 %v16023_v2 }
 0x115   :  { %v9670_v42 = vpack.c.bf16 %v768_v38, %v768_v38  ;;  %v690_v45 = vadd.f32 %v11009_v27, %v603_v41  ;;  %v495_v46 = vpop.permute.xlu1 %494 }
 0x116   :  { %v490_v49 = vpop.permute.xlu0 %489  ;;  %1170 = vst.msk [vmem:[#allocation2 + $0x114] sm:$0xf] %vm1100_vm0, %v9671_v6  ;;  %v771_v50 = vmax.f32 %v691_v43, 0.0  ;;  %v606_v61 = vmul.f32 %v10998_v21, %v495_v46 }
 0x117   :  { %1169 = vst.msk [vmem:[#allocation2 + $0x110] sm:$0xf] %vm1100_vm0, %v9670_v42  ;;  %v770_v52 = vmax.f32 %v690_v45, 0.0  ;;  %v605_v53 = vmul.f32 %v10998_v21, %v490_v49 }
 0x118   :  { %v9673_v54 = vpack.c.bf16 %v771_v50, %v771_v50  ;;  %v693_v57 = vadd.f32 %v11009_v27, %v606_v61  ;;  %v10004_v61 = vld [vmem:[#allocation2 + $0xe0] sm:$0xff]  }
 0x119   :  { %v9672_v56 = vpack.c.bf16 %v770_v52, %v770_v52  ;;  %v692_v24 = vadd.f32 %v11009_v27, %v605_v53  ;;  %v505_v58 = vpop.permute.xlu1 %504  ;;  %v10003_v52 = vld [vmem:[#allocation2 + $0xd8] sm:$0xff]  }
 0x11a   :  { %v500_v60 = vpop.permute.xlu0 %499  ;;  %1172 = vst.msk [vmem:[#allocation2 + $0x11c] sm:$0xf] %vm1100_vm0, %v9673_v54  ;;  %v773_v32 = vmax.f32 %v693_v57, 0.0  ;;  %v608_v0 = vmul.f32 %v10998_v21, %v505_v58  ;;  %9839 = vmatmul.mubr.msk.bf16.gmra.mxu1 %vm1501_vm1, %v10878_v47  ;;  %v9994_v47 = vld [vmem:[#allocation2 + $0x90] sm:$0xff]  }
 0x11b   :  { %1171 = vst.msk [vmem:[#allocation2 + $0x118] sm:$0xf] %vm1100_vm0, %v9672_v56  ;;  %v772_v63 = vmax.f32 %v692_v24, 0.0  ;;  %v607_v1 = vmul.f32 %v10998_v21, %v500_v60  ;;  %9319 = vmatmul.mubr.msk.bf16.gmra.mxu0 %vm1501_vm1, %v9993_v62  ;;  %9842 = vmatprep.mubr.msk.bf16.mxu1 %vm1501_vm1, %v10895_v11  ;;  %v9995_v11 = vld [vmem:[#allocation2 + $0x98] sm:$0xff]  }
 0x11c   :  { %v9675_v3 = vpack.c.bf16 %v773_v32, %v773_v32  ;;  %v695_v7 = vadd.f32 %v11009_v27, %v608_v0  ;;  %1834 = vmatprep.mubr.bf16.mxu0 %v16023_v2 }
 0x11d   :  { %v9674_v55 = vpack.c.bf16 %v772_v63, %v772_v63  ;;  %v694_v9 = vadd.f32 %v11009_v27, %v607_v1  ;;  %v9996_v27 = vld [vmem:[#allocation2 + $0xa0] sm:$0xff]   ;;  %v10005_v1 = vld [vmem:[#allocation2 + $0xe8] sm:$0xff]  }
 0x11e   :  { %1174 = vst.msk [vmem:[#allocation2 + $0x124] sm:$0xf] %vm1100_vm0, %v9675_v3  ;;  %v775_v21 = vmax.f32 %v695_v7, 0.0  ;;  %v10006_v3 = vld [vmem:[#allocation2 + $0xf0] sm:$0xff]  }
 0x11f   :  { %1173 = vst.msk [vmem:[#allocation2 + $0x120] sm:$0xf] %vm1100_vm0, %v9674_v55  ;;  %v774_v12 = vmax.f32 %v694_v9, 0.0 }
 0x120   :  { %v9677_v13 = vpack.c.bf16 %v775_v21, %v775_v21 }
 0x121   :  { %v9676_v14 = vpack.c.bf16 %v774_v12, %v774_v12 }
 0x122   :  { %1176 = vst.msk [vmem:[#allocation2 + $0x12c] sm:$0xf] %vm1100_vm0, %v9677_v13  ;;  %9843 = vmatmul.mubr.msk.bf16.gmra.mxu1 %vm1501_vm1, %v10912_v35  ;;  %v9997_v35 = vld [vmem:[#allocation2 + $0xa8] sm:$0xff]  }
 0x123   :  { %1175 = vst.msk [vmem:[#allocation2 + $0x128] sm:$0xf] %vm1100_vm0, %v9676_v14  ;;  %9320 = vmatmul.mubr.msk.bf16.gmra.mxu0 %vm1501_vm1, %v9994_v47  ;;  %9846 = vmatprep.mubr.msk.bf16.mxu1 %vm1501_vm1, %v10929_v59  ;;  %v9998_v59 = vld [vmem:[#allocation2 + $0xb0] sm:$0xff]  }
 0x124   :  { %1844 = vmatprep.mubr.bf16.mxu0 %v16023_v2 }
 0x12a   :  { %9847 = vmatmul.mubr.msk.bf16.gmra.mxu1 %vm1501_vm1, %v10946_v25  ;;  %v9999_v25 = vld [vmem:[#allocation2 + $0xb8] sm:$0xff]  }
 0x12b   :  { %9321 = vmatmul.mubr.msk.bf16.gmra.mxu0 %vm1501_vm1, %v9995_v11  ;;  %9850 = vmatprep.mubr.msk.bf16.mxu1 %vm1501_vm1, %v10963_v48  ;;  %v10000_v48 = vld [vmem:[#allocation2 + $0xc0] sm:$0xff]  }
 0x12c   :  { %1854 = vmatprep.mubr.bf16.mxu0 %v16023_v2 }
 0x132   :  { %9851 = vmatmul.mubr.msk.bf16.gmra.mxu1 %vm1501_vm1, %v10989_v16 }
 0x133   :  { %9322 = vmatmul.mubr.msk.bf16.gmra.mxu0 %vm1501_vm1, %v9996_v27  ;;  %9854 = vmatprep.mubr.msk.bf16.mxu1 %vm1501_vm1, %v11022_v44 }
 0x134   :  { %1864 = vmatprep.mubr.bf16.mxu0 %v16023_v2 }
 0x13a   :  { %9855 = vmatmul.mubr.msk.bf16.gmra.mxu1 %vm1501_vm1, %v11043_v10 }
 0x13b   :  { %9323 = vmatmul.mubr.msk.bf16.gmra.mxu0 %vm1501_vm1, %v9997_v35  ;;  %9858 = vmatprep.mubr.msk.bf16.mxu1 %vm1501_vm1, %v11064_v36 }
 0x13c   :  { %1874 = vmatprep.mubr.bf16.mxu0 %v16023_v2 }
 0x142   :  { %9859 = vmatmul.mubr.msk.bf16.gmra.mxu1 %vm1501_vm1, %v9993_v62 }
 0x143   :  { %9324 = vmatmul.mubr.msk.bf16.gmra.mxu0 %vm1501_vm1, %v9998_v59  ;;  %9862 = vmatprep.mubr.msk.bf16.mxu1 %vm1501_vm1, %v9994_v47 }
 0x144   :  { %1884 = vmatprep.mubr.bf16.mxu0 %v16023_v2 }
 0x14a   :  { %9863 = vmatmul.mubr.msk.bf16.gmra.mxu1 %vm1501_vm1, %v9995_v11 }
 0x14b   :  { %9325 = vmatmul.mubr.msk.bf16.gmra.mxu0 %vm1501_vm1, %v9999_v25  ;;  %9866 = vmatprep.mubr.msk.bf16.mxu1 %vm1501_vm1, %v9996_v27 }
 0x14c   :  { %1894 = vmatprep.mubr.bf16.mxu0 %v16023_v2 }
 0x152   :  { %9867 = vmatmul.mubr.msk.bf16.gmra.mxu1 %vm1501_vm1, %v9997_v35 }
 0x153   :  { %v1656_v16 = vpop.f32.mrf.mxu0  ;;  %9326 = vmatmul.mubr.msk.bf16.gmra.mxu0 %vm1501_vm1, %v10000_v48  ;;  %9870 = vmatprep.mubr.msk.bf16.mxu1 %vm1501_vm1, %v9998_v59 }
 0x154   :  { %2408 = vst [vmem:[#allocation3] sm:$0xff] %v1656_v16  ;;  %1904 = vmatprep.mubr.bf16.mxu0 %v16023_v2 }
 0x155   :  { %v1658_v44 = vpop.f32.mrf.mxu0 }
 0x156   :  { %v10007_v44 = vld [vmem:[#allocation2 + $0xf8] sm:$0xff]  }
 0x157   :  { %v1660_v10 = vpop.f32.mrf.mxu0 }
 0x158   :  { %2411 = vst [vmem:[#allocation3 + $0x18] sm:$0xff] %v1660_v10  ;;  %v2796_v8 = vrot.slane %v1660_v10, 1  ;;  %v3232_v34 = vrot.slane %v1660_v10, 2  ;;  %v11227_v10 = vld [vmem:[#allocation2 + $0x100] sm:$0xff]  }
 0x159   :  { %v1662_v15 = vpop.f32.mrf.mxu0 }
 0x15a   :  { %9871 = vmatmul.mubr.msk.bf16.gmra.mxu1 %vm1501_vm1, %v9999_v25 }
 0x15b   :  { %v1666_v18 = vpop.f32.mrf.mxu0  ;;  %9327 = vmatmul.mubr.msk.bf16.gmra.mxu0 %vm1501_vm1, %v10001_v4  ;;  %v2720_v20 = vld [vmem:[#allocation3] sm:$0xfe]  ;;  %9874 = vmatprep.mubr.msk.bf16.mxu1 %vm1501_vm1, %v10000_v48 }
 0x15c   :  { %2414 = vst [vmem:[#allocation3 + $0x30] sm:$0xff] %v1666_v18  ;;  %1914 = vmatprep.mubr.bf16.mxu0 %v16023_v2  ;;  %v2795_v5 = vrot.slane %v2720_v20, 1  ;;  %v3226_v22 = vld [vmem:[#allocation3] sm:$0xfc]  ;;  %v2798_v23 = vrot.slane %v1666_v18, 1  ;;  %v3234_v31 = vrot.slane %v1666_v18, 2 }
 0x15d   :  { %v1668_v26 = vpop.f32.mrf.mxu0  ;;  %v3231_v30 = vrot.slane %v3226_v22, 2 }
 0x15e   :  { %v2797_v17 = vsel %vm2794_vm2, %v2795_v5, %v2796_v8  ;;  %v2799_v28 = vsel %vm2794_vm2, %v2796_v8, %v2798_v23  ;;  %v3235_v40 = vsel %vm3230_vm3, %v3232_v34, %v3234_v31 }
 0x15f   :  { %v1670_v29 = vpop.f32.mrf.mxu0  ;;  %2938 = vrot.lane.b32.xlu0 %v2797_v17, %s10355_s1  ;;  %2940 = vrot.lane.b32.xlu1 %v2799_v28, %s10355_s1  ;;  %v3233_v37 = vsel %vm3230_vm3, %v3231_v30, %v3232_v34 }
 0x160   :  { %2417 = vst [vmem:[#allocation3 + $0x48] sm:$0xff] %v1670_v29  ;;  %v2800_v38 = vrot.slane %v1670_v29, 1  ;;  %v3236_v46 = vrot.slane %v1670_v29, 2 }
 0x161   :  { %v1672_v39 = vpop.f32.mrf.mxu0 }
 0x162   :  { %9875 = vmatmul.mubr.msk.bf16.gmra.mxu1 %vm1501_vm1, %v10001_v4  ;;  %v2801_v45 = vsel %vm2794_vm2, %v2798_v23, %v2800_v38  ;;  %v3237_v54 = vsel %vm3230_vm3, %v3234_v31, %v3236_v46  ;;  %v11262_v31 = vld [vmem:[#allocation2 + $0x108] sm:$0xff]   ;;  %v11265_v39 = vld [vmem:[#allocation2 + $0x110] sm:$0xff]  }
 0x163   :  { %v11145_v36 = vpop.f32.mrf.mxu0  ;;  %9328 = vmatmul.mubr.msk.bf16.gmra.mxu0 %vm1501_vm1, %v10002_v33  ;;  %9878 = vmatprep.mubr.msk.bf16.mxu1 %vm1501_vm1, %v10002_v33 }
 0x164   :  { %2420 = vst [vmem:[#allocation3 + $0x60] sm:$0xff] %v11145_v36  ;;  %3374 = vrot.lane.b32.xlu0 %v3233_v37, %s10356_s2  ;;  %v2802_v41 = vrot.slane %v11145_v36, 1  ;;  %1924 = vmatprep.mubr.bf16.mxu0 %v16023_v2  ;;  %v3238_v49 = vrot.slane %v11145_v36, 2 }
 0x165   :  { %v1678_v6 = vpop.f32.mrf.mxu0  ;;  %3376 = vrot.lane.b32.xlu1 %v3235_v40, %s10356_s2 }
 0x166   :  { %2421 = vst [vmem:[#allocation3 + $0x68] sm:$0xff] %v1678_v6  ;;  %v2803_v42 = vsel %vm2794_vm2, %v2800_v38, %v2802_v41  ;;  %v3239_v56 = vsel %vm3230_vm3, %v3236_v46, %v3238_v49  ;;  %v11297_v46 = vld [vmem:[#allocation2 + $0x120] sm:$0xff]  }
 0x167   :  { %v1680_v43 = vpop.f32.mrf.mxu0 }
 0x168   :  { %2423 = vst [vmem:[#allocation3 + $0x78] sm:$0xff] %v1680_v43  ;;  %2942 = vrot.lane.b32.xlu0 %v2801_v45, %s10355_s1  ;;  %v2804_v62 = vrot.slane %v1680_v43, 1  ;;  %v3240_v21 = vrot.slane %v1680_v43, 2  ;;  %v11294_v45 = vld [vmem:[#allocation2 + $0x118] sm:$0xff]  }
 0x169   :  { %v11161_v50 = vpop.f32.mrf.mxu0  ;;  %2944 = vrot.lane.b32.xlu1 %v2803_v42, %s10355_s1 }
 0x16a   :  { %9879 = vmatmul.mubr.msk.bf16.gmra.mxu1 %vm1501_vm1, %v10003_v52  ;;  %v16031_v24 = vrot.slane %v11161_v50, 1  ;;  %v2805_v9 = vsel %vm2794_vm2, %v2802_v41, %v2804_v62  ;;  %v3241_v35 = vsel %vm3230_vm3, %v3238_v49, %v3240_v21  ;;  %v4394_v22 = vrot.slane %v11161_v50, 2 }
 0x16b   :  { %v11164_v53 = vpop.f32.mrf.mxu0  ;;  %9329 = vmatmul.mubr.msk.bf16.gmra.mxu0 %vm1501_vm1, %v10003_v52  ;;  %9882 = vmatprep.mubr.msk.bf16.mxu1 %vm1501_vm1, %v10004_v61 }
 0x16c   :  { %2426 = vst [vmem:[#allocation3 + $0x90] sm:$0xff] %v11164_v53  ;;  %3378 = vrot.lane.b32.xlu0 %v3237_v54, %s10356_s2  ;;  %1934 = vmatprep.mubr.bf16.mxu0 %v16023_v2  ;;  %v2806_v32 = vrot.slane %v11164_v53, 1  ;;  %v3242_v13 = vrot.slane %v11164_v53, 2 }
 0x16d   :  { %v11173_v57 = vpop.f32.mrf.mxu0  ;;  %3380 = vrot.lane.b32.xlu1 %v3239_v56, %s10356_s2  ;;  %v4389_v25 = vld [vmem:[#allocation3 + $0x68] sm:$0xfc] }
 0x16e   :  { %v4105_v58 = vrot.slane %v11173_v57, 1  ;;  %v2807_v12 = vsel %vm2794_vm2, %v2804_v62, %v2806_v32  ;;  %v3243_v59 = vsel %vm3230_vm3, %v3240_v21, %v3242_v13  ;;  %v4393_v18 = vrot.slane %v4389_v25, 2 }
 0x16f   :  { %v11179_v60 = vpop.f32.mrf.mxu0  ;;  %v4396_v20 = vrot.slane %v11173_v57, 2 }
 0x170   :  { %2429 = vst [vmem:[#allocation3 + $0xa8] sm:$0xff] %v11179_v60  ;;  %3670 = vrot.lane.b32.xlu0 %v11145_v36, %s10357_s16  ;;  %v11188_v63 = vsel %vm2794_vm2, %v16031_v24, %v4105_v58  ;;  %v4395_v26 = vsel %vm3230_vm3, %v4393_v18, %v4394_v22  ;;  %v2808_v17 = vrot.slane %v11179_v60, 1  ;;  %v3244_v33 = vrot.slane %v11179_v60, 2 }
 0x171   :  { %v11190_v0 = vpop.f32.mrf.mxu0  ;;  %3672 = vrot.lane.b32.xlu1 %v1680_v43, %s10357_s16  ;;  %v4397_v28 = vsel %vm3230_vm3, %v4394_v22, %v4396_v20 }
 0x172   :  { %v4107_v55 = vrot.slane %v11190_v0, 1  ;;  %9883 = vmatmul.mubr.msk.bf16.gmra.mxu1 %vm1501_vm1, %v10005_v1  ;;  %v2809_v36 = vsel %vm2794_vm2, %v2806_v32, %v2808_v17  ;;  %v3245_v6 = vsel %vm3230_vm3, %v3242_v13, %v3244_v33  ;;  %v4398_v52 = vrot.slane %v11190_v0, 2 }
 0x173   :  { %v11194_v7 = vpop.f32.mrf.mxu0  ;;  %9330 = vmatmul.mubr.msk.bf16.gmra.mxu0 %vm1501_vm1, %v10004_v61  ;;  %9886 = vmatprep.mubr.msk.bf16.mxu1 %vm1501_vm1, %v10006_v3 }
 0x174   :  { %2432 = vst [vmem:[#allocation3 + $0xc0] sm:$0xff] %v11194_v7  ;;  %2946 = vrot.lane.b32.xlu0 %v2805_v9, %s10355_s1  ;;  %v11207_v14 = vsel %vm2794_vm2, %v4105_v58, %v4107_v55  ;;  %1944 = vmatprep.mubr.bf16.mxu0 %v16023_v2  ;;  %v2810_v29 = vrot.slane %v11194_v7, 1  ;;  %v3246_v38 = vrot.slane %v11194_v7, 2  ;;  %v4399_v56 = vsel %vm3230_vm3, %v4396_v20, %v4398_v52 }
 0x175   :  { %v11209_v47 = vpop.f32.mrf.mxu0  ;;  %2948 = vrot.lane.b32.xlu1 %v2807_v12, %s10355_s1 }
 0x176   :  { %2433 = vst [vmem:[#allocation3 + $0xc8] sm:$0xff] %v11209_v47  ;;  %v4109_v11 = vrot.slane %v11209_v47, 1  ;;  %v2811_v37 = vsel %vm2794_vm2, %v2808_v17, %v2810_v29  ;;  %v3247_v42 = vsel %vm3230_vm3, %v3244_v33, %v3246_v38  ;;  %v4400_v61 = vrot.slane %v11209_v47, 2 }
 0x177   :  { %v11215_v27 = vpop.f32.mrf.mxu0 }
 0x178   :  { %2435 = vst [vmem:[#allocation3 + $0xd8] sm:$0xff] %v11215_v27  ;;  %3382 = vrot.lane.b32.xlu0 %v3241_v35, %s10356_s2  ;;  %v11222_v48 = vsel %vm2794_vm2, %v4107_v55, %v4109_v11  ;;  %v4401_v57 = vsel %vm3230_vm3, %v4398_v52, %v4400_v61  ;;  %v2812_v62 = vrot.slane %v11215_v27, 1 }
 0x179   :  { %v11224_v16 = vpop.f32.mrf.mxu0  ;;  %3384 = vrot.lane.b32.xlu1 %v3243_v59, %s10356_s2 }
 0x17a   :  { %v11230_v15 = vrot.slane %v11224_v16, 1  ;;  %9887 = vmatmul.mubr.msk.bf16.gmra.mxu1 %vm1501_vm1, %v10007_v44 }
 0x17b   :  { %v11232_v4 = vpop.f32.mrf.mxu0  ;;  %9331 = vmatmul.mubr.msk.bf16.gmra.mxu0 %vm1501_vm1, %v10005_v1  ;;  %9890 = vmatprep.mubr.msk.bf16.mxu1 %vm1501_vm1, %v11227_v10 }
 0x17c   :  { %2438 = vst [vmem:[#allocation3 + $0xf0] sm:$0xff] %v11232_v4  ;;  %3674 = vrot.lane.b32.xlu0 %v11164_v53, %s10357_s16  ;;  %v11244_v5 = vsel %vm2794_vm2, %v4109_v11, %v11230_v15  ;;  %1954 = vmatprep.mubr.bf16.mxu0 %v16023_v2  ;;  %v2814_v0 = vrot.slane %v11232_v4, 1  ;;  %v3250_v9 = vrot.slane %v11232_v4, 2 }
 0x17d   :  { %v11246_v8 = vpop.f32.mrf.mxu0  ;;  %3676 = vrot.lane.b32.xlu1 %v11179_v60, %s10357_s16  ;;  %v11324_v60 = vld [vmem:[#allocation2 + $0x128] sm:$0xff]  }
 0x17e   :  { %v5120_v59 = vld [vmem:[#allocation3 + $0xc8] sm:$0xfe]  ;;  %v4113_v20 = vrot.slane %v11246_v8, 1 }
 0x17f   :  { %v11252_v23 = vpop.f32.mrf.mxu0 }
 0x180   :  { %2441 = vst [vmem:[#allocation3 + $0x108] sm:$0xff] %v11252_v23  ;;  %4536 = vrot.lane.b32.xlu0 %v4395_v26, %s10355_s1 }
 0x181   :  { %v11260_v30 = vpop.f32.mrf.mxu0  ;;  %4538 = vrot.lane.b32.xlu1 %v4397_v28, %s10355_s1  ;;  %v11408_v28 = vsel %vm2794_vm2, %v11230_v15, %v4113_v20 }
 0x182   :  { %9891 = vmatmul.mubr.msk.bf16.gmra.mxu1 %vm1501_vm1, %v11262_v31 }
 0x183   :  { %v11268_v34 = vpop.f32.mrf.mxu0  ;;  %9332 = vmatmul.mubr.msk.bf16.gmra.mxu0 %vm1501_vm1, %v10006_v3  ;;  %9894 = vmatprep.mubr.msk.bf16.mxu1 %vm1501_vm1, %v11265_v39  ;;  %v3248_v3 = vrot.slane %v11215_v27, 2 }
 0x184   :  { %2444 = vst [vmem:[#allocation3 + $0x120] sm:$0xff] %v11268_v34  ;;  %2950 = vrot.lane.b32.xlu0 %v2809_v36, %s10355_s1  ;;  %1964 = vmatprep.mubr.bf16.mxu0 %v16023_v2  ;;  %v3252_v36 = vrot.slane %v11252_v23, 2 }
 0x185   :  { %v11282_v40 = vpop.f32.mrf.mxu0  ;;  %2952 = vrot.lane.b32.xlu1 %v2811_v37, %s10355_s1  ;;  %v3249_v13 = vsel %vm3230_vm3, %v3246_v38, %v3248_v3 }
 0x187   :  { %v11286_v41 = vpop.f32.mrf.mxu0 }
 0x188   :  { %2447 = vst [vmem:[#allocation3 + $0x138] sm:$0xff] %v11286_v41  ;;  %3386 = vrot.lane.b32.xlu0 %v3245_v6, %s10356_s2 }
 0x189   :  { %v11292_v43 = vpop.f32.mrf.mxu0  ;;  %3388 = vrot.lane.b32.xlu1 %v3247_v42, %s10356_s2  ;;  %v3254_v42 = vrot.slane %v11268_v34, 2 }
 0x18a   :  { %9895 = vmatmul.mubr.msk.bf16.gmra.mxu1 %vm1501_vm1, %v11294_v45 }
 0x18b   :  { %v11299_v49 = vpop.f32.mrf.mxu0  ;;  %9333 = vmatmul.mubr.msk.bf16.gmra.mxu0 %vm1501_vm1, %v10007_v44  ;;  %9898 = vmatprep.mubr.msk.bf16.mxu1 %vm1501_vm1, %v11297_v46 }
 0x18c   :  { %2450 = vst [vmem:[#allocation3 + $0x150] sm:$0xff] %v11299_v49  ;;  %3678 = vrot.lane.b32.xlu0 %v11194_v7, %s10357_s16  ;;  %1974 = vmatprep.mubr.bf16.mxu0 %v16023_v2  ;;  %v2813_v7 = vsel %vm2794_vm2, %v2810_v29, %v2812_v62 }
 0x18d   :  { %v11311_v53 = vpop.f32.mrf.mxu0  ;;  %3680 = vrot.lane.b32.xlu1 %v11215_v27, %s10357_s16  ;;  %v4402_v27 = vrot.slane %v11224_v16, 2 }
 0x18f   :  { %v11316_v54 = vpop.f32.mrf.mxu0 }
 0x190   :  { %2453 = vst [vmem:[#allocation3 + $0x168] sm:$0xff] %v11316_v54  ;;  %4540 = vrot.lane.b32.xlu0 %v4399_v56, %s10355_s1  ;;  %v3255_v56 = vsel %vm3230_vm3, %v3252_v36, %v3254_v42 }
 0x191   :  { %v11322_v58 = vpop.f32.mrf.mxu0  ;;  %4542 = vrot.lane.b32.xlu1 %v4401_v57, %s10355_s1 }
 0x192   :  { %9899 = vmatmul.mubr.msk.bf16.gmra.mxu1 %vm1501_vm1, %v11324_v60 }
 0x193   :  { %v11328_v32 = vpop.f32.mrf.mxu0  ;;  %9334 = vmatmul.mubr.msk.bf16.gmra.mxu0 %vm1501_vm1, %v11227_v10  ;;  %9902 = vmatprep.mubr.msk.bf16.mxu1 %vm1501_vm1, %v10965_v51  ;;  %v2815_v51 = vsel %vm2794_vm2, %v2812_v62, %v2814_v0  ;;  %v5124_v10 = vrot.slane %v5120_v59, 1 }
 0x194   :  { %2456 = vst [vmem:[#allocation3 + $0x180] sm:$0xff] %v11328_v32  ;;  %4832 = vrot.lane.b32.xlu0 %v11209_v47, %s10356_s2  ;;  %1984 = vmatprep.mubr.bf16.mxu0 %v16023_v2  ;;  %v3251_v47 = vsel %vm3230_vm3, %v3248_v3, %v3250_v9  ;;  %v4408_v3 = vrot.slane %v11282_v40, 2 }
 0x195   :  { %v11340_v1 = vpop.f32.mrf.mxu0  ;;  %4834 = vrot.lane.b32.xlu1 %v11224_v16, %s10356_s2  ;;  %v4403_v16 = vsel %vm3230_vm3, %v4400_v61, %v4402_v27  ;;  %v5125_v17 = vsel %vm2794_vm2, %v5124_v10, %v11230_v15  ;;  %v2818_v15 = vrot.slane %v11268_v34, 1  ;;  %v3253_v61 = vsel %vm3230_vm3, %v3250_v9, %v3252_v36 }
 0x196   :  { %v4115_v9 = vrot.slane %v11260_v30, 1 }
 0x197   :  { %v11346_v55 = vpop.f32.mrf.mxu0 }
 0x198   :  { %2459 = vst [vmem:[#allocation3 + $0x198] sm:$0xff] %v11346_v55  ;;  %2954 = vrot.lane.b32.xlu0 %v2813_v7, %s10355_s1 }
 0x199   :  { %v11355_v21 = vpop.f32.mrf.mxu0  ;;  %2956 = vrot.lane.b32.xlu1 %v2815_v51, %s10355_s1 }
 0x19a   :  { %9903 = vmatmul.mubr.msk.bf16.gmra.mxu1 %vm1501_vm1, %v10991_v19  ;;  %v4404_v19 = vrot.slane %v11246_v8, 2 }
 0x19b   :  { %v11358_v12 = vpop.f32.mrf.mxu0  ;;  %9335 = vmatmul.mubr.msk.bf16.gmra.mxu0 %vm1501_vm1, %v11262_v31  ;;  %v2816_v31 = vrot.slane %v11252_v23, 1 }
 0x19c   :  { %2462 = vst [vmem:[#allocation3 + $0x1b0] sm:$0xff] %v11358_v12  ;;  %3390 = vrot.lane.b32.xlu0 %v3249_v13, %s10356_s2  ;;  %1994 = vmatprep.mubr.bf16.mxu0 %v16023_v2  ;;  %v4405_v18 = vsel %vm3230_vm3, %v4402_v27, %v4404_v19 }
 0x19d   :  { %v11371_v11 = vpop.f32.mrf.mxu0  ;;  %3392 = vrot.lane.b32.xlu1 %v3251_v47, %s10356_s2  ;;  %v2817_v38 = vsel %vm2794_vm2, %v2814_v0, %v2816_v31  ;;  %v2819_v6 = vsel %vm2794_vm2, %v2816_v31, %v2818_v15 }
 0x19f   :  { %v11375_v35 = vpop.f32.mrf.mxu0 }
 0x1a0   :  { %2465 = vst [vmem:[#allocation3 + $0x1c8] sm:$0xff] %v11375_v35  ;;  %3682 = vrot.lane.b32.xlu0 %v11232_v4, %s10357_s16 }
 0x1a1   :  { %v11381_v25 = vpop.f32.mrf.mxu0  ;;  %3684 = vrot.lane.b32.xlu1 %v11252_v23, %s10357_s16 }
 0x1a3   :  { %v11385_v44 = vpop.f32.mrf.mxu0  ;;  %9336 = vmatmul.mubr.msk.bf16.gmra.mxu0 %vm1501_vm1, %v11265_v39 }
 0x1a4   :  { %2468 = vst [vmem:[#allocation3 + $0x1e0] sm:$0xff] %v11385_v44  ;;  %4544 = vrot.lane.b32.xlu0 %v4403_v16, %s10355_s1  ;;  %2004 = vmatprep.mubr.bf16.mxu0 %v16023_v2  ;;  %v4117_v16 = vrot.slane %v11282_v40, 1 }
 0x1a5   :  { %v1758_v22 = vpop.f32.mrf.mxu0  ;;  %4546 = vrot.lane.b32.xlu1 %v4405_v18, %s10355_s1 }
 0x1a6   :  { %2469 = vst [vmem:[#allocation3 + $0x1e8] sm:$0xff] %v1758_v22  ;;  %v11470_v22 = vsel %vm2794_vm2, %v4115_v9, %v4117_v16 }
 0x1a7   :  { %v11398_v26 = vpop.f32.mrf.mxu0 }
 0x1a8   :  { %2471 = vst [vmem:[#allocation3 + $0x1f8] sm:$0xff] %v11398_v26  ;;  %5136 = vrot.lane.b32.xlu0 %v5125_v17, %s10357_s16 }
 0x1a9   :  { %v1762_v29 = vpop.f32.mrf.mxu0  ;;  %5138 = vrot.lane.b32.xlu1 %v11408_v28, %s10357_s16 }
 0x1aa   :  { %2472 = vst [vmem:[#allocation3 + $0x200] sm:$0xff] %v1762_v29 }
 0x1ab   :  { %v1766_v39 = vpop.f32.mrf.mxu0  ;;  %9337 = vmatmul.mubr.msk.bf16.gmra.mxu0 %vm1501_vm1, %v11294_v45 }
 0x1ac   :  { %2474 = vst [vmem:[#allocation3 + $0x210] sm:$0xff] %v1766_v39  ;;  %4836 = vrot.lane.b32.xlu0 %v11246_v8, %s10356_s2  ;;  %2014 = vmatprep.mubr.bf16.mxu0 %v16023_v2  ;;  %v2820_v8 = vrot.slane %v11286_v41, 1  ;;  %v2822_v39 = vrot.slane %v11299_v49, 1 }
 0x1ad   :  { %v1768_v33 = vpop.f32.mrf.mxu0  ;;  %4838 = vrot.lane.b32.xlu1 %v11260_v30, %s10356_s2 }
 0x1ae   :  { %2475 = vst [vmem:[#allocation3 + $0x218] sm:$0xff] %v1768_v33 }
 0x1af   :  { %v1770_v37 = vpop.f32.mrf.mxu0 }
 0x1b0   :  { %2477 = vst [vmem:[#allocation3 + $0x228] sm:$0xff] %v1770_v37  ;;  %2958 = vrot.lane.b32.xlu0 %v2817_v38, %s10355_s1  ;;  %v3256_v37 = vrot.slane %v11286_v41, 2 }
 0x1b1   :  { %v1772_v45 = vpop.f32.mrf.mxu0  ;;  %2960 = vrot.lane.b32.xlu1 %v2819_v6, %s10355_s1 }
 0x1b2   :  { %2478 = vst [vmem:[#allocation3 + $0x230] sm:$0xff] %v1772_v45  ;;  %v2036_v23 = vpop.f32.mrf.mxu1  ;;  %v2821_v45 = vsel %vm2794_vm2, %v2818_v15, %v2820_v8  ;;  %v3257_v15 = vsel %vm3230_vm3, %v3254_v42, %v3256_v37 }
 0x1b3   :  { %v1776_v52 = vpop.f32.mrf.mxu0  ;;  %9338 = vmatmul.mubr.msk.bf16.gmra.mxu0 %vm1501_vm1, %v11297_v46  ;;  %v4406_v46 = vrot.slane %v11260_v30, 2  ;;  %v3258_v23 = vrot.slane %v11299_v49, 2 }
 0x1b4   :  { %2480 = vst [vmem:[#allocation3 + $0x240] sm:$0xff] %v1776_v52  ;;  %3394 = vrot.lane.b32.xlu0 %v3253_v61, %s10356_s2  ;;  %2024 = vmatprep.mubr.bf16.mxu0 %v16023_v2  ;;  %v2038_v62 = vpop.f32.mrf.mxu1  ;;  %v2823_v52 = vsel %vm2794_vm2, %v2820_v8, %v2822_v39 }
 0x1b5   :  { %v1778_v57 = vpop.f32.mrf.mxu0  ;;  %3396 = vrot.lane.b32.xlu1 %v3255_v56, %s10356_s2  ;;  %2637 = vst [vmem:[#allocation3 + $0x728] sm:$0xff] %v2038_v62  ;;  %v4407_v27 = vsel %vm3230_vm3, %v4404_v19, %v4406_v46  ;;  %v4409_v59 = vsel %vm3230_vm3, %v4406_v46, %v4408_v3  ;;  %v11463_v19 = vsel %vm2794_vm2, %v4113_v20, %v4115_v9 }
 0x1b6   :  { %2481 = vst [vmem:[#allocation3 + $0x248] sm:$0xff] %v1778_v57  ;;  %v2040_v0 = vpop.f32.mrf.mxu1  ;;  %v3259_v62 = vsel %vm3230_vm3, %v3256_v37, %v3258_v23 }
 0x1b7   :  { %v1780_v4 = vpop.f32.mrf.mxu0  ;;  %v4410_v0 = vrot.slane %v11292_v43, 2 }
 0x1b8   :  { %2483 = vst [vmem:[#allocation3 + $0x258] sm:$0xff] %v1780_v4  ;;  %3686 = vrot.lane.b32.xlu0 %v11268_v34, %s10357_s16  ;;  %v2042_v51 = vpop.f32.mrf.mxu1  ;;  %v4412_v34 = vrot.slane %v11311_v53, 2 }
 0x1b9   :  { %v1782_v7 = vpop.f32.mrf.mxu0  ;;  %3688 = vrot.lane.b32.xlu1 %v11286_v41, %s10357_s16  ;;  %2640 = vst [vmem:[#allocation3 + $0x740] sm:$0xff] %v2042_v51 }
 0x1ba   :  { %2484 = vst [vmem:[#allocation3 + $0x260] sm:$0xff] %v1782_v7  ;;  %v2046_v47 = vpop.f32.mrf.mxu1 }
 0x1bb   :  { %v1786_v13 = vpop.f32.mrf.mxu0  ;;  %9339 = vmatmul.mubr.msk.bf16.gmra.mxu0 %vm1501_vm1, %v11324_v60 }
 0x1bc   :  { %2486 = vst [vmem:[#allocation3 + $0x270] sm:$0xff] %v1786_v13  ;;  %4548 = vrot.lane.b32.xlu0 %v4407_v27, %s10355_s1  ;;  %v2048_v30 = vpop.f32.mrf.mxu1  ;;  %v4119_v27 = vrot.slane %v11292_v43, 1 }
 0x1bd   :  { %v1788_v10 = vpop.f32.mrf.mxu0  ;;  %4550 = vrot.lane.b32.xlu1 %v4409_v59, %s10355_s1  ;;  %2643 = vst [vmem:[#allocation3 + $0x758] sm:$0xff] %v2048_v30  ;;  %v4411_v30 = vsel %vm3230_vm3, %v4408_v3, %v4410_v0 }
 0x1be   :  { %2487 = vst [vmem:[#allocation3 + $0x278] sm:$0xff] %v1788_v10  ;;  %v2050_v18 = vpop.f32.mrf.mxu1  ;;  %v11531_v37 = vsel %vm2794_vm2, %v4117_v16, %v4119_v27 }
 0x1bf   :  { %v1790_v60 = vpop.f32.mrf.mxu0  ;;  %v4413_v18 = vsel %vm3230_vm3, %v4410_v0, %v4412_v34  ;;  %v3260_v0 = vrot.slane %v11316_v54, 2 }
 0x1c0   :  { %2489 = vst [vmem:[#allocation3 + $0x288] sm:$0xff] %v1790_v60  ;;  %5140 = vrot.lane.b32.xlu0 %v11463_v19, %s10357_s16  ;;  %v2052_v29 = vpop.f32.mrf.mxu1 }
 0x1c1   :  { %v1792_v17 = vpop.f32.mrf.mxu0  ;;  %5142 = vrot.lane.b32.xlu1 %v11470_v22, %s10357_s16  ;;  %2646 = vst [vmem:[#allocation3 + $0x770] sm:$0xff] %v2052_v29 }
 0x1c2   :  { %2490 = vst [vmem:[#allocation3 + $0x290] sm:$0xff] %v1792_v17  ;;  %v9828_v31 = vpop.f32.mrf.mxu1  ;;  %v4121_v17 = vrot.slane %v11311_v53, 1 }
 0x1c3   :  { %v1796_v20 = vpop.f32.mrf.mxu0 }
 0x1c4   :  { %2492 = vst [vmem:[#allocation3 + $0x2a0] sm:$0xff] %v1796_v20  ;;  %4840 = vrot.lane.b32.xlu0 %v11282_v40, %s10356_s2  ;;  %v2089_v36 = vpop.f32.mrf.mxu1 }
 0x1c5   :  { %v1798_v33 = vpop.f32.mrf.mxu0  ;;  %4842 = vrot.lane.b32.xlu1 %v11292_v43, %s10356_s2 }
 0x1c6   :  { %2493 = vst [vmem:[#allocation3 + $0x2a8] sm:$0xff] %v1798_v33  ;;  %v9829_v6 = vpop.f32.mrf.mxu1 }
 0x1c7   :  { %v1800_v38 = vpop.f32.mrf.mxu0  ;;  %v11541_v6 = vsel %vm2794_vm2, %v4119_v27, %v4121_v17 }
 0x1c8   :  { %2495 = vst [vmem:[#allocation3 + $0x2b8] sm:$0xff] %v1800_v38  ;;  %2962 = vrot.lane.b32.xlu0 %v2821_v45, %s10355_s1  ;;  %v2092_v56 = vpop.f32.mrf.mxu1 }
 0x1c9   :  { %v1802_v61 = vpop.f32.mrf.mxu0  ;;  %2964 = vrot.lane.b32.xlu1 %v2823_v52, %s10355_s1 }
 0x1ca   :  { %2496 = vst [vmem:[#allocation3 + $0x2c0] sm:$0xff] %v1802_v61  ;;  %v9832_v57 = vpop.f32.mrf.mxu1  ;;  %v2824_v61 = vrot.slane %v11316_v54, 1 }
 0x1cb   :  { %v1806_v41 = vpop.f32.mrf.mxu0 }
 0x1cc   :  { %2498 = vst [vmem:[#allocation3 + $0x2d0] sm:$0xff] %v1806_v41  ;;  %3398 = vrot.lane.b32.xlu0 %v3257_v15, %s10356_s2  ;;  %v2105_v4 = vpop.f32.mrf.mxu1  ;;  %v16035_v15 = vrot.slane %v11328_v32, 1 }
 0x1cd   :  { %v1808_v46 = vpop.f32.mrf.mxu0  ;;  %3400 = vrot.lane.b32.xlu1 %v3259_v62, %s10356_s2 }
 0x1ce   :  { %2499 = vst [vmem:[#allocation3 + $0x2d8] sm:$0xff] %v1808_v46  ;;  %v9833_v51 = vpop.f32.mrf.mxu1  ;;  %v2827_v27 = vsel %vm2794_vm2, %v2824_v61, %v16035_v15  ;;  %v3264_v15 = vrot.slane %v11346_v55, 2 }
 0x1cf   :  { %v1810_v7 = vpop.f32.mrf.mxu0 }
 0x1d0   :  { %2501 = vst [vmem:[#allocation3 + $0x2e8] sm:$0xff] %v1810_v7  ;;  %3690 = vrot.lane.b32.xlu0 %v11299_v49, %s10357_s16  ;;  %v2108_v9 = vpop.f32.mrf.mxu1 }
 0x1d1   :  { %v1812_v42 = vpop.f32.mrf.mxu0  ;;  %3692 = vrot.lane.b32.xlu1 %v11316_v54, %s10357_s16  ;;  %v11504_v13 = vpop.permute.xlu0 %2938  ;;  %v11512_v60 = vld [vmem:[#allocation3 + $0x2c0] sm:$0xff] }
 0x1d2   :  { %2502 = vst [vmem:[#allocation3 + $0x2f0] sm:$0xff] %v1812_v42  ;;  %v11506_v47 = vpop.permute.xlu1 %2940  ;;  %v9836_v10 = vpop.f32.mrf.mxu1  ;;  %16193 = vst [vmem:[#allocation14_spill] sm:$0xff] %v11512_v60  ;;  %v16030_v20 = vrot.slane %v11512_v60, 1  ;;  %v2825_v42 = vsel %vm2794_vm2, %v2822_v39, %v2824_v61  ;;  %v10215_v60 = vld [vmem:[#allocation3 + $0x18] sm:$0xff] }
 0x1d3   :  { %v1816_v59 = vpop.f32.mrf.mxu0  ;;  %2440 = vst.msk [vmem:[#allocation3 + $0x100] sm:$0xff] %vm1501_vm1, %v9836_v10 }
 0x1d4   :  { %2504 = vst [vmem:[#allocation3 + $0x300] sm:$0xff] %v1816_v59  ;;  %4552 = vrot.lane.b32.xlu0 %v4411_v30, %s10355_s1  ;;  %v2121_v29 = vpop.f32.mrf.mxu1  ;;  %v16034_v59 = vrot.slane %v11328_v32, 2 }
 0x1d5   :  { %v1818_v43 = vpop.f32.mrf.mxu0  ;;  %4554 = vrot.lane.b32.xlu1 %v4413_v18, %s10355_s1  ;;  %v11521_v8 = vld [vmem:[#allocation3 + $0x2d8] sm:$0xff]  ;;  %2434 = vst.msk [vmem:[#allocation3 + $0xd0] sm:$0xff] %vm1501_vm1, %v2121_v29  ;;  %v3261_v29 = vsel %vm3230_vm3, %v3258_v23, %v3260_v0 }
 0x1d6   :  { %16194 = vst [vmem:[#allocation15_spill] sm:$0xff] %v11521_v8  ;;  %2505 = vst [vmem:[#allocation3 + $0x308] sm:$0xff] %v1818_v43  ;;  %v11524_v3 = vpop.permute.xlu0 %3374  ;;  %v16029_v31 = vrot.slane %v11521_v8, 1  ;;  %v9837_v36 = vpop.f32.mrf.mxu1 }
 0x1d7   :  { %v1820_v33 = vpop.f32.mrf.mxu0  ;;  %2443 = vst.msk [vmem:[#allocation3 + $0x118] sm:$0xff] %vm1501_vm1, %v9837_v36  ;;  %v11536_v38 = vpop.permute.xlu1 %3376 }
 0x1d8   :  { %2507 = vst [vmem:[#allocation3 + $0x318] sm:$0xff] %v1820_v33  ;;  %5144 = vrot.lane.b32.xlu0 %v11531_v37, %s10357_s16  ;;  %v11548_v40 = vsel %vm2794_vm2, %v16030_v20, %v16029_v31  ;;  %v2124_v45 = vpop.f32.mrf.mxu1 }
 0x1d9   :  { %16195 = vst [vmem:[#allocation16_spill] sm:$0xff] %v11548_v40  ;;  %v1822_v16 = vpop.f32.mrf.mxu0  ;;  %5146 = vrot.lane.b32.xlu1 %v11541_v6, %s10357_s16  ;;  %2437 = vst.msk [vmem:[#allocation3 + $0xe8] sm:$0xff] %vm1501_vm1, %v2124_v45 }
 0x1da   :  { %2508 = vst [vmem:[#allocation3 + $0x320] sm:$0xff] %v1822_v16  ;;  %v11553_v52 = vpop.permute.xlu0 %2942  ;;  %v9840_v41 = vpop.f32.mrf.mxu1  ;;  %v3263_v16 = vsel %vm3230_vm3, %v3260_v0, %v16034_v59 }
 0x1db   :  { %v1826_v56 = vpop.f32.mrf.mxu0  ;;  %2452 = vst.msk [vmem:[#allocation3 + $0x160] sm:$0xff] %vm1501_vm1, %v9840_v41  ;;  %v11559_v57 = vpop.permute.xlu1 %2944 }
 0x1dc   :  { %2510 = vst [vmem:[#allocation3 + $0x330] sm:$0xff] %v1826_v56  ;;  %4844 = vrot.lane.b32.xlu0 %v11311_v53, %s10356_s2  ;;  %v2137_v46 = vpop.f32.mrf.mxu1 }
 0x1dd   :  { %v1828_v62 = vpop.f32.mrf.mxu0  ;;  %4846 = vrot.lane.b32.xlu1 %v11322_v58, %s10356_s2  ;;  %2446 = vst.msk [vmem:[#allocation3 + $0x130] sm:$0xff] %vm1501_vm1, %v2137_v46  ;;  %v4414_v46 = vrot.slane %v11322_v58, 2 }
 0x1de   :  { %2511 = vst [vmem:[#allocation3 + $0x338] sm:$0xff] %v1828_v62  ;;  %v11565_v4 = vpop.permute.xlu0 %3378  ;;  %v9841_v51 = vpop.f32.mrf.mxu1 }
 0x1df   :  { %v1830_v7 = vpop.f32.mrf.mxu0  ;;  %2455 = vst.msk [vmem:[#allocation3 + $0x178] sm:$0xff] %vm1501_vm1, %v9841_v51  ;;  %v11573_v9 = vpop.permute.xlu1 %3380  ;;  %v11583_v30 = vld [vmem:[#allocation3 + $0x318] sm:$0xff] }
 0x1e0   :  { %2513 = vst [vmem:[#allocation3 + $0x348] sm:$0xff] %v1830_v7  ;;  %2966 = vrot.lane.b32.xlu0 %v2825_v42, %s10355_s1  ;;  %v2140_v10 = vpop.f32.mrf.mxu1  ;;  %16196 = vst [vmem:[#allocation17_spill] sm:$0xff] %v11583_v30  ;;  %v16022_v49 = vrot.slane %v11583_v30, 1  ;;  %v16020_v23 = vrot.slane %v11583_v30, 2 }
 0x1e1   :  { %v1832_v54 = vpop.f32.mrf.mxu0  ;;  %2968 = vrot.lane.b32.xlu1 %v2827_v27, %s10355_s1  ;;  %2449 = vst.msk [vmem:[#allocation3 + $0x148] sm:$0xff] %vm1501_vm1, %v2140_v10 }
 0x1e2   :  { %2514 = vst [vmem:[#allocation3 + $0x350] sm:$0xff] %v1832_v54  ;;  %v11581_v39 = vpop.permute.xlu0 %3670  ;;  %v9844_v43 = vpop.f32.mrf.mxu1  ;;  %v16033_v54 = vrot.slane %v11340_v1, 2 }
 0x1e3   :  { %v1836_v18 = vpop.f32.mrf.mxu0  ;;  %v11588_v33 = vld [vmem:[#allocation3 + $0x330] sm:$0xff]  ;;  %2464 = vst.msk [vmem:[#allocation3 + $0x1c0] sm:$0xff] %vm1501_vm1, %v9844_v43  ;;  %v11592_v36 = vpop.permute.xlu1 %3672 }
 0x1e4   :  { %16197 = vst [vmem:[#allocation18_spill] sm:$0xff] %v11588_v33  ;;  %2516 = vst [vmem:[#allocation3 + $0x360] sm:$0xff] %v1836_v18  ;;  %3402 = vrot.lane.b32.xlu0 %v3261_v29, %s10356_s2  ;;  %v16021_v45 = vrot.slane %v11588_v33, 1  ;;  %v2153_v56 = vpop.f32.mrf.mxu1  ;;  %v16019_v41 = vrot.slane %v11588_v33, 2  ;;  %v16231_v33 = vrot.slane %v11340_v1, 2 }
 0x1e5   :  { %v1838_v61 = vpop.f32.mrf.mxu0  ;;  %3404 = vrot.lane.b32.xlu1 %v3263_v16, %s10356_s2  ;;  %2458 = vst.msk [vmem:[#allocation3 + $0x190] sm:$0xff] %vm1501_vm1, %v2153_v56  ;;  %v4123_v16 = vrot.slane %v11322_v58, 1  ;;  %v16032_v58 = vrot.slane %v11340_v1, 1 }
 0x1e6   :  { %2517 = vst [vmem:[#allocation3 + $0x368] sm:$0xff] %v1838_v61  ;;  %v11603_v62 = vpop.permute.xlu0 %2946  ;;  %v9845_v7 = vpop.f32.mrf.mxu1  ;;  %v11611_v51 = vsel %vm2794_vm2, %v16022_v49, %v16021_v45  ;;  %v11618_v42 = vsel %vm3230_vm3, %v16020_v23, %v16019_v41 }
 0x1e7   :  { %v1840_v0 = vpop.f32.mrf.mxu0  ;;  %16198 = vst [vmem:[#allocation19_spill] sm:$0xff] %v11611_v51  ;;  %16199 = vst [vmem:[#allocation20_spill] sm:$0xff] %v11618_v42  ;;  %v11623_v27 = vpop.permute.xlu1 %2948  ;;  %v11631_v29 = vld [vmem:[#allocation3 + $0x348] sm:$0xff]  ;;  %v11658_v2 = vsel %vm2794_vm2, %v4121_v17, %v4123_v16  ;;  %v11682_v17 = vsel %vm2794_vm2, %v4123_v16, %v16032_v58  ;;  %v16210_v51 = vrot.slane %v11328_v32, 1 }
 0x1e8   :  { %2519 = vst [vmem:[#allocation3 + $0x378] sm:$0xff] %v1840_v0  ;;  %2467 = vst.msk [vmem:[#allocation3 + $0x1d8] sm:$0xff] %vm1501_vm1, %v9845_v7  ;;  %3694 = vrot.lane.b32.xlu0 %v11328_v32, %s10357_s16  ;;  %v2156_v18 = vpop.f32.mrf.mxu1  ;;  %v4415_v0 = vsel %vm3230_vm3, %v4412_v34, %v4414_v46  ;;  %v16028_v34 = vrot.slane %v11631_v29, 1 }
 0x1e9   :  { %v1842_v10 = vpop.f32.mrf.mxu0  ;;  %3696 = vrot.lane.b32.xlu1 %v11346_v55, %s10357_s16  ;;  %2461 = vst.msk [vmem:[#allocation3 + $0x1a8] sm:$0xff] %vm1501_vm1, %v2156_v18  ;;  %16200 = vst [vmem:[#allocation21_spill] sm:$0xff] %v11631_v29  ;;  %v4417_v18 = vsel %vm3230_vm3, %v4414_v46, %v16033_v54 }
 0x1ea   :  { %2520 = vst [vmem:[#allocation3 + $0x380] sm:$0xff] %v1842_v10  ;;  %v11629_v43 = vpop.permute.xlu0 %3382  ;;  %v9848_v56 = vpop.f32.mrf.mxu1  ;;  %16202 = vst [vmem:[#allocation23_spill] sm:$0xff] %v11658_v2 }
 0x1eb   :  { %v1846_v61 = vpop.f32.mrf.mxu0  ;;  %v11637_v7 = vld [vmem:[#allocation3 + $0x360] sm:$0xff]  ;;  %2476 = vst.msk [vmem:[#allocation3 + $0x220] sm:$0xff] %vm1501_vm1, %v9848_v56  ;;  %v11641_v10 = vpop.permute.xlu1 %3384  ;;  %16205 = vst [vmem:[#allocation26_spill] sm:$0xff] %v11682_v17 }
 0x1ec   :  { %16201 = vst [vmem:[#allocation22_spill] sm:$0xff] %v11637_v7  ;;  %2522 = vst [vmem:[#allocation3 + $0x390] sm:$0xff] %v1846_v61  ;;  %4556 = vrot.lane.b32.xlu0 %v4415_v0, %s10355_s1  ;;  %v2169_v23 = vpop.f32.mrf.mxu1  ;;  %v16027_v61 = vrot.slane %v11631_v29, 2  ;;  %v16025_v56 = vrot.slane %v11637_v7, 1  ;;  %v16026_v0 = vrot.slane %v11637_v7, 2 }
 0x1ed   :  { %v1848_v41 = vpop.f32.mrf.mxu0  ;;  %4558 = vrot.lane.b32.xlu1 %v4417_v18, %s10355_s1  ;;  %2470 = vst.msk [vmem:[#allocation3 + $0x1f0] sm:$0xff] %vm1501_vm1, %v2169_v23 }
 0x1ee   :  { %2523 = vst [vmem:[#allocation3 + $0x398] sm:$0xff] %v1848_v41  ;;  %v11653_v45 = vpop.permute.xlu0 %3674  ;;  %v9849_v49 = vpop.f32.mrf.mxu1  ;;  %v11665_v18 = vsel %vm2794_vm2, %v16028_v34, %v16025_v56  ;;  %v11672_v23 = vsel %vm3230_vm3, %v16027_v61, %v16026_v0  ;;  %v2828_v0 = vrot.slane %v11346_v55, 1 }
 0x1ef   :  { %v1850_v46 = vpop.f32.mrf.mxu0  ;;  %16203 = vst [vmem:[#allocation24_spill] sm:$0xff] %v11665_v18  ;;  %16204 = vst [vmem:[#allocation25_spill] sm:$0xff] %v11672_v23  ;;  %v11677_v53 = vpop.permute.xlu1 %3676 }
 0x1f0   :  { %2525 = vst [vmem:[#allocation3 + $0x3a8] sm:$0xff] %v1850_v46  ;;  %2479 = vst.msk [vmem:[#allocation3 + $0x238] sm:$0xff] %vm1501_vm1, %v9849_v49  ;;  %5148 = vrot.lane.b32.xlu0 %v11658_v2, %s10357_s16  ;;  %v2172_v56 = vpop.f32.mrf.mxu1  ;;  %v11689_v49 = vld [vmem:[#allocation3 + $0x378] sm:$0xff] }
 0x1f1   :  { %v1852_v41 = vpop.f32.mrf.mxu0  ;;  %5150 = vrot.lane.b32.xlu1 %v11682_v17, %s10357_s16  ;;  %2473 = vst.msk [vmem:[#allocation3 + $0x208] sm:$0xff] %vm1501_vm1, %v2172_v56  ;;  %16206 = vst [vmem:[#allocation27_spill] sm:$0xff] %v11689_v49  ;;  %v16212_v59 = vrot.slane %v11689_v49, 1 }
 0x1f2   :  { %2526 = vst [vmem:[#allocation3 + $0x3b0] sm:$0xff] %v1852_v41  ;;  %v11687_v46 = vpop.permute.xlu0 %4536  ;;  %v9852_v34 = vpop.f32.mrf.mxu1  ;;  %v11700_v41 = vld [vmem:[#allocation3 + $0x380] sm:$0xff] }
 0x1f3   :  { %v1856_v61 = vpop.f32.mrf.mxu0  ;;  %v11692_v31 = vld [vmem:[#allocation3 + $0x390] sm:$0xff]  ;;  %2488 = vst.msk [vmem:[#allocation3 + $0x280] sm:$0xff] %vm1501_vm1, %v9852_v34  ;;  %v11697_v16 = vpop.permute.xlu1 %4538  ;;  %16208 = vst [vmem:[#allocation29_spill] sm:$0xff] %v11700_v41  ;;  %v16217_v34 = vrot.slane %v11358_v12, 1 }
 0x1f4   :  { %16207 = vst [vmem:[#allocation28_spill] sm:$0xff] %v11692_v31  ;;  %2528 = vst [vmem:[#allocation3 + $0x3c0] sm:$0xff] %v1856_v61  ;;  %4848 = vrot.lane.b32.xlu0 %v11340_v1, %s10356_s2  ;;  %v2185_v24 = vpop.f32.mrf.mxu1  ;;  %v2829_v61 = vsel %vm2794_vm2, %v16210_v51, %v2828_v0  ;;  %v16211_v54 = vrot.slane %v11692_v31, 1 }
 0x1f5   :  { %v1858_v20 = vpop.f32.mrf.mxu0  ;;  %4850 = vrot.lane.b32.xlu1 %v11355_v21, %s10356_s2  ;;  %v11704_v58 = vld [vmem:[#allocation3 + $0x398] sm:$0xff]  ;;  %2482 = vst.msk [vmem:[#allocation3 + $0x250] sm:$0xff] %vm1501_vm1, %v2185_v24  ;;  %v16214_v24 = vrot.slane %v11692_v31, 2  ;;  %v2831_v7 = vsel %vm2794_vm2, %v2828_v0, %v16217_v34 }
 0x1f6   :  { %16209 = vst [vmem:[#allocation30_spill] sm:$0xff] %v11704_v58  ;;  %2529 = vst [vmem:[#allocation3 + $0x3c8] sm:$0xff] %v1858_v20  ;;  %v11712_v56 = vpop.permute.xlu0 %2950  ;;  %v9853_v18 = vpop.f32.mrf.mxu1  ;;  %v11724_v55 = vsel %vm2794_vm2, %v16212_v59, %v16211_v54  ;;  %v16215_v20 = vrot.slane %v11689_v49, 2 }
 0x1f7   :  { %v1860_v42 = vpop.f32.mrf.mxu0  ;;  %16213 = vst [vmem:[#allocation31_spill] sm:$0xff] %v11724_v55  ;;  %2491 = vst.msk [vmem:[#allocation3 + $0x298] sm:$0xff] %vm1501_vm1, %v9853_v18  ;;  %v11735_v51 = vpop.permute.xlu1 %2952  ;;  %v11742_v31 = vld [vmem:[#allocation3 + $0x3a8] sm:$0xff]  ;;  %v16220_v18 = vrot.slane %v11700_v41, 2 }
 0x1f8   :  { %v11731_v23 = vsel %vm3230_vm3, %v16215_v20, %v16214_v24  ;;  %2531 = vst [vmem:[#allocation3 + $0x3d8] sm:$0xff] %v1860_v42  ;;  %2970 = vrot.lane.b32.xlu0 %v2829_v61, %s10355_s1  ;;  %v2188_v55 = vpop.f32.mrf.mxu1  ;;  %16218 = vst [vmem:[#allocation33_spill] sm:$0xff] %v11742_v31  ;;  %v16219_v42 = vrot.slane %v11704_v58, 2  ;;  %v16222_v20 = vrot.slane %v11328_v32, 2  ;;  %v16043_v32 = vrot.slane %v11742_v31, 1 }
 0x1f9   :  { %16216 = vst [vmem:[#allocation32_spill] sm:$0xff] %v11731_v23  ;;  %v1862_v54 = vpop.f32.mrf.mxu0  ;;  %2972 = vrot.lane.b32.xlu1 %v2831_v7, %s10355_s1  ;;  %2485 = vst.msk [vmem:[#allocation3 + $0x268] sm:$0xff] %vm1501_vm1, %v2188_v55 }
 0x1fa   :  { %v11749_v61 = vsel %vm3230_vm3, %v16220_v18, %v16219_v42  ;;  %2532 = vst [vmem:[#allocation3 + $0x3e0] sm:$0xff] %v1862_v54  ;;  %v11752_v24 = vpop.permute.xlu0 %3386  ;;  %v9856_v34 = vpop.f32.mrf.mxu1  ;;  %v3265_v7 = vsel %vm3230_vm3, %v16222_v20, %v3264_v15  ;;  %v16224_v54 = vrot.slane %v11358_v12, 2  ;;  %v11766_v18 = vld [vmem:[#allocation3 + $0x3b0] sm:$0xff] }
 0x1fb   :  { %16221 = vst [vmem:[#allocation34_spill] sm:$0xff] %v11749_v61  ;;  %v1866_v0 = vpop.f32.mrf.mxu0  ;;  %v11757_v59 = vld [vmem:[#allocation3 + $0x3c0] sm:$0xff]  ;;  %2500 = vst.msk [vmem:[#allocation3 + $0x2e0] sm:$0xff] %vm1501_vm1, %v9856_v34  ;;  %v11761_v42 = vpop.permute.xlu1 %3388  ;;  %v16051_v41 = vrot.slane %v11766_v18, 2 }
 0x1fc   :  { %16223 = vst [vmem:[#allocation35_spill] sm:$0xff] %v11757_v59  ;;  %2534 = vst [vmem:[#allocation3 + $0x3f0] sm:$0xff] %v1866_v0  ;;  %3406 = vrot.lane.b32.xlu0 %v3265_v7, %s10356_s2  ;;  %v3267_v55 = vsel %vm3230_vm3, %v3264_v15, %v16224_v54  ;;  %v16044_v61 = vrot.slane %v11757_v59, 1  ;;  %v2201_v23 = vpop.f32.mrf.mxu1  ;;  %v4418_v54 = vrot.slane %v11355_v21, 2 }
 0x1fd   :  { %16225 = vst [vmem:[#allocation36_spill] sm:$0xff] %v11766_v18  ;;  %v1868_v20 = vpop.f32.mrf.mxu0  ;;  %3408 = vrot.lane.b32.xlu1 %v3267_v55, %s10356_s2  ;;  %v11771_v0 = vld [vmem:[#allocation3 + $0x3c8] sm:$0xff]  ;;  %2494 = vst.msk [vmem:[#allocation3 + $0x2b0] sm:$0xff] %vm1501_vm1, %v2201_v23 }
 0x1fe   :  { %16226 = vst [vmem:[#allocation37_spill] sm:$0xff] %v11771_v0  ;;  %2535 = vst [vmem:[#allocation3 + $0x3f8] sm:$0xff] %v1868_v20  ;;  %v11774_v34 = vpop.permute.xlu0 %3678  ;;  %v11782_v15 = vsel %vm2794_vm2, %v16043_v32, %v16044_v61  ;;  %v9857_v55 = vpop.f32.mrf.mxu1  ;;  %v16228_v32 = vrot.slane %v11771_v0, 2  ;;  %v4127_v20 = vrot.slane %v11355_v21, 1  ;;  %v4419_v29 = vsel %vm3230_vm3, %v16231_v33, %v4418_v54 }
 0x1ff   :  { %16227 = vst [vmem:[#allocation38_spill] sm:$0xff] %v11782_v15  ;;  %v1870_v58 = vpop.f32.mrf.mxu0  ;;  %2503 = vst.msk [vmem:[#allocation3 + $0x2f8] sm:$0xff] %vm1501_vm1, %v9857_v55  ;;  %v11789_v23 = vpop.permute.xlu1 %3680  ;;  %v16056_v18 = vrot.slane %v11771_v0, 1 }
 0x200   :  { %2537 = vst [vmem:[#allocation3 + $0x408] sm:$0xff] %v1870_v58  ;;  %3698 = vrot.lane.b32.xlu0 %v11358_v12, %s10357_s16  ;;  %v2204_v31 = vpop.f32.mrf.mxu1  ;;  %v11799_v58 = vsel %vm3230_vm3, %v16051_v41, %v16228_v32  ;;  %v16234_v41 = vrot.slane %v11340_v1, 1  ;;  %v16237_v1 = vrot.slane %v11371_v11, 1 }
 0x201   :  { %v1872_v7 = vpop.f32.mrf.mxu0  ;;  %3700 = vrot.lane.b32.xlu1 %v11375_v35, %s10357_s16  ;;  %16229 = vst [vmem:[#allocation39_spill] sm:$0xff] %v11799_v58  ;;  %2497 = vst.msk [vmem:[#allocation3 + $0x2c8] sm:$0xff] %vm1501_vm1, %v2204_v31  ;;  %v11804_v61 = vld [vmem:[#allocation3 + $0x3e0] sm:$0xff]  ;;  %v16232_v31 = vrot.slane %v11371_v11, 2 }
 0x202   :  { %2538 = vst [vmem:[#allocation3 + $0x410] sm:$0xff] %v1872_v7  ;;  %v11802_v55 = vpop.permute.xlu0 %4540  ;;  %16230 = vst [vmem:[#allocation40_spill] sm:$0xff] %v11804_v61  ;;  %v9860_v49 = vpop.f32.mrf.mxu1  ;;  %v11830_v30 = vsel %vm2794_vm2, %v16234_v41, %v4127_v20  ;;  %v11848_v41 = vsel %vm2794_vm2, %v4127_v20, %v16237_v1  ;;  %v2832_v20 = vrot.slane %v11375_v35, 1 }
 0x203   :  { %v1876_v15 = vpop.f32.mrf.mxu0  ;;  %2512 = vst.msk [vmem:[#allocation3 + $0x340] sm:$0xff] %vm1501_vm1, %v9860_v49  ;;  %v11812_v32 = vpop.permute.xlu1 %4542  ;;  %v4421_v7 = vsel %vm3230_vm3, %v4418_v54, %v16232_v31  ;;  %v16055_v49 = vrot.slane %v11804_v61, 1  ;;  %16235 = vst [vmem:[#allocation42_spill] sm:$0xff] %v11830_v30 }
 0x204   :  { %2540 = vst [vmem:[#allocation3 + $0x420] sm:$0xff] %v1876_v15  ;;  %4560 = vrot.lane.b32.xlu0 %v4419_v29, %s10355_s1  ;;  %v2217_v58 = vpop.f32.mrf.mxu1  ;;  %16238 = vst [vmem:[#allocation44_spill] sm:$0xff] %v11848_v41 }
 0x205   :  { %v1878_v21 = vpop.f32.mrf.mxu0  ;;  %4562 = vrot.lane.b32.xlu1 %v4421_v7, %s10355_s1  ;;  %v11820_v33 = vld [vmem:[#allocation3 + $0x3f8] sm:$0xff]  ;;  %2506 = vst.msk [vmem:[#allocation3 + $0x310] sm:$0xff] %vm1501_vm1, %v2217_v58 }
 0x206   :  { %16233 = vst [vmem:[#allocation41_spill] sm:$0xff] %v11820_v33  ;;  %2541 = vst [vmem:[#allocation3 + $0x428] sm:$0xff] %v1878_v21  ;;  %v11824_v29 = vpop.permute.xlu0 %4832  ;;  %v9861_v31 = vpop.f32.mrf.mxu1  ;;  %v11838_v21 = vsel %vm2794_vm2, %v16056_v18, %v16055_v49 }
 0x207   :  { %v1880_v54 = vpop.f32.mrf.mxu0  ;;  %16236 = vst [vmem:[#allocation43_spill] sm:$0xff] %v11838_v21  ;;  %2515 = vst.msk [vmem:[#allocation3 + $0x358] sm:$0xff] %vm1501_vm1, %v9861_v31  ;;  %v11843_v58 = vpop.permute.xlu1 %4834  ;;  %v16241_v31 = vrot.slane %v11804_v61, 2 }
 0x208   :  { %2543 = vst [vmem:[#allocation3 + $0x438] sm:$0xff] %v1880_v54  ;;  %5152 = vrot.lane.b32.xlu0 %v11830_v30, %s10357_s16  ;;  %v2220_v15 = vpop.f32.mrf.mxu1  ;;  %v16240_v54 = vrot.slane %v11820_v33, 2 }
 0x209   :  { %v1882_v7 = vpop.f32.mrf.mxu0  ;;  %5154 = vrot.lane.b32.xlu1 %v11848_v41, %s10357_s16  ;;  %v11852_v49 = vld [vmem:[#allocation3 + $0x410] sm:$0xff]  ;;  %2509 = vst.msk [vmem:[#allocation3 + $0x328] sm:$0xff] %vm1501_vm1, %v2220_v15  ;;  %v3268_v15 = vrot.slane %v11375_v35, 2  ;;  %v3155_v41 = vadd.f32 %v10215_v60, %v11506_v47  ;;  %v16246_v47 = vrot.slane %v11385_v44, 1 }
 0x20a   :  { %16239 = vst [vmem:[#allocation45_spill] sm:$0xff] %v11852_v49  ;;  %v11859_v18 = vsel %vm3230_vm3, %v16241_v31, %v16240_v54  ;;  %2544 = vst [vmem:[#allocation3 + $0x440] sm:$0xff] %v1882_v7  ;;  %v11862_v21 = vpop.permute.xlu0 %2954  ;;  %v9864_v59 = vpop.f32.mrf.mxu1  ;;  %v16072_v8 = vrot.slane %v11852_v49, 1  ;;  %v10214_v7 = vld [vmem:[#allocation3] sm:$0xff] }
 0x20b   :  { %16242 = vst [vmem:[#allocation46_spill] sm:$0xff] %v11859_v18  ;;  %v1886_v1 = vpop.f32.mrf.mxu0  ;;  %2524 = vst.msk [vmem:[#allocation3 + $0x3a0] sm:$0xff] %vm1501_vm1, %v9864_v59  ;;  %v11870_v54 = vpop.permute.xlu1 %2956  ;;  %v3154_v31 = vadd.f32 %v10214_v7, %v11504_v13  ;;  %v3958_v18 = vld [vmem:[#allocation3 + $0x68] sm:$0xfe]  ;;  %v16243_v59 = vrot.slane %v11820_v33, 1  ;;  %v16245_v33 = vrot.slane %v11358_v12, 1  ;;  %v2835_v60 = vsel %vm2794_vm2, %v2832_v20, %v16246_v47 }
 0x20c   :  { %2546 = vst [vmem:[#allocation3 + $0x450] sm:$0xff] %v1886_v1  ;;  %4852 = vrot.lane.b32.xlu0 %v11371_v11, %s10356_s2  ;;  %v2233_v40 = vpop.f32.mrf.mxu1 }
 0x20d   :  { %v1888_v61 = vpop.f32.mrf.mxu0  ;;  %4854 = vrot.lane.b32.xlu1 %v11381_v25, %s10356_s2  ;;  %v11876_v0 = vld [vmem:[#allocation3 + $0x428] sm:$0xff]  ;;  %v11883_v1 = vsel %vm2794_vm2, %v16243_v59, %v16072_v8  ;;  %2518 = vst.msk [vmem:[#allocation3 + $0x370] sm:$0xff] %vm1501_vm1, %v2233_v40  ;;  %v3590_v30 = vadd.f32 %v11524_v3, %v3154_v31  ;;  %v2833_v59 = vsel %vm2794_vm2, %v16245_v33, %v2832_v20  ;;  %v3270_v3 = vrot.slane %v11385_v44, 2 }
 0x20e   :  { %16244 = vst [vmem:[#allocation47_spill] sm:$0xff] %v11883_v1  ;;  %2547 = vst [vmem:[#allocation3 + $0x458] sm:$0xff] %v1888_v61  ;;  %v11887_v13 = vpop.permute.xlu0 %3390  ;;  %v16073_v7 = vrot.slane %v11876_v0, 2  ;;  %v9865_v2 = vpop.f32.mrf.mxu1  ;;  %v4102_v61 = vrot.slane %v3958_v18, 1  ;;  %v3591_v31 = vadd.f32 %v11536_v38, %v3155_v41 }
 0x20f   :  { %v1890_v17 = vpop.f32.mrf.mxu0  ;;  %2527 = vst.msk [vmem:[#allocation3 + $0x3b8] sm:$0xff] %vm1501_vm1, %v9865_v2  ;;  %v11898_v40 = vpop.permute.xlu1 %3392  ;;  %v3886_v33 = vadd.f32 %v11581_v39, %v3590_v30  ;;  %v16247_v2 = vrot.slane %v11852_v49, 2  ;;  %v16249_v30 = vrot.slane %v11358_v12, 2 }
 0x210   :  { %2549 = vst [vmem:[#allocation3 + $0x468] sm:$0xff] %v1890_v17  ;;  %2974 = vrot.lane.b32.xlu0 %v2833_v59, %s10355_s1  ;;  %v2236_v35 = vpop.f32.mrf.mxu1  ;;  %v3887_v38 = vadd.f32 %v11592_v36, %v3591_v31  ;;  %v16250_v59 = vrot.slane %v11161_v50, 1  ;;  %v3271_v36 = vsel %vm3230_vm3, %v3268_v15, %v3270_v3  ;;  %v5425_v31 = vld [vmem:[#allocation3 + $0xe8] sm:$0xff] }
 0x211   :  { %v1892_v8 = vpop.f32.mrf.mxu0  ;;  %2976 = vrot.lane.b32.xlu1 %v2835_v60, %s10355_s1  ;;  %v11912_v17 = vsel %vm3230_vm3, %v16247_v2, %v16073_v7  ;;  %2521 = vst.msk [vmem:[#allocation3 + $0x388] sm:$0xff] %vm1501_vm1, %v2236_v35  ;;  %v3269_v20 = vsel %vm3230_vm3, %v16249_v30, %v3268_v15  ;;  %v11932_v50 = vld [vmem:[#allocation3 + $0x1e8] sm:$0xff]  ;;  %v5424_v30 = vld [vmem:[#allocation3 + $0xd0] sm:$0xfc] }
 0x212   :  { %16248 = vst [vmem:[#allocation48_spill] sm:$0xff] %v11912_v17  ;;  %2550 = vst [vmem:[#allocation3 + $0x470] sm:$0xff] %v1892_v8  ;;  %v11915_v18 = vpop.permute.xlu0 %3682  ;;  %v9868_v39 = vpop.f32.mrf.mxu1  ;;  %v4104_v47 = vsel %vm2794_vm2, %v4102_v61, %v16250_v59  ;;  %v5569_v59 = vrot.slane %v5425_v31, 2 }
 0x213   :  { %v1896_v41 = vpop.f32.mrf.mxu0  ;;  %2536 = vst.msk [vmem:[#allocation3 + $0x400] sm:$0xff] %vm1501_vm1, %v9868_v39  ;;  %v11926_v8 = vpop.permute.xlu1 %3684  ;;  %v4317_v35 = vadd.f32 %v4104_v47, %v3886_v33  ;;  %v4422_v39 = vrot.slane %v11381_v25, 2  ;;  %v16074_v47 = vrot.slane %v11932_v50, 2 }
 0x214   :  { %2552 = vst [vmem:[#allocation3 + $0x480] sm:$0xff] %v1896_v41  ;;  %3410 = vrot.lane.b32.xlu0 %v3269_v20, %s10356_s2  ;;  %v2249_v12 = vpop.f32.mrf.mxu1  ;;  %v4318_v41 = vadd.f32 %v11188_v63, %v3887_v38 }
 0x215   :  { %v1898_v60 = vpop.f32.mrf.mxu0  ;;  %3412 = vrot.lane.b32.xlu1 %v3271_v36, %s10356_s2  ;;  %2530 = vst.msk [vmem:[#allocation3 + $0x3d0] sm:$0xff] %vm1501_vm1, %v2249_v12  ;;  %v4752_v2 = vadd.f32 %v11687_v46, %v4317_v35  ;;  %v11950_v35 = vld [vmem:[#allocation3 + $0x100] sm:$0xff] }
 0x216   :  { %2553 = vst [vmem:[#allocation3 + $0x488] sm:$0xff] %v1898_v60  ;;  %v11935_v61 = vpop.permute.xlu0 %4544  ;;  %v9869_v33 = vpop.f32.mrf.mxu1  ;;  %v4753_v46 = vadd.f32 %v11697_v16, %v4318_v41  ;;  %v5568_v60 = vrot.slane %v5424_v30, 2 }
 0x217   :  { %v1900_v15 = vpop.f32.mrf.mxu0  ;;  %2539 = vst.msk [vmem:[#allocation3 + $0x418] sm:$0xff] %vm1501_vm1, %v9869_v33  ;;  %v11943_v20 = vpop.permute.xlu1 %4546  ;;  %v5048_v63 = vadd.f32 %v11824_v29, %v4752_v2  ;;  %v16251_v29 = vrot.slane %v11371_v11, 2 }
 0x218   :  { %2555 = vst [vmem:[#allocation3 + $0x498] sm:$0xff] %v1900_v15  ;;  %3702 = vrot.lane.b32.xlu0 %v11385_v44, %s10357_s16  ;;  %v2252_v36 = vpop.f32.mrf.mxu1  ;;  %v5049_v31 = vadd.f32 %v11843_v58, %v4753_v46  ;;  %v4131_v15 = vrot.slane %v11381_v25, 1  ;;  %v4425_v25 = vsel %vm3230_vm3, %v4422_v39, %v16074_v47  ;;  %v16076_v58 = vrot.slane %v11932_v50, 1 }
 0x219   :  { %v1902_v38 = vpop.f32.mrf.mxu0  ;;  %3704 = vrot.lane.b32.xlu1 %v11398_v26, %s10357_s16  ;;  %2533 = vst.msk [vmem:[#allocation3 + $0x3e8] sm:$0xff] %vm1501_vm1, %v2252_v36  ;;  %v4423_v2 = vsel %vm3230_vm3, %v16251_v29, %v4422_v39  ;;  %v5570_v26 = vsel %vm3230_vm3, %v5568_v60, %v5569_v59 }
 0x21a   :  { %2556 = vst [vmem:[#allocation3 + $0x4a0] sm:$0xff] %v1902_v38  ;;  %v5137_v12 = vpop.permute.xlu0 %5136  ;;  %v9872_v16 = vpop.f32.mrf.mxu1  ;;  %v16075_v38 = vrot.slane %v11950_v35, 2 }
 0x21b   :  { %v1906_v33 = vpop.f32.mrf.mxu0  ;;  %v5352_v41 = vadd.f32 %v5137_v12, %v5048_v63  ;;  %2548 = vst.msk [vmem:[#allocation3 + $0x460] sm:$0xff] %vm1501_vm1, %v9872_v16  ;;  %v5139_v30 = vpop.permute.xlu1 %5138 }
 0x21c   :  { %2558 = vst [vmem:[#allocation3 + $0x4b0] sm:$0xff] %v1906_v33  ;;  %4564 = vrot.lane.b32.xlu0 %v4423_v2, %s10355_s1  ;;  %v2265_v63 = vpop.f32.mrf.mxu1  ;;  %v5353_v12 = vadd.f32 %v5139_v30, %v5049_v31  ;;  %v5572_v60 = vsel %vm3230_vm3, %v5569_v59, %v16075_v38  ;;  %v16252_v2 = vrot.slane %v11371_v11, 1  ;;  %v11987_v59 = vsel %vm2794_vm2, %v4131_v15, %v16076_v58  ;;  %v11992_v30 = vld [vmem:[#allocation3 + $0x210] sm:$0xff] }
 0x21d   :  { %v1908_v46 = vpop.f32.mrf.mxu0  ;;  %v5783_v36 = vadd.f32 %v5570_v26, %v5352_v41  ;;  %4566 = vrot.lane.b32.xlu1 %v4425_v25, %s10355_s1  ;;  %2542 = vst.msk [vmem:[#allocation3 + $0x430] sm:$0xff] %vm1501_vm1, %v2265_v63 }
 0x21e   :  { %2559 = vst [vmem:[#allocation3 + $0x4b8] sm:$0xff] %v1908_v46  ;;  %v11971_v33 = vpop.permute.xlu0 %4836  ;;  %v9873_v16 = vpop.f32.mrf.mxu1  ;;  %v5784_v29 = vadd.f32 %v5572_v60, %v5353_v12  ;;  %v11977_v31 = vsel %vm2794_vm2, %v16252_v2, %v4131_v15  ;;  %v10216_v46 = vld [vmem:[#allocation3 + $0x1f8] sm:$0xff]  ;;  %v12002_v60 = vld [vmem:[#allocation3 + $0x200] sm:$0xff] }
 0x21f   :  { %5855 = vst.msk [vmem:[#allocation4] sm:$0xff] %vm1501_vm1, %v5783_v36  ;;  %v1910_v39 = vpop.f32.mrf.mxu0  ;;  %2551 = vst.msk [vmem:[#allocation3 + $0x478] sm:$0xff] %vm1501_vm1, %v9873_v16  ;;  %v11982_v41 = vpop.permute.xlu1 %4838  ;;  %v2836_v63 = vrot.slane %v10216_v46, 1  ;;  %v10217_v16 = vld [vmem:[#allocation3 + $0x30] sm:$0xff]  ;;  %v3272_v47 = vrot.slane %v10216_v46, 2 }
 0x220   :  { %2561 = vst [vmem:[#allocation3 + $0x4c8] sm:$0xff] %v1910_v39  ;;  %5156 = vrot.lane.b32.xlu0 %v11977_v31, %s10357_s16  ;;  %5856 = vst.msk [vmem:[#allocation4 + $0x8] sm:$0xff] %vm1501_vm1, %v5784_v29  ;;  %v2268_v11 = vpop.f32.mrf.mxu1  ;;  %v2838_v39 = vrot.slane %v11992_v30, 1  ;;  %v3156_v29 = vadd.f32 %v10217_v16, %v11553_v52  ;;  %v16253_v52 = vrot.slane %v11385_v44, 1  ;;  %v5427_v44 = vld [vmem:[#allocation3 + $0x118] sm:$0xff] }
 0x221   :  { %v1912_v26 = vpop.f32.mrf.mxu0  ;;  %5158 = vrot.lane.b32.xlu1 %v11987_v59, %s10357_s16  ;;  %2545 = vst.msk [vmem:[#allocation3 + $0x448] sm:$0xff] %vm1501_vm1, %v2268_v11 }
 0x222   :  { %2562 = vst [vmem:[#allocation3 + $0x4d0] sm:$0xff] %v1912_v26  ;;  %v11995_v25 = vpop.permute.xlu0 %2958  ;;  %v9876_v12 = vpop.f32.mrf.mxu1  ;;  %v3592_v7 = vadd.f32 %v11565_v4, %v3156_v29  ;;  %v2837_v16 = vsel %vm2794_vm2, %v16253_v52, %v2836_v63  ;;  %v16077_v4 = vrot.slane %v11992_v30, 2 }
 0x223   :  { %v1916_v36 = vpop.f32.mrf.mxu0  ;;  %2560 = vst.msk [vmem:[#allocation3 + $0x4c0] sm:$0xff] %vm1501_vm1, %v9876_v12  ;;  %v12000_v15 = vpop.permute.xlu1 %2960 }
 0x224   :  { %2564 = vst [vmem:[#allocation3 + $0x4e0] sm:$0xff] %v1916_v36  ;;  %4856 = vrot.lane.b32.xlu0 %v11932_v50, %s10356_s2  ;;  %v2281_v26 = vpop.f32.mrf.mxu1  ;;  %v10218_v36 = vld [vmem:[#allocation3 + $0x48] sm:$0xff]  ;;  %v3888_v29 = vadd.f32 %v11653_v45, %v3592_v7  ;;  %v3275_v45 = vsel %vm3230_vm3, %v3272_v47, %v16077_v4 }
 0x225   :  { %v1918_v2 = vpop.f32.mrf.mxu0  ;;  %4858 = vrot.lane.b32.xlu1 %v12002_v60, %s10356_s2  ;;  %2554 = vst.msk [vmem:[#allocation3 + $0x490] sm:$0xff] %vm1501_vm1, %v2281_v26  ;;  %v3157_v12 = vadd.f32 %v10218_v36, %v11559_v57  ;;  %v2839_v57 = vsel %vm2794_vm2, %v2836_v63, %v2838_v39  ;;  %v3273_v63 = vsel %vm3230_vm3, %v3270_v3, %v3272_v47  ;;  %v4135_v47 = vrot.slane %v12002_v60, 1 }
 0x226   :  { %2565 = vst [vmem:[#allocation3 + $0x4e8] sm:$0xff] %v1918_v2  ;;  %v12009_v11 = vpop.permute.xlu0 %3394  ;;  %v9877_v58 = vpop.f32.mrf.mxu1  ;;  %v4319_v7 = vadd.f32 %v11207_v14, %v3888_v29  ;;  %v12051_v29 = vld [vmem:[#allocation3 + $0x130] sm:$0xff] }
 0x227   :  { %v1920_v38 = vpop.f32.mrf.mxu0  ;;  %2563 = vst.msk [vmem:[#allocation3 + $0x4d8] sm:$0xff] %vm1501_vm1, %v9877_v58  ;;  %v12018_v2 = vpop.permute.xlu1 %3396  ;;  %v3593_v46 = vadd.f32 %v11573_v9, %v3157_v12 }
 0x228   :  { %2567 = vst [vmem:[#allocation3 + $0x4f8] sm:$0xff] %v1920_v38  ;;  %2978 = vrot.lane.b32.xlu0 %v2837_v16, %s10355_s1  ;;  %v2284_v36 = vpop.f32.mrf.mxu1 }
 0x229   :  { %v1922_v26 = vpop.f32.mrf.mxu0  ;;  %2980 = vrot.lane.b32.xlu1 %v2839_v57, %s10355_s1  ;;  %2557 = vst.msk [vmem:[#allocation3 + $0x4a8] sm:$0xff] %vm1501_vm1, %v2284_v36  ;;  %v3889_v58 = vadd.f32 %v11677_v53, %v3593_v46  ;;  %v12043_v57 = vld [vmem:[#allocation3 + $0x218] sm:$0xff]  ;;  %v4754_v46 = vadd.f32 %v11802_v55, %v4319_v7 }
 0x22a   :  { %2568 = vst [vmem:[#allocation3 + $0x500] sm:$0xff] %v1922_v26  ;;  %v12028_v38 = vpop.permute.xlu0 %3686  ;;  %v9880_v16 = vpop.f32.mrf.mxu1  ;;  %v16080_v55 = vrot.slane %v12043_v57, 1 }
 0x22b   :  { %v1926_v52 = vpop.f32.mrf.mxu0  ;;  %2572 = vst.msk [vmem:[#allocation3 + $0x520] sm:$0xff] %vm1501_vm1, %v9880_v16  ;;  %v12036_v9 = vpop.permute.xlu1 %3688  ;;  %v4320_v26 = vadd.f32 %v11222_v48, %v3889_v58  ;;  %v5573_v16 = vrot.slane %v5427_v44, 2  ;;  %v5050_v58 = vadd.f32 %v11971_v33, %v4754_v46  ;;  %v16254_v33 = vrot.slane %v11932_v50, 1 }
 0x22c   :  { %2570 = vst [vmem:[#allocation3 + $0x510] sm:$0xff] %v1926_v52  ;;  %3414 = vrot.lane.b32.xlu0 %v3273_v63, %s10356_s2  ;;  %v2297_v12 = vpop.f32.mrf.mxu1  ;;  %v12058_v63 = vld [vmem:[#allocation3 + $0x228] sm:$0xff] }
 0x22d   :  { %v1928_v53 = vpop.f32.mrf.mxu0  ;;  %3416 = vrot.lane.b32.xlu1 %v3275_v45, %s10356_s2  ;;  %2566 = vst.msk [vmem:[#allocation3 + $0x4f0] sm:$0xff] %vm1501_vm1, %v2297_v12  ;;  %v4755_v48 = vadd.f32 %v11812_v32, %v4320_v26  ;;  %v16079_v12 = vrot.slane %v12051_v29, 2  ;;  %v12072_v46 = vsel %vm2794_vm2, %v16254_v33, %v4135_v47  ;;  %v16256_v26 = vrot.slane %v11950_v35, 2 }
 0x22e   :  { %2571 = vst [vmem:[#allocation3 + $0x518] sm:$0xff] %v1928_v53  ;;  %v12046_v3 = vpop.permute.xlu0 %4548  ;;  %v9881_v14 = vpop.f32.mrf.mxu1  ;;  %16255 = vst [vmem:[#allocation49_spill] sm:$0xff] %v12072_v46 }
 0x22f   :  { %v1930_v36 = vpop.f32.mrf.mxu0  ;;  %2575 = vst.msk [vmem:[#allocation3 + $0x538] sm:$0xff] %vm1501_vm1, %v9881_v14  ;;  %v12056_v52 = vpop.permute.xlu1 %4550  ;;  %v5051_v44 = vadd.f32 %v11982_v41, %v4755_v48  ;;  %v16078_v48 = vrot.slane %v12043_v57, 2  ;;  %v5576_v35 = vsel %vm3230_vm3, %v5573_v16, %v16079_v12 }
 0x230   :  { %2573 = vst [vmem:[#allocation3 + $0x528] sm:$0xff] %v1930_v36  ;;  %3706 = vrot.lane.b32.xlu0 %v11992_v30, %s10357_s16  ;;  %v2300_v7 = vpop.f32.mrf.mxu1  ;;  %v4426_v36 = vrot.slane %v12002_v60, 2  ;;  %v12083_v60 = vsel %vm2794_vm2, %v4135_v47, %v16080_v55 }
 0x231   :  { %v1932_v45 = vpop.f32.mrf.mxu0  ;;  %3708 = vrot.lane.b32.xlu1 %v12058_v63, %s10357_s16  ;;  %2569 = vst.msk [vmem:[#allocation3 + $0x508] sm:$0xff] %vm1501_vm1, %v2300_v7  ;;  %16257 = vst [vmem:[#allocation50_spill] sm:$0xff] %v12083_v60 }
 0x232   :  { %2574 = vst [vmem:[#allocation3 + $0x530] sm:$0xff] %v1932_v45  ;;  %v5141_v53 = vpop.permute.xlu0 %5140  ;;  %v9884_v4 = vpop.f32.mrf.mxu1  ;;  %v5574_v45 = vsel %vm3230_vm3, %v16256_v26, %v5573_v16  ;;  %v4429_v16 = vsel %vm3230_vm3, %v4426_v36, %v16078_v48  ;;  %v3276_v48 = vrot.slane %v12058_v63, 2 }
 0x233   :  { %v1936_v14 = vpop.f32.mrf.mxu0  ;;  %v5354_v32 = vadd.f32 %v5141_v53, %v5050_v58  ;;  %2584 = vst.msk [vmem:[#allocation3 + $0x580] sm:$0xff] %vm1501_vm1, %v9884_v4  ;;  %v5143_v41 = vpop.permute.xlu1 %5142 }
 0x234   :  { %2576 = vst [vmem:[#allocation3 + $0x540] sm:$0xff] %v1936_v14  ;;  %5160 = vrot.lane.b32.xlu0 %v12072_v46, %s10357_s16  ;;  %v2313_v7 = vpop.f32.mrf.mxu1  ;;  %v5355_v14 = vadd.f32 %v5143_v41, %v5051_v44  ;;  %v12598_v46 = vld [vmem:[#allocation3 + $0x220] sm:$0xff] }
 0x235   :  { %v1938_v58 = vpop.f32.mrf.mxu0  ;;  %v5785_v53 = vadd.f32 %v5574_v45, %v5354_v32  ;;  %5162 = vrot.lane.b32.xlu1 %v12083_v60, %s10357_s16  ;;  %2578 = vst.msk [vmem:[#allocation3 + $0x550] sm:$0xff] %vm1501_vm1, %v2313_v7  ;;  %v16258_v32 = vrot.slane %v11932_v50, 2  ;;  %v12107_v50 = vld [vmem:[#allocation3 + $0x240] sm:$0xff] }
 0x236   :  { %2577 = vst [vmem:[#allocation3 + $0x548] sm:$0xff] %v1938_v58  ;;  %v12092_v4 = vpop.permute.xlu0 %4840  ;;  %v9885_v33 = vpop.f32.mrf.mxu1  ;;  %v5786_v26 = vadd.f32 %v5576_v35, %v5355_v14 }
 0x237   :  { %5857 = vst.msk [vmem:[#allocation4 + $0x10] sm:$0xff] %vm1501_vm1, %v5785_v53  ;;  %v1940_v47 = vpop.f32.mrf.mxu0  ;;  %v4427_v44 = vsel %vm3230_vm3, %v16258_v32, %v4426_v36  ;;  %2587 = vst.msk [vmem:[#allocation3 + $0x598] sm:$0xff] %vm1501_vm1, %v9885_v33  ;;  %v12100_v45 = vpop.permute.xlu1 %4842  ;;  %v2840_v53 = vrot.slane %v12058_v63, 1  ;;  %v2842_v33 = vrot.slane %v12107_v50, 1 }
 0x238   :  { %2579 = vst [vmem:[#allocation3 + $0x558] sm:$0xff] %v1940_v47  ;;  %4568 = vrot.lane.b32.xlu0 %v4427_v44, %s10355_s1  ;;  %5858 = vst.msk [vmem:[#allocation4 + $0x18] sm:$0xff] %vm1501_vm1, %v5786_v26  ;;  %v2316_v58 = vpop.f32.mrf.mxu1  ;;  %v12118_v47 = vld [vmem:[#allocation3 + $0x230] sm:$0xff]  ;;  %v10219_v26 = vld [vmem:[#allocation3 + $0x60] sm:$0xff] }
 0x239   :  { %v1942_v41 = vpop.f32.mrf.mxu0  ;;  %4570 = vrot.lane.b32.xlu1 %v4429_v16, %s10355_s1  ;;  %2581 = vst.msk [vmem:[#allocation3 + $0x568] sm:$0xff] %vm1501_vm1, %v2316_v58  ;;  %v3158_v32 = vadd.f32 %v10219_v26, %v11603_v62  ;;  %v10220_v58 = vld [vmem:[#allocation3 + $0x78] sm:$0xff]  ;;  %v2841_v62 = vsel %vm2794_vm2, %v2838_v39, %v2840_v53 }
 0x23a   :  { %2580 = vst [vmem:[#allocation3 + $0x560] sm:$0xff] %v1942_v41  ;;  %v12110_v7 = vpop.permute.xlu0 %2962  ;;  %v9888_v35 = vpop.f32.mrf.mxu1 }
 0x23b   :  { %v1946_v14 = vpop.f32.mrf.mxu0  ;;  %2596 = vst.msk [vmem:[#allocation3 + $0x5e0] sm:$0xff] %vm1501_vm1, %v9888_v35  ;;  %v12116_v36 = vpop.permute.xlu1 %2964  ;;  %v3594_v35 = vadd.f32 %v11629_v43, %v3158_v32  ;;  %v16084_v43 = vrot.slane %v12107_v50, 2 }
 0x23c   :  { %2582 = vst [vmem:[#allocation3 + $0x570] sm:$0xff] %v1946_v14  ;;  %4860 = vrot.lane.b32.xlu0 %v12043_v57, %s10356_s2  ;;  %v2329_v16 = vpop.f32.mrf.mxu1  ;;  %v3159_v14 = vadd.f32 %v10220_v58, %v11623_v27  ;;  %v2843_v27 = vsel %vm2794_vm2, %v2840_v53, %v2842_v33  ;;  %v16259_v53 = vrot.slane %v11992_v30, 2  ;;  %v5429_v30 = vld [vmem:[#allocation3 + $0x148] sm:$0xff] }
 0x23d   :  { %v1948_v44 = vpop.f32.mrf.mxu0  ;;  %4862 = vrot.lane.b32.xlu1 %v12118_v47, %s10356_s2  ;;  %2590 = vst.msk [vmem:[#allocation3 + $0x5b0] sm:$0xff] %vm1501_vm1, %v2329_v16  ;;  %v3890_v32 = vadd.f32 %v11774_v34, %v3594_v35  ;;  %v3279_v34 = vsel %vm3230_vm3, %v3276_v48, %v16084_v43 }
 0x23e   :  { %2583 = vst [vmem:[#allocation3 + $0x578] sm:$0xff] %v1948_v44  ;;  %v12125_v41 = vpop.permute.xlu0 %3398  ;;  %v9889_v55 = vpop.f32.mrf.mxu1  ;;  %v3595_v63 = vadd.f32 %v11641_v10, %v3159_v14 }
 0x23f   :  { %v1950_v12 = vpop.f32.mrf.mxu0  ;;  %2599 = vst.msk [vmem:[#allocation3 + $0x5f8] sm:$0xff] %vm1501_vm1, %v9889_v55  ;;  %v12135_v26 = vpop.permute.xlu1 %3400  ;;  %v4321_v14 = vadd.f32 %v11244_v5, %v3890_v32 }
 0x240   :  { %2585 = vst [vmem:[#allocation3 + $0x588] sm:$0xff] %v1950_v12  ;;  %2982 = vrot.lane.b32.xlu0 %v2841_v62, %s10355_s1  ;;  %v2332_v16 = vpop.f32.mrf.mxu1  ;;  %v3891_v55 = vadd.f32 %v11789_v23, %v3595_v63  ;;  %v3277_v62 = vsel %vm3230_vm3, %v16259_v53, %v3276_v48  ;;  %v4139_v48 = vrot.slane %v12118_v47, 1  ;;  %v12173_v53 = vld [vmem:[#allocation3 + $0x258] sm:$0xff] }
 0x241   :  { %v1952_v44 = vpop.f32.mrf.mxu0  ;;  %2984 = vrot.lane.b32.xlu1 %v2843_v27, %s10355_s1  ;;  %2593 = vst.msk [vmem:[#allocation3 + $0x5c8] sm:$0xff] %vm1501_vm1, %v2332_v16  ;;  %v12160_v27 = vld [vmem:[#allocation3 + $0x248] sm:$0xff] }
 0x242   :  { %2586 = vst [vmem:[#allocation3 + $0x590] sm:$0xff] %v1952_v44  ;;  %v12145_v39 = vpop.permute.xlu0 %3690  ;;  %v9892_v58 = vpop.f32.mrf.mxu1  ;;  %v4756_v44 = vadd.f32 %v11935_v61, %v4321_v14  ;;  %v4322_v16 = vadd.f32 %v11408_v28, %v3891_v55  ;;  %v12180_v14 = vld [vmem:[#allocation3 + $0x160] sm:$0xff] }
 0x243   :  { %v1956_v12 = vpop.f32.mrf.mxu0  ;;  %2608 = vst.msk [vmem:[#allocation3 + $0x640] sm:$0xff] %vm1501_vm1, %v9892_v58  ;;  %v12153_v10 = vpop.permute.xlu1 %3692  ;;  %v5577_v58 = vrot.slane %v5429_v30, 2  ;;  %v4430_v30 = vrot.slane %v12118_v47, 2  ;;  %v16082_v47 = vrot.slane %v12180_v14, 2 }
 0x244   :  { %2588 = vst [vmem:[#allocation3 + $0x5a0] sm:$0xff] %v1956_v12  ;;  %3418 = vrot.lane.b32.xlu0 %v3277_v62, %s10356_s2  ;;  %v2345_v35 = vpop.f32.mrf.mxu1  ;;  %v16081_v62 = vrot.slane %v12160_v27, 1  ;;  %v4757_v61 = vadd.f32 %v11943_v20, %v4322_v16  ;;  %v5052_v28 = vadd.f32 %v12092_v4, %v4756_v44  ;;  %v16260_v4 = vrot.slane %v12043_v57, 1 }
 0x245   :  { %v1958_v23 = vpop.f32.mrf.mxu0  ;;  %3420 = vrot.lane.b32.xlu1 %v3279_v34, %s10356_s2  ;;  %2602 = vst.msk [vmem:[#allocation3 + $0x610] sm:$0xff] %vm1501_vm1, %v2345_v35  ;;  %v16262_v16 = vrot.slane %v12051_v29, 2  ;;  %v5580_v29 = vsel %vm3230_vm3, %v5577_v58, %v16082_v47  ;;  %v10222_v47 = vld [vmem:[#allocation3 + $0xa8] sm:$0xff] }
 0x246   :  { %2589 = vst [vmem:[#allocation3 + $0x5a8] sm:$0xff] %v1958_v23  ;;  %v12163_v63 = vpop.permute.xlu0 %4552  ;;  %v9893_v5 = vpop.f32.mrf.mxu1  ;;  %v5053_v35 = vadd.f32 %v12100_v45, %v4757_v61  ;;  %v12188_v44 = vsel %vm2794_vm2, %v16260_v4, %v4139_v48  ;;  %v12200_v61 = vsel %vm2794_vm2, %v4139_v48, %v16081_v62 }
 0x247   :  { %v1960_v12 = vpop.f32.mrf.mxu0  ;;  %2611 = vst.msk [vmem:[#allocation3 + $0x658] sm:$0xff] %vm1501_vm1, %v9893_v5  ;;  %v12171_v32 = vpop.permute.xlu1 %4554  ;;  %16261 = vst [vmem:[#allocation51_spill] sm:$0xff] %v12188_v44 }
 0x248   :  { %2591 = vst [vmem:[#allocation3 + $0x5b8] sm:$0xff] %v1960_v12  ;;  %3710 = vrot.lane.b32.xlu0 %v12107_v50, %s10357_s16  ;;  %v2348_v34 = vpop.f32.mrf.mxu1  ;;  %16263 = vst [vmem:[#allocation52_spill] sm:$0xff] %v12200_v61 }
 0x249   :  { %v1962_v55 = vpop.f32.mrf.mxu0  ;;  %3712 = vrot.lane.b32.xlu1 %v12173_v53, %s10357_s16  ;;  %2605 = vst.msk [vmem:[#allocation3 + $0x628] sm:$0xff] %vm1501_vm1, %v2348_v34 }
 0x24a   :  { %2592 = vst [vmem:[#allocation3 + $0x5c0] sm:$0xff] %v1962_v55  ;;  %v5145_v23 = vpop.permute.xlu0 %5144  ;;  %v9896_v5 = vpop.f32.mrf.mxu1  ;;  %v5578_v55 = vsel %vm3230_vm3, %v16262_v16, %v5577_v58 }
 0x24b   :  { %v1966_v12 = vpop.f32.mrf.mxu0  ;;  %v5356_v20 = vadd.f32 %v5145_v23, %v5052_v28  ;;  %2620 = vst.msk [vmem:[#allocation3 + $0x6a0] sm:$0xff] %vm1501_vm1, %v9896_v5  ;;  %v5147_v45 = vpop.permute.xlu1 %5146  ;;  %v16083_v28 = vrot.slane %v12160_v27, 2 }
 0x24c   :  { %2594 = vst [vmem:[#allocation3 + $0x5d0] sm:$0xff] %v1966_v12  ;;  %5164 = vrot.lane.b32.xlu0 %v12188_v44, %s10357_s16  ;;  %v2361_v23 = vpop.f32.mrf.mxu1  ;;  %v5357_v5 = vadd.f32 %v5147_v45, %v5053_v35 }
 0x24d   :  { %v1968_v34 = vpop.f32.mrf.mxu0  ;;  %v5787_v12 = vadd.f32 %v5578_v55, %v5356_v20  ;;  %5166 = vrot.lane.b32.xlu1 %v12200_v61, %s10357_s16  ;;  %2614 = vst.msk [vmem:[#allocation3 + $0x670] sm:$0xff] %vm1501_vm1, %v2361_v23  ;;  %v16264_v20 = vrot.slane %v12043_v57, 2  ;;  %v4433_v58 = vsel %vm3230_vm3, %v4430_v30, %v16083_v28  ;;  %v12224_v57 = vld [vmem:[#allocation3 + $0x270] sm:$0xff]  ;;  %v3161_v28 = vadd.f32 %v10222_v47, %v11735_v51 }
 0x24e   :  { %2595 = vst [vmem:[#allocation3 + $0x5d8] sm:$0xff] %v1968_v34  ;;  %v12209_v4 = vpop.permute.xlu0 %4844  ;;  %v9897_v16 = vpop.f32.mrf.mxu1  ;;  %v5788_v62 = vadd.f32 %v5580_v29, %v5357_v5  ;;  %v16265_v51 = vrot.slane %v12224_v57, 1 }
 0x24f   :  { %5859 = vst.msk [vmem:[#allocation4 + $0x20] sm:$0xff] %vm1501_vm1, %v5787_v12  ;;  %v1970_v48 = vpop.f32.mrf.mxu0  ;;  %v4431_v35 = vsel %vm3230_vm3, %v16264_v20, %v4430_v30  ;;  %2623 = vst.msk [vmem:[#allocation3 + $0x6b8] sm:$0xff] %vm1501_vm1, %v9897_v16  ;;  %v12217_v55 = vpop.permute.xlu1 %4846  ;;  %v2844_v12 = vrot.slane %v12173_v53, 1  ;;  %v12235_v30 = vld [vmem:[#allocation3 + $0x260] sm:$0xff]  ;;  %v10221_v16 = vld [vmem:[#allocation3 + $0x90] sm:$0xff]  ;;  %v3597_v47 = vadd.f32 %v11761_v42, %v3161_v28 }
 0x250   :  { %2597 = vst [vmem:[#allocation3 + $0x5e8] sm:$0xff] %v1970_v48  ;;  %4572 = vrot.lane.b32.xlu0 %v4431_v35, %s10355_s1  ;;  %5860 = vst.msk [vmem:[#allocation4 + $0x28] sm:$0xff] %vm1501_vm1, %v5788_v62  ;;  %v2364_v34 = vpop.f32.mrf.mxu1  ;;  %v3160_v20 = vadd.f32 %v10221_v16, %v11712_v56  ;;  %v3280_v56 = vrot.slane %v12173_v53, 2  ;;  %v16090_v53 = vrot.slane %v12224_v57, 2 }
 0x251   :  { %v1972_v45 = vpop.f32.mrf.mxu0  ;;  %4574 = vrot.lane.b32.xlu1 %v4433_v58, %s10355_s1  ;;  %2617 = vst.msk [vmem:[#allocation3 + $0x688] sm:$0xff] %vm1501_vm1, %v2364_v34  ;;  %v5996_v34 = vld [vmem:[#allocation4 + $0x1] sm:$0xff]  ;;  %v2845_v1 = vsel %vm2794_vm2, %v2842_v33, %v2844_v12  ;;  %v3893_v42 = vadd.f32 %v11926_v8, %v3597_v47 }
 0x252   :  { %2598 = vst [vmem:[#allocation3 + $0x5f0] sm:$0xff] %v1972_v45  ;;  %v12227_v23 = vpop.permute.xlu0 %2966  ;;  %v9900_v29 = vpop.f32.mrf.mxu1  ;;  %v5928_v45 = vld [vmem:[#allocation4] sm:$0xff]  ;;  %v3596_v43 = vadd.f32 %v11752_v24, %v3160_v20  ;;  %v2847_v24 = vsel %vm2794_vm2, %v2844_v12, %v16265_v51 }
 0x253   :  { %v1976_v5 = vpop.f32.mrf.mxu0  ;;  %2632 = vst.msk [vmem:[#allocation3 + $0x700] sm:$0xff] %vm1501_vm1, %v9900_v29  ;;  %v12233_v62 = vpop.permute.xlu1 %2968 }
 0x254   :  { %2600 = vst [vmem:[#allocation3 + $0x600] sm:$0xff] %v1976_v5  ;;  %4864 = vrot.lane.b32.xlu0 %v12160_v27, %s10356_s2  ;;  %v2377_v58 = vpop.f32.mrf.mxu1  ;;  %v3892_v20 = vadd.f32 %v11915_v18, %v3596_v43 }
 0x255   :  { %v1978_v35 = vpop.f32.mrf.mxu0  ;;  %4866 = vrot.lane.b32.xlu1 %v12235_v30, %s10356_s2  ;;  %2626 = vst.msk [vmem:[#allocation3 + $0x6d0] sm:$0xff] %vm1501_vm1, %v2377_v58  ;;  %v6064_v58 = vmax.f32 %v5928_v45, %v5996_v34 }
 0x256   :  { %v5932_v5 = vld [vmem:[#allocation4 + $0x20] sm:$0xff]  ;;  %2601 = vst [vmem:[#allocation3 + $0x608] sm:$0xff] %v1978_v35  ;;  %v12242_v29 = vpop.permute.xlu0 %3402  ;;  %v9901_v48 = vpop.f32.mrf.mxu1  ;;  %v4323_v8 = vadd.f32 %v11463_v19, %v3892_v20  ;;  %v4324_v20 = vadd.f32 %v11470_v22, %v3893_v42 }
 0x257   :  { %v1980_v16 = vpop.f32.mrf.mxu0  ;;  %v6000_v17 = vld [vmem:[#allocation4 + $0x21] sm:$0xff]  ;;  %2635 = vst.msk [vmem:[#allocation3 + $0x718] sm:$0xff] %vm1501_vm1, %v9901_v48  ;;  %v12252_v35 = vpop.permute.xlu1 %3404 }
 0x258   :  { %2603 = vst [vmem:[#allocation3 + $0x618] sm:$0xff] %v1980_v16  ;;  %2986 = vrot.lane.b32.xlu0 %v2845_v1, %s10355_s1  ;;  %v6068_v33 = vmax.f32 %v5932_v5, %v6000_v17  ;;  %v2380_v16 = vpop.f32.mrf.mxu1  ;;  %v12264_v1 = vld [vmem:[%s16009_s4] ss:$0 sm:$0xff]  ;;  %v16266_v17 = vrot.slane %v12107_v50, 2  ;;  %v5431_v50 = vld [vmem:[#allocation3 + $0x178] sm:$0xff]  ;;  %v4758_v19 = vadd.f32 %v12046_v3, %v4323_v8  ;;  %v4759_v3 = vadd.f32 %v12056_v52, %v4324_v20 }
 0x259   :  { %v1982_v49 = vpop.f32.mrf.mxu0  ;;  %2988 = vrot.lane.b32.xlu1 %v2847_v24, %s10355_s1  ;;  %2629 = vst.msk [vmem:[#allocation3 + $0x6e8] sm:$0xff] %vm1501_vm1, %v2380_v16  ;;  %v12283_v24 = vld [vmem:[#allocation3 + $0x278] sm:$0xff]  ;;  %v10016_v52 = vld [vmem:[%s16010_s5] sm:$0xff]  }
 0x25a   :  { %2604 = vst [vmem:[#allocation3 + $0x620] sm:$0xff] %v1982_v49  ;;  %v12267_v12 = vpop.permute.xlu0 %3694  ;;  %v6147_v28 = vmax.f32 %v6064_v58, %v6068_v33  ;;  %v9904_v43 = vpop.f32.mrf.mxu1  ;;  %v3281_v48 = vsel %vm3230_vm3, %v16266_v17, %v3280_v56  ;;  %v3283_v49 = vsel %vm3230_vm3, %v3280_v56, %v16090_v53  ;;  %v10015_v56 = vld [vmem:[%s16010_s5 + $0x8] sm:$0xff]   ;;  %v4434_v33 = vrot.slane %v12235_v30, 2  ;;  %s10332_s5 = scalar_lea.vmem %s9167_s22, 32 }
 0x25b   :  { %v1986_v18 = vpop.f32.mrf.mxu0  ;;  %2644 = vst.msk [vmem:[#allocation3 + $0x760] sm:$0xff] %vm1501_vm1, %v9904_v43  ;;  %v12275_v45 = vpop.permute.xlu1 %3696  ;;  %v5581_v17 = vrot.slane %v5431_v50, 2  ;;  %v16089_v22 = vrot.slane %v12283_v24, 2  ;;  %9906 = vmatprep.subr.bf16.mxu1 %v10015_v56  ;;  %v5054_v42 = vadd.f32 %v12209_v4, %v4758_v19  ;;  %v16267_v19 = vrot.slane %v12160_v27, 2  ;;  %p10333_p0 = scmp.ne.s32.totalorder %s9167_s22, %s10332_s5  ;;  %p10338_p2 = scmp.lt.s32.totalorder %s10332_s5, %s10332_s5 }
 0x25c   :  { %2606 = vst [vmem:[#allocation3 + $0x630] sm:$0xff] %v1986_v18  ;;  %3422 = vrot.lane.b32.xlu0 %v3281_v48, %s10356_s2  ;;  %v6222_v34 = vadd.f32 %v12264_v1, %v6147_v28  ;;  %v2393_v51 = vpop.f32.mrf.mxu1  ;;  %v12294_v18 = vld [vmem:[#allocation3 + $0x190] sm:$0xff]  ;;  %v12301_v48 = vld [vmem:[#allocation3 + $0x288] sm:$0xff]  ;;  %9907 = vmatpush3.bf16.msra.mxu1 %v10015_v56  ;;  %v16268_v56 = vrot.slane %v12180_v14, 2 }
 0x25d   :  { %v1988_v5 = vpop.f32.mrf.mxu0  ;;  %3424 = vrot.lane.b32.xlu1 %v3283_v49, %s10356_s2  ;;  %2638 = vst.msk [vmem:[#allocation3 + $0x730] sm:$0xff] %vm1501_vm1, %v2393_v51  ;;  %v5055_v51 = vadd.f32 %v12217_v55, %v4759_v3  ;;  %v4435_v20 = vsel %vm3230_vm3, %v16267_v19, %v4434_v33  ;;  %9908 = vmatprep.subr.bf16.mxu1 %v10016_v52  ;;  %p10339_p3 = por %p10338_p2, %p10337_p1 }
 0x25e   :  { %2607 = vst [vmem:[#allocation3 + $0x638] sm:$0xff] %v1988_v5  ;;  %v12286_v47 = vpop.permute.xlu0 %4556  ;;  %v6290_v58 = vmax.f32 %v6222_v34, 0.0  ;;  %v9905_v28 = vpop.f32.mrf.mxu1  ;;  %v16088_v5 = vrot.slane %v12294_v18, 2 }
 0x25f   :  { %v1990_v16 = vpop.f32.mrf.mxu0  ;;  %2647 = vst.msk [vmem:[#allocation3 + $0x778] sm:$0xff] %vm1501_vm1, %v9905_v28  ;;  %v12299_v43 = vpop.permute.xlu1 %4558  ;;  %v4437_v28 = vsel %vm3230_vm3, %v4434_v33, %v16089_v22  ;;  %v2848_v33 = vrot.slane %v12301_v48, 1  ;;  %p10340_p4 = pnand %p10339_p3, %p10333_p0 }
 0x260   :  { %2609 = vst [vmem:[#allocation3 + $0x648] sm:$0xff] %v1990_v16  ;;  %3714 = vrot.lane.b32.xlu0 %v12224_v57, %s10357_s16  ;;  %6358 = vst.msk [vmem:[#allocation5] sm:$0xff] %vm1501_vm1, %v6290_v58  ;;  %v2396_v8 = vpop.f32.mrf.mxu1  ;;  %v5582_v58 = vsel %vm3230_vm3, %v16268_v56, %v5581_v17  ;;  %9909 = vmatpush3.bf16.msra.mxu1 %v10016_v52  ;;  %v5584_v14 = vsel %vm3230_vm3, %v5581_v17, %v16088_v5  ;;  %v12339_v52 = vld [vmem:[#allocation3 + $0x290] sm:$0xff] }
 0x261   :  { %v1992_v49 = vpop.f32.mrf.mxu0  ;;  %3716 = vrot.lane.b32.xlu1 %v12301_v48, %s10357_s16  ;;  %2641 = vst.msk [vmem:[#allocation3 + $0x748] sm:$0xff] %vm1501_vm1, %v2396_v8 }
 0x262   :  { %2610 = vst [vmem:[#allocation3 + $0x650] sm:$0xff] %v1992_v49  ;;  %v5149_v34 = vpop.permute.xlu0 %5148  ;;  %v12326_v49 = vld [vmem:[#allocation3 + $0x2a0] sm:$0xff] }
 0x263   :  { %v1996_v50 = vpop.f32.mrf.mxu0  ;;  %v5358_v4 = vadd.f32 %v5149_v34, %v5054_v42  ;;  %v5151_v16 = vpop.permute.xlu1 %5150 }
 0x264   :  { %2612 = vst [vmem:[#allocation3 + $0x660] sm:$0xff] %v1996_v50  ;;  %4576 = vrot.lane.b32.xlu0 %v4435_v20, %s10355_s1  ;;  %v5359_v42 = vadd.f32 %v5151_v16, %v5055_v51  ;;  %v3284_v20 = vrot.slane %v12301_v48, 2 }
 0x265   :  { %v1998_v55 = vpop.f32.mrf.mxu0  ;;  %v5789_v3 = vadd.f32 %v5582_v58, %v5358_v4  ;;  %4578 = vrot.lane.b32.xlu1 %v4437_v28, %s10355_s1  ;;  %v16092_v4 = vrot.slane %v12326_v49, 1  ;;  %v16269_v58 = vrot.slane %v12224_v57, 1  ;;  %v5997_v28 = vld [vmem:[#allocation4 + $0x9] sm:$0xff] }
 0x266   :  { %2613 = vst [vmem:[#allocation3 + $0x668] sm:$0xff] %v1998_v55  ;;  %v12331_v8 = vpop.permute.xlu0 %4848  ;;  %v5790_v50 = vadd.f32 %v5584_v14, %v5359_v42  ;;  %v10223_v14 = vld [vmem:[#allocation3 + $0xc0] sm:$0xff] }
 0x267   :  { %5861 = vst.msk [vmem:[#allocation4 + $0x30] sm:$0xff] %vm1501_vm1, %v5789_v3  ;;  %v2000_v34 = vpop.f32.mrf.mxu0  ;;  %v12337_v51 = vpop.permute.xlu1 %4850  ;;  %v2849_v16 = vsel %vm2794_vm2, %v16269_v58, %v2848_v33  ;;  %v2851_v3 = vsel %vm2794_vm2, %v2848_v33, %v16092_v4  ;;  %v3162_v48 = vadd.f32 %v10223_v14, %v11862_v21  ;;  %v16270_v14 = vrot.slane %v12224_v57, 2 }
 0x268   :  { %2615 = vst [vmem:[#allocation3 + $0x678] sm:$0xff] %v2000_v34  ;;  %4868 = vrot.lane.b32.xlu0 %v12283_v24, %s10356_s2  ;;  %5862 = vst.msk [vmem:[#allocation4 + $0x38] sm:$0xff] %vm1501_vm1, %v5790_v50  ;;  %v5929_v34 = vld [vmem:[#allocation4 + $0x8] sm:$0xff]  ;;  %v5930_v50 = vld [vmem:[#allocation4 + $0x10] sm:$0xff] }
 0x269   :  { %v2002_v17 = vpop.f32.mrf.mxu0  ;;  %4870 = vrot.lane.b32.xlu1 %v12339_v52, %s10356_s2  ;;  %v3598_v33 = vadd.f32 %v11887_v13, %v3162_v48  ;;  %v6065_v4 = vmax.f32 %v5929_v34, %v5997_v28  ;;  %v3285_v44 = vsel %vm3230_vm3, %v16270_v14, %v3284_v20  ;;  %v12376_v34 = vld [vmem:[#allocation3 + $0x2a8] sm:$0xff] }
 0x26a   :  { %2616 = vst [vmem:[#allocation3 + $0x680] sm:$0xff] %v2002_v17  ;;  %v12345_v19 = vpop.permute.xlu0 %2970  ;;  %v5998_v17 = vld [vmem:[#allocation4 + $0x11] sm:$0xff] }
 0x26b   :  { %v2006_v56 = vpop.f32.mrf.mxu0  ;;  %v12352_v55 = vpop.permute.xlu1 %2972  ;;  %v3894_v13 = vadd.f32 %v12028_v38, %v3598_v33  ;;  %v12391_v33 = vld [vmem:[#allocation3 + $0x2d0] sm:$0xff] }
 0x26c   :  { %2618 = vst [vmem:[#allocation3 + $0x690] sm:$0xff] %v2006_v56  ;;  %2990 = vrot.lane.b32.xlu0 %v2849_v16, %s10355_s1  ;;  %v10224_v56 = vld [vmem:[#allocation3 + $0xd8] sm:$0xff]  ;;  %v5933_v16 = vld [vmem:[#allocation4 + $0x28] sm:$0xff] }
 0x26d   :  { %v2008_v5 = vpop.f32.mrf.mxu0  ;;  %2992 = vrot.lane.b32.xlu1 %v2851_v3, %s10355_s1  ;;  %v3163_v58 = vadd.f32 %v10224_v56, %v11870_v54 }
 0x26e   :  { %v5934_v22 = vld [vmem:[#allocation4 + $0x30] sm:$0xff]  ;;  %2619 = vst [vmem:[#allocation3 + $0x698] sm:$0xff] %v2008_v5  ;;  %v12361_v61 = vpop.permute.xlu0 %3406  ;;  %v16271_v5 = vrot.slane %v12326_v49, 2 }
 0x26f   :  { %v6001_v53 = vld [vmem:[#allocation4 + $0x29] sm:$0xff]  ;;  %v2010_v21 = vpop.f32.mrf.mxu0  ;;  %v3599_v3 = vadd.f32 %v11898_v40, %v3163_v58  ;;  %v6002_v60 = vld [vmem:[#allocation4 + $0x31] sm:$0xff]  ;;  %v12369_v54 = vpop.permute.xlu1 %3408  ;;  %v4438_v40 = vrot.slane %v12339_v52, 2 }
 0x270   :  { %v6069_v42 = vmax.f32 %v5933_v16, %v6001_v53  ;;  %2621 = vst [vmem:[#allocation3 + $0x6a8] sm:$0xff] %v2010_v21  ;;  %3426 = vrot.lane.b32.xlu0 %v3285_v44, %s10356_s2  ;;  %v3287_v56 = vsel %vm3230_vm3, %v3284_v20, %v16271_v5  ;;  %v6066_v53 = vmax.f32 %v5930_v50, %v5998_v17 }
 0x271   :  { %v6070_v48 = vmax.f32 %v5934_v22, %v6002_v60  ;;  %v2012_v57 = vpop.f32.mrf.mxu0  ;;  %3428 = vrot.lane.b32.xlu1 %v3287_v56, %s10356_s2  ;;  %v3895_v58 = vadd.f32 %v12036_v9, %v3599_v3  ;;  %v2677_v60 = vld [vmem:[#allocation3 + $0x2b8] sm:$0xff]  ;;  %v4440_v22 = vrot.slane %v12376_v34, 2  ;;  %v5433_v9 = vld [vmem:[#allocation3 + $0x1a8] sm:$0xff]  ;;  %v16272_v3 = vrot.slane %v12283_v24, 2 }
 0x272   :  { %v6148_v28 = vmax.f32 %v6065_v4, %v6069_v42  ;;  %2622 = vst [vmem:[#allocation3 + $0x6b0] sm:$0xff] %v2012_v57  ;;  %v12379_v44 = vpop.permute.xlu0 %3698  ;;  %v4325_v4 = vadd.f32 %v11531_v37, %v3894_v13  ;;  %v5585_v57 = vrot.slane %v5433_v9, 2  ;;  %v16273_v9 = vrot.slane %v12326_v49, 1 }
 0x273   :  { %v6149_v20 = vmax.f32 %v6066_v53, %v6070_v48  ;;  %v2016_v21 = vpop.f32.mrf.mxu0  ;;  %v12385_v38 = vpop.permute.xlu1 %3700  ;;  %v4439_v5 = vsel %vm3230_vm3, %v16272_v3, %v4438_v40  ;;  %v4326_v37 = vadd.f32 %v11541_v6, %v3895_v58  ;;  %v16274_v3 = vrot.slane %v12294_v18, 2 }
 0x274   :  { %v6223_v16 = vadd.f32 %v12264_v1, %v6148_v28  ;;  %2624 = vst [vmem:[#allocation3 + $0x6c0] sm:$0xff] %v2016_v21  ;;  %3718 = vrot.lane.b32.xlu0 %v12326_v49, %s10357_s16  ;;  %v4760_v56 = vadd.f32 %v12163_v63, %v4325_v4  ;;  %v2852_v28 = vrot.slane %v2677_v60, 1  ;;  %v12412_v21 = vld [vmem:[#allocation3 + $0x1c0] sm:$0xff] }
 0x275   :  { %v6224_v50 = vadd.f32 %v12264_v1, %v6149_v20  ;;  %v2018_v17 = vpop.f32.mrf.mxu0  ;;  %3720 = vrot.lane.b32.xlu1 %v2677_v60, %s10357_s16  ;;  %v2854_v20 = vrot.slane %v12391_v33, 1  ;;  %v4761_v63 = vadd.f32 %v12171_v32, %v4326_v37 }
 0x276   :  { %v6291_v42 = vmax.f32 %v6223_v16, 0.0  ;;  %2625 = vst [vmem:[#allocation3 + $0x6c8] sm:$0xff] %v2018_v17  ;;  %v12393_v14 = vpop.permute.xlu0 %4560  ;;  %v4441_v16 = vsel %vm3230_vm3, %v4438_v40, %v4440_v22  ;;  %v5056_v6 = vadd.f32 %v12331_v8, %v4760_v56  ;;  %v2853_v32 = vsel %vm2794_vm2, %v16273_v9, %v2852_v28 }
 0x277   :  { %v6292_v13 = vmax.f32 %v6224_v50, 0.0  ;;  %v2020_v53 = vpop.f32.mrf.mxu0  ;;  %v12402_v48 = vpop.permute.xlu1 %4562  ;;  %v3288_v50 = vrot.slane %v2677_v60, 2  ;;  %v5586_v8 = vsel %vm3230_vm3, %v16274_v3, %v5585_v57  ;;  %v5587_v56 = vrot.slane %v12412_v21, 2  ;;  %v12448_v3 = vld [vmem:[#allocation3 + $0x2c0] sm:$0xff] }
 0x278   :  { %6359 = vst.msk [vmem:[#allocation5 + $0x8] sm:$0xff] %vm1501_vm1, %v6291_v42  ;;  %2627 = vst [vmem:[#allocation3 + $0x6d8] sm:$0xff] %v2020_v53  ;;  %4580 = vrot.lane.b32.xlu0 %v4439_v5, %s10355_s1  ;;  %v5057_v42 = vadd.f32 %v12337_v51, %v4761_v63  ;;  %v2855_v51 = vsel %vm2794_vm2, %v2852_v28, %v2854_v20  ;;  %v3290_v60 = vrot.slane %v12391_v33, 2  ;;  %v16275_v28 = vrot.slane %v12326_v49, 2 }
 0x279   :  { %6360 = vst.msk [vmem:[#allocation5 + $0x10] sm:$0xff] %vm1501_vm1, %v6292_v13  ;;  %v2022_v58 = vpop.f32.mrf.mxu0  ;;  %4582 = vrot.lane.b32.xlu1 %v4441_v16, %s10355_s1  ;;  %v5588_v18 = vsel %vm3230_vm3, %v5585_v57, %v5587_v56 }
 0x27a   :  { %2628 = vst [vmem:[#allocation3 + $0x6e0] sm:$0xff] %v2022_v58  ;;  %v5153_v4 = vpop.permute.xlu0 %5152  ;;  %v3291_v57 = vsel %vm3230_vm3, %v3288_v50, %v3290_v60 }
 0x27b   :  { %v2026_v17 = vpop.f32.mrf.mxu0  ;;  %v5360_v40 = vadd.f32 %v5153_v4, %v5056_v6  ;;  %v5155_v5 = vpop.permute.xlu1 %5154  ;;  %v3289_v4 = vsel %vm3230_vm3, %v16275_v28, %v3288_v50 }
 0x27c   :  { %2630 = vst [vmem:[#allocation3 + $0x6f0] sm:$0xff] %v2026_v17  ;;  %2994 = vrot.lane.b32.xlu0 %v2853_v32, %s10355_s1  ;;  %v5361_v53 = vadd.f32 %v5155_v5, %v5057_v42  ;;  %v2679_v5 = vld [vmem:[#allocation3 + $0x2e8] sm:$0xff] }
 0x27d   :  { %v2028_v37 = vpop.f32.mrf.mxu0  ;;  %v5791_v13 = vadd.f32 %v5586_v8, %v5360_v40  ;;  %2996 = vrot.lane.b32.xlu1 %v2855_v51, %s10355_s1  ;;  %v4442_v8 = vrot.slane %v12448_v3, 2  ;;  %v12456_v51 = vld [vmem:[#allocation3 + $0x2d8] sm:$0xff] }
 0x27e   :  { %2631 = vst [vmem:[#allocation3 + $0x6f8] sm:$0xff] %v2028_v37  ;;  %v12431_v16 = vpop.permute.xlu0 %4852  ;;  %v5792_v58 = vadd.f32 %v5588_v18, %v5361_v53  ;;  %v4444_v37 = vrot.slane %v12456_v51, 2  ;;  %v12461_v18 = vld [vmem:[#allocation3 + $0x300] sm:$0xff] }
 0x27f   :  { %v6443_v63 = vld [vmem:[#allocation5] ss:$2 sm:$0xff]  ;;  %5863 = vst.msk [vmem:[#allocation4 + $0x40] sm:$0xff] %vm1501_vm1, %v5791_v13  ;;  %v2030_v6 = vpop.f32.mrf.mxu0  ;;  %v12438_v42 = vpop.permute.xlu1 %4854  ;;  %v10227_v13 = vld [vmem:[#allocation3 + $0xf0] sm:$0xff]  ;;  %16276 = vst [vmem:[#allocation53_spill] sm:$0xff] %v12461_v18  ;;  %v4443_v28 = vsel %vm3230_vm3, %v4440_v22, %v4442_v8 }
 0x280   :  { %v9682_v17 = vpack.c.bf16 %v6443_v63, %v6443_v63  ;;  %2633 = vst [vmem:[#allocation3 + $0x708] sm:$0xff] %v2030_v6  ;;  %3430 = vrot.lane.b32.xlu0 %v3289_v4, %s10356_s2  ;;  %v6445_v40 = vld [vmem:[#allocation5 + $0x10] ss:$2 sm:$0xf]  ;;  %5864 = vst.msk [vmem:[#allocation4 + $0x48] sm:$0xff] %vm1501_vm1, %v5792_v58  ;;  %v3164_v53 = vadd.f32 %v10227_v13, %v11995_v25  ;;  %v2856_v58 = vrot.slane %v2679_v5, 1 }
 0x281   :  { %v2032_v9 = vpop.f32.mrf.mxu0  ;;  %3432 = vrot.lane.b32.xlu1 %v3291_v57, %s10356_s2  ;;  %v9683_v49 = vpack.c.bf16 %v6445_v40, %v6445_v40  ;;  %v10228_v4 = vld [vmem:[#allocation3 + $0x108] sm:$0xff] }
 0x282   :  { %6454 = vst.msk [vmem:[#allocation6] sm:$0xf] %vm1100_vm0, %v9682_v17  ;;  %2634 = vst [vmem:[#allocation3 + $0x710] sm:$0xff] %v2032_v9  ;;  %v12446_v32 = vpop.permute.xlu0 %2974  ;;  %v3165_v17 = vadd.f32 %v10228_v4, %v12000_v15  ;;  %v3600_v57 = vadd.f32 %v12009_v11, %v3164_v53  ;;  %v4445_v9 = vsel %vm3230_vm3, %v4442_v8, %v4444_v37  ;;  %v3292_v11 = vrot.slane %v2679_v5, 2  ;;  %v12509_v15 = vld [vmem:[#allocation3 + $0x1f0] sm:$0xff] }
 0x283   :  { %6456 = vst.msk [vmem:[#allocation6 + $0x4] sm:$0x3] %vm6455_vm4, %v9683_v49  ;;  %v12454_v50 = vpop.permute.xlu1 %2976  ;;  %v16096_v49 = vrot.slane %v12461_v18, 1  ;;  %v2857_v8 = vsel %vm2794_vm2, %v2854_v20, %v2856_v58 }
 0x284   :  { %3722 = vrot.lane.b32.xlu0 %v12391_v33, %s10357_s16  ;;  %v3601_v13 = vadd.f32 %v12018_v2, %v3165_v17  ;;  %v3896_v22 = vadd.f32 %v12145_v39, %v3600_v57  ;;  %v16277_v17 = vld [vmem:[#allocation23_spill] sm:$0xff]  ;;  %v12522_v33 = vld [vmem:[#allocation3 + $0x308] sm:$0xff] }
 0x285   :  { %3724 = vrot.lane.b32.xlu1 %v2679_v5, %s10357_s16  ;;  %v2859_v39 = vsel %vm2794_vm2, %v2856_v58, %v16096_v49  ;;  %v16095_v5 = vrot.slane %v12461_v18, 2 }
 0x286   :  { %v12463_v63 = vld [vmem:[#allocation4 + $0x40] sm:$0xff]  ;;  %v12465_v6 = vpop.permute.xlu0 %3410  ;;  %v3897_v4 = vadd.f32 %v12153_v10, %v3601_v13  ;;  %v4327_v57 = vadd.f32 %v16277_v17, %v3896_v22  ;;  %v5435_v10 = vld [vmem:[#allocation3 + $0x1d8] sm:$0xff]  ;;  %v12517_v17 = vld [vmem:[#allocation3 + $0x2f0] sm:$0xff] }
 0x287   :  { %v12472_v40 = vld [vmem:[#allocation4 + $0x41] sm:$0xff]  ;;  %v12475_v25 = vpop.permute.xlu1 %3412  ;;  %v16278_v13 = vld [vmem:[#allocation26_spill] sm:$0xff]  ;;  %v5589_v22 = vrot.slane %v5435_v10, 2 }
 0x288   :  { %4584 = vrot.lane.b32.xlu0 %v4443_v28, %s10355_s1  ;;  %v4762_v20 = vadd.f32 %v12286_v47, %v4327_v57  ;;  %v16097_v57 = vrot.slane %v12509_v15, 2 }
 0x289   :  { %4586 = vrot.lane.b32.xlu1 %v4445_v9, %s10355_s1 }
 0x28a   :  { %v12486_v53 = vpop.permute.xlu0 %3702  ;;  %v10014_v28 = vld [vmem:[#allocation6] sm:$0xff]  }
 0x28b   :  { %v12493_v2 = vpop.permute.xlu1 %3704  ;;  %9910 = vmatprep.mubr.msk.bf16.mxu1 %vm1501_vm1, %v10014_v28  ;;  %v3293_v28 = vsel %vm3230_vm3, %v3290_v60, %v3292_v11 }
 0x28c   :  { %2998 = vrot.lane.b32.xlu0 %v2857_v8, %s10355_s1  ;;  %v4328_v8 = vadd.f32 %v16278_v13, %v3897_v4  ;;  %v5058_v4 = vadd.f32 %v12431_v16, %v4762_v20  ;;  %v4448_v16 = vrot.slane %v12522_v33, 2 }
 0x28d   :  { %3000 = vrot.lane.b32.xlu1 %v2859_v39, %s10355_s1  ;;  %v3295_v39 = vsel %vm3230_vm3, %v3292_v11, %v16095_v5  ;;  %v5590_v11 = vsel %vm3230_vm3, %v5587_v56, %v5589_v22  ;;  %v5437_v5 = vld [vmem:[#allocation3 + $0x208] sm:$0xff] }
 0x28e   :  { %v12502_v9 = vpop.permute.xlu0 %4564  ;;  %v4763_v47 = vadd.f32 %v12299_v43, %v4328_v8 }
 0x28f   :  { %v12512_v58 = vpop.permute.xlu1 %4566 }
 0x290   :  { %3434 = vrot.lane.b32.xlu0 %v3293_v28, %s10356_s2  ;;  %v5059_v13 = vadd.f32 %v12438_v42, %v4763_v47  ;;  %v4446_v28 = vrot.slane %v12517_v17, 2  ;;  %v5592_v42 = vsel %vm3230_vm3, %v5589_v22, %v16097_v57 }
 0x291   :  { %3436 = vrot.lane.b32.xlu1 %v3295_v39, %s10356_s2  ;;  %v10229_v39 = vld [vmem:[#allocation3 + $0x318] sm:$0xff] }
 0x292   :  { %v5157_v60 = vpop.permute.xlu0 %5156  ;;  %v4447_v56 = vsel %vm3230_vm3, %v4444_v37, %v4446_v28 }
 0x293   :  { %v5362_v10 = vadd.f32 %v5157_v60, %v5058_v4  ;;  %v5159_v43 = vpop.permute.xlu1 %5158  ;;  %v4449_v60 = vsel %vm3230_vm3, %v4446_v28, %v4448_v16 }
 0x294   :  { %3726 = vrot.lane.b32.xlu0 %v12461_v18, %s10357_s16  ;;  %v5363_v8 = vadd.f32 %v5159_v43, %v5059_v13  ;;  %v12543_v13 = vld [vmem:[#allocation3 + $0x320] sm:$0xff]  ;;  %v10231_v43 = vld [vmem:[#allocation3 + $0x138] sm:$0xff] }
 0x295   :  { %v5793_v20 = vadd.f32 %v5590_v11, %v5362_v10  ;;  %3728 = vrot.lane.b32.xlu1 %v10229_v39, %s10357_s16  ;;  %v10230_v10 = vld [vmem:[#allocation3 + $0x120] sm:$0xff]  ;;  %v10232_v39 = vld [vmem:[#allocation3 + $0x330] sm:$0xff] }
 0x296   :  { %v4857_v47 = vpop.permute.xlu0 %4856  ;;  %v5794_v21 = vadd.f32 %v5592_v42, %v5363_v8  ;;  %v3166_v11 = vadd.f32 %v10230_v10, %v12110_v7  ;;  %v4450_v8 = vrot.slane %v12543_v13, 2 }
 0x297   :  { %5865 = vst.msk [vmem:[#allocation4 + $0x50] sm:$0xff] %vm1501_vm1, %v5793_v20  ;;  %v4859_v4 = vpop.permute.xlu1 %4858  ;;  %v3167_v20 = vadd.f32 %v10231_v43, %v12116_v36 }
 0x298   :  { %4588 = vrot.lane.b32.xlu0 %v4447_v56, %s10355_s1  ;;  %5866 = vst.msk [vmem:[#allocation4 + $0x58] sm:$0xff] %vm1501_vm1, %v5794_v21  ;;  %v3602_v37 = vadd.f32 %v12125_v41, %v3166_v11  ;;  %v12560_v21 = vld [vmem:[#allocation3 + $0x338] sm:$0xff]  ;;  %v12562_v56 = vld [vmem:[#allocation4 + $0x48] sm:$0xff]  ;;  %v12574_v11 = vld [vmem:[#allocation3 + $0x350] sm:$0xff] }
 0x299   :  { %4590 = vrot.lane.b32.xlu1 %v4449_v60, %s10355_s1  ;;  %v3603_v7 = vadd.f32 %v12135_v26, %v3167_v20  ;;  %v4452_v20 = vrot.slane %v12560_v21, 2  ;;  %v4454_v49 = vrot.slane %v12574_v11, 2 }
 0x29a   :  { %v12548_v22 = vpop.permute.xlu0 %2978  ;;  %v3898_v42 = vadd.f32 %v12267_v12, %v3602_v37  ;;  %v4451_v12 = vsel %vm3230_vm3, %v4448_v16, %v4450_v8  ;;  %v16280_v37 = vld [vmem:[#allocation42_spill] sm:$0xff] }
 0x29b   :  { %v12554_v28 = vpop.permute.xlu1 %2980  ;;  %v3899_v10 = vadd.f32 %v12275_v45, %v3603_v7  ;;  %v10233_v7 = vld [vmem:[#allocation3 + $0x348] sm:$0xff] }
 0x29c   :  { %3730 = vrot.lane.b32.xlu0 %v10232_v39, %s10357_s16  ;;  %v4329_v39 = vadd.f32 %v16280_v37, %v3898_v42  ;;  %v5593_v42 = vrot.slane %v5437_v5, 2  ;;  %v4453_v37 = vsel %vm3230_vm3, %v4450_v8, %v4452_v20 }
 0x29d   :  { %4874 = vrot.lane.b32.xlu1 %v12448_v3, %s10356_s2 }
 0x29e   :  { %v12564_v36 = vld [vmem:[#allocation4 + $0x50] sm:$0xff]  ;;  %v12568_v60 = vpop.permute.xlu0 %3414  ;;  %v4764_v26 = vadd.f32 %v12393_v14, %v4329_v39 }
 0x29f   :  { %v12566_v41 = vld [vmem:[#allocation4 + $0x49] sm:$0xff]  ;;  %v12576_v3 = vld [vmem:[#allocation4 + $0x51] sm:$0xff]  ;;  %v12579_v43 = vpop.permute.xlu1 %3416 }
 0x2a0   :  { %4592 = vrot.lane.b32.xlu0 %v4451_v12, %s10355_s1  ;;  %16279 = vst [vmem:[#allocation23_spill] sm:$0xff] %v12579_v43  ;;  %v16282_v12 = vld [vmem:[#allocation44_spill] sm:$0xff]  ;;  %v16284_v43 = vrot.slane %v12509_v15, 2 }
 0x2a1   :  { %3732 = vrot.lane.b32.xlu1 %v10233_v7, %s10357_s16  ;;  %v4330_v57 = vadd.f32 %v16282_v12, %v3899_v10  ;;  %v5060_v7 = vadd.f32 %v4857_v47, %v4764_v26  ;;  %v4455_v12 = vsel %vm3230_vm3, %v4452_v20, %v4454_v49 }
 0x2a2   :  { %v12586_v16 = vpop.permute.xlu0 %3706  ;;  %v5594_v5 = vsel %vm3230_vm3, %v16284_v43, %v5593_v42 }
 0x2a3   :  { %16281 = vst [vmem:[#allocation26_spill] sm:$0xff] %v12586_v16  ;;  %v12593_v18 = vpop.permute.xlu1 %3708  ;;  %v4765_v45 = vadd.f32 %v12402_v48, %v4330_v57  ;;  %v12600_v16 = vld [vmem:[#allocation3 + $0x368] sm:$0xff]  ;;  %v5595_v48 = vrot.slane %v12598_v46, 2 }
 0x2a4   :  { %4872 = vrot.lane.b32.xlu0 %v12376_v34, %s10356_s2  ;;  %16283 = vst [vmem:[#allocation42_spill] sm:$0xff] %v12600_v16  ;;  %v16101_v57 = vrot.slane %v12600_v16, 2 }
 0x2a5   :  { %4594 = vrot.lane.b32.xlu1 %v4453_v37, %s10355_s1  ;;  %v5061_v39 = vadd.f32 %v4859_v4, %v4765_v45  ;;  %v5596_v4 = vsel %vm3230_vm3, %v5593_v42, %v5595_v48 }
 0x2a6   :  { %v5161_v14 = vpop.permute.xlu0 %5160  ;;  %v4457_v45 = vsel %vm3230_vm3, %v4454_v49, %v16101_v57 }
 0x2a7   :  { %v5364_v10 = vadd.f32 %v5161_v14, %v5060_v7  ;;  %v5163_v8 = vpop.permute.xlu1 %5162  ;;  %v10234_v7 = vld [vmem:[#allocation3 + $0x150] sm:$0xff] }
 0x2a8   :  { %4596 = vrot.lane.b32.xlu0 %v4455_v12, %s10355_s1  ;;  %v5365_v26 = vadd.f32 %v5163_v8, %v5061_v39  ;;  %v3168_v14 = vadd.f32 %v10234_v7, %v12227_v23  ;;  %v12655_v7 = vld [vmem:[#allocation3 + $0x380] sm:$0xff] }
 0x2a9   :  { %v5795_v47 = vadd.f32 %v5594_v5, %v5364_v10  ;;  %4878 = vrot.lane.b32.xlu1 %v12517_v17, %s10356_s2  ;;  %v10235_v10 = vld [vmem:[#allocation3 + $0x168] sm:$0xff] }
 0x2aa   :  { %v12614_v20 = vpop.permute.xlu0 %4568  ;;  %v5796_v15 = vadd.f32 %v5596_v4, %v5365_v26  ;;  %v3169_v49 = vadd.f32 %v10235_v10, %v12233_v62  ;;  %v3604_v12 = vadd.f32 %v12242_v29, %v3168_v14  ;;  %v16285_v29 = vmax.f32 %v12463_v63, %v12472_v40  ;;  %v5439_v14 = vld [vmem:[#allocation3 + $0x238] sm:$0xff] }
 0x2ab   :  { %5867 = vst.msk [vmem:[#allocation4 + $0x60] sm:$0xff] %vm1501_vm1, %v5795_v47  ;;  %v12619_v43 = vpop.permute.xlu1 %4570  ;;  %v4143_v63 = vrot.slane %v12235_v30, 1 }
 0x2ac   :  { %4876 = vrot.lane.b32.xlu0 %v12456_v51, %s10356_s2  ;;  %5868 = vst.msk [vmem:[#allocation4 + $0x68] sm:$0xff] %vm1501_vm1, %v5796_v15  ;;  %v3605_v47 = vadd.f32 %v12252_v35, %v3169_v49  ;;  %v3900_v23 = vadd.f32 %v12379_v44, %v3604_v12  ;;  %v12664_v49 = vld [vmem:[#allocation3 + $0x250] sm:$0xff] }
 0x2ad   :  { %4598 = vrot.lane.b32.xlu1 %v4457_v45, %s10355_s1 }
 0x2ae   :  { %v4861_v37 = vpop.permute.xlu0 %4860  ;;  %v3901_v62 = vadd.f32 %v12385_v38, %v3605_v47  ;;  %v4331_v35 = vadd.f32 %v11977_v31, %v3900_v23  ;;  %v12666_v31 = vld [vmem:[#allocation3 + $0x398] sm:$0xff]  ;;  %v4145_v47 = vrot.slane %v12283_v24, 1 }
 0x2af   :  { %v4863_v42 = vpop.permute.xlu1 %4862 }
 0x2b0   :  { %4880 = vrot.lane.b32.xlu0 %v12522_v33, %s10356_s2  ;;  %v4766_v40 = vadd.f32 %v12502_v9, %v4331_v35  ;;  %v12675_v9 = vld [vmem:[#allocation3 + $0x3b0] sm:$0xff]  ;;  %v16286_v35 = vrot.slane %v12160_v27, 1 }
 0x2b1   :  { %4882 = vrot.lane.b32.xlu1 %v12543_v13, %s10356_s2 }
 0x2b2   :  { %v5940_v51 = vld [vmem:[#allocation4 + $0x60] sm:$0xff]  ;;  %v12631_v39 = vpop.permute.xlu0 %2982  ;;  %v5062_v30 = vadd.f32 %v4861_v37, %v4766_v40  ;;  %v12684_v24 = vsel %vm2794_vm2, %v16286_v35, %v4143_v63 }
 0x2b3   :  { %v6008_v5 = vld [vmem:[#allocation4 + $0x61] sm:$0xff]  ;;  %v12637_v8 = vpop.permute.xlu1 %2984  ;;  %16287 = vst [vmem:[#allocation44_spill] sm:$0xff] %v12684_v24 }
 0x2b4   :  { %4884 = vrot.lane.b32.xlu0 %v12560_v21, %s10356_s2  ;;  %v6076_v26 = vmax.f32 %v5940_v51, %v6008_v5  ;;  %v4332_v51 = vadd.f32 %v11987_v59, %v3901_v62  ;;  %v5597_v5 = vrot.slane %v5439_v14, 2  ;;  %v4147_v62 = vrot.slane %v12339_v52, 1 }
 0x2b5   :  { %4886 = vrot.lane.b32.xlu1 %v12574_v11, %s10356_s2  ;;  %v4149_v52 = vrot.slane %v12376_v34, 1 }
 0x2b6   :  { %v12643_v4 = vpop.permute.xlu0 %3418  ;;  %v6155_v15 = vmax.f32 %v16285_v29, %v6076_v26  ;;  %v4767_v23 = vadd.f32 %v12512_v58, %v4332_v51  ;;  %v16102_v26 = vrot.slane %v12664_v49, 2  ;;  %v5598_v58 = vsel %vm3230_vm3, %v5595_v48, %v5597_v5 }
 0x2b7   :  { %v12651_v45 = vpop.permute.xlu1 %3420  ;;  %v12704_v40 = vsel %vm2794_vm2, %v4145_v47, %v4147_v62 }
 0x2b8   :  { %4888 = vrot.lane.b32.xlu0 %v12600_v16, %s10356_s2  ;;  %v6230_v44 = vadd.f32 %v12264_v1, %v6155_v15  ;;  %v5063_v29 = vadd.f32 %v4863_v42, %v4767_v23  ;;  %v5600_v46 = vsel %vm3230_vm3, %v5597_v5, %v16102_v26  ;;  %16290 = vst [vmem:[#allocation56_spill] sm:$0xff] %v12704_v40  ;;  %v4155_v23 = vrot.slane %v12517_v17, 1 }
 0x2b9   :  { %4890 = vrot.lane.b32.xlu1 %v12655_v7, %s10356_s2 }
 0x2ba   :  { %v12659_v38 = vpop.permute.xlu0 %3710  ;;  %v6298_v10 = vmax.f32 %v6230_v44, 0.0  ;;  %v12692_v44 = vsel %vm2794_vm2, %v4143_v63, %v4145_v47  ;;  %v12711_v63 = vsel %vm2794_vm2, %v4147_v62, %v4149_v52  ;;  %v16298_v62 = vld [vmem:[#allocation16_spill] sm:$0xff] }
 0x2bb   :  { %v12670_v12 = vpop.permute.xlu1 %3712  ;;  %16288 = vst [vmem:[#allocation54_spill] sm:$0xff] %v12692_v44  ;;  %16292 = vst [vmem:[#allocation58_spill] sm:$0xff] %v12711_v63 }
 0x2bc   :  { %4892 = vrot.lane.b32.xlu0 %v12666_v31, %s10356_s2  ;;  %6366 = vst.msk [vmem:[#allocation5 + $0x40] sm:$0xff] %vm1501_vm1, %v6298_v10  ;;  %v16294_v10 = vld [vmem:[#allocation14_spill] sm:$0xff] }
 0x2bd   :  { %4894 = vrot.lane.b32.xlu1 %v12675_v9, %s10356_s2  ;;  %v16295_v5 = vrot.slane %v16294_v10, 1  ;;  %v4161_v10 = vrot.slane %v12560_v21, 1  ;;  %v4163_v21 = vrot.slane %v12574_v11, 1  ;;  %v4167_v11 = vrot.slane %v12655_v7, 1 }
 0x2be   :  { %v5165_v59 = vpop.permute.xlu0 %5164  ;;  %v4171_v7 = vrot.slane %v12675_v9, 1 }
 0x2bf   :  { %v5366_v15 = vadd.f32 %v5165_v59, %v5062_v30  ;;  %v5167_v37 = vpop.permute.xlu1 %5166  ;;  %v12721_v47 = vsel %vm2794_vm2, %v4149_v52, %v16295_v5  ;;  %v4157_v59 = vrot.slane %v12522_v33, 1  ;;  %v16299_v52 = vld [vmem:[#allocation15_spill] sm:$0xff]  ;;  %v16304_v5 = vmax.f32 %v12562_v56, %v12566_v41 }
 0x2c0   :  { %5168 = vrot.lane.b32.xlu0 %v12684_v24, %s10357_s16  ;;  %v5367_v14 = vadd.f32 %v5167_v37, %v5063_v29  ;;  %16296 = vst [vmem:[#allocation14_spill] sm:$0xff] %v12721_v47  ;;  %v5941_v29 = vld [vmem:[#allocation4 + $0x68] sm:$0xff] }
 0x2c1   :  { %v5797_v42 = vadd.f32 %v5598_v58, %v5366_v15  ;;  %5170 = vrot.lane.b32.xlu1 %v12692_v44, %s10357_s16 }
 0x2c2   :  { %v12700_v27 = vpop.permute.xlu0 %4572  ;;  %v5798_v48 = vadd.f32 %v5600_v46, %v5367_v14  ;;  %v4159_v14 = vrot.slane %v12543_v13, 1 }
 0x2c3   :  { %16289 = vst [vmem:[#allocation55_spill] sm:$0xff] %v12700_v27  ;;  %5869 = vst.msk [vmem:[#allocation4 + $0x70] sm:$0xff] %vm1501_vm1, %v5797_v42  ;;  %v12708_v34 = vpop.permute.xlu1 %4574  ;;  %v16300_v42 = vrot.slane %v16299_v52, 1 }
 0x2c4   :  { %5172 = vrot.lane.b32.xlu0 %v12704_v40, %s10357_s16  ;;  %16291 = vst [vmem:[#allocation57_spill] sm:$0xff] %v12708_v34  ;;  %5870 = vst.msk [vmem:[#allocation4 + $0x78] sm:$0xff] %vm1501_vm1, %v5798_v48  ;;  %v12744_v48 = vsel %vm2794_vm2, %v4155_v23, %v4157_v59  ;;  %v12767_v41 = vsel %vm2794_vm2, %v4159_v14, %v4161_v10  ;;  %v12916_v40 = vld [vmem:[#allocation3 + $0x528] sm:$0xff] }
 0x2c5   :  { %5174 = vrot.lane.b32.xlu1 %v12711_v63, %s10357_s16  ;;  %v12736_v17 = vsel %vm2794_vm2, %v16300_v42, %v4155_v23  ;;  %16303 = vst [vmem:[#allocation62_spill] sm:$0xff] %v12744_v48  ;;  %v16306_v42 = vmax.f32 %v12564_v36, %v12576_v3  ;;  %v12759_v23 = vsel %vm2794_vm2, %v4157_v59, %v4159_v14  ;;  %16309 = vst [vmem:[#allocation66_spill] sm:$0xff] %v12767_v41 }
 0x2c6   :  { %v12716_v51 = vpop.permute.xlu0 %4864  ;;  %16301 = vst [vmem:[#allocation15_spill] sm:$0xff] %v12736_v17  ;;  %16307 = vst [vmem:[#allocation64_spill] sm:$0xff] %v12759_v23  ;;  %v12778_v59 = vsel %vm2794_vm2, %v4161_v10, %v4163_v21  ;;  %v4169_v14 = vrot.slane %v12666_v31, 1 }
 0x2c7   :  { %16293 = vst [vmem:[#allocation59_spill] sm:$0xff] %v12716_v51  ;;  %v12726_v30 = vpop.permute.xlu1 %4866  ;;  %16310 = vst [vmem:[#allocation67_spill] sm:$0xff] %v12778_v59  ;;  %v5449_v51 = vld [vmem:[#allocation3 + $0x328] sm:$0xff] }
 0x2c8   :  { %5176 = vrot.lane.b32.xlu0 %v12721_v47, %s10357_s16  ;;  %16297 = vst [vmem:[#allocation60_spill] sm:$0xff] %v12726_v30  ;;  %16340 = vst [vmem:[#allocation92_spill] sm:$0xff] %v12916_v40  ;;  %v5451_v30 = vld [vmem:[#allocation3 + $0x358] sm:$0xff]  ;;  %v5617_v44 = vrot.slane %v5449_v51, 2 }
 0x2c9   :  { %5178 = vrot.lane.b32.xlu1 %v16298_v62, %s10357_s16  ;;  %v5621_v24 = vrot.slane %v5451_v30, 2 }
 0x2ca   :  { %v5942_v15 = vld [vmem:[#allocation4 + $0x70] sm:$0xff]  ;;  %v12731_v58 = vpop.permute.xlu0 %2986 }
 0x2cb   :  { %v6009_v35 = vld [vmem:[#allocation4 + $0x69] sm:$0xff]  ;;  %v6010_v46 = vld [vmem:[#allocation4 + $0x71] sm:$0xff]  ;;  %v12741_v33 = vpop.permute.xlu1 %2988 }
 0x2cc   :  { %v6077_v37 = vmax.f32 %v5941_v29, %v6009_v35  ;;  %5180 = vrot.lane.b32.xlu0 %v12736_v17, %s10357_s16  ;;  %16302 = vst [vmem:[#allocation61_spill] sm:$0xff] %v12741_v33  ;;  %v6078_v35 = vmax.f32 %v5942_v15, %v6010_v46  ;;  %v4165_v15 = vrot.slane %v12600_v16, 1 }
 0x2cd   :  { %5182 = vrot.lane.b32.xlu1 %v12744_v48, %s10357_s16  ;;  %v12859_v48 = vld [vmem:[#allocation3 + $0x468] sm:$0xff] }
 0x2ce   :  { %v6156_v29 = vmax.f32 %v16304_v5, %v6077_v37  ;;  %v12752_v13 = vpop.permute.xlu0 %3422  ;;  %v6157_v57 = vmax.f32 %v16306_v42, %v6078_v35  ;;  %v12795_v10 = vsel %vm2794_vm2, %v4165_v15, %v4167_v11  ;;  %v12804_v35 = vld [vmem:[#allocation3 + $0x3d8] sm:$0xff]  ;;  %v2888_v47 = vrot.slane %v12859_v48, 1 }
 0x2cf   :  { %16305 = vst [vmem:[#allocation63_spill] sm:$0xff] %v12752_v13  ;;  %v12764_v56 = vpop.permute.xlu1 %3424  ;;  %16314 = vst [vmem:[#allocation71_spill] sm:$0xff] %v12795_v10  ;;  %v5452_v13 = vld [vmem:[#allocation3 + $0x370] sm:$0xff] }
 0x2d0   :  { %v6231_v52 = vadd.f32 %v12264_v1, %v6156_v29  ;;  %5184 = vrot.lane.b32.xlu0 %v12759_v23, %s10357_s16  ;;  %16308 = vst [vmem:[#allocation65_spill] sm:$0xff] %v12764_v56  ;;  %v6232_v46 = vadd.f32 %v12264_v1, %v6157_v57  ;;  %v12786_v1 = vsel %vm2794_vm2, %v4163_v21, %v4165_v15  ;;  %v2876_v15 = vrot.slane %v12804_v35, 1  ;;  %v5448_v56 = vld [vmem:[#allocation3 + $0x310] sm:$0xff] }
 0x2d1   :  { %5186 = vrot.lane.b32.xlu1 %v12767_v41, %s10357_s16  ;;  %16312 = vst [vmem:[#allocation69_spill] sm:$0xff] %v12786_v1  ;;  %v12802_v29 = vsel %vm2794_vm2, %v4167_v11, %v4169_v14  ;;  %v12813_v21 = vsel %vm2794_vm2, %v4169_v14, %v4171_v7  ;;  %v16320_v11 = vld [vmem:[#allocation37_spill] sm:$0xff]  ;;  %v12830_v14 = vld [vmem:[#allocation3 + $0x420] sm:$0xff]  ;;  %v12845_v41 = vld [vmem:[#allocation3 + $0x438] sm:$0xff]  ;;  %v5623_v33 = vrot.slane %v5452_v13, 2 }
 0x2d2   :  { %v6299_v37 = vmax.f32 %v6231_v52, 0.0  ;;  %v12773_v36 = vpop.permute.xlu0 %3714  ;;  %v6300_v3 = vmax.f32 %v6232_v46, 0.0  ;;  %16316 = vst [vmem:[#allocation73_spill] sm:$0xff] %v12802_v29  ;;  %v12808_v52 = vld [vmem:[#allocation3 + $0x3f0] sm:$0xff]  ;;  %16318 = vst [vmem:[#allocation75_spill] sm:$0xff] %v12813_v21 }
 0x2d3   :  { %v12783_v5 = vpop.permute.xlu1 %3716 }
 0x2d4   :  { %6367 = vst.msk [vmem:[#allocation5 + $0x48] sm:$0xff] %vm1501_vm1, %v6299_v37  ;;  %5188 = vrot.lane.b32.xlu0 %v12778_v59, %s10357_s16  ;;  %16311 = vst [vmem:[#allocation68_spill] sm:$0xff] %v12783_v5  ;;  %v5454_v5 = vld [vmem:[#allocation3 + $0x3a0] sm:$0xff] }
 0x2d5   :  { %6368 = vst.msk [vmem:[#allocation5 + $0x50] sm:$0xff] %vm1501_vm1, %v6300_v3  ;;  %5190 = vrot.lane.b32.xlu1 %v12786_v1, %s10357_s16  ;;  %v16321_v3 = vrot.slane %v16320_v11, 1  ;;  %v16324_v1 = vld [vmem:[#allocation35_spill] sm:$0xff] }
 0x2d6   :  { %v12791_v57 = vpop.permute.xlu0 %4576  ;;  %v16325_v11 = vrot.slane %v16324_v1, 1 }
 0x2d7   :  { %16313 = vst [vmem:[#allocation70_spill] sm:$0xff] %v12791_v57  ;;  %v12799_v31 = vpop.permute.xlu1 %4578  ;;  %v12823_v26 = vsel %vm2794_vm2, %v4171_v7, %v16321_v3  ;;  %v5447_v57 = vld [vmem:[#allocation3 + $0x2f8] sm:$0xff] }
 0x2d8   :  { %5192 = vrot.lane.b32.xlu0 %v12795_v10, %s10357_s16  ;;  %16315 = vst [vmem:[#allocation72_spill] sm:$0xff] %v12799_v31  ;;  %16322 = vst [vmem:[#allocation77_spill] sm:$0xff] %v12823_v26  ;;  %v2878_v10 = vrot.slane %v12808_v52, 1  ;;  %v2877_v7 = vsel %vm2794_vm2, %v16325_v11, %v2876_v15 }
 0x2d9   :  { %5194 = vrot.lane.b32.xlu1 %v12802_v29, %s10357_s16  ;;  %v12826_v29 = vld [vmem:[#allocation3 + $0x408] sm:$0xff] }
 0x2da   :  { %v12810_v42 = vpop.permute.xlu0 %4868  ;;  %v2880_v3 = vrot.slane %v12826_v29, 1 }
 0x2db   :  { %16317 = vst [vmem:[#allocation74_spill] sm:$0xff] %v12810_v42  ;;  %v6458_v9 = vld [vmem:[#allocation5 + $0x40] ss:$2 sm:$0xff]  ;;  %v12818_v46 = vpop.permute.xlu1 %4870 }
 0x2dc   :  { %v9684_v37 = vpack.c.bf16 %v6458_v9, %v6458_v9  ;;  %5196 = vrot.lane.b32.xlu0 %v12813_v21, %s10357_s16  ;;  %16319 = vst [vmem:[#allocation76_spill] sm:$0xff] %v12818_v46  ;;  %v6460_v16 = vld [vmem:[#allocation5 + $0x50] ss:$2 sm:$0xf]  ;;  %v2881_v11 = vsel %vm2794_vm2, %v2878_v10, %v2880_v3  ;;  %v12888_v42 = vld [vmem:[#allocation3 + $0x4c8] sm:$0xff] }
 0x2dd   :  { %5198 = vrot.lane.b32.xlu1 %v12823_v26, %s10357_s16  ;;  %v9685_v9 = vpack.c.bf16 %v6460_v16, %v6460_v16  ;;  %v2879_v26 = vsel %vm2794_vm2, %v2876_v15, %v2878_v10  ;;  %v2882_v16 = vrot.slane %v12830_v14, 1  ;;  %v12877_v46 = vld [vmem:[#allocation3 + $0x4b0] sm:$0xff] }
 0x2de   :  { %6469 = vst.msk [vmem:[#allocation6 + $0x8] sm:$0xf] %vm1100_vm0, %v9684_v37  ;;  %v12833_v21 = vpop.permute.xlu0 %2990  ;;  %v12848_v37 = vld [vmem:[#allocation3 + $0x450] sm:$0xff] }
 0x2df   :  { %16323 = vst [vmem:[#allocation78_spill] sm:$0xff] %v12833_v21  ;;  %6470 = vst.msk [vmem:[#allocation6 + $0xc] sm:$0x3] %vm6455_vm4, %v9685_v9  ;;  %v12841_v59 = vpop.permute.xlu1 %2992  ;;  %v2884_v9 = vrot.slane %v12845_v41, 1  ;;  %v2883_v15 = vsel %vm2794_vm2, %v2880_v3, %v2882_v16  ;;  %v2886_v23 = vrot.slane %v12848_v37, 1 }
 0x2e0   :  { %3018 = vrot.lane.b32.xlu0 %v2877_v7, %s10355_s1  ;;  %16326 = vst [vmem:[#allocation35_spill] sm:$0xff] %v12841_v59 }
 0x2e1   :  { %3020 = vrot.lane.b32.xlu1 %v2879_v26, %s10355_s1  ;;  %v12862_v26 = vld [vmem:[#allocation3 + $0x480] sm:$0xff]  ;;  %v2885_v10 = vsel %vm2794_vm2, %v2882_v16, %v2884_v9  ;;  %v2887_v3 = vsel %vm2794_vm2, %v2884_v9, %v2886_v23  ;;  %v2889_v16 = vsel %vm2794_vm2, %v2886_v23, %v2888_v47  ;;  %v2894_v9 = vrot.slane %v12877_v46, 1 }
 0x2e2   :  { %v12850_v1 = vpop.permute.xlu0 %3426 }
 0x2e3   :  { %16327 = vst [vmem:[#allocation79_spill] sm:$0xff] %v12850_v1  ;;  %v12855_v7 = vpop.permute.xlu1 %3428 }
 0x2e4   :  { %3022 = vrot.lane.b32.xlu0 %v2881_v11, %s10355_s1  ;;  %16328 = vst [vmem:[#allocation80_spill] sm:$0xff] %v12855_v7  ;;  %v2890_v7 = vrot.slane %v12862_v26, 1 }
 0x2e5   :  { %3024 = vrot.lane.b32.xlu1 %v2883_v15, %s10355_s1  ;;  %v12874_v15 = vld [vmem:[#allocation3 + $0x498] sm:$0xff] }
 0x2e6   :  { %v12864_v17 = vpop.permute.xlu0 %3718  ;;  %v10017_v62 = vld [vmem:[#allocation6 + $0x8] sm:$0xff]  }
 0x2e7   :  { %16329 = vst [vmem:[#allocation81_spill] sm:$0xff] %v12864_v17  ;;  %v12869_v11 = vpop.permute.xlu1 %3720  ;;  %9911 = vmatmul.mubr.msk.bf16.vlgmr.msra.gmra.mxu1 %vm1501_vm1, %v10017_v62  ;;  %v2891_v62 = vsel %vm2794_vm2, %v2888_v47, %v2890_v7 }
 0x2e8   :  { %3026 = vrot.lane.b32.xlu0 %v2885_v10, %s10355_s1  ;;  %16330 = vst [vmem:[#allocation82_spill] sm:$0xff] %v12869_v11  ;;  %v2892_v10 = vrot.slane %v12874_v15, 1  ;;  %v12902_v11 = vld [vmem:[#allocation3 + $0x4f8] sm:$0xff] }
 0x2e9   :  { %3028 = vrot.lane.b32.xlu1 %v2887_v3, %s10355_s1  ;;  %v12891_v3 = vld [vmem:[#allocation3 + $0x4e0] sm:$0xff]  ;;  %16336 = vst [vmem:[#allocation88_spill] sm:$0xff] %v12902_v11 }
 0x2ea   :  { %v12879_v1 = vpop.permute.xlu0 %4580  ;;  %16333 = vst [vmem:[#allocation85_spill] sm:$0xff] %v12891_v3  ;;  %v2893_v23 = vsel %vm2794_vm2, %v2890_v7, %v2892_v10  ;;  %v2895_v47 = vsel %vm2794_vm2, %v2892_v10, %v2894_v9 }
 0x2eb   :  { %16331 = vst [vmem:[#allocation83_spill] sm:$0xff] %v12879_v1  ;;  %v12884_v59 = vpop.permute.xlu1 %4582  ;;  %v2896_v1 = vrot.slane %v12888_v42, 1 }
 0x2ec   :  { %3030 = vrot.lane.b32.xlu0 %v2889_v16, %s10355_s1  ;;  %16332 = vst [vmem:[#allocation84_spill] sm:$0xff] %v12884_v59  ;;  %v2898_v59 = vrot.slane %v12891_v3, 1 }
 0x2ed   :  { %3032 = vrot.lane.b32.xlu1 %v2891_v62, %s10355_s1  ;;  %v12905_v62 = vld [vmem:[#allocation3 + $0x510] sm:$0xff]  ;;  %v2897_v7 = vsel %vm2794_vm2, %v2894_v9, %v2896_v1 }
 0x2ee   :  { %v12893_v63 = vpop.permute.xlu0 %2994  ;;  %16337 = vst [vmem:[#allocation89_spill] sm:$0xff] %v12905_v62  ;;  %v2899_v10 = vsel %vm2794_vm2, %v2896_v1, %v2898_v59 }
 0x2ef   :  { %16334 = vst [vmem:[#allocation86_spill] sm:$0xff] %v12893_v63  ;;  %v12898_v16 = vpop.permute.xlu1 %2996  ;;  %v2900_v63 = vrot.slane %v12902_v11, 1 }
 0x2f0   :  { %3034 = vrot.lane.b32.xlu0 %v2893_v23, %s10355_s1  ;;  %16335 = vst [vmem:[#allocation87_spill] sm:$0xff] %v12898_v16  ;;  %v2902_v16 = vrot.slane %v12905_v62, 1 }
 0x2f1   :  { %3036 = vrot.lane.b32.xlu1 %v2895_v47, %s10355_s1  ;;  %v12919_v47 = vld [vmem:[#allocation3 + $0x540] sm:$0xff]  ;;  %v2901_v9 = vsel %vm2794_vm2, %v2898_v59, %v2900_v63 }
 0x2f2   :  { %v12907_v31 = vpop.permute.xlu0 %3430  ;;  %16341 = vst [vmem:[#allocation93_spill] sm:$0xff] %v12919_v47  ;;  %v2903_v1 = vsel %vm2794_vm2, %v2900_v63, %v2902_v16  ;;  %v3314_v63 = vrot.slane %v12808_v52, 2  ;;  %v3318_v52 = vrot.slane %v12830_v14, 2 }
 0x2f3   :  { %16338 = vst [vmem:[#allocation90_spill] sm:$0xff] %v12907_v31  ;;  %v12912_v23 = vpop.permute.xlu1 %3432  ;;  %v2904_v31 = vrot.slane %v12916_v40, 1 }
 0x2f4   :  { %3038 = vrot.lane.b32.xlu0 %v2897_v7, %s10355_s1  ;;  %16339 = vst [vmem:[#allocation91_spill] sm:$0xff] %v12912_v23  ;;  %v16117_v23 = vrot.slane %v12919_v47, 1 }
 0x2f5   :  { %3040 = vrot.lane.b32.xlu1 %v2899_v10, %s10355_s1  ;;  %v2905_v10 = vsel %vm2794_vm2, %v2902_v16, %v2904_v31  ;;  %v3316_v16 = vrot.slane %v12826_v29, 2 }
 0x2f6   :  { %v12921_v17 = vpop.permute.xlu0 %3722 }
 0x2f7   :  { %16342 = vst [vmem:[#allocation94_spill] sm:$0xff] %v12921_v17  ;;  %v12926_v7 = vpop.permute.xlu1 %3724  ;;  %v3312_v17 = vrot.slane %v12804_v35, 2  ;;  %v3319_v29 = vsel %vm3230_vm3, %v3316_v16, %v3318_v52 }
 0x2f8   :  { %3042 = vrot.lane.b32.xlu0 %v2901_v9, %s10355_s1  ;;  %16343 = vst [vmem:[#allocation95_spill] sm:$0xff] %v12926_v7  ;;  %v2907_v9 = vsel %vm2794_vm2, %v2904_v31, %v16117_v23  ;;  %v12943_v7 = vld [vmem:[#allocation3 + $0x3c0] sm:$0xff]  ;;  %v3317_v23 = vsel %vm3230_vm3, %v3314_v63, %v3316_v16 }
 0x2f9   :  { %3044 = vrot.lane.b32.xlu1 %v2903_v1, %s10355_s1  ;;  %16346 = vst [vmem:[#allocation98_spill] sm:$0xff] %v12943_v7  ;;  %v16119_v1 = vrot.slane %v12943_v7, 2  ;;  %v3315_v31 = vsel %vm3230_vm3, %v3312_v17, %v3314_v63  ;;  %v3320_v7 = vrot.slane %v12845_v41, 2 }
 0x2fa   :  { %v12931_v21 = vpop.permute.xlu0 %4584 }
 0x2fb   :  { %16344 = vst [vmem:[#allocation96_spill] sm:$0xff] %v12931_v21  ;;  %v12936_v59 = vpop.permute.xlu1 %4586  ;;  %v3313_v35 = vsel %vm3230_vm3, %v16119_v1, %v3312_v17 }
 0x2fc   :  { %3046 = vrot.lane.b32.xlu0 %v2905_v10, %s10355_s1  ;;  %16345 = vst [vmem:[#allocation97_spill] sm:$0xff] %v12936_v59  ;;  %v3324_v59 = vrot.slane %v12859_v48, 2 }
 0x2fd   :  { %3048 = vrot.lane.b32.xlu1 %v2907_v9, %s10355_s1 }
 0x2fe   :  { %v12946_v21 = vpop.permute.xlu0 %2998 }
 0x2ff   :  { %16347 = vst [vmem:[#allocation99_spill] sm:$0xff] %v12946_v21  ;;  %v12953_v10 = vpop.permute.xlu1 %3000 }
 0x300   :  { %3454 = vrot.lane.b32.xlu0 %v3313_v35, %s10356_s2  ;;  %16348 = vst [vmem:[#allocation100_spill] sm:$0xff] %v12953_v10  ;;  %v3322_v35 = vrot.slane %v12848_v37, 2 }
 0x301   :  { %3456 = vrot.lane.b32.xlu1 %v3315_v31, %s10356_s2  ;;  %v3321_v31 = vsel %vm3230_vm3, %v3318_v52, %v3320_v7 }
 0x302   :  { %v12958_v9 = vpop.permute.xlu0 %3434 }
 0x303   :  { %16349 = vst [vmem:[#allocation101_spill] sm:$0xff] %v12958_v9  ;;  %v12963_v1 = vpop.permute.xlu1 %3436  ;;  %v3338_v9 = vrot.slane %v12905_v62, 2  ;;  %v5444_v62 = vld [vmem:[#allocation3 + $0x2b0] sm:$0xff] }
 0x304   :  { %3458 = vrot.lane.b32.xlu0 %v3317_v23, %s10356_s2  ;;  %16350 = vst [vmem:[#allocation102_spill] sm:$0xff] %v12963_v1  ;;  %v3323_v23 = vsel %vm3230_vm3, %v3320_v7, %v3322_v35  ;;  %v3326_v1 = vrot.slane %v12862_v26, 2 }
 0x305   :  { %3460 = vrot.lane.b32.xlu1 %v3319_v29, %s10356_s2  ;;  %v3325_v29 = vsel %vm3230_vm3, %v3322_v35, %v3324_v59 }
 0x306   :  { %v12968_v17 = vpop.permute.xlu0 %3726 }
 0x307   :  { %16351 = vst [vmem:[#allocation103_spill] sm:$0xff] %v12968_v17  ;;  %v12973_v63 = vpop.permute.xlu1 %3728  ;;  %v3328_v17 = vrot.slane %v12874_v15, 2 }
 0x308   :  { %3462 = vrot.lane.b32.xlu0 %v3321_v31, %s10356_s2  ;;  %16352 = vst [vmem:[#allocation104_spill] sm:$0xff] %v12973_v63  ;;  %v3327_v31 = vsel %vm3230_vm3, %v3324_v59, %v3326_v1  ;;  %v3330_v63 = vrot.slane %v12877_v46, 2 }
 0x309   :  { %3464 = vrot.lane.b32.xlu1 %v3323_v23, %s10356_s2  ;;  %v3329_v23 = vsel %vm3230_vm3, %v3326_v1, %v3328_v17 }
 0x30a   :  { %v12978_v16 = vpop.permute.xlu0 %4588 }
 0x30b   :  { %16353 = vst [vmem:[#allocation105_spill] sm:$0xff] %v12978_v16  ;;  %v12983_v52 = vpop.permute.xlu1 %4590  ;;  %v3332_v16 = vrot.slane %v12888_v42, 2 }
 0x30c   :  { %3466 = vrot.lane.b32.xlu0 %v3325_v29, %s10356_s2  ;;  %16354 = vst [vmem:[#allocation106_spill] sm:$0xff] %v12983_v52  ;;  %v3331_v29 = vsel %vm3230_vm3, %v3328_v17, %v3330_v63  ;;  %v3334_v52 = vrot.slane %v12891_v3, 2  ;;  %v5443_v17 = vld [vmem:[#allocation3 + $0x298] sm:$0xff]  ;;  %v13030_v3 = vld [vmem:[#allocation3 + $0x470] sm:$0xff] }
 0x30d   :  { %3468 = vrot.lane.b32.xlu1 %v3327_v31, %s10356_s2  ;;  %v3333_v31 = vsel %vm3230_vm3, %v3330_v63, %v3332_v16  ;;  %v3340_v63 = vrot.slane %v12916_v40, 2  ;;  %v5605_v21 = vrot.slane %v5443_v17, 2  ;;  %v5445_v40 = vld [vmem:[#allocation3 + $0x2c8] sm:$0xff] }
 0x30e   :  { %v12988_v7 = vpop.permute.xlu0 %3730 }
 0x30f   :  { %16355 = vst [vmem:[#allocation107_spill] sm:$0xff] %v12988_v7  ;;  %v12993_v35 = vpop.permute.xlu1 %4874  ;;  %v3336_v7 = vrot.slane %v12902_v11, 2 }
 0x310   :  { %3470 = vrot.lane.b32.xlu0 %v3329_v23, %s10356_s2  ;;  %16356 = vst [vmem:[#allocation108_spill] sm:$0xff] %v12993_v35  ;;  %v3335_v23 = vsel %vm3230_vm3, %v3332_v16, %v3334_v52  ;;  %v5442_v35 = vld [vmem:[#allocation3 + $0x280] sm:$0xff]  ;;  %v16126_v16 = vrot.slane %v12919_v47, 2 }
 0x311   :  { %3472 = vrot.lane.b32.xlu1 %v3331_v29, %s10356_s2  ;;  %v5441_v29 = vld [vmem:[#allocation3 + $0x268] sm:$0xff] }
 0x312   :  { %v12998_v59 = vpop.permute.xlu0 %4592 }
 0x313   :  { %16357 = vst [vmem:[#allocation109_spill] sm:$0xff] %v12998_v59  ;;  %v13003_v1 = vpop.permute.xlu1 %3732  ;;  %v3337_v59 = vsel %vm3230_vm3, %v3334_v52, %v3336_v7  ;;  %v5603_v52 = vrot.slane %v5442_v35, 2  ;;  %v5607_v35 = vrot.slane %v5444_v62, 2  ;;  %v5453_v62 = vld [vmem:[#allocation3 + $0x388] sm:$0xff] }
 0x314   :  { %3474 = vrot.lane.b32.xlu0 %v3333_v31, %s10356_s2  ;;  %16358 = vst [vmem:[#allocation110_spill] sm:$0xff] %v13003_v1  ;;  %v3339_v1 = vsel %vm3230_vm3, %v3336_v7, %v3338_v9  ;;  %v4000_v7 = vld [vmem:[#allocation3 + $0x458] sm:$0xff]  ;;  %v5625_v30 = vrot.slane %v5453_v62, 2 }
 0x315   :  { %3476 = vrot.lane.b32.xlu1 %v3335_v23, %s10356_s2  ;;  %v5601_v23 = vrot.slane %v5441_v29, 2  ;;  %v13028_v29 = vsel %vm3230_vm3, %v5603_v52, %v5605_v21 }
 0x316   :  { %v13008_v10 = vpop.permute.xlu0 %4872  ;;  %16363 = vst [vmem:[#allocation115_spill] sm:$0xff] %v13028_v29  ;;  %v5450_v29 = vld [vmem:[#allocation3 + $0x340] sm:$0xff] }
 0x317   :  { %16359 = vst [vmem:[#allocation111_spill] sm:$0xff] %v13008_v10  ;;  %v13013_v31 = vpop.permute.xlu1 %4594  ;;  %v5446_v10 = vld [vmem:[#allocation3 + $0x2e0] sm:$0xff]  ;;  %v13041_v47 = vsel %vm3230_vm3, %v5601_v23, %v5603_v52  ;;  %v5619_v51 = vrot.slane %v5450_v29, 2  ;;  %v16366_v52 = vrot.slane %v11876_v0, 2 }
 0x318   :  { %3478 = vrot.lane.b32.xlu0 %v3337_v59, %s10356_s2  ;;  %16360 = vst [vmem:[#allocation112_spill] sm:$0xff] %v13013_v31  ;;  %v3341_v59 = vsel %vm3230_vm3, %v3338_v9, %v3340_v63  ;;  %v3999_v31 = vld [vmem:[#allocation3 + $0x440] sm:$0xff]  ;;  %v13032_v9 = vld [vmem:[#allocation3 + $0x3b8] sm:$0xff]  ;;  %v5611_v34 = vrot.slane %v5446_v10, 2 }
 0x319   :  { %3480 = vrot.lane.b32.xlu1 %v3339_v1, %s10356_s2  ;;  %v3343_v1 = vsel %vm3230_vm3, %v3340_v63, %v16126_v16  ;;  %16364 = vst [vmem:[#allocation116_spill] sm:$0xff] %v13032_v9  ;;  %v5609_v63 = vrot.slane %v5445_v40, 2  ;;  %v5615_v16 = vrot.slane %v5448_v56, 2  ;;  %v4474_v27 = vrot.slane %v3999_v31, 2 }
 0x31a   :  { %v13018_v11 = vpop.permute.xlu0 %4596  ;;  %v13052_v56 = vsel %vm3230_vm3, %v5605_v21, %v5607_v35 }
 0x31b   :  { %16361 = vst [vmem:[#allocation113_spill] sm:$0xff] %v13018_v11  ;;  %v13022_v17 = vpop.permute.xlu1 %4878  ;;  %v5613_v11 = vrot.slane %v5447_v57, 2  ;;  %v13060_v13 = vsel %vm3230_vm3, %v5607_v35, %v5609_v63  ;;  %v13063_v31 = vsel %vm3230_vm3, %v5609_v63, %v5611_v34  ;;  %v13076_v29 = vsel %vm3230_vm3, %v5615_v16, %v5617_v44  ;;  %v13084_v35 = vld [vmem:[#allocation3 + $0x488] sm:$0xff]  ;;  %v13101_v63 = vld [vmem:[#allocation3 + $0x4d0] sm:$0xff] }
 0x31c   :  { %3482 = vrot.lane.b32.xlu0 %v3341_v59, %s10356_s2  ;;  %16362 = vst [vmem:[#allocation114_spill] sm:$0xff] %v13022_v17  ;;  %v16365_v59 = vrot.slane %v12664_v49, 2  ;;  %v16129_v49 = vrot.slane %v13030_v3, 2  ;;  %16368 = vst [vmem:[#allocation118_spill] sm:$0xff] %v13084_v35 }
 0x31d   :  { %3484 = vrot.lane.b32.xlu1 %v3343_v1, %s10356_s2  ;;  %v4476_v1 = vrot.slane %v4000_v7, 2  ;;  %v13055_v10 = vsel %vm3230_vm3, %v5611_v34, %v5613_v11  ;;  %v13073_v7 = vsel %vm3230_vm3, %v16366_v52, %v4474_v27  ;;  %v13082_v34 = vsel %vm3230_vm3, %v5619_v51, %v5621_v24  ;;  %v10241_v52 = vld [vmem:[#allocation3 + $0x198] sm:$0xff] }
 0x31e   :  { %v13038_v17 = vsel %vm3230_vm3, %v16365_v59, %v5601_v23  ;;  %v13043_v57 = vpop.permute.xlu0 %4876  ;;  %v16131_v59 = vrot.slane %v13032_v9, 2  ;;  %v5627_v23 = vrot.slane %v5454_v5, 2  ;;  %16367 = vst [vmem:[#allocation117_spill] sm:$0xff] %v13082_v34  ;;  %v3171_v34 = vadd.f32 %v10241_v52, %v12352_v55  ;;  %v10242_v9 = vld [vmem:[#allocation3 + $0x1b0] sm:$0xff] }
 0x31f   :  { %v13049_v40 = vpop.permute.xlu1 %4598  ;;  %v13089_v5 = vsel %vm3230_vm3, %v4474_v27, %v4476_v1  ;;  %v13094_v0 = vsel %vm3230_vm3, %v4476_v1, %v16129_v49  ;;  %v13115_v1 = vsel %vm3230_vm3, %v5623_v33, %v5625_v30  ;;  %v4480_v55 = vrot.slane %v13084_v35, 2  ;;  %v10245_v35 = vld [vmem:[#allocation3 + $0x1f8] sm:$0xff] }
 0x320   :  { %3750 = vrot.lane.b32.xlu0 %v12830_v14, %s10357_s16  ;;  %v13066_v14 = vsel %vm3230_vm3, %v5613_v11, %v5615_v16  ;;  %v13086_v11 = vld [vmem:[#allocation3 + $0x4a0] sm:$0xff]  ;;  %v13097_v16 = vsel %vm3230_vm3, %v5621_v24, %v5623_v33  ;;  %v13106_v62 = vsel %vm3230_vm3, %v5627_v23, %v16131_v59  ;;  %v13118_v49 = vsel %vm3230_vm3, %v5625_v30, %v5627_v23 }
 0x321   :  { %3752 = vrot.lane.b32.xlu1 %v12845_v41, %s10357_s16  ;;  %v13079_v41 = vsel %vm3230_vm3, %v5617_v44, %v5619_v51  ;;  %16369 = vst [vmem:[#allocation119_spill] sm:$0xff] %v13086_v11  ;;  %v13099_v44 = vld [vmem:[#allocation3 + $0x4b8] sm:$0xff]  ;;  %16370 = vst [vmem:[#allocation120_spill] sm:$0xff] %v13106_v62  ;;  %v10240_v51 = vld [vmem:[#allocation3 + $0x180] sm:$0xff]  ;;  %v3172_v59 = vadd.f32 %v10242_v9, %v12446_v32  ;;  %v3607_v23 = vadd.f32 %v12369_v54, %v3171_v34 }
 0x322   :  { %v13068_v21 = vpop.permute.xlu0 %4880  ;;  %v3170_v27 = vadd.f32 %v10240_v51, %v12345_v19  ;;  %16371 = vst [vmem:[#allocation121_spill] sm:$0xff] %v13118_v49  ;;  %v10243_v62 = vld [vmem:[#allocation3 + $0x1c8] sm:$0xff]  ;;  %v13128_v33 = vld [vmem:[#allocation3 + $0x500] sm:$0xff]  ;;  %v4484_v32 = vrot.slane %v13099_v44, 2  ;;  %v3175_v49 = vadd.f32 %v10245_v35, %v12554_v28  ;;  %v16375_v35 = vrot.slane %v13030_v3, 2 }
 0x323   :  { %v13112_v24 = vpop.permute.xlu1 %4882  ;;  %v3173_v19 = vadd.f32 %v10243_v62, %v12454_v50  ;;  %v13126_v51 = vld [vmem:[#allocation3 + $0x4e8] sm:$0xff]  ;;  %v4486_v50 = vrot.slane %v13101_v63, 2  ;;  %v10244_v62 = vld [vmem:[#allocation3 + $0x1e0] sm:$0xff]  ;;  %v3903_v54 = vadd.f32 %v12493_v2, %v3607_v23 }
 0x324   :  { %3754 = vrot.lane.b32.xlu0 %v12848_v37, %s10357_s16  ;;  %v4482_v37 = vrot.slane %v13086_v11, 2  ;;  %16372 = vst [vmem:[#allocation122_spill] sm:$0xff] %v13126_v51  ;;  %v3606_v30 = vadd.f32 %v12361_v61, %v3170_v27  ;;  %v3174_v11 = vadd.f32 %v10244_v62, %v12548_v22  ;;  %v4488_v27 = vrot.slane %v13126_v51, 2  ;;  %v16376_v3 = vld [vmem:[#allocation49_spill] sm:$0xff] }
 0x325   :  { %3756 = vrot.lane.b32.xlu1 %v12859_v48, %s10357_s16  ;;  %v3608_v48 = vadd.f32 %v12465_v6, %v3172_v59  ;;  %v3609_v9 = vadd.f32 %v12475_v25, %v3173_v19  ;;  %v16136_v6 = vrot.slane %v13128_v33, 2  ;;  %v16373_v59 = vld [vmem:[#allocation23_spill] sm:$0xff]  ;;  %v16374_v19 = vld [vmem:[#allocation26_spill] sm:$0xff]  ;;  %v13172_v23 = vsel %vm3230_vm3, %v4484_v32, %v4486_v50 }
 0x326   :  { %v13132_v52 = vpop.permute.xlu0 %4884  ;;  %v3902_v61 = vadd.f32 %v12486_v53, %v3606_v30  ;;  %v3610_v25 = vadd.f32 %v12568_v60, %v3174_v11  ;;  %v3611_v22 = vadd.f32 %v16373_v59, %v3175_v49  ;;  %v10246_v53 = vld [vmem:[#allocation3 + $0x210] sm:$0xff]  ;;  %v13160_v30 = vsel %vm3230_vm3, %v16375_v35, %v4480_v55  ;;  %v16382_v35 = vld [vmem:[#allocation44_spill] sm:$0xff] }
 0x327   :  { %v13144_v34 = vpop.permute.xlu1 %4886  ;;  %v3904_v62 = vadd.f32 %v16374_v19, %v3608_v48  ;;  %v3905_v28 = vadd.f32 %v12593_v18, %v3609_v9  ;;  %v3176_v2 = vadd.f32 %v10246_v53, %v12631_v39  ;;  %v13163_v60 = vsel %vm3230_vm3, %v4480_v55, %v4482_v37  ;;  %v10247_v18 = vld [vmem:[#allocation3 + $0x228] sm:$0xff]  ;;  %v16377_v9 = vld [vmem:[#allocation50_spill] sm:$0xff] }
 0x328   :  { %3758 = vrot.lane.b32.xlu0 %v12862_v26, %s10357_s16  ;;  %v13166_v49 = vsel %vm3230_vm3, %v4482_v37, %v4484_v32  ;;  %v3177_v11 = vadd.f32 %v10247_v18, %v12637_v8  ;;  %v3907_v39 = vadd.f32 %v12670_v12, %v3611_v22  ;;  %v4333_v48 = vadd.f32 %v16376_v3, %v3902_v61  ;;  %v16378_v12 = vld [vmem:[#allocation51_spill] sm:$0xff]  ;;  %v16379_v32 = vld [vmem:[#allocation52_spill] sm:$0xff]  ;;  %v16383_v18 = vld [vmem:[#allocation54_spill] sm:$0xff] }
 0x329   :  { %3760 = vrot.lane.b32.xlu1 %v12874_v15, %s10357_s16  ;;  %v3906_v15 = vadd.f32 %v12659_v38, %v3610_v25  ;;  %v4334_v59 = vadd.f32 %v16377_v9, %v3903_v54  ;;  %v3612_v55 = vadd.f32 %v12643_v4, %v3176_v2  ;;  %v13182_v8 = vsel %vm3230_vm3, %v4486_v50, %v4488_v27  ;;  %v10248_v50 = vld [vmem:[#allocation3 + $0x240] sm:$0xff] }
 0x32a   :  { %v13155_v26 = vpop.permute.xlu0 %4888  ;;  %v3613_v38 = vadd.f32 %v12651_v45, %v3177_v11  ;;  %v4335_v25 = vadd.f32 %v16378_v12, %v3904_v62  ;;  %v4336_v22 = vadd.f32 %v16379_v32, %v3905_v28  ;;  %v13192_v4 = vsel %vm3230_vm3, %v4488_v27, %v16136_v6  ;;  %v10249_v62 = vld [vmem:[#allocation3 + $0x258] sm:$0xff]  ;;  %v16380_v28 = vld [vmem:[#allocation61_spill] sm:$0xff]  ;;  %v16381_v27 = vld [vmem:[#allocation68_spill] sm:$0xff] }
 0x32b   :  { %v13179_v37 = vpop.permute.xlu1 %4890  ;;  %v4769_v61 = vadd.f32 %v12619_v43, %v4334_v59  ;;  %v3178_v54 = vadd.f32 %v10248_v50, %v12731_v58  ;;  %v3908_v45 = vadd.f32 %v12773_v36, %v3612_v55  ;;  %v3179_v53 = vadd.f32 %v10249_v62, %v16380_v28  ;;  %v16384_v11 = vld [vmem:[#allocation55_spill] sm:$0xff]  ;;  %v16385_v58 = vld [vmem:[#allocation57_spill] sm:$0xff]  ;;  %v16389_v50 = vld [vmem:[#allocation60_spill] sm:$0xff] }
 0x32c   :  { %3762 = vrot.lane.b32.xlu0 %v12877_v46, %s10357_s16  ;;  %v4768_v46 = vadd.f32 %v12614_v20, %v4333_v48  ;;  %v3909_v2 = vadd.f32 %v16381_v27, %v3613_v38  ;;  %v4337_v20 = vadd.f32 %v16382_v35, %v3906_v15  ;;  %v4338_v43 = vadd.f32 %v16383_v18, %v3907_v39  ;;  %v16386_v36 = vld [vmem:[#allocation63_spill] sm:$0xff]  ;;  %v16387_v59 = vld [vmem:[#allocation85_spill] sm:$0xff]  ;;  %v16391_v39 = vld [vmem:[#allocation88_spill] sm:$0xff] }
 0x32d   :  { %3764 = vrot.lane.b32.xlu1 %v12888_v42, %s10357_s16  ;;  %v10020_v42 = vld [vmem:[%s16012_s7 + $0x88] ss:$20 sps:$4 sm:$0xff]   ;;  %v4770_v3 = vadd.f32 %v16384_v11, %v4335_v25  ;;  %v4771_v48 = vadd.f32 %v16385_v58, %v4336_v22  ;;  %v3614_v9 = vadd.f32 %v16386_v36, %v3178_v54  ;;  %v5065_v38 = vadd.f32 %v16389_v50, %v4769_v61  ;;  %v16392_v25 = vld [vmem:[#allocation70_spill] sm:$0xff] }
 0x32e   :  { %v13198_v19 = vpop.permute.xlu0 %4892  ;;  %9926 = vmatprep.subr.bf16.mxu0 %v10020_v42  ;;  %v16388_v12 = vld [vmem:[#allocation59_spill] sm:$0xff]  ;;  %v16390_v62 = vld [vmem:[#allocation65_spill] sm:$0xff]  ;;  %v4772_v22 = vadd.f32 %v16392_v25, %v4337_v20  ;;  %v16393_v54 = vld [vmem:[#allocation78_spill] sm:$0xff] }
 0x32f   :  { %v13212_v55 = vpop.permute.xlu1 %4894  ;;  %v5064_v32 = vadd.f32 %v16388_v12, %v4768_v46  ;;  %v3615_v15 = vadd.f32 %v16390_v62, %v3179_v53  ;;  %9927 = vmatpush3.bf16.msra.mxu0 %v10020_v42  ;;  %v10250_v28 = vld [vmem:[#allocation3 + $0x270] sm:$0xff]  ;;  %v16395_v11 = vld [vmem:[#allocation56_spill] sm:$0xff] }
 0x330   :  { %3766 = vrot.lane.b32.xlu0 %v16387_v59, %s10357_s16  ;;  %v3180_v27 = vadd.f32 %v10250_v28, %v16393_v54  ;;  %v16394_v35 = vld [vmem:[#allocation81_spill] sm:$0xff]  ;;  %v4339_v58 = vadd.f32 %v16395_v11, %v3908_v45  ;;  %v10021_v46 = vld [vmem:[%s16012_s7 + $0x60] ss:$20 sps:$4 sm:$0xff]  }
 0x331   :  { %3768 = vrot.lane.b32.xlu1 %v16391_v39, %s10357_s16  ;;  %v3910_v18 = vadd.f32 %v16394_v35, %v3614_v9  ;;  %v16396_v61 = vld [vmem:[#allocation72_spill] sm:$0xff]  ;;  %v16397_v59 = vld [vmem:[#allocation82_spill] sm:$0xff]  ;;  %v16400_v28 = vld [vmem:[#allocation35_spill] sm:$0xff]  ;;  %9928 = vmatprep.subr.bf16.mxu0 %v10021_v46 }
 0x332   :  { %v5169_v36 = vpop.permute.xlu0 %5168  ;;  %v4773_v53 = vadd.f32 %v16396_v61, %v4338_v43  ;;  %v3911_v12 = vadd.f32 %v16397_v59, %v3615_v15  ;;  %v16398_v50 = vld [vmem:[#allocation58_spill] sm:$0xff]  ;;  %v10251_v25 = vld [vmem:[#allocation3 + $0x288] sm:$0xff]  ;;  %v16401_v9 = vld [vmem:[#allocation79_spill] sm:$0xff] }
 0x333   :  { %v4340_v42 = vadd.f32 %v16398_v50, %v3909_v2  ;;  %v5368_v62 = vadd.f32 %v5169_v36, %v5064_v32  ;;  %v16399_v20 = vld [vmem:[#allocation74_spill] sm:$0xff]  ;;  %v3181_v54 = vadd.f32 %v10251_v25, %v16400_v28  ;;  %v3616_v35 = vadd.f32 %v16401_v9, %v3180_v27  ;;  %v16402_v45 = vld [vmem:[#allocation89_spill] sm:$0xff]  ;;  %v5171_v11 = vpop.permute.xlu1 %5170  ;;  %v16403_v6 = vld [vmem:[#allocation76_spill] sm:$0xff]  ;;  %9929 = vmatpush3.bf16.msra.mxu0 %v10021_v46 }
 0x334   :  { %v5066_v39 = vadd.f32 %v16399_v20, %v4770_v3  ;;  %3770 = vrot.lane.b32.xlu0 %v16402_v45, %s10357_s16  ;;  %v5067_v51 = vadd.f32 %v16403_v6, %v4771_v48  ;;  %v5369_v15 = vadd.f32 %v5171_v11, %v5065_v38  ;;  %v16404_v2 = vld [vmem:[#allocation92_spill] sm:$0xff]  ;;  %v16406_v61 = vld [vmem:[#allocation86_spill] sm:$0xff] }
 0x335   :  { %v5799_v43 = vadd.f32 %v13038_v17, %v5368_v62  ;;  %3772 = vrot.lane.b32.xlu1 %v16404_v2, %s10357_s16  ;;  %v16405_v3 = vld [vmem:[#allocation80_spill] sm:$0xff]  ;;  %v16407_v27 = vld [vmem:[#allocation94_spill] sm:$0xff]  ;;  %v16409_v17 = vld [vmem:[#allocation83_spill] sm:$0xff] }
 0x336   :  { %v3617_v32 = vadd.f32 %v16405_v3, %v3181_v54  ;;  %v10252_v36 = vld [vmem:[#allocation3 + $0x2a0] sm:$0xff]  ;;  %v3912_v50 = vadd.f32 %v16407_v27, %v3616_v35  ;;  %v16408_v20 = vld [vmem:[#allocation14_spill] sm:$0xff]  ;;  %v5173_v28 = vpop.permute.xlu0 %5172  ;;  %v4774_v48 = vadd.f32 %v16409_v17, %v4339_v58  ;;  %v5800_v46 = vadd.f32 %v13041_v47, %v5369_v15 }
 0x337   :  { %v3182_v59 = vadd.f32 %v10252_v36, %v16406_v61  ;;  %v4341_v25 = vadd.f32 %v16408_v20, %v3910_v18  ;;  %v10022_v6 = vld [vmem:[%s16012_s7 + $0x38] ss:$20 sps:$4 sm:$0xff]   ;;  %v16410_v38 = vld [vmem:[#allocation16_spill] sm:$0xff]  ;;  %5871 = vst.msk [vmem:[#allocation4 + $0x80] sm:$0xff] %vm1501_vm1, %v5799_v43  ;;  %v5370_v54 = vadd.f32 %v5173_v28, %v5066_v39  ;;  %v5175_v61 = vpop.permute.xlu1 %5174  ;;  %v10254_v17 = vld [vmem:[#allocation3 + $0x2d0] sm:$0xff] }
 0x338   :  { %v4342_v62 = vadd.f32 %v16410_v38, %v3911_v12  ;;  %v16411_v9 = vld [vmem:[#allocation84_spill] sm:$0xff]  ;;  %v10253_v11 = vld [vmem:[#allocation3 + $0x2b8] sm:$0xff]  ;;  %v16414_v36 = vld [vmem:[#allocation93_spill] sm:$0xff]  ;;  %9930 = vmatprep.subr.bf16.mxu0 %v10022_v6  ;;  %5872 = vst.msk [vmem:[#allocation4 + $0x88] sm:$0xff] %vm1501_vm1, %v5800_v46  ;;  %v5371_v43 = vadd.f32 %v5175_v61, %v5067_v51 }
 0x339   :  { %v4775_v45 = vadd.f32 %v16411_v9, %v4340_v42  ;;  %v16412_v35 = vld [vmem:[#allocation87_spill] sm:$0xff]  ;;  %v16413_v18 = vld [vmem:[#allocation90_spill] sm:$0xff]  ;;  %3774 = vrot.lane.b32.xlu0 %v16414_v36, %s10357_s16  ;;  %9931 = vmatpush3.bf16.msra.mxu0 %v10022_v6  ;;  %v16423_v61 = vld [vmem:[#allocation108_spill] sm:$0xff] }
 0x33a   :  { %v3183_v2 = vadd.f32 %v10253_v11, %v16412_v35  ;;  %v3618_v3 = vadd.f32 %v16413_v18, %v3182_v59  ;;  %v13254_v27 = vld [vmem:[#allocation3 + $0x558] sm:$0xff]  ;;  %v13261_v42 = vld [vmem:[#allocation3 + $0x3d0] sm:$0xff]  ;;  %v5177_v35 = vpop.permute.xlu0 %5176  ;;  %v5069_v6 = vadd.f32 %v16423_v61, %v4773_v53 }
 0x33b   :  { %v16415_v58 = vld [vmem:[#allocation111_spill] sm:$0xff]  ;;  %3776 = vrot.lane.b32.xlu1 %v13254_v27, %s10357_s16  ;;  %16417 = vst [vmem:[#allocation23_spill] sm:$0xff] %v13261_v42  ;;  %v10023_v51 = vld [vmem:[%s16012_s7 + $0x10] ss:$20 sps:$4 sm:$0xff]  }
 0x33c   :  { %v5068_v12 = vadd.f32 %v16415_v58, %v4772_v22  ;;  %v16416_v47 = vld [vmem:[#allocation115_spill] sm:$0xff]  ;;  %v13276_v58 = vld [vmem:[#allocation3 + $0x570] sm:$0xff]  ;;  %9932 = vmatprep.subr.bf16.mxu0 %v10023_v51 }
 0x33d   :  { %v5801_v39 = vadd.f32 %v16416_v47, %v5370_v54  ;;  %v16418_v15 = vld [vmem:[#allocation91_spill] sm:$0xff]  ;;  %v16422_v54 = vld [vmem:[#allocation96_spill] sm:$0xff]  ;;  %3778 = vrot.lane.b32.xlu0 %v13276_v58, %s10357_s16  ;;  %9933 = vmatpush3.bf16.msra.mxu0 %v10023_v51  ;;  %v16433_v53 = vld [vmem:[#allocation105_spill] sm:$0xff] }
 0x33e   :  { %v3619_v59 = vadd.f32 %v16418_v15, %v3183_v2  ;;  %v16419_v20 = vld [vmem:[#allocation95_spill] sm:$0xff]  ;;  %v4776_v18 = vadd.f32 %v16422_v54, %v4341_v25  ;;  %v5372_v2 = vadd.f32 %v5177_v35, %v5068_v12  ;;  %v10255_v47 = vld [vmem:[#allocation3 + $0x2e8] sm:$0xff]  ;;  %v5179_v25 = vpop.permute.xlu1 %5178 }
 0x33f   :  { %v3913_v28 = vadd.f32 %v16419_v20, %v3617_v32  ;;  %v16420_v38 = vld [vmem:[#allocation99_spill] sm:$0xff]  ;;  %5873 = vst.msk [vmem:[#allocation4 + $0x90] sm:$0xff] %vm1501_vm1, %v5801_v39  ;;  %v5802_v32 = vadd.f32 %v13052_v56, %v5371_v43  ;;  %v16425_v20 = vld [vmem:[#allocation101_spill] sm:$0xff]  ;;  %v5070_v56 = vadd.f32 %v13043_v57, %v4774_v48  ;;  %v5373_v39 = vadd.f32 %v5179_v25, %v5069_v6  ;;  %v16427_v43 = vld [vmem:[#allocation102_spill] sm:$0xff]  ;;  %v5181_v48 = vpop.permute.xlu0 %5180 }
 0x340   :  { %v3184_v9 = vadd.f32 %v10254_v17, %v16420_v38  ;;  %v16421_v11 = vld [vmem:[#allocation15_spill] sm:$0xff]  ;;  %v13283_v54 = vld [vmem:[#allocation3 + $0x588] sm:$0xff]  ;;  %v5803_v12 = vadd.f32 %v13060_v13, %v5372_v2 }
 0x341   :  { %v4343_v22 = vadd.f32 %v16421_v11, %v3912_v50  ;;  %v13267_v46 = vld [vmem:[#allocation3 + $0x518] sm:$0xff]  ;;  %v16424_v50 = vld [vmem:[#allocation100_spill] sm:$0xff]  ;;  %5874 = vst.msk [vmem:[#allocation4 + $0x98] sm:$0xff] %vm1501_vm1, %v5802_v32  ;;  %3780 = vrot.lane.b32.xlu1 %v13283_v54, %s10357_s16  ;;  %v5804_v6 = vadd.f32 %v13063_v31, %v5373_v39  ;;  %v5374_v2 = vadd.f32 %v5181_v48, %v5070_v56  ;;  %v16432_v25 = vld [vmem:[#allocation97_spill] sm:$0xff] }
 0x342   :  { %v3185_v15 = vadd.f32 %v10255_v47, %v16424_v50  ;;  %v3620_v17 = vadd.f32 %v16425_v20, %v3184_v9  ;;  %v16426_v38 = vld [vmem:[#allocation103_spill] sm:$0xff]  ;;  %v16428_v35 = vld [vmem:[#allocation104_spill] sm:$0xff]  ;;  %v16429_v47 = vld [vmem:[#allocation62_spill] sm:$0xff]  ;;  %5875 = vst.msk [vmem:[#allocation4 + $0xa0] sm:$0xff] %vm1501_vm1, %v5803_v12  ;;  %v4777_v51 = vadd.f32 %v16432_v25, %v4342_v62  ;;  %4616 = vrot.lane.b32.xlu0 %v13073_v7, %s10355_s1 }
 0x343   :  { %v3914_v11 = vadd.f32 %v16426_v38, %v3618_v3  ;;  %v4492_v3 = vrot.slane %v13267_v46, 2  ;;  %v3915_v61 = vadd.f32 %v16428_v35, %v3619_v59  ;;  %v4344_v50 = vadd.f32 %v16429_v47, %v3913_v28  ;;  %v16430_v20 = vld [vmem:[#allocation107_spill] sm:$0xff]  ;;  %v16431_v32 = vld [vmem:[#allocation114_spill] sm:$0xff]  ;;  %5876 = vst.msk [vmem:[#allocation4 + $0xa8] sm:$0xff] %vm1501_vm1, %v5804_v6  ;;  %v5945_v7 = vld [vmem:[#allocation4 + $0x88] sm:$0xff]  ;;  %v5185_v48 = vpop.permute.xlu0 %5184 }
 0x344   :  { %v3621_v9 = vadd.f32 %v16427_v43, %v3185_v15  ;;  %v3916_v38 = vadd.f32 %v16430_v20, %v3620_v17  ;;  %v13296_v57 = vld [vmem:[#allocation4 + $0x80] sm:$0xff]  ;;  %v5071_v13 = vadd.f32 %v16431_v32, %v4775_v45  ;;  %v4778_v15 = vadd.f32 %v16433_v53, %v4343_v22  ;;  %v16435_v35 = vld [vmem:[#allocation110_spill] sm:$0xff]  ;;  %v5183_v17 = vpop.permute.xlu1 %5182 }
 0x345   :  { %v16434_v43 = vld [vmem:[#allocation64_spill] sm:$0xff]  ;;  %v5805_v31 = vadd.f32 %v13055_v10, %v5374_v2  ;;  %4618 = vrot.lane.b32.xlu1 %v13089_v5, %s10355_s1  ;;  %v16436_v62 = vld [vmem:[#allocation106_spill] sm:$0xff]  ;;  %v16438_v12 = vld [vmem:[#allocation67_spill] sm:$0xff] }
 0x346   :  { %v4345_v59 = vadd.f32 %v16434_v43, %v3914_v11  ;;  %v3917_v28 = vadd.f32 %v16435_v35, %v3621_v9  ;;  %v6012_v47 = vld [vmem:[#allocation4 + $0x81] sm:$0xff]  ;;  %v5375_v56 = vadd.f32 %v5183_v17, %v5071_v13  ;;  %v4779_v22 = vadd.f32 %v16436_v62, %v4344_v50  ;;  %v16437_v11 = vld [vmem:[#allocation66_spill] sm:$0xff]  ;;  %v13321_v10 = vld [vmem:[%s16009_s4] ss:$0 sm:$0xff]  ;;  %4620 = vrot.lane.b32.xlu0 %v13094_v0, %s10355_s1 }
 0x347   :  { %v6080_v45 = vmax.f32 %v13296_v57, %v6012_v47  ;;  %v4346_v53 = vadd.f32 %v16437_v11, %v3915_v61  ;;  %v4347_v39 = vadd.f32 %v16438_v12, %v3916_v38  ;;  %v5072_v9 = vadd.f32 %v13068_v21, %v4776_v18  ;;  %v13316_v20 = vld [vmem:[#allocation4 + $0x90] sm:$0xff]  ;;  %5877 = vst.msk [vmem:[#allocation4 + $0xb0] sm:$0xff] %vm1501_vm1, %v5805_v31 }
 0x348   :  { %v6013_v57 = vld [vmem:[#allocation4 + $0x89] sm:$0xff]  ;;  %v5806_v5 = vadd.f32 %v13066_v14, %v5375_v56  ;;  %v5073_v21 = vadd.f32 %v13112_v24, %v4777_v51  ;;  %v6014_v18 = vld [vmem:[#allocation4 + $0x91] sm:$0xff]  ;;  %v5187_v2 = vpop.permute.xlu1 %5186  ;;  %v5075_v0 = vadd.f32 %v13144_v34, %v4779_v22 }
 0x349   :  { %v6081_v32 = vmax.f32 %v5945_v7, %v6013_v57  ;;  %v16439_v61 = vld [vmem:[#allocation109_spill] sm:$0xff]  ;;  %v5376_v6 = vadd.f32 %v5185_v48, %v5072_v9  ;;  %v6082_v25 = vmax.f32 %v13316_v20, %v6014_v18  ;;  %4622 = vrot.lane.b32.xlu1 %v13160_v30, %s10355_s1  ;;  %v16441_v14 = vld [vmem:[#allocation112_spill] sm:$0xff] }
 0x34a   :  { %v4780_v50 = vadd.f32 %v16439_v61, %v4345_v59  ;;  %v16440_v38 = vld [vmem:[#allocation69_spill] sm:$0xff]  ;;  %5878 = vst.msk [vmem:[#allocation4 + $0xb8] sm:$0xff] %vm1501_vm1, %v5806_v5  ;;  %v4781_v43 = vadd.f32 %v16441_v14, %v4346_v53  ;;  %v5074_v59 = vadd.f32 %v13132_v52, %v4778_v15  ;;  %v5948_v35 = vld [vmem:[#allocation4 + $0xa0] sm:$0xff]  ;;  %v5377_v51 = vadd.f32 %v5187_v2, %v5073_v21 }
 0x34b   :  { %v4348_v13 = vadd.f32 %v16440_v38, %v3917_v28  ;;  %v5807_v24 = vadd.f32 %v13076_v29, %v5376_v6  ;;  %v5189_v28 = vpop.permute.xlu0 %5188  ;;  %v16442_v47 = vld [vmem:[#allocation113_spill] sm:$0xff]  ;;  %v6016_v31 = vld [vmem:[#allocation4 + $0xa1] sm:$0xff]  ;;  %4624 = vrot.lane.b32.xlu0 %v13163_v60, %s10355_s1 }
 0x34c   :  { %v4782_v17 = vadd.f32 %v16442_v47, %v4347_v39  ;;  %v5808_v56 = vadd.f32 %v13079_v41, %v5377_v51  ;;  %v5378_v62 = vadd.f32 %v5189_v28, %v5074_v59  ;;  %v5191_v30 = vpop.permute.xlu1 %5190  ;;  %v6084_v52 = vmax.f32 %v5948_v35, %v6016_v31  ;;  %v5949_v11 = vld [vmem:[#allocation4 + $0xa8] sm:$0xff]  ;;  %v13349_v7 = vld [vmem:[#allocation3 + $0x530] sm:$0xff]  ;;  %v13377_v59 = vld [vmem:[#allocation3 + $0x560] sm:$0xff] }
 0x34d   :  { %5879 = vst.msk [vmem:[#allocation4 + $0xc0] sm:$0xff] %vm1501_vm1, %v5807_v24  ;;  %4626 = vrot.lane.b32.xlu1 %v13166_v49, %s10355_s1  ;;  %v4783_v29 = vadd.f32 %v13049_v40, %v4348_v13  ;;  %v5076_v15 = vadd.f32 %v13155_v26, %v4780_v50  ;;  %v16443_v53 = vld [vmem:[#allocation117_spill] sm:$0xff]  ;;  %v5379_v12 = vadd.f32 %v5191_v30, %v5075_v0  ;;  %v16447_v0 = vrot.slane %v13261_v42, 2  ;;  %v16448_v31 = vld [vmem:[#allocation116_spill] sm:$0xff] }
 0x34e   :  { %v5950_v34 = vld [vmem:[#allocation4 + $0xb0] sm:$0xff]  ;;  %5880 = vst.msk [vmem:[#allocation4 + $0xc8] sm:$0xff] %vm1501_vm1, %v5808_v56  ;;  %v5809_v41 = vadd.f32 %v16443_v53, %v5378_v62  ;;  %v6163_v9 = vmax.f32 %v6080_v45, %v6084_v52  ;;  %v5077_v20 = vadd.f32 %v13179_v37, %v4781_v43  ;;  %v5078_v49 = vadd.f32 %v13198_v19, %v4782_v17  ;;  %v13360_v37 = vld [vmem:[#allocation3 + $0x548] sm:$0xff] }
 0x34f   :  { %v6017_v22 = vld [vmem:[#allocation4 + $0xa9] sm:$0xff]  ;;  %v5193_v39 = vpop.permute.xlu0 %5192  ;;  %v5810_v26 = vadd.f32 %v13097_v16, %v5379_v12  ;;  %4628 = vrot.lane.b32.xlu0 %v13172_v23, %s10355_s1  ;;  %v5079_v19 = vadd.f32 %v13212_v55, %v4783_v29  ;;  %v4494_v23 = vrot.slane %v13349_v7, 2  ;;  %v4496_v43 = vrot.slane %v13360_v37, 2 }
 0x350   :  { %v6085_v60 = vmax.f32 %v5949_v11, %v6017_v22  ;;  %5881 = vst.msk [vmem:[#allocation4 + $0xd0] sm:$0xff] %vm1501_vm1, %v5809_v41  ;;  %v5380_v57 = vadd.f32 %v5193_v39, %v5076_v15  ;;  %v5195_v48 = vpop.permute.xlu1 %5194  ;;  %v6238_v5 = vadd.f32 %v13321_v10, %v6163_v9  ;;  %v16449_v56 = vrot.slane %v16448_v31, 2  ;;  %v13404_v9 = vld [vmem:[#allocation3 + $0x590] sm:$0xff] }
 0x351   :  { %v6018_v40 = vld [vmem:[#allocation4 + $0xb1] sm:$0xff]  ;;  %4630 = vrot.lane.b32.xlu1 %v13182_v8, %s10355_s1  ;;  %5882 = vst.msk [vmem:[#allocation4 + $0xd8] sm:$0xff] %vm1501_vm1, %v5810_v26  ;;  %v5381_v50 = vadd.f32 %v5195_v48, %v5077_v20  ;;  %v4495_v52 = vsel %vm3230_vm3, %v4492_v3, %v4494_v23  ;;  %v4498_v53 = vrot.slane %v13377_v59, 2 }
 0x352   :  { %v6164_v45 = vmax.f32 %v6081_v32, %v6085_v60  ;;  %v6086_v61 = vmax.f32 %v5950_v34, %v6018_v40  ;;  %v5811_v16 = vadd.f32 %v13115_v1, %v5380_v57  ;;  %v6306_v13 = vmax.f32 %v6238_v5, 0.0  ;;  %v16444_v8 = vld [vmem:[#allocation121_spill] sm:$0xff] }
 0x353   :  { %v5197_v38 = vpop.permute.xlu0 %5196  ;;  %v5812_v2 = vadd.f32 %v16444_v8, %v5381_v50  ;;  %4632 = vrot.lane.b32.xlu0 %v13192_v4, %s10355_s1  ;;  %v16445_v1 = vrot.slane %v13128_v33, 2  ;;  %v16446_v4 = vld [vmem:[#allocation120_spill] sm:$0xff]  ;;  %v5632_v62 = vsel %vm3230_vm3, %v16449_v56, %v16447_v0  ;;  %v4499_v57 = vsel %vm3230_vm3, %v4496_v43, %v4498_v53  ;;  %v16450_v0 = vld [vmem:[#allocation118_spill] sm:$0xff] }
 0x354   :  { %v6239_v21 = vadd.f32 %v13321_v10, %v6164_v45  ;;  %v6165_v32 = vmax.f32 %v6082_v25, %v6086_v61  ;;  %v5952_v18 = vld [vmem:[#allocation4 + $0xc0] sm:$0xff]  ;;  %v5382_v6 = vadd.f32 %v5197_v38, %v5078_v49  ;;  %5883 = vst.msk [vmem:[#allocation4 + $0xe0] sm:$0xff] %vm1501_vm1, %v5811_v16  ;;  %v5199_v55 = vpop.permute.xlu1 %5198  ;;  %v13379_v25 = vld [vmem:[#allocation3 + $0x578] sm:$0xff]  ;;  %6374 = vst.msk [vmem:[#allocation5 + $0x80] sm:$0xff] %vm1501_vm1, %v6306_v13  ;;  %v4502_v5 = vrot.slane %v13404_v9, 2 }
 0x355   :  { %v4493_v14 = vsel %vm3230_vm3, %v16445_v1, %v4492_v3  ;;  %v6020_v51 = vld [vmem:[#allocation4 + $0xc1] sm:$0xff]  ;;  %v5383_v47 = vadd.f32 %v5199_v55, %v5079_v19  ;;  %5884 = vst.msk [vmem:[#allocation4 + $0xe8] sm:$0xff] %vm1501_vm1, %v5812_v2  ;;  %v4500_v41 = vrot.slane %v13379_v25, 2  ;;  %v4497_v3 = vsel %vm3230_vm3, %v4494_v23, %v4496_v43 }
 0x356   :  { %v6307_v35 = vmax.f32 %v6239_v21, 0.0  ;;  %v6240_v24 = vadd.f32 %v13321_v10, %v6165_v32  ;;  %v5813_v28 = vadd.f32 %v16446_v4, %v5382_v6  ;;  %4634 = vrot.lane.b32.xlu1 %v4493_v14, %s10355_s1  ;;  %v6088_v17 = vmax.f32 %v5952_v18, %v6020_v51  ;;  %v5953_v15 = vld [vmem:[#allocation4 + $0xc8] sm:$0xff] }
 0x357   :  { %v13391_v30 = vpop.permute.xlu0 %3018  ;;  %v5954_v11 = vld [vmem:[#allocation4 + $0xd0] sm:$0xff]  ;;  %v5814_v22 = vadd.f32 %v5632_v62, %v5383_v47  ;;  %4636 = vrot.lane.b32.xlu0 %v4495_v52, %s10355_s1  ;;  %v13406_v60 = vld [vmem:[#allocation3 + $0x5a8] sm:$0xff]  ;;  %v4501_v48 = vsel %vm3230_vm3, %v4498_v53, %v4500_v41  ;;  %v4503_v18 = vsel %vm3230_vm3, %v4500_v41, %v4502_v5  ;;  %v16451_v52 = vld [vmem:[#allocation119_spill] sm:$0xff] }
 0x358   :  { %6375 = vst.msk [vmem:[#allocation5 + $0x88] sm:$0xff] %vm1501_vm1, %v6307_v35  ;;  %v6308_v29 = vmax.f32 %v6240_v24, 0.0  ;;  %v6021_v34 = vld [vmem:[#allocation4 + $0xc9] sm:$0xff]  ;;  %5885 = vst.msk [vmem:[#allocation4 + $0xf0] sm:$0xff] %vm1501_vm1, %v5813_v28  ;;  %v13401_v39 = vpop.permute.xlu1 %3020  ;;  %v6022_v20 = vld [vmem:[#allocation4 + $0xd1] sm:$0xff]  ;;  %v16139_v45 = vrot.slane %v13406_v60, 2 }
 0x359   :  { %v6089_v12 = vmax.f32 %v5953_v15, %v6021_v34  ;;  %5886 = vst.msk [vmem:[#allocation4 + $0xf8] sm:$0xff] %vm1501_vm1, %v5814_v22  ;;  %v6090_v49 = vmax.f32 %v5954_v11, %v6022_v20  ;;  %v16455_v22 = vld [vmem:[#allocation122_spill] sm:$0xff] }
 0x35a   :  { %6376 = vst.msk [vmem:[#allocation5 + $0x90] sm:$0xff] %vm1501_vm1, %v6308_v29  ;;  %4638 = vrot.lane.b32.xlu1 %v4497_v3, %s10355_s1  ;;  %v4505_v1 = vsel %vm3230_vm3, %v4502_v5, %v16139_v45 }
 0x35b   :  { %v13411_v40 = vpop.permute.xlu0 %3022  ;;  %v5956_v26 = vld [vmem:[#allocation4 + $0xe0] sm:$0xff]  ;;  %4640 = vrot.lane.b32.xlu0 %v4499_v57, %s10355_s1 }
 0x35c   :  { %v13418_v61 = vpop.permute.xlu1 %3024  ;;  %v5957_v19 = vld [vmem:[#allocation4 + $0xe8] sm:$0xff] }
 0x35d   :  { %v6024_v16 = vld [vmem:[#allocation4 + $0xe1] sm:$0xff] }
 0x35e   :  { %4642 = vrot.lane.b32.xlu1 %v4501_v48, %s10355_s1  ;;  %v6092_v50 = vmax.f32 %v5956_v26, %v6024_v16 }
 0x35f   :  { %v5958_v38 = vld [vmem:[#allocation4 + $0xf0] sm:$0xff]  ;;  %v13421_v13 = vpop.permute.xlu0 %3026  ;;  %v6472_v21 = vld [vmem:[#allocation5 + $0x80] ss:$2 sm:$0xff]  ;;  %4644 = vrot.lane.b32.xlu0 %v4503_v18, %s10355_s1  ;;  %v4191_v18 = vrot.slane %v16451_v52, 1 }
 0x360   :  { %v6025_v23 = vld [vmem:[#allocation4 + $0xe9] sm:$0xff]  ;;  %v9686_v6 = vpack.c.bf16 %v6472_v21, %v6472_v21  ;;  %v6171_v8 = vmax.f32 %v6088_v17, %v6092_v50  ;;  %v6026_v2 = vld [vmem:[#allocation4 + $0xf1] sm:$0xff]  ;;  %v13425_v55 = vpop.permute.xlu1 %3028 }
 0x361   :  { %v6093_v32 = vmax.f32 %v5957_v19, %v6025_v23  ;;  %v6474_v14 = vld [vmem:[#allocation5 + $0x90] ss:$2 sm:$0xf]  ;;  %v6094_v35 = vmax.f32 %v5958_v38, %v6026_v2  ;;  %v13497_v23 = vld [vmem:[#allocation3 + $0x5c0] sm:$0xff]  ;;  %v4193_v2 = vrot.slane %v13099_v44, 1 }
 0x362   :  { %4646 = vrot.lane.b32.xlu1 %v4505_v1, %s10355_s1  ;;  %v9687_v24 = vpack.c.bf16 %v6474_v14, %v6474_v14  ;;  %6483 = vst.msk [vmem:[#allocation6 + $0x10] sm:$0xf] %vm1100_vm0, %v9686_v6  ;;  %v6246_v51 = vadd.f32 %v13321_v10, %v6171_v8  ;;  %v13510_v8 = vld [vmem:[#allocation3 + $0x5f0] sm:$0xff]  ;;  %v16140_v1 = vrot.slane %v16450_v0, 1 }
 0x363   :  { %v6172_v43 = vmax.f32 %v6089_v12, %v6093_v32  ;;  %v13433_v4 = vpop.permute.xlu0 %3030  ;;  %v6173_v47 = vmax.f32 %v6090_v49, %v6094_v35  ;;  %4912 = vrot.lane.b32.xlu0 %v16450_v0, %s10356_s2  ;;  %v13503_v32 = vld [vmem:[#allocation3 + $0x5d8] sm:$0xff]  ;;  %v4195_v35 = vrot.slane %v13101_v63, 1 }
 0x364   :  { %6484 = vst.msk [vmem:[#allocation6 + $0x14] sm:$0x3] %vm6455_vm4, %v9687_v24  ;;  %v6314_v17 = vmax.f32 %v6246_v51, 0.0  ;;  %v13439_v31 = vpop.permute.xlu1 %3032  ;;  %v4197_v51 = vrot.slane %v16455_v22, 1 }
 0x365   :  { %v6247_v28 = vadd.f32 %v13321_v10, %v6172_v43  ;;  %v6248_v62 = vadd.f32 %v13321_v10, %v6173_v47  ;;  %v13521_v43 = vsel %vm2794_vm2, %v16140_v1, %v4191_v18  ;;  %v13537_v47 = vsel %vm2794_vm2, %v4193_v2, %v4195_v35 }
 0x366   :  { %4914 = vrot.lane.b32.xlu1 %v16451_v52, %s10356_s2  ;;  %6382 = vst.msk [vmem:[#allocation5 + $0xc0] sm:$0xff] %vm1501_vm1, %v6314_v17  ;;  %16462 = vst [vmem:[#allocation55_spill] sm:$0xff] %v13521_v43 }
 0x367   :  { %v6315_v56 = vmax.f32 %v6247_v28, 0.0  ;;  %v13445_v29 = vpop.permute.xlu0 %3034  ;;  %v6316_v15 = vmax.f32 %v6248_v62, 0.0  ;;  %4916 = vrot.lane.b32.xlu0 %v13099_v44, %s10356_s2  ;;  %v13529_v44 = vsel %vm2794_vm2, %v4191_v18, %v4193_v2  ;;  %16466 = vst [vmem:[#allocation59_spill] sm:$0xff] %v13537_v47  ;;  %v4201_v62 = vrot.slane %v13267_v46, 1 }
 0x368   :  { %16452 = vst [vmem:[#allocation26_spill] sm:$0xff] %v13445_v29  ;;  %v13450_v11 = vpop.permute.xlu1 %3036  ;;  %16464 = vst [vmem:[#allocation63_spill] sm:$0xff] %v13529_v44 }
 0x369   :  { %6383 = vst.msk [vmem:[#allocation5 + $0xc8] sm:$0xff] %vm1501_vm1, %v6315_v56  ;;  %16453 = vst [vmem:[#allocation49_spill] sm:$0xff] %v13450_v11  ;;  %v13545_v56 = vsel %vm2794_vm2, %v4195_v35, %v4197_v51  ;;  %v5465_v11 = vld [vmem:[#allocation3 + $0x4a8] sm:$0xff] }
 0x36a   :  { %6384 = vst.msk [vmem:[#allocation5 + $0xd0] sm:$0xff] %vm1501_vm1, %v6316_v15  ;;  %4918 = vrot.lane.b32.xlu1 %v13101_v63, %s10356_s2  ;;  %v4199_v63 = vrot.slane %v13128_v33, 1  ;;  %16468 = vst [vmem:[#allocation65_spill] sm:$0xff] %v13545_v56 }
 0x36b   :  { %v13455_v10 = vpop.permute.xlu0 %3038  ;;  %v10018_v34 = vld [vmem:[#allocation6 + $0x10] sm:$0xff]   ;;  %4920 = vrot.lane.b32.xlu0 %v16455_v22, %s10356_s2 }
 0x36c   :  { %16454 = vst [vmem:[#allocation50_spill] sm:$0xff] %v13455_v10  ;;  %v13459_v53 = vpop.permute.xlu1 %3040  ;;  %9914 = vmatprep.mubr.msk.bf16.mxu1 %vm1501_vm1, %v10018_v34  ;;  %v13553_v15 = vsel %vm2794_vm2, %v4197_v51, %v4199_v63  ;;  %v13561_v22 = vsel %vm2794_vm2, %v4199_v63, %v4201_v62  ;;  %v4215_v63 = vrot.slane %v13497_v23, 1 }
 0x36d   :  { %16456 = vst [vmem:[#allocation51_spill] sm:$0xff] %v13459_v53  ;;  %16470 = vst [vmem:[#allocation70_spill] sm:$0xff] %v13553_v15 }
 0x36e   :  { %4922 = vrot.lane.b32.xlu1 %v13128_v33, %s10356_s2  ;;  %v4203_v33 = vrot.slane %v13349_v7, 1  ;;  %16472 = vst [vmem:[#allocation81_spill] sm:$0xff] %v13561_v22 }
 0x36f   :  { %v13464_v41 = vpop.permute.xlu0 %3042  ;;  %4924 = vrot.lane.b32.xlu0 %v13267_v46, %s10356_s2  ;;  %v4205_v46 = vrot.slane %v13360_v37, 1 }
 0x370   :  { %16457 = vst [vmem:[#allocation52_spill] sm:$0xff] %v13464_v41  ;;  %v6486_v12 = vld [vmem:[#allocation5 + $0xc0] ss:$2 sm:$0xff]  ;;  %v13468_v20 = vpop.permute.xlu1 %3044 }
 0x371   :  { %v9688_v3 = vpack.c.bf16 %v6486_v12, %v6486_v12  ;;  %16458 = vst [vmem:[#allocation61_spill] sm:$0xff] %v13468_v20  ;;  %v6488_v49 = vld [vmem:[#allocation5 + $0xd0] ss:$2 sm:$0xf]  ;;  %v13677_v20 = vld [vmem:[#allocation3 + $0x5e8] sm:$0xff] }
 0x372   :  { %4926 = vrot.lane.b32.xlu1 %v13349_v7, %s10356_s2  ;;  %v9689_v26 = vpack.c.bf16 %v6488_v49, %v6488_v49  ;;  %v4207_v7 = vrot.slane %v13377_v59, 1 }
 0x373   :  { %6497 = vst.msk [vmem:[#allocation6 + $0x18] sm:$0xf] %vm1100_vm0, %v9688_v3  ;;  %v13473_v57 = vpop.permute.xlu0 %3046  ;;  %4928 = vrot.lane.b32.xlu0 %v13360_v37, %s10356_s2  ;;  %v13569_v3 = vsel %vm2794_vm2, %v4201_v62, %v4203_v33  ;;  %v4209_v37 = vrot.slane %v13379_v25, 1 }
 0x374   :  { %16459 = vst [vmem:[#allocation68_spill] sm:$0xff] %v13473_v57  ;;  %6498 = vst.msk [vmem:[#allocation6 + $0x1c] sm:$0x3] %vm6455_vm4, %v9689_v26  ;;  %v13478_v48 = vpop.permute.xlu1 %3048  ;;  %v13577_v26 = vsel %vm2794_vm2, %v4203_v33, %v4205_v46  ;;  %v13585_v18 = vsel %vm2794_vm2, %v4205_v46, %v4207_v7 }
 0x375   :  { %16460 = vst [vmem:[#allocation44_spill] sm:$0xff] %v13478_v48  ;;  %16474 = vst [vmem:[#allocation72_spill] sm:$0xff] %v13569_v3  ;;  %v13593_v35 = vsel %vm2794_vm2, %v4207_v7, %v4209_v37  ;;  %v13614_v7 = vld [vmem:[#allocation3 + $0x608] sm:$0xff] }
 0x376   :  { %4930 = vrot.lane.b32.xlu1 %v13377_v59, %s10356_s2  ;;  %16476 = vst [vmem:[#allocation58_spill] sm:$0xff] %v13577_v26  ;;  %16478 = vst [vmem:[#allocation35_spill] sm:$0xff] %v13585_v18  ;;  %v4211_v59 = vrot.slane %v13404_v9, 1 }
 0x377   :  { %v13482_v5 = vpop.permute.xlu0 %3454  ;;  %4932 = vrot.lane.b32.xlu0 %v13379_v25, %s10356_s2  ;;  %16480 = vst [vmem:[#allocation89_spill] sm:$0xff] %v13593_v35  ;;  %v4213_v25 = vrot.slane %v13406_v60, 1 }
 0x378   :  { %v13486_v19 = vpop.permute.xlu1 %3456  ;;  %v13602_v62 = vsel %vm2794_vm2, %v4209_v37, %v4211_v59  ;;  %v4219_v37 = vrot.slane %v13510_v8, 1 }
 0x379   :  { %16481 = vst [vmem:[#allocation76_spill] sm:$0xff] %v13602_v62  ;;  %v13610_v46 = vsel %vm2794_vm2, %v4211_v59, %v4213_v25  ;;  %v13620_v1 = vsel %vm2794_vm2, %v4213_v25, %v4215_v63 }
 0x37a   :  { %4934 = vrot.lane.b32.xlu1 %v13404_v9, %s10356_s2  ;;  %v4217_v9 = vrot.slane %v13503_v32, 1  ;;  %16482 = vst [vmem:[#allocation92_spill] sm:$0xff] %v13610_v46  ;;  %16483 = vst [vmem:[#allocation80_spill] sm:$0xff] %v13620_v1 }
 0x37b   :  { %v13490_v16 = vpop.permute.xlu0 %3458  ;;  %v10019_v50 = vld [vmem:[#allocation6 + $0x18] sm:$0xff]   ;;  %4936 = vrot.lane.b32.xlu0 %v13406_v60, %s10356_s2 }
 0x37c   :  { %v13494_v38 = vpop.permute.xlu1 %3460  ;;  %9915 = vmatmul.mubr.msk.bf16.gmra.mxu1 %vm1501_vm1, %v10019_v50  ;;  %v13627_v59 = vsel %vm2794_vm2, %v4215_v63, %v4217_v9  ;;  %v13636_v25 = vsel %vm2794_vm2, %v4217_v9, %v4219_v37  ;;  %v2912_v9 = vrot.slane %v13283_v54, 1 }
 0x37d   :  { %16484 = vst [vmem:[#allocation86_spill] sm:$0xff] %v13627_v59  ;;  %16485 = vst [vmem:[#allocation94_spill] sm:$0xff] %v13636_v25 }
 0x37e   :  { %4938 = vrot.lane.b32.xlu1 %v13497_v23, %s10356_s2 }
 0x37f   :  { %v13501_v21 = vpop.permute.xlu0 %3462  ;;  %4940 = vrot.lane.b32.xlu0 %v13503_v32, %s10356_s2 }
 0x380   :  { %v13508_v6 = vpop.permute.xlu1 %3464 }
 0x382   :  { %4942 = vrot.lane.b32.xlu1 %v13510_v8, %s10356_s2 }
 0x383   :  { %v13516_v14 = vpop.permute.xlu0 %3466  ;;  %5216 = vrot.lane.b32.xlu0 %v13521_v43, %s10357_s16  ;;  %v5472_v43 = vld [vmem:[#allocation3 + $0x550] sm:$0xff] }
 0x384   :  { %16461 = vst [vmem:[#allocation54_spill] sm:$0xff] %v13516_v14  ;;  %v13526_v24 = vpop.permute.xlu1 %3468  ;;  %v5479_v14 = vld [vmem:[#allocation3 + $0x5f8] sm:$0xff] }
 0x385   :  { %16463 = vst [vmem:[#allocation57_spill] sm:$0xff] %v13526_v24 }
 0x386   :  { %5218 = vrot.lane.b32.xlu1 %v13529_v44, %s10357_s16 }
 0x387   :  { %v13534_v28 = vpop.permute.xlu0 %3470  ;;  %5220 = vrot.lane.b32.xlu0 %v13537_v47, %s10357_s16 }
 0x388   :  { %16465 = vst [vmem:[#allocation85_spill] sm:$0xff] %v13534_v28  ;;  %v13542_v17 = vpop.permute.xlu1 %3472 }
 0x389   :  { %16467 = vst [vmem:[#allocation60_spill] sm:$0xff] %v13542_v17 }
 0x38a   :  { %5222 = vrot.lane.b32.xlu1 %v13545_v56, %s10357_s16  ;;  %v13697_v56 = vld [vmem:[#allocation3 + $0x630] sm:$0xff] }
 0x38b   :  { %v13550_v52 = vpop.permute.xlu0 %3474  ;;  %5224 = vrot.lane.b32.xlu0 %v13553_v15, %s10357_s16  ;;  %v13689_v15 = vld [vmem:[#allocation3 + $0x618] sm:$0xff] }
 0x38c   :  { %16469 = vst [vmem:[#allocation88_spill] sm:$0xff] %v13550_v52  ;;  %v13558_v34 = vpop.permute.xlu1 %3476  ;;  %v2924_v52 = vrot.slane %v13689_v15, 1 }
 0x38d   :  { %16471 = vst [vmem:[#allocation78_spill] sm:$0xff] %v13558_v34 }
 0x38e   :  { %5226 = vrot.lane.b32.xlu1 %v13561_v22, %s10357_s16 }
 0x38f   :  { %v13566_v12 = vpop.permute.xlu0 %3478  ;;  %5228 = vrot.lane.b32.xlu0 %v13569_v3, %s10357_s16 }
 0x390   :  { %16473 = vst [vmem:[#allocation56_spill] sm:$0xff] %v13566_v12  ;;  %v13574_v49 = vpop.permute.xlu1 %3480  ;;  %v2920_v12 = vrot.slane %v13677_v20, 1 }
 0x391   :  { %16475 = vst [vmem:[#allocation82_spill] sm:$0xff] %v13574_v49 }
 0x392   :  { %5230 = vrot.lane.b32.xlu1 %v13577_v26, %s10357_s16  ;;  %v13663_v26 = vld [vmem:[#allocation3 + $0x5b8] sm:$0xff] }
 0x393   :  { %v13582_v50 = vpop.permute.xlu0 %3482  ;;  %5232 = vrot.lane.b32.xlu0 %v13585_v18, %s10357_s16 }
 0x394   :  { %16477 = vst [vmem:[#allocation74_spill] sm:$0xff] %v13582_v50  ;;  %v13590_v2 = vpop.permute.xlu1 %3484  ;;  %v16489_v50 = vrot.slane %v16414_v36, 1 }
 0x395   :  { %16479 = vst [vmem:[#allocation79_spill] sm:$0xff] %v13590_v2  ;;  %v2910_v2 = vrot.slane %v13276_v58, 1 }
 0x396   :  { %5234 = vrot.lane.b32.xlu1 %v13593_v35, %s10357_s16  ;;  %v2908_v35 = vrot.slane %v13254_v27, 1 }
 0x397   :  { %v13598_v51 = vpop.permute.xlu0 %3750  ;;  %5236 = vrot.lane.b32.xlu0 %v13602_v62, %s10357_s16  ;;  %v16149_v62 = vrot.slane %v13614_v7, 1  ;;  %v2913_v57 = vsel %vm2794_vm2, %v2910_v2, %v2912_v9 }
 0x398   :  { %v13607_v33 = vpop.permute.xlu1 %3752 }
 0x399   :  { %v13646_v63 = vsel %vm2794_vm2, %v4219_v37, %v16149_v62  ;;  %v2911_v37 = vsel %vm2794_vm2, %v2908_v35, %v2910_v2  ;;  %v9399_v2 = vld [vmem:[%s16011_s6] ss:$0 sm:$0xff] }
 0x39a   :  { %5238 = vrot.lane.b32.xlu1 %v13610_v46, %s10357_s16  ;;  %16487 = vst [vmem:[#allocation83_spill] sm:$0xff] %v13646_v63 }
 0x39b   :  { %v13616_v45 = vpop.permute.xlu0 %3754  ;;  %5240 = vrot.lane.b32.xlu0 %v13620_v1, %s10357_s16 }
 0x39c   :  { %v13624_v42 = vpop.permute.xlu1 %3756 }
 0x39e   :  { %5242 = vrot.lane.b32.xlu1 %v13627_v59, %s10357_s16  ;;  %v13650_v59 = vld [vmem:[#allocation3 + $0x5a0] sm:$0xff] }
 0x39f   :  { %v13632_v46 = vpop.permute.xlu0 %3758  ;;  %5244 = vrot.lane.b32.xlu0 %v13636_v25, %s10357_s16  ;;  %v2909_v25 = vsel %vm2794_vm2, %v16489_v50, %v2908_v35  ;;  %v2914_v62 = vrot.slane %v13650_v59, 1  ;;  %v2916_v50 = vrot.slane %v13663_v26, 1 }
 0x3a0   :  { %v13641_v1 = vpop.permute.xlu1 %3760 }
 0x3a1   :  { %16486 = vst [vmem:[#allocation14_spill] sm:$0xff] %v13641_v1  ;;  %v2915_v35 = vsel %vm2794_vm2, %v2912_v9, %v2914_v62  ;;  %v16528_v1 = vrot.slane %v16450_v0, 1 }
 0x3a2   :  { %5246 = vrot.lane.b32.xlu1 %v13646_v63, %s10357_s16  ;;  %v13666_v63 = vld [vmem:[#allocation3 + $0x5d0] sm:$0xff] }
 0x3a3   :  { %v13652_v18 = vpop.permute.xlu0 %3762  ;;  %3050 = vrot.lane.b32.xlu0 %v2909_v25, %s10355_s1  ;;  %v2918_v3 = vrot.slane %v13666_v63, 1 }
 0x3a4   :  { %16488 = vst [vmem:[#allocation16_spill] sm:$0xff] %v13652_v18  ;;  %v13659_v48 = vpop.permute.xlu1 %3764  ;;  %v5475_v18 = vld [vmem:[#allocation3 + $0x598] sm:$0xff] }
 0x3a5   :  { %16490 = vst [vmem:[#allocation84_spill] sm:$0xff] %v13659_v48 }
 0x3a6   :  { %3052 = vrot.lane.b32.xlu1 %v2911_v37, %s10355_s1  ;;  %v13680_v37 = vld [vmem:[#allocation3 + $0x600] sm:$0xff] }
 0x3a7   :  { %v13668_v49 = vpop.permute.xlu0 %3766  ;;  %3054 = vrot.lane.b32.xlu0 %v2913_v57, %s10355_s1  ;;  %v2917_v57 = vsel %vm2794_vm2, %v2914_v62, %v2916_v50  ;;  %v9912_v34 = vpop.f32.mrf.mxu1  ;;  %v2922_v41 = vrot.slane %v13680_v37, 1 }
 0x3a8   :  { %16491 = vst [vmem:[#allocation87_spill] sm:$0xff] %v13668_v49  ;;  %v13673_v25 = vpop.permute.xlu1 %3768  ;;  %v13708_v49 = vld [vmem:[#allocation3 + $0x648] sm:$0xff] }
 0x3a9   :  { %16492 = vst [vmem:[#allocation90_spill] sm:$0xff] %v13673_v25  ;;  %v6692_v62 = vpop.f32.mrf.mxu1  ;;  %v2928_v48 = vrot.slane %v13708_v49, 1 }
 0x3aa   :  { %3056 = vrot.lane.b32.xlu1 %v2915_v35, %s10355_s1  ;;  %v2919_v35 = vsel %vm2794_vm2, %v2916_v50, %v2918_v3  ;;  %v6693_v47 = vadd.f32 %v9399_v2, %v6692_v62  ;;  %v2925_v62 = vsel %vm2794_vm2, %v2922_v41, %v2924_v52 }
 0x3ab   :  { %v13682_v22 = vpop.permute.xlu0 %3770  ;;  %3058 = vrot.lane.b32.xlu0 %v2917_v57, %s10355_s1  ;;  %v2921_v57 = vsel %vm2794_vm2, %v2918_v3, %v2920_v12 }
 0x3ac   :  { %16493 = vst [vmem:[#allocation93_spill] sm:$0xff] %v13682_v22  ;;  %v13692_v9 = vpop.permute.xlu1 %3772  ;;  %v6701_v22 = vadd.f32 %v9912_v34, %v9399_v2  ;;  %v2923_v34 = vsel %vm2794_vm2, %v2920_v12, %v2922_v41  ;;  %v6755_v17 = vmax.f32 %v6693_v47, 0.0 }
 0x3ad   :  { %16494 = vst [vmem:[#allocation111_spill] sm:$0xff] %v13692_v9  ;;  %v9913_v9 = vpop.f32.mrf.mxu1 }
 0x3ae   :  { %3060 = vrot.lane.b32.xlu1 %v2919_v35, %s10355_s1  ;;  %v6757_v53 = vmax.f32 %v6701_v22, 0.0  ;;  %v2926_v35 = vrot.slane %v13697_v56, 1  ;;  %v6704_v10 = vadd.f32 %v9913_v9, %v9399_v2  ;;  %v13711_v22 = vld [vmem:[#allocation3 + $0x660] sm:$0xff] }
 0x3af   :  { %v13699_v25 = vpop.permute.xlu0 %3774  ;;  %3062 = vrot.lane.b32.xlu0 %v2921_v57, %s10355_s1  ;;  %v6695_v57 = vpop.f32.mrf.mxu1  ;;  %v2930_v9 = vrot.slane %v13711_v22, 1 }
 0x3b0   :  { %16495 = vst [vmem:[#allocation115_spill] sm:$0xff] %v13699_v25  ;;  %v13704_v50 = vpop.permute.xlu1 %3776  ;;  %v9700_v25 = vpack.c.bf16 %v6757_v53, %v6757_v53  ;;  %v6758_v12 = vmax.f32 %v6704_v10, 0.0  ;;  %v6696_v44 = vadd.f32 %v9399_v2, %v6695_v57  ;;  %v2927_v47 = vsel %vm2794_vm2, %v2924_v52, %v2926_v35  ;;  %v13727_v10 = vld [vmem:[#allocation3 + $0x690] sm:$0xff]  ;;  %v2721_v57 = vld [vmem:[#allocation3 + $0x6a8] sm:$0x7f] }
 0x3b1   :  { %16496 = vst [vmem:[#allocation91_spill] sm:$0xff] %v13704_v50  ;;  %v9698_v50 = vpack.c.bf16 %v6755_v17, %v6755_v17  ;;  %16499 = vst [vmem:[#allocation15_spill] sm:$0xff] %v13727_v10  ;;  %v2929_v2 = vsel %vm2794_vm2, %v2926_v35, %v2928_v48  ;;  %v2936_v35 = vrot.slane %v2721_v57, 1 }
 0x3b2   :  { %3064 = vrot.lane.b32.xlu1 %v2923_v34, %s10355_s1  ;;  %6838 = vst.msk [vmem:[#allocation7 + $0x8] sm:$0xf] %vm6835_vm5, %v9700_v25  ;;  %v13723_v34 = vld [vmem:[#allocation3 + $0x678] sm:$0xff]  ;;  %v9701_v41 = vpack.c.bf16 %v6758_v12, %v6758_v12 }
 0x3b3   :  { %v13713_v3 = vpop.permute.xlu0 %3778  ;;  %3066 = vrot.lane.b32.xlu0 %v2925_v62, %s10355_s1  ;;  %6836 = vst.msk [vmem:[#allocation7] sm:$0xf] %vm6835_vm5, %v9698_v50  ;;  %v2932_v52 = vrot.slane %v13723_v34, 1  ;;  %v2931_v50 = vsel %vm2794_vm2, %v2928_v48, %v2930_v9 }
 0x3b4   :  { %16497 = vst [vmem:[#allocation95_spill] sm:$0xff] %v13713_v3  ;;  %v13719_v53 = vpop.permute.xlu1 %3780  ;;  %v6756_v3 = vmax.f32 %v6696_v44, 0.0  ;;  %6839 = vst.msk [vmem:[#allocation7 + $0xc] sm:$0xf] %vm6835_vm5, %v9701_v41  ;;  %v2934_v44 = vrot.slane %v13727_v10, 1 }
 0x3b5   :  { %16498 = vst [vmem:[#allocation99_spill] sm:$0xff] %v13719_v53 }
 0x3b6   :  { %3068 = vrot.lane.b32.xlu1 %v2927_v47, %s10355_s1  ;;  %v9699_v25 = vpack.c.bf16 %v6756_v3, %v6756_v3  ;;  %v2933_v3 = vsel %vm2794_vm2, %v2930_v9, %v2932_v52  ;;  %v2935_v41 = vsel %vm2794_vm2, %v2932_v52, %v2934_v44 }
 0x3b7   :  { %v13729_v17 = vpop.permute.xlu0 %4616  ;;  %3070 = vrot.lane.b32.xlu0 %v2929_v2, %s10355_s1  ;;  %v3344_v2 = vrot.slane %v13254_v27, 2  ;;  %v16505_v27 = vrot.slane %v16414_v36, 2  ;;  %v3352_v36 = vrot.slane %v13663_v26, 2 }
 0x3b8   :  { %v13735_v62 = vpop.permute.xlu1 %4618  ;;  %6837 = vst.msk [vmem:[#allocation7 + $0x4] sm:$0xf] %vm6835_vm5, %v9699_v25  ;;  %v2937_v25 = vsel %vm2794_vm2, %v2934_v44, %v2936_v35 }
 0x3b9   :  { %v3345_v44 = vsel %vm3230_vm3, %v16505_v27, %v3344_v2  ;;  %v3354_v27 = vrot.slane %v13666_v63, 2 }
 0x3ba   :  { %3072 = vrot.lane.b32.xlu1 %v2931_v50, %s10355_s1  ;;  %v3346_v50 = vrot.slane %v13276_v58, 2 }
 0x3bb   :  { %v13741_v12 = vpop.permute.xlu0 %4620  ;;  %3074 = vrot.lane.b32.xlu0 %v2933_v3, %s10355_s1  ;;  %v10025_v3 = vld [vmem:[#allocation7 + $0x8] sm:$0xff]  }
 0x3bc   :  { %16500 = vst [vmem:[#allocation96_spill] sm:$0xff] %v13741_v12  ;;  %v13745_v47 = vpop.permute.xlu1 %4622  ;;  %v5476_v12 = vld [vmem:[#allocation3 + $0x5b0] sm:$0xff] }
 0x3bd   :  { %16501 = vst [vmem:[#allocation108_spill] sm:$0xff] %v13745_v47  ;;  %v5649_v47 = vrot.slane %v5465_v11, 2  ;;  %v5473_v11 = vld [vmem:[#allocation3 + $0x568] sm:$0xff] }
 0x3be   :  { %3076 = vrot.lane.b32.xlu1 %v2935_v41, %s10355_s1  ;;  %v3348_v41 = vrot.slane %v13283_v54, 2  ;;  %v5665_v0 = vrot.slane %v5473_v11, 2 }
 0x3bf   :  { %v13749_v48 = vpop.permute.xlu0 %4624  ;;  %3078 = vrot.lane.b32.xlu0 %v2937_v25, %s10355_s1  ;;  %v10024_v57 = vld [vmem:[#allocation7] sm:$0xff]   ;;  %v3347_v25 = vsel %vm3230_vm3, %v3344_v2, %v3346_v50 }
 0x3c0   :  { %16502 = vst [vmem:[#allocation100_spill] sm:$0xff] %v13749_v48  ;;  %v13755_v9 = vpop.permute.xlu1 %4626  ;;  %9934 = vmatprep.mubr.msk.bf16.mxu0 %vm7036_vm6, %v10024_v57  ;;  %v3349_v54 = vsel %vm3230_vm3, %v3346_v50, %v3348_v41  ;;  %v10258_v48 = vld [vmem:[#allocation3 + $0x458] sm:$0xff] }
 0x3c1   :  { %16503 = vst [vmem:[#allocation101_spill] sm:$0xff] %v13755_v9  ;;  %9935 = vmatmul.mubr.msk.bf16.vlgmr.msra.gmra.mxu0 %vm7036_vm6, %v10025_v3  ;;  %v10257_v9 = vld [vmem:[#allocation3 + $0x440] sm:$0xff]  ;;  %v4185_v28 = vrot.slane %v10258_v48, 1 }
 0x3c2   :  { %3080 = vrot.lane.b32.xlu1 %v2936_v35, %s10355_s1  ;;  %v3350_v35 = vrot.slane %v13650_v59, 2  ;;  %v5466_v48 = vld [vmem:[#allocation3 + $0x4c0] sm:$0xff] }
 0x3c3   :  { %v13758_v52 = vpop.permute.xlu0 %4628  ;;  %3486 = vrot.lane.b32.xlu0 %v3345_v44, %s10356_s2 }
 0x3c4   :  { %16504 = vst [vmem:[#allocation103_spill] sm:$0xff] %v13758_v52  ;;  %v13767_v58 = vpop.permute.xlu1 %4630  ;;  %v3351_v3 = vsel %vm3230_vm3, %v3348_v41, %v3350_v35  ;;  %v3353_v44 = vsel %vm3230_vm3, %v3350_v35, %v3352_v36 }
 0x3c5   :  { %16506 = vst [vmem:[#allocation102_spill] sm:$0xff] %v13767_v58 }
 0x3c6   :  { %3488 = vrot.lane.b32.xlu1 %v3347_v25, %s10356_s2  ;;  %v3356_v25 = vrot.slane %v13677_v20, 2 }
 0x3c7   :  { %v13772_v53 = vpop.permute.xlu0 %4632  ;;  %3490 = vrot.lane.b32.xlu0 %v3349_v54, %s10356_s2  ;;  %v3355_v54 = vsel %vm3230_vm3, %v3352_v36, %v3354_v27 }
 0x3c8   :  { %16507 = vst [vmem:[#allocation104_spill] sm:$0xff] %v13772_v53  ;;  %v13777_v57 = vpop.permute.xlu1 %4634  ;;  %v13821_v53 = vld [vmem:[#allocation3 + $0x6a8] sm:$0xff] }
 0x3c9   :  { %16508 = vst [vmem:[#allocation62_spill] sm:$0xff] %v13777_v57  ;;  %v3358_v57 = vrot.slane %v13680_v37, 2  ;;  %16516 = vst [vmem:[#allocation66_spill] sm:$0xff] %v13821_v53 }
 0x3ca   :  { %3492 = vrot.lane.b32.xlu1 %v3351_v3, %s10356_s2  ;;  %v3357_v3 = vsel %vm3230_vm3, %v3354_v27, %v3356_v25 }
 0x3cb   :  { %v13782_v2 = vpop.permute.xlu0 %4636  ;;  %3494 = vrot.lane.b32.xlu0 %v3353_v44, %s10356_s2  ;;  %v3359_v44 = vsel %vm3230_vm3, %v3356_v25, %v3358_v57 }
 0x3cc   :  { %16509 = vst [vmem:[#allocation107_spill] sm:$0xff] %v13782_v2  ;;  %v13787_v50 = vpop.permute.xlu1 %4638  ;;  %v3360_v2 = vrot.slane %v13689_v15, 2 }
 0x3cd   :  { %16510 = vst [vmem:[#allocation114_spill] sm:$0xff] %v13787_v50  ;;  %v3362_v50 = vrot.slane %v13697_v56, 2 }
 0x3ce   :  { %3496 = vrot.lane.b32.xlu1 %v3355_v54, %s10356_s2  ;;  %v3361_v54 = vsel %vm3230_vm3, %v3358_v57, %v3360_v2 }
 0x3cf   :  { %v13792_v41 = vpop.permute.xlu0 %4640  ;;  %3498 = vrot.lane.b32.xlu0 %v3357_v3, %s10356_s2  ;;  %v3363_v3 = vsel %vm3230_vm3, %v3360_v2, %v3362_v50 }
 0x3d0   :  { %16511 = vst [vmem:[#allocation97_spill] sm:$0xff] %v13792_v41  ;;  %v13797_v35 = vpop.permute.xlu1 %4642  ;;  %v3364_v41 = vrot.slane %v13708_v49, 2 }
 0x3d1   :  { %16512 = vst [vmem:[#allocation105_spill] sm:$0xff] %v13797_v35  ;;  %v3366_v35 = vrot.slane %v13711_v22, 2 }
 0x3d2   :  { %3500 = vrot.lane.b32.xlu1 %v3359_v44, %s10356_s2  ;;  %v3365_v44 = vsel %vm3230_vm3, %v3362_v50, %v3364_v41  ;;  %v3372_v50 = vrot.slane %v13821_v53, 2  ;;  %v10259_v53 = vld [vmem:[#allocation3 + $0x470] sm:$0xff] }
 0x3d3   :  { %v13802_v36 = vpop.permute.xlu0 %4644  ;;  %3502 = vrot.lane.b32.xlu0 %v3361_v54, %s10356_s2  ;;  %v3367_v54 = vsel %vm3230_vm3, %v3364_v41, %v3366_v35 }
 0x3d4   :  { %16513 = vst [vmem:[#allocation64_spill] sm:$0xff] %v13802_v36  ;;  %v13807_v27 = vpop.permute.xlu1 %4646  ;;  %v3368_v36 = vrot.slane %v13723_v34, 2 }
 0x3d5   :  { %16514 = vst [vmem:[#allocation110_spill] sm:$0xff] %v13807_v27  ;;  %v3370_v27 = vrot.slane %v13727_v10, 2  ;;  %v5470_v10 = vld [vmem:[#allocation3 + $0x520] sm:$0xff] }
 0x3d6   :  { %3504 = vrot.lane.b32.xlu1 %v3363_v3, %s10356_s2  ;;  %v3369_v3 = vsel %vm3230_vm3, %v3366_v35, %v3368_v36 }
 0x3d7   :  { %v13812_v25 = vpop.permute.xlu0 %4912  ;;  %3506 = vrot.lane.b32.xlu0 %v3365_v44, %s10356_s2  ;;  %v3371_v44 = vsel %vm3230_vm3, %v3368_v36, %v3370_v27  ;;  %v3373_v52 = vsel %vm3230_vm3, %v3370_v27, %v3372_v50  ;;  %v5468_v36 = vld [vmem:[#allocation3 + $0x4f0] sm:$0xff] }
 0x3d8   :  { %v13817_v57 = vpop.permute.xlu1 %4914  ;;  %v5655_v24 = vrot.slane %v5468_v36, 2 }
 0x3d9   :  { %16515 = vst [vmem:[#allocation106_spill] sm:$0xff] %v13817_v57 }
 0x3da   :  { %3508 = vrot.lane.b32.xlu1 %v3367_v54, %s10356_s2  ;;  %v4183_v54 = vrot.slane %v10257_v9, 1  ;;  %v13845_v9 = vld [vmem:[#allocation3 + $0x490] sm:$0xff] }
 0x3db   :  { %v13824_v2 = vpop.permute.xlu0 %4916  ;;  %3510 = vrot.lane.b32.xlu0 %v3369_v3, %s10356_s2  ;;  %v5467_v3 = vld [vmem:[#allocation3 + $0x4d8] sm:$0xff]  ;;  %16523 = vst [vmem:[#allocation121_spill] sm:$0xff] %v13845_v9 }
 0x3dc   :  { %16517 = vst [vmem:[#allocation67_spill] sm:$0xff] %v13824_v2  ;;  %v13829_v58 = vpop.permute.xlu1 %4918  ;;  %v13840_v2 = vld [vmem:[#allocation3 + $0x428] sm:$0xff] }
 0x3dd   :  { %16518 = vst [vmem:[#allocation109_spill] sm:$0xff] %v13829_v58  ;;  %v4187_v58 = vrot.slane %v10259_v53, 1  ;;  %16521 = vst [vmem:[#allocation113_spill] sm:$0xff] %v13840_v2  ;;  %v16161_v27 = vrot.slane %v13840_v2, 1  ;;  %v5651_v2 = vrot.slane %v5466_v48, 2 }
 0x3de   :  { %3512 = vrot.lane.b32.xlu1 %v3371_v44, %s10356_s2  ;;  %v5471_v44 = vld [vmem:[#allocation3 + $0x538] sm:$0xff] }
 0x3df   :  { %v13833_v41 = vpop.permute.xlu0 %4920  ;;  %3514 = vrot.lane.b32.xlu0 %v3373_v52, %s10356_s2  ;;  %v5469_v52 = vld [vmem:[#allocation3 + $0x508] sm:$0xff]  ;;  %v13850_v53 = vsel %vm2794_vm2, %v16161_v27, %v4183_v54  ;;  %v5661_v29 = vrot.slane %v5471_v44, 2  ;;  %v16163_v27 = vrot.slane %v13845_v9, 2  ;;  %v5659_v44 = vrot.slane %v5470_v10, 2  ;;  %v5478_v9 = vld [vmem:[#allocation3 + $0x5e0] sm:$0xff] }
 0x3e0   :  { %16519 = vst [vmem:[#allocation69_spill] sm:$0xff] %v13833_v41  ;;  %v13837_v35 = vpop.permute.xlu1 %4922  ;;  %16524 = vst [vmem:[#allocation120_spill] sm:$0xff] %v13850_v53  ;;  %v5657_v57 = vrot.slane %v5469_v52, 2  ;;  %v13878_v48 = vsel %vm3230_vm3, %v5649_v47, %v5651_v2 }
 0x3e1   :  { %16520 = vst [vmem:[#allocation112_spill] sm:$0xff] %v13837_v35  ;;  %v5653_v35 = vrot.slane %v5467_v3, 2  ;;  %v13860_v3 = vsel %vm2794_vm2, %v4185_v28, %v4187_v58  ;;  %v13893_v10 = vsel %vm3230_vm3, %v5659_v44, %v5661_v29 }
 0x3e2   :  { %3516 = vrot.lane.b32.xlu1 %v3372_v50, %s10356_s2  ;;  %v13853_v50 = vsel %vm2794_vm2, %v4183_v54, %v4185_v28  ;;  %16527 = vst [vmem:[#allocation119_spill] sm:$0xff] %v13860_v3  ;;  %v5474_v54 = vld [vmem:[#allocation3 + $0x580] sm:$0xff]  ;;  %v5669_v28 = vrot.slane %v5475_v18, 2  ;;  %16532 = vst [vmem:[#allocation125_spill] sm:$0xff] %v13893_v10 }
 0x3e3   :  { %v13843_v41 = vpop.permute.xlu0 %4924  ;;  %16525 = vst [vmem:[#allocation116_spill] sm:$0xff] %v13853_v50  ;;  %3782 = vrot.lane.b32.xlu0 %v13650_v59, %s10357_s16  ;;  %v13868_v59 = vsel %vm2794_vm2, %v4187_v58, %v16528_v1  ;;  %v13881_v52 = vsel %vm3230_vm3, %v5651_v2, %v5653_v35  ;;  %v5477_v1 = vld [vmem:[#allocation3 + $0x5c8] sm:$0xff]  ;;  %v13883_v58 = vld [vmem:[#allocation3 + $0x610] sm:$0xff]  ;;  %v13890_v18 = vsel %vm3230_vm3, %v5653_v35, %v5655_v24  ;;  %v10261_v2 = vld [vmem:[#allocation3 + $0x3c0] sm:$0xff]  ;;  %v5677_v35 = vrot.slane %v5479_v14, 2 }
 0x3e4   :  { %16522 = vst [vmem:[#allocation117_spill] sm:$0xff] %v13843_v41  ;;  %v13857_v41 = vpop.permute.xlu1 %4926  ;;  %16529 = vst [vmem:[#allocation122_spill] sm:$0xff] %v13868_v59  ;;  %v3194_v11 = vadd.f32 %v10261_v2, %v13391_v30  ;;  %v16165_v30 = vrot.slane %v13883_v58, 2  ;;  %v10262_v2 = vld [vmem:[#allocation3 + $0x3d8] sm:$0xff]  ;;  %v5675_v14 = vrot.slane %v5478_v9, 2 }
 0x3e5   :  { %16526 = vst [vmem:[#allocation118_spill] sm:$0xff] %v13857_v41  ;;  %v5663_v41 = vrot.slane %v5472_v43, 2 }
 0x3e6   :  { %3784 = vrot.lane.b32.xlu1 %v13663_v26, %s10357_s16  ;;  %v13875_v26 = vsel %vm3230_vm3, %v16163_v27, %v5649_v47  ;;  %v5667_v47 = vrot.slane %v5474_v54, 2  ;;  %v5671_v27 = vrot.slane %v5476_v12, 2  ;;  %v5673_v54 = vrot.slane %v5477_v1, 2 }
 0x3e7   :  { %v13870_v36 = vpop.permute.xlu0 %4928  ;;  %3786 = vrot.lane.b32.xlu0 %v13666_v63, %s10357_s16  ;;  %v13902_v63 = vsel %vm3230_vm3, %v5657_v57, %v5659_v44  ;;  %v13907_v10 = vsel %vm3230_vm3, %v5661_v29, %v5663_v41  ;;  %v4506_v44 = vrot.slane %v13497_v23, 2  ;;  %v4508_v29 = vrot.slane %v13503_v32, 2  ;;  %v13935_v32 = vld [vmem:[#allocation3 + $0x620] sm:$0xff] }
 0x3e8   :  { %16530 = vst [vmem:[#allocation123_spill] sm:$0xff] %v13870_v36  ;;  %v13887_v43 = vpop.permute.xlu1 %4930  ;;  %v13899_v36 = vsel %vm3230_vm3, %v5655_v24, %v5657_v57  ;;  %v13910_v12 = vsel %vm3230_vm3, %v5667_v47, %v5669_v28  ;;  %v3630_v24 = vadd.f32 %v13482_v5, %v3194_v11  ;;  %v13916_v57 = vsel %vm3230_vm3, %v5663_v41, %v5665_v0  ;;  %v10263_v5 = vld [vmem:[#allocation3 + $0x3f0] sm:$0xff] }
 0x3e9   :  { %16531 = vst [vmem:[#allocation124_spill] sm:$0xff] %v13887_v43  ;;  %16533 = vst [vmem:[#allocation126_spill] sm:$0xff] %v13910_v12  ;;  %v13925_v1 = vsel %vm3230_vm3, %v5665_v0, %v5667_v47  ;;  %v3196_v41 = vadd.f32 %v10263_v5, %v13411_v40  ;;  %v4510_v0 = vrot.slane %v13510_v8, 2  ;;  %v13946_v40 = vld [vmem:[#allocation3 + $0x638] sm:$0xff] }
 0x3ea   :  { %3788 = vrot.lane.b32.xlu1 %v13677_v20, %s10357_s16  ;;  %v3195_v20 = vadd.f32 %v10262_v2, %v13401_v39  ;;  %v13928_v39 = vsel %vm3230_vm3, %v5669_v28, %v5671_v27  ;;  %v3926_v23 = vadd.f32 %v13598_v51, %v3630_v24  ;;  %v13944_v28 = vsel %vm3230_vm3, %v5671_v27, %v5673_v54  ;;  %v10264_v51 = vld [vmem:[#allocation3 + $0x408] sm:$0xff]  ;;  %v10265_v24 = vld [vmem:[#allocation3 + $0x420] sm:$0xff] }
 0x3eb   :  { %v13904_v43 = vpop.permute.xlu0 %4932  ;;  %3790 = vrot.lane.b32.xlu0 %v13680_v37, %s10357_s16  ;;  %v13938_v37 = vsel %vm3230_vm3, %v5675_v14, %v5677_v35  ;;  %v3197_v11 = vadd.f32 %v10264_v51, %v13418_v61  ;;  %v3632_v8 = vadd.f32 %v13490_v16, %v3196_v41  ;;  %v4512_v27 = vrot.slane %v13614_v7, 2 }
 0x3ec   :  { %v13922_v12 = vpop.permute.xlu1 %4934  ;;  %v3631_v9 = vadd.f32 %v13486_v19, %v3195_v20  ;;  %v13949_v19 = vsel %vm3230_vm3, %v5673_v54, %v5675_v14  ;;  %v13960_v20 = vld [vmem:[#allocation3 + $0x650] sm:$0xff]  ;;  %v3198_v54 = vadd.f32 %v10265_v24, %v13421_v13  ;;  %v13973_v16 = vsel %vm3230_vm3, %v4506_v44, %v4508_v29 }
 0x3ed   :  { %v3633_v5 = vadd.f32 %v13494_v38, %v3197_v11  ;;  %v3928_v41 = vadd.f32 %v13616_v45, %v3632_v8  ;;  %v4357_v13 = vadd.f32 %v13850_v53, %v3926_v23  ;;  %v13987_v24 = vsel %vm3230_vm3, %v4508_v29, %v4510_v0  ;;  %v10267_v8 = vld [vmem:[#allocation3 + $0x450] sm:$0xff] }
 0x3ee   :  { %3792 = vrot.lane.b32.xlu1 %v13689_v15, %s10357_s16  ;;  %v13954_v15 = vsel %vm3230_vm3, %v5677_v35, %v16165_v30  ;;  %v3927_v2 = vadd.f32 %v13607_v33, %v3631_v9  ;;  %v16534_v35 = vrot.slane %v13406_v60, 2  ;;  %v4514_v33 = vrot.slane %v13935_v32, 2  ;;  %v10266_v60 = vld [vmem:[#allocation3 + $0x438] sm:$0xff]  ;;  %v16544_v30 = vld [vmem:[#allocation108_spill] sm:$0xff] }
 0x3ef   :  { %v13941_v47 = vpop.permute.xlu0 %4936  ;;  %3794 = vrot.lane.b32.xlu0 %v13697_v56, %s10357_s16  ;;  %v4516_v56 = vrot.slane %v13946_v40, 2  ;;  %v3199_v9 = vadd.f32 %v10266_v60, %v13425_v55  ;;  %v3634_v51 = vadd.f32 %v13501_v21, %v3198_v54  ;;  %v16166_v38 = vrot.slane %v13960_v20, 2  ;;  %v16538_v60 = vld [vmem:[#allocation106_spill] sm:$0xff] }
 0x3f0   :  { %v13965_v14 = vpop.permute.xlu1 %4938  ;;  %v13970_v61 = vsel %vm3230_vm3, %v16534_v35, %v4506_v44  ;;  %v3929_v45 = vadd.f32 %v13624_v42, %v3633_v5  ;;  %v4792_v23 = vadd.f32 %v13729_v17, %v4357_v13  ;;  %v13994_v11 = vsel %vm3230_vm3, %v4510_v0, %v4512_v27  ;;  %v16536_v5 = vld [vmem:[#allocation14_spill] sm:$0xff] }
 0x3f1   :  { %v3200_v55 = vadd.f32 %v10267_v8, %v13433_v4  ;;  %v3635_v21 = vadd.f32 %v13508_v6, %v3199_v9  ;;  %v3930_v54 = vadd.f32 %v13632_v46, %v3634_v51  ;;  %v14004_v42 = vsel %vm3230_vm3, %v4512_v27, %v4514_v33  ;;  %v10268_v6 = vld [vmem:[#allocation3 + $0x468] sm:$0xff]  ;;  %v10269_v51 = vld [vmem:[#allocation3 + $0x480] sm:$0xff] }
 0x3f2   :  { %3796 = vrot.lane.b32.xlu1 %v13708_v49, %s10357_s16  ;;  %v4358_v49 = vadd.f32 %v13853_v50, %v3927_v2  ;;  %v4359_v0 = vadd.f32 %v13860_v3, %v3928_v41  ;;  %v5088_v2 = vadd.f32 %v13812_v25, %v4792_v23  ;;  %v14012_v4 = vsel %vm3230_vm3, %v4514_v33, %v4516_v56  ;;  %v16537_v25 = vld [vmem:[#allocation96_spill] sm:$0xff]  ;;  %v16539_v23 = vld [vmem:[#allocation26_spill] sm:$0xff] }
 0x3f3   :  { %v13984_v44 = vpop.permute.xlu0 %4940  ;;  %3798 = vrot.lane.b32.xlu0 %v13711_v22, %s10357_s16  ;;  %v3201_v46 = vadd.f32 %v10268_v6, %v13439_v31  ;;  %v16535_v22 = vld [vmem:[#allocation54_spill] sm:$0xff]  ;;  %v3931_v27 = vadd.f32 %v16536_v5, %v3635_v21  ;;  %v3202_v31 = vadd.f32 %v10269_v51, %v16539_v23  ;;  %v16542_v6 = vld [vmem:[#allocation55_spill] sm:$0xff] }
 0x3f4   :  { %v14001_v29 = vpop.permute.xlu1 %4942  ;;  %v4793_v17 = vadd.f32 %v13735_v62, %v4358_v49  ;;  %v3636_v35 = vadd.f32 %v16535_v22, %v3200_v55  ;;  %v14020_v62 = vsel %vm3230_vm3, %v4516_v56, %v16166_v38  ;;  %v4794_v41 = vadd.f32 %v16537_v25, %v4359_v0  ;;  %v16540_v49 = vld [vmem:[#allocation57_spill] sm:$0xff]  ;;  %v16541_v55 = vld [vmem:[#allocation16_spill] sm:$0xff]  ;;  %v16543_v5 = vld [vmem:[#allocation15_spill] sm:$0xff] }
 0x3f5   :  { %v3637_v8 = vadd.f32 %v16540_v49, %v3201_v46  ;;  %v4361_v22 = vadd.f32 %v16542_v6, %v3930_v54  ;;  %v16545_v25 = vld [vmem:[#allocation67_spill] sm:$0xff]  ;;  %v16547_v46 = vld [vmem:[#allocation49_spill] sm:$0xff]  ;;  %v16549_v54 = vld [vmem:[#allocation84_spill] sm:$0xff] }
 0x3f6   :  { %3800 = vrot.lane.b32.xlu1 %v13723_v34, %s10357_s16  ;;  %v4360_v34 = vadd.f32 %v13868_v59, %v3929_v45  ;;  %v5089_v33 = vadd.f32 %v16538_v60, %v4793_v17  ;;  %v3932_v21 = vadd.f32 %v16541_v55, %v3636_v35  ;;  %v5090_v45 = vadd.f32 %v16545_v25, %v4794_v41  ;;  %v10270_v60 = vld [vmem:[#allocation3 + $0x498] sm:$0xff]  ;;  %v16548_v35 = vld [vmem:[#allocation85_spill] sm:$0xff]  ;;  %v16551_v38 = vld [vmem:[#allocation100_spill] sm:$0xff] }
 0x3f7   :  { %v5217_v13 = vpop.permute.xlu0 %5216  ;;  %3802 = vrot.lane.b32.xlu0 %v16543_v5, %s10357_s16  ;;  %v3203_v51 = vadd.f32 %v10270_v60, %v16547_v46  ;;  %v3638_v23 = vadd.f32 %v16548_v35, %v3202_v31  ;;  %v3933_v49 = vadd.f32 %v16549_v54, %v3637_v8  ;;  %v16550_v55 = vld [vmem:[#allocation63_spill] sm:$0xff]  ;;  %v16553_v25 = vld [vmem:[#allocation50_spill] sm:$0xff]  ;;  %v16554_v60 = vld [vmem:[#allocation60_spill] sm:$0xff] }
 0x3f8   :  { %v5392_v9 = vadd.f32 %v5217_v13, %v5088_v2  ;;  %v5219_v56 = vpop.permute.xlu1 %5218  ;;  %v4795_v0 = vadd.f32 %v16544_v30, %v4360_v34  ;;  %v16546_v13 = vld [vmem:[#allocation66_spill] sm:$0xff]  ;;  %v4362_v6 = vadd.f32 %v16550_v55, %v3931_v27  ;;  %v4796_v30 = vadd.f32 %v16551_v38, %v4361_v22  ;;  %v16552_v34 = vld [vmem:[#allocation109_spill] sm:$0xff]  ;;  %v16555_v46 = vld [vmem:[#allocation87_spill] sm:$0xff] }
 0x3f9   :  { %v5393_v2 = vadd.f32 %v5219_v56, %v5089_v33  ;;  %v10271_v56 = vld [vmem:[#allocation3 + $0x4b0] sm:$0xff]  ;;  %v3639_v31 = vadd.f32 %v16554_v60, %v3203_v51  ;;  %v3934_v8 = vadd.f32 %v16555_v46, %v3638_v23  ;;  %v16556_v35 = vld [vmem:[#allocation59_spill] sm:$0xff] }
 0x3fa   :  { %v5823_v17 = vadd.f32 %v13875_v26, %v5392_v9  ;;  %3804 = vrot.lane.b32.xlu1 %v16546_v13, %s10357_s16  ;;  %v5091_v41 = vadd.f32 %v16552_v34, %v4795_v0  ;;  %v3662_v9 = vld [vmem:[#allocation3 + $0x6c0] sm:$0xff]  ;;  %v3204_v13 = vadd.f32 %v10271_v56, %v16553_v25  ;;  %v4363_v27 = vadd.f32 %v16556_v35, %v3932_v21  ;;  %v3663_v22 = vld [vmem:[#allocation3 + $0x6d8] sm:$0xff]  ;;  %v16557_v0 = vld [vmem:[#allocation101_spill] sm:$0xff] }
 0x3fb   :  { %v5221_v5 = vpop.permute.xlu0 %5220  ;;  %v5824_v26 = vadd.f32 %v13878_v48, %v5393_v2  ;;  %3806 = vrot.lane.b32.xlu0 %v3662_v9, %s10357_s16  ;;  %v4797_v54 = vadd.f32 %v16557_v0, %v4362_v6  ;;  %v10272_v2 = vld [vmem:[#allocation3 + $0x4c8] sm:$0xff]  ;;  %v16559_v51 = vld [vmem:[#allocation51_spill] sm:$0xff]  ;;  %v16561_v34 = vld [vmem:[#allocation90_spill] sm:$0xff] }
 0x3fc   :  { %5895 = vst.msk [vmem:[#allocation4 + $0x140] sm:$0xff] %vm1501_vm1, %v5823_v17  ;;  %v5394_v33 = vadd.f32 %v5221_v5, %v5090_v45  ;;  %v5223_v38 = vpop.permute.xlu1 %5222  ;;  %v16558_v17 = vld [vmem:[#allocation69_spill] sm:$0xff]  ;;  %v3205_v23 = vadd.f32 %v10272_v2, %v16559_v51  ;;  %v16560_v5 = vld [vmem:[#allocation88_spill] sm:$0xff]  ;;  %v3935_v9 = vadd.f32 %v16561_v34, %v3639_v31  ;;  %v16563_v6 = vld [vmem:[#allocation103_spill] sm:$0xff] }
 0x3fd   :  { %v5092_v55 = vadd.f32 %v16558_v17, %v4796_v30  ;;  %5896 = vst.msk [vmem:[#allocation4 + $0x148] sm:$0xff] %vm1501_vm1, %v5824_v26  ;;  %v5395_v45 = vadd.f32 %v5223_v38, %v5091_v41  ;;  %v3640_v21 = vadd.f32 %v16560_v5, %v3204_v13  ;;  %v16562_v56 = vld [vmem:[#allocation65_spill] sm:$0xff]  ;;  %v4798_v46 = vadd.f32 %v16563_v6, %v4363_v27  ;;  %v16564_v30 = vld [vmem:[#allocation112_spill] sm:$0xff]  ;;  %v16566_v0 = vld [vmem:[#allocation78_spill] sm:$0xff] }
 0x3fe   :  { %v5825_v48 = vadd.f32 %v13881_v52, %v5394_v33  ;;  %3808 = vrot.lane.b32.xlu1 %v3663_v22, %s10357_s16  ;;  %v4364_v25 = vadd.f32 %v16562_v56, %v3933_v49  ;;  %v5093_v35 = vadd.f32 %v16564_v30, %v4797_v54  ;;  %v3664_v26 = vld [vmem:[#allocation3 + $0x6f0] sm:$0xff]  ;;  %v14062_v33 = vld [vmem:[#allocation3 + $0x668] sm:$0xff]  ;;  %v10273_v38 = vld [vmem:[#allocation3 + $0x4e0] sm:$0xff]  ;;  %v3641_v31 = vadd.f32 %v16566_v0, %v3205_v23 }
 0x3ff   :  { %v5225_v60 = vpop.permute.xlu0 %5224  ;;  %v5826_v52 = vadd.f32 %v13890_v18, %v5395_v45  ;;  %v16565_v22 = vld [vmem:[#allocation52_spill] sm:$0xff]  ;;  %v16567_v17 = vld [vmem:[#allocation93_spill] sm:$0xff]  ;;  %v16568_v2 = vld [vmem:[#allocation70_spill] sm:$0xff]  ;;  %3810 = vrot.lane.b32.xlu0 %v3664_v26, %s10357_s16 }
 0x400   :  { %5897 = vst.msk [vmem:[#allocation4 + $0x150] sm:$0xff] %vm1501_vm1, %v5825_v48  ;;  %v5396_v41 = vadd.f32 %v5225_v60, %v5092_v55  ;;  %v3206_v13 = vadd.f32 %v10273_v38, %v16565_v22  ;;  %v3936_v49 = vadd.f32 %v16567_v17, %v3640_v21  ;;  %v4365_v51 = vadd.f32 %v16568_v2, %v3934_v8  ;;  %v5227_v27 = vpop.permute.xlu1 %5226  ;;  %v3665_v54 = vld [vmem:[#allocation3 + $0x708] sm:$0x3f]  ;;  %v16569_v48 = vld [vmem:[#allocation102_spill] sm:$0xff]  ;;  %v14074_v23 = vld [vmem:[#allocation3 + $0x680] sm:$0xff] }
 0x401   :  { %v4799_v5 = vadd.f32 %v16569_v48, %v4364_v25  ;;  %v16570_v18 = vld [vmem:[#allocation117_spill] sm:$0xff]  ;;  %5898 = vst.msk [vmem:[#allocation4 + $0x158] sm:$0xff] %vm1501_vm1, %v5826_v52  ;;  %v5397_v34 = vadd.f32 %v5227_v27, %v5093_v35  ;;  %v16571_v21 = vld [vmem:[#allocation56_spill] sm:$0xff]  ;;  %v16572_v8 = vld [vmem:[#allocation111_spill] sm:$0xff]  ;;  %v4520_v25 = vrot.slane %v14062_v33, 2 }
 0x402   :  { %v5094_v55 = vadd.f32 %v16570_v18, %v4798_v46  ;;  %v5827_v45 = vadd.f32 %v13899_v36, %v5396_v41  ;;  %3812 = vrot.lane.b32.xlu1 %v3665_v54, %s10357_s16  ;;  %v3642_v56 = vadd.f32 %v16571_v21, %v3206_v13  ;;  %v3937_v60 = vadd.f32 %v16572_v8, %v3641_v31  ;;  %v16573_v6 = vld [vmem:[#allocation81_spill] sm:$0xff]  ;;  %v16574_v38 = vld [vmem:[#allocation104_spill] sm:$0xff]  ;;  %v16575_v22 = vld [vmem:[#allocation118_spill] sm:$0xff] }
 0x403   :  { %v4366_v30 = vadd.f32 %v16573_v6, %v3935_v9  ;;  %v5229_v26 = vpop.permute.xlu0 %5228  ;;  %v4800_v46 = vadd.f32 %v16574_v38, %v4365_v51  ;;  %v5095_v52 = vadd.f32 %v16575_v22, %v4799_v5  ;;  %v5828_v36 = vadd.f32 %v13902_v63, %v5397_v34  ;;  %v14084_v41 = vld [vmem:[#allocation3 + $0x698] sm:$0xff]  ;;  %v16576_v13 = vld [vmem:[#allocation61_spill] sm:$0xff]  ;;  %v16578_v9 = vld [vmem:[#allocation72_spill] sm:$0xff]  ;;  %4648 = vrot.lane.b32.xlu0 %v13970_v61, %s10355_s1 }
 0x404   :  { %5899 = vst.msk [vmem:[#allocation4 + $0x160] sm:$0xff] %vm1501_vm1, %v5827_v45  ;;  %v5398_v35 = vadd.f32 %v5229_v26, %v5094_v55  ;;  %v10274_v0 = vld [vmem:[#allocation3 + $0x4f8] sm:$0xff]  ;;  %v4367_v27 = vadd.f32 %v16578_v9, %v3936_v49  ;;  %v5231_v51 = vpop.permute.xlu1 %5230  ;;  %v4522_v54 = vrot.slane %v14074_v23, 2  ;;  %v16581_v55 = vld [vmem:[#allocation125_spill] sm:$0xff]  ;;  %v16582_v49 = vld [vmem:[#allocation68_spill] sm:$0xff] }
 0x405   :  { %v3207_v17 = vadd.f32 %v10274_v0, %v16576_v13  ;;  %v16577_v31 = vld [vmem:[#allocation115_spill] sm:$0xff]  ;;  %v16579_v48 = vld [vmem:[#allocation62_spill] sm:$0xff]  ;;  %5900 = vst.msk [vmem:[#allocation4 + $0x168] sm:$0xff] %vm1501_vm1, %v5828_v36  ;;  %v5399_v34 = vadd.f32 %v5231_v51, %v5095_v52  ;;  %v16586_v0 = vld [vmem:[#allocation124_spill] sm:$0xff] }
 0x406   :  { %v3938_v2 = vadd.f32 %v16577_v31, %v3642_v56  ;;  %v4801_v5 = vadd.f32 %v16579_v48, %v4366_v30  ;;  %v16580_v18 = vld [vmem:[#allocation123_spill] sm:$0xff]  ;;  %v5829_v45 = vadd.f32 %v16581_v55, %v5398_v35  ;;  %4650 = vrot.lane.b32.xlu1 %v13973_v16, %s10355_s1  ;;  %v10275_v21 = vld [vmem:[#allocation3 + $0x510] sm:$0xff]  ;;  %v4524_v30 = vrot.slane %v14084_v41, 2  ;;  %v10276_v16 = vld [vmem:[#allocation3 + $0x528] sm:$0xff] }
 0x407   :  { %v5096_v63 = vadd.f32 %v16580_v18, %v4800_v46  ;;  %v3208_v56 = vadd.f32 %v10275_v21, %v16582_v49  ;;  %v16583_v8 = vld [vmem:[#allocation82_spill] sm:$0xff]  ;;  %v5233_v38 = vpop.permute.xlu0 %5232  ;;  %v16585_v22 = vld [vmem:[#allocation107_spill] sm:$0xff]  ;;  %v5830_v52 = vadd.f32 %v13907_v10, %v5399_v34  ;;  %v16587_v13 = vld [vmem:[#allocation44_spill] sm:$0xff]  ;;  %4652 = vrot.lane.b32.xlu0 %v13987_v24, %s10355_s1 }
 0x408   :  { %v3643_v61 = vadd.f32 %v16583_v8, %v3207_v17  ;;  %v16584_v6 = vld [vmem:[#allocation58_spill] sm:$0xff]  ;;  %v4802_v46 = vadd.f32 %v16585_v22, %v4367_v27  ;;  %v5097_v36 = vadd.f32 %v16586_v0, %v4801_v5  ;;  %5901 = vst.msk [vmem:[#allocation4 + $0x170] sm:$0xff] %vm1501_vm1, %v5829_v45  ;;  %v3209_v31 = vadd.f32 %v10276_v16, %v16587_v13  ;;  %v16589_v17 = vld [vmem:[#allocation91_spill] sm:$0xff]  ;;  %v5235_v27 = vpop.permute.xlu1 %5234  ;;  %v6037_v22 = vld [vmem:[#allocation4 + $0x149] sm:$0xff] }
 0x409   :  { %v4368_v26 = vadd.f32 %v16584_v6, %v3937_v60  ;;  %v5400_v35 = vadd.f32 %v5233_v38, %v5096_v63  ;;  %v16588_v9 = vld [vmem:[#allocation74_spill] sm:$0xff]  ;;  %v16590_v60 = vld [vmem:[#allocation35_spill] sm:$0xff]  ;;  %5902 = vst.msk [vmem:[#allocation4 + $0x178] sm:$0xff] %vm1501_vm1, %v5830_v52  ;;  %v4523_v0 = vsel %vm3230_vm3, %v4520_v25, %v4522_v54  ;;  %v16597_v16 = vld [vmem:[#allocation89_spill] sm:$0xff] }
 0x40a   :  { %v3644_v51 = vadd.f32 %v16588_v9, %v3208_v56  ;;  %v3939_v48 = vadd.f32 %v16589_v17, %v3643_v61  ;;  %v4369_v18 = vadd.f32 %v16590_v60, %v3938_v2  ;;  %v16591_v55 = vld [vmem:[#allocation114_spill] sm:$0xff]  ;;  %v5098_v45 = vadd.f32 %v13904_v43, %v4802_v46  ;;  %4654 = vrot.lane.b32.xlu1 %v13994_v11, %s10355_s1  ;;  %v16592_v34 = vld [vmem:[#allocation79_spill] sm:$0xff]  ;;  %v16594_v56 = vld [vmem:[#allocation97_spill] sm:$0xff] }
 0x40b   :  { %v4803_v5 = vadd.f32 %v16591_v55, %v4368_v26  ;;  %v5831_v10 = vadd.f32 %v13916_v57, %v5400_v35  ;;  %v5401_v63 = vadd.f32 %v5235_v27, %v5097_v36  ;;  %v3645_v21 = vadd.f32 %v16592_v34, %v3209_v31  ;;  %v16593_v49 = vld [vmem:[#allocation95_spill] sm:$0xff]  ;;  %v5237_v26 = vpop.permute.xlu0 %5236  ;;  %v14128_v36 = vld [vmem:[#allocation3 + $0x6b0] sm:$0xff]  ;;  %4656 = vrot.lane.b32.xlu0 %v14004_v42, %s10355_s1 }
 0x40c   :  { %v3940_v2 = vadd.f32 %v16593_v49, %v3644_v51  ;;  %v4804_v8 = vadd.f32 %v16594_v56, %v4369_v18  ;;  %v5968_v24 = vld [vmem:[#allocation4 + $0x140] sm:$0xff]  ;;  %v16595_v43 = vrot.slane %v13960_v20, 2  ;;  %v5402_v46 = vadd.f32 %v5237_v26, %v5098_v45  ;;  %v5969_v51 = vld [vmem:[#allocation4 + $0x148] sm:$0xff]  ;;  %v6038_v60 = vld [vmem:[#allocation4 + $0x151] sm:$0xff] }
 0x40d   :  { %v6036_v61 = vld [vmem:[#allocation4 + $0x141] sm:$0xff]  ;;  %v5099_v57 = vadd.f32 %v13922_v12, %v4803_v5  ;;  %5903 = vst.msk [vmem:[#allocation4 + $0x180] sm:$0xff] %vm1501_vm1, %v5831_v10  ;;  %v5832_v11 = vadd.f32 %v13925_v1, %v5401_v63  ;;  %v4370_v13 = vadd.f32 %v16597_v16, %v3939_v48  ;;  %v5239_v12 = vpop.permute.xlu1 %5238  ;;  %v4525_v1 = vsel %vm3230_vm3, %v4522_v54, %v4524_v30  ;;  %v16598_v27 = vld [vmem:[#allocation126_spill] sm:$0xff] }
 0x40e   :  { %v5972_v6 = vld [vmem:[#allocation4 + $0x160] sm:$0xff]  ;;  %v4521_v38 = vsel %vm3230_vm3, %v16595_v43, %v4520_v25  ;;  %v5100_v31 = vadd.f32 %v13941_v47, %v4804_v8  ;;  %v6104_v17 = vmax.f32 %v5968_v24, %v6036_v61  ;;  %v5970_v25 = vld [vmem:[#allocation4 + $0x150] sm:$0xff]  ;;  %v5833_v48 = vadd.f32 %v16598_v27, %v5402_v46  ;;  %4658 = vrot.lane.b32.xlu1 %v14012_v4, %s10355_s1  ;;  %v5973_v63 = vld [vmem:[#allocation4 + $0x168] sm:$0xff] }
 0x40f   :  { %v16596_v52 = vld [vmem:[#allocation99_spill] sm:$0xff]  ;;  %5904 = vst.msk [vmem:[#allocation4 + $0x188] sm:$0xff] %vm1501_vm1, %v5832_v11  ;;  %v5403_v55 = vadd.f32 %v5239_v12, %v5099_v57  ;;  %v16599_v47 = vld [vmem:[#allocation105_spill] sm:$0xff]  ;;  %v16600_v5 = vld [vmem:[#allocation76_spill] sm:$0xff]  ;;  %v6105_v10 = vmax.f32 %v5969_v51, %v6037_v22  ;;  %v4526_v49 = vrot.slane %v14128_v36, 2  ;;  %v6106_v57 = vmax.f32 %v5970_v25, %v6038_v60  ;;  %4660 = vrot.lane.b32.xlu0 %v14020_v62, %s10355_s1 }
 0x410   :  { %v3941_v35 = vadd.f32 %v16596_v52, %v3645_v21  ;;  %v6040_v9 = vld [vmem:[#allocation4 + $0x161] sm:$0xff]  ;;  %v4805_v42 = vadd.f32 %v16599_v47, %v4370_v13  ;;  %v4371_v45 = vadd.f32 %v16600_v5, %v3940_v2  ;;  %v5974_v54 = vld [vmem:[#allocation4 + $0x170] sm:$0xff]  ;;  %v5241_v21 = vpop.permute.xlu0 %5240  ;;  %5905 = vst.msk [vmem:[#allocation4 + $0x190] sm:$0xff] %vm1501_vm1, %v5833_v48  ;;  %v14155_v46 = vld [vmem:[%s16009_s4] ss:$0 sm:$0xff] }
 0x411   :  { %v6108_v18 = vmax.f32 %v5972_v6, %v6040_v9  ;;  %v6041_v34 = vld [vmem:[#allocation4 + $0x169] sm:$0xff]  ;;  %v5834_v24 = vadd.f32 %v13928_v39, %v5403_v55  ;;  %v5404_v61 = vadd.f32 %v5241_v21, %v5100_v31  ;;  %v6042_v22 = vld [vmem:[#allocation4 + $0x171] sm:$0xff]  ;;  %v5243_v11 = vpop.permute.xlu1 %5242 }
 0x412   :  { %v6109_v8 = vmax.f32 %v5973_v63, %v6041_v34  ;;  %v16601_v6 = vld [vmem:[#allocation64_spill] sm:$0xff]  ;;  %v5101_v2 = vadd.f32 %v13965_v14, %v4805_v42  ;;  %v6110_v16 = vmax.f32 %v5974_v54, %v6042_v22  ;;  %4662 = vrot.lane.b32.xlu1 %v4521_v38, %s10355_s1  ;;  %v16603_v13 = vld [vmem:[#allocation110_spill] sm:$0xff]  ;;  %v4527_v34 = vsel %vm3230_vm3, %v4524_v30, %v4526_v49 }
 0x413   :  { %v6187_v56 = vmax.f32 %v6104_v17, %v6108_v18  ;;  %v4806_v4 = vadd.f32 %v16601_v6, %v4371_v45  ;;  %v16602_v26 = vld [vmem:[#allocation92_spill] sm:$0xff]  ;;  %5906 = vst.msk [vmem:[#allocation4 + $0x198] sm:$0xff] %vm1501_vm1, %v5834_v24  ;;  %4664 = vrot.lane.b32.xlu0 %v4523_v0, %s10355_s1  ;;  %v14179_v45 = vld [vmem:[#allocation3 + $0x6f8] sm:$0xff] }
 0x414   :  { %v4372_v43 = vadd.f32 %v16602_v26, %v3941_v35  ;;  %v6188_v52 = vmax.f32 %v6105_v10, %v6109_v8  ;;  %v5835_v35 = vadd.f32 %v13944_v28, %v5404_v61  ;;  %v14161_v14 = vld [vmem:[#allocation3 + $0x6c8] sm:$0xff]  ;;  %v14165_v9 = vld [vmem:[#allocation4 + $0x180] sm:$0xff]  ;;  %v5405_v12 = vadd.f32 %v5243_v11, %v5101_v2  ;;  %v5245_v51 = vpop.permute.xlu0 %5244  ;;  %v14192_v8 = vld [vmem:[#allocation3 + $0x710] sm:$0xff] }
 0x415   :  { %v6262_v39 = vadd.f32 %v14155_v46, %v6187_v56  ;;  %v5102_v31 = vadd.f32 %v13984_v44, %v4806_v4  ;;  %v6189_v60 = vmax.f32 %v6106_v57, %v6110_v16  ;;  %v14169_v18 = vld [vmem:[#allocation3 + $0x6e0] sm:$0xff]  ;;  %v5247_v44 = vpop.permute.xlu1 %5246  ;;  %v4528_v55 = vrot.slane %v14161_v14, 2  ;;  %v10036_v53 = vld [vmem:[%s16012_s7 + $0x54] ss:$20 sps:$4 sm:$0xff]  }
 0x416   :  { %v4807_v62 = vadd.f32 %v16603_v13, %v4372_v43  ;;  %v6263_v25 = vadd.f32 %v14155_v46, %v6188_v52  ;;  %5907 = vst.msk [vmem:[#allocation4 + $0x1a0] sm:$0xff] %vm1501_vm1, %v5835_v35  ;;  %v6044_v38 = vld [vmem:[#allocation4 + $0x181] sm:$0xff]  ;;  %v5836_v27 = vadd.f32 %v13949_v19, %v5405_v12  ;;  %4666 = vrot.lane.b32.xlu1 %v4525_v1, %s10355_s1  ;;  %v4530_v1 = vrot.slane %v14169_v18, 2 }
 0x417   :  { %v6330_v17 = vmax.f32 %v6262_v39, 0.0  ;;  %v5406_v48 = vadd.f32 %v5245_v51, %v5102_v31  ;;  %v6264_v42 = vadd.f32 %v14155_v46, %v6189_v60  ;;  %v6112_v5 = vmax.f32 %v14165_v9, %v6044_v38  ;;  %v5978_v10 = vld [vmem:[#allocation4 + $0x190] sm:$0xff]  ;;  %4668 = vrot.lane.b32.xlu0 %v4527_v34, %s10355_s1 }
 0x418   :  { %v5103_v28 = vadd.f32 %v14001_v29, %v4807_v62  ;;  %v6331_v47 = vmax.f32 %v6263_v25, 0.0  ;;  %v5977_v29 = vld [vmem:[#allocation4 + $0x188] sm:$0xff]  ;;  %5908 = vst.msk [vmem:[#allocation4 + $0x1a8] sm:$0xff] %vm1501_vm1, %v5836_v27  ;;  %v14183_v54 = vpop.permute.xlu0 %3050  ;;  %v4529_v30 = vsel %vm3230_vm3, %v4526_v49, %v4528_v55  ;;  %v4532_v6 = vrot.slane %v14179_v45, 2  ;;  %v10034_v50 = vld [vmem:[%s16012_s7 + $0x50] ss:$20 sps:$4 sm:$0xff]  }
 0x419   :  { %6398 = vst.msk [vmem:[#allocation5 + $0x140] sm:$0xff] %vm1501_vm1, %v6330_v17  ;;  %v6045_v19 = vld [vmem:[#allocation4 + $0x189] sm:$0xff]  ;;  %v5837_v0 = vadd.f32 %v13938_v37, %v5406_v48  ;;  %v6332_v21 = vmax.f32 %v6264_v42, 0.0  ;;  %v14197_v61 = vpop.permute.xlu1 %3052  ;;  %v4534_v43 = vrot.slane %v14192_v8, 2 }
 0x41a   :  { %v5407_v63 = vadd.f32 %v5247_v44, %v5103_v28  ;;  %6399 = vst.msk [vmem:[#allocation5 + $0x148] sm:$0xff] %vm1501_vm1, %v6331_v47  ;;  %v6113_v56 = vmax.f32 %v5977_v29, %v6045_v19  ;;  %v6046_v24 = vld [vmem:[#allocation4 + $0x191] sm:$0xff]  ;;  %4670 = vrot.lane.b32.xlu1 %v4529_v30, %s10355_s1  ;;  %v4533_v49 = vsel %vm3230_vm3, %v4530_v1, %v4532_v6  ;;  %v10278_v42 = vld [vmem:[#allocation3 + $0x608] sm:$0xff] }
 0x41b   :  { %5909 = vst.msk [vmem:[#allocation4 + $0x1b0] sm:$0xff] %vm1501_vm1, %v5837_v0  ;;  %6400 = vst.msk [vmem:[#allocation5 + $0x150] sm:$0xff] %vm1501_vm1, %v6332_v21  ;;  %v6114_v4 = vmax.f32 %v5978_v10, %v6046_v24  ;;  %v4535_v62 = vsel %vm3230_vm3, %v4532_v6, %v4534_v43 }
 0x41c   :  { %v5838_v37 = vadd.f32 %v13954_v15, %v5407_v63  ;;  %v14206_v26 = vpop.permute.xlu0 %3054  ;;  %v4531_v15 = vsel %vm3230_vm3, %v4528_v55, %v4530_v1 }
 0x41d   :  { %v5980_v2 = vld [vmem:[#allocation4 + $0x1a0] sm:$0xff]  ;;  %4672 = vrot.lane.b32.xlu0 %v4531_v15, %s10355_s1  ;;  %v14211_v57 = vpop.permute.xlu1 %3056 }
 0x41e   :  { %5910 = vst.msk [vmem:[#allocation4 + $0x1b8] sm:$0xff] %vm1501_vm1, %v5838_v37  ;;  %4674 = vrot.lane.b32.xlu1 %v4533_v49, %s10355_s1 }
 0x41f   :  { %v6048_v22 = vld [vmem:[#allocation4 + $0x1a1] sm:$0xff] }
 0x420   :  { %v6116_v11 = vmax.f32 %v5980_v2, %v6048_v22  ;;  %v14215_v39 = vpop.permute.xlu0 %3058  ;;  %v5981_v16 = vld [vmem:[#allocation4 + $0x1a8] sm:$0xff] }
 0x421   :  { %v6500_v52 = vld [vmem:[#allocation5 + $0x140] ss:$2 sm:$0xff]  ;;  %4676 = vrot.lane.b32.xlu0 %v4535_v62, %s10355_s1  ;;  %v14219_v51 = vpop.permute.xlu1 %3060 }
 0x422   :  { %v5982_v35 = vld [vmem:[#allocation4 + $0x1b0] sm:$0xff]  ;;  %v9690_v31 = vpack.c.bf16 %v6500_v52, %v6500_v52  ;;  %v6195_v9 = vmax.f32 %v6112_v5, %v6116_v11  ;;  %4678 = vrot.lane.b32.xlu1 %v4534_v43, %s10355_s1  ;;  %v14282_v22 = vld [vmem:[#allocation3 + $0x728] sm:$0xff] }
 0x423   :  { %v6049_v13 = vld [vmem:[#allocation4 + $0x1a9] sm:$0xff] }
 0x424   :  { %v6117_v12 = vmax.f32 %v5981_v16, %v6049_v13  ;;  %v6502_v17 = vld [vmem:[#allocation5 + $0x150] ss:$2 sm:$0xf]  ;;  %6511 = vst.msk [vmem:[#allocation6 + $0x20] sm:$0xf] %vm1100_vm0, %v9690_v31  ;;  %v6270_v28 = vadd.f32 %v14155_v46, %v6195_v9  ;;  %v14224_v48 = vpop.permute.xlu0 %3062 }
 0x425   :  { %v6050_v25 = vld [vmem:[#allocation4 + $0x1b1] sm:$0xff]  ;;  %v9691_v60 = vpack.c.bf16 %v6502_v17, %v6502_v17  ;;  %4944 = vrot.lane.b32.xlu0 %v10278_v42, %s10356_s2  ;;  %v14229_v5 = vpop.permute.xlu1 %3064  ;;  %v10279_v13 = vld [vmem:[%s16011_s6] ss:$0 sm:$0xff] }
 0x426   :  { %v6196_v38 = vmax.f32 %v6113_v56, %v6117_v12  ;;  %v6118_v27 = vmax.f32 %v5982_v35, %v6050_v25  ;;  %v6338_v44 = vmax.f32 %v6270_v28, 0.0  ;;  %4946 = vrot.lane.b32.xlu1 %v13935_v32, %s10356_s2  ;;  %v14288_v35 = vld [vmem:[#allocation3 + $0x740] sm:$0xff]  ;;  %v4223_v12 = vrot.slane %v13935_v32, 1  ;;  %v14299_v25 = vld [vmem:[#allocation3 + $0x758] sm:$0xff] }
 0x427   :  { %6512 = vst.msk [vmem:[#allocation6 + $0x24] sm:$0x3] %vm6455_vm4, %v9691_v60  ;;  %v16604_v32 = vrot.slane %v13614_v7, 1  ;;  %v4229_v7 = vrot.slane %v14062_v33, 1 }
 0x428   :  { %v6271_v55 = vadd.f32 %v14155_v46, %v6196_v38  ;;  %v6197_v47 = vmax.f32 %v6114_v4, %v6118_v27  ;;  %6406 = vst.msk [vmem:[#allocation5 + $0x180] sm:$0xff] %vm1501_vm1, %v6338_v44  ;;  %v14235_v19 = vpop.permute.xlu0 %3066  ;;  %v4827_v27 = vld [vmem:[#allocation3 + $0x770] sm:$0x3f]  ;;  %v4225_v44 = vrot.slane %v13946_v40, 1 }
 0x429   :  { %4948 = vrot.lane.b32.xlu0 %v13946_v40, %s10356_s2  ;;  %v14240_v63 = vpop.permute.xlu1 %3068  ;;  %v4227_v40 = vrot.slane %v13960_v20, 1 }
 0x42a   :  { %v6339_v29 = vmax.f32 %v6271_v55, 0.0  ;;  %v6272_v10 = vadd.f32 %v14155_v46, %v6197_v47  ;;  %4950 = vrot.lane.b32.xlu1 %v13960_v20, %s10356_s2 }
 0x42c   :  { %6407 = vst.msk [vmem:[#allocation5 + $0x188] sm:$0xff] %vm1501_vm1, %v6339_v29  ;;  %v6340_v0 = vmax.f32 %v6272_v10, 0.0  ;;  %v14245_v34 = vpop.permute.xlu0 %3070  ;;  %v14312_v10 = vsel %vm2794_vm2, %v16604_v32, %v4223_v12 }
 0x42d   :  { %4952 = vrot.lane.b32.xlu0 %v14062_v33, %s10356_s2  ;;  %v14249_v46 = vpop.permute.xlu1 %3072  ;;  %16605 = vst [vmem:[#allocation54_spill] sm:$0xff] %v14312_v10 }
 0x42e   :  { %6408 = vst.msk [vmem:[#allocation5 + $0x190] sm:$0xff] %vm1501_vm1, %v6340_v0  ;;  %v10026_v1 = vld [vmem:[#allocation6 + $0x20] sm:$0xff]   ;;  %4954 = vrot.lane.b32.xlu1 %v14074_v23, %s10356_s2 }
 0x42f   :  { %9918 = vmatprep.mubr.msk.bf16.mxu1 %vm1501_vm1, %v10026_v1 }
 0x430   :  { %v14254_v21 = vpop.permute.xlu0 %3074 }
 0x431   :  { %4956 = vrot.lane.b32.xlu0 %v14084_v41, %s10356_s2  ;;  %v14258_v24 = vpop.permute.xlu1 %3076 }
 0x432   :  { %4958 = vrot.lane.b32.xlu1 %v14128_v36, %s10356_s2 }
 0x433   :  { %v6514_v56 = vld [vmem:[#allocation5 + $0x180] ss:$2 sm:$0xff] }
 0x434   :  { %v9692_v37 = vpack.c.bf16 %v6514_v56, %v6514_v56  ;;  %v14262_v6 = vpop.permute.xlu0 %3078 }
 0x435   :  { %v6516_v30 = vld [vmem:[#allocation5 + $0x190] ss:$2 sm:$0xf]  ;;  %4960 = vrot.lane.b32.xlu0 %v14161_v14, %s10356_s2  ;;  %v14267_v15 = vpop.permute.xlu1 %3080 }
 0x436   :  { %v9693_v4 = vpack.c.bf16 %v6516_v30, %v6516_v30  ;;  %6525 = vst.msk [vmem:[#allocation6 + $0x28] sm:$0xf] %vm1100_vm0, %v9692_v37  ;;  %4962 = vrot.lane.b32.xlu1 %v14169_v18, %s10356_s2 }
 0x438   :  { %6526 = vst.msk [vmem:[#allocation6 + $0x2c] sm:$0x3] %vm6455_vm4, %v9693_v4  ;;  %v14272_v43 = vpop.permute.xlu0 %3486  ;;  %v14321_v4 = vsel %vm2794_vm2, %v4223_v12, %v4225_v44  ;;  %v14339_v12 = vsel %vm2794_vm2, %v4227_v40, %v4229_v7 }
 0x439   :  { %4964 = vrot.lane.b32.xlu0 %v14179_v45, %s10356_s2  ;;  %v14276_v2 = vpop.permute.xlu1 %3488  ;;  %16606 = vst [vmem:[#allocation14_spill] sm:$0xff] %v14321_v4  ;;  %16608 = vst [vmem:[#allocation106_spill] sm:$0xff] %v14339_v12 }
 0x43a   :  { %4966 = vrot.lane.b32.xlu1 %v14192_v8, %s10356_s2 }
 0x43c   :  { %v14280_v49 = vpop.permute.xlu0 %3490  ;;  %v9916_v16 = vpop.f32.mrf.mxu1 }
 0x43d   :  { %4968 = vrot.lane.b32.xlu0 %v14282_v22, %s10356_s2  ;;  %v14286_v52 = vpop.permute.xlu1 %3492  ;;  %v6717_v62 = vadd.f32 %v10279_v13, %v9916_v16 }
 0x43e   :  { %4970 = vrot.lane.b32.xlu1 %v14288_v35, %s10356_s2  ;;  %v6708_v9 = vpop.f32.mrf.mxu1 }
 0x43f   :  { %v10027_v11 = vld [vmem:[#allocation6 + $0x28] sm:$0xff]   ;;  %v6761_v17 = vmax.f32 %v6717_v62, 0.0  ;;  %v6709_v60 = vadd.f32 %v10279_v13, %v6708_v9  ;;  %v14331_v62 = vsel %vm2794_vm2, %v4225_v44, %v4227_v40  ;;  %v4231_v9 = vrot.slane %v14074_v23, 1 }
 0x440   :  { %9919 = vmatmul.mubr.msk.bf16.gmra.mxu1 %vm1501_vm1, %v10027_v11  ;;  %v14296_v31 = vpop.permute.xlu0 %3494  ;;  %v9917_v38 = vpop.f32.mrf.mxu1  ;;  %16607 = vst [vmem:[#allocation96_spill] sm:$0xff] %v14331_v62  ;;  %v4235_v23 = vrot.slane %v14128_v36, 1  ;;  %v4239_v36 = vrot.slane %v14169_v18, 1 }
 0x441   :  { %4972 = vrot.lane.b32.xlu0 %v14299_v25, %s10356_s2  ;;  %v14303_v28 = vpop.permute.xlu1 %3496  ;;  %v9704_v55 = vpack.c.bf16 %v6761_v17, %v6761_v17  ;;  %v6759_v47 = vmax.f32 %v6709_v60, 0.0  ;;  %v6720_v42 = vadd.f32 %v10279_v13, %v9917_v38  ;;  %v4233_v17 = vrot.slane %v14084_v41, 1 }
 0x442   :  { %4974 = vrot.lane.b32.xlu1 %v4827_v27, %s10356_s2  ;;  %v6711_v0 = vpop.f32.mrf.mxu1  ;;  %v14348_v38 = vsel %vm2794_vm2, %v4229_v7, %v4231_v9  ;;  %v4237_v41 = vrot.slane %v14161_v14, 1  ;;  %v14377_v14 = vrot.slane %v14179_v45, 1  ;;  %v5128_v7 = vrot.slane %v14282_v22, 1 }
 0x443   :  { %6842 = vst.msk [vmem:[#allocation7 + $0x18] sm:$0xf] %vm6835_vm5, %v9704_v55  ;;  %v9702_v1 = vpack.c.bf16 %v6759_v47, %v6759_v47  ;;  %v6762_v56 = vmax.f32 %v6720_v42, 0.0  ;;  %v6712_v37 = vadd.f32 %v10279_v13, %v6711_v0  ;;  %16610 = vst [vmem:[#allocation57_spill] sm:$0xff] %v14348_v38  ;;  %v14356_v44 = vsel %vm2794_vm2, %v4231_v9, %v4233_v17 }
 0x444   :  { %v14307_v29 = vpop.permute.xlu0 %3498  ;;  %16612 = vst [vmem:[#allocation55_spill] sm:$0xff] %v14356_v44  ;;  %v14364_v47 = vsel %vm2794_vm2, %v4233_v17, %v4235_v23  ;;  %v14372_v32 = vsel %vm2794_vm2, %v4235_v23, %v4237_v41  ;;  %v14388_v18 = vsel %vm2794_vm2, %v4237_v41, %v4239_v36  ;;  %v14399_v40 = vsel %vm2794_vm2, %v4239_v36, %v14377_v14  ;;  %v5121_v23 = vld [vmem:[#allocation3 + $0x770] sm:$0x7f] }
 0x445   :  { %5248 = vrot.lane.b32.xlu0 %v14312_v10, %s10357_s16  ;;  %v14318_v30 = vpop.permute.xlu1 %3500  ;;  %6840 = vst.msk [vmem:[#allocation7 + $0x10] sm:$0xf] %vm6835_vm5, %v9702_v1  ;;  %v9705_v11 = vpack.c.bf16 %v6762_v56, %v6762_v56  ;;  %v6760_v16 = vmax.f32 %v6712_v37, 0.0  ;;  %16614 = vst [vmem:[#allocation108_spill] sm:$0xff] %v14364_v47  ;;  %v5126_v37 = vrot.slane %v14192_v8, 1  ;;  %v5134_v36 = vrot.slane %v5121_v23, 1 }
 0x446   :  { %5250 = vrot.lane.b32.xlu1 %v14321_v4, %s10357_s16  ;;  %16616 = vst [vmem:[#allocation66_spill] sm:$0xff] %v14372_v32  ;;  %16620 = vst [vmem:[#allocation63_spill] sm:$0xff] %v14388_v18 }
 0x447   :  { %6843 = vst.msk [vmem:[#allocation7 + $0x1c] sm:$0xf] %vm6835_vm5, %v9705_v11  ;;  %v9703_v20 = vpack.c.bf16 %v6760_v16, %v6760_v16  ;;  %16622 = vst [vmem:[#allocation109_spill] sm:$0xff] %v14399_v40  ;;  %v5130_v16 = vrot.slane %v14288_v35, 1  ;;  %v5127_v8 = vsel %vm2794_vm2, %v14377_v14, %v5126_v37  ;;  %v5129_v17 = vsel %vm2794_vm2, %v5126_v37, %v5128_v7 }
 0x448   :  { %v14327_v13 = vpop.permute.xlu0 %3502 }
 0x449   :  { %5252 = vrot.lane.b32.xlu0 %v14331_v62, %s10357_s16  ;;  %v14336_v33 = vpop.permute.xlu1 %3504  ;;  %6841 = vst.msk [vmem:[#allocation7 + $0x14] sm:$0xf] %vm6835_vm5, %v9703_v20  ;;  %v5132_v20 = vrot.slane %v14299_v25, 1  ;;  %v5131_v22 = vsel %vm2794_vm2, %v5128_v7, %v5130_v16 }
 0x44a   :  { %5254 = vrot.lane.b32.xlu1 %v14339_v12, %s10357_s16 }
 0x44b   :  { %v5133_v25 = vsel %vm2794_vm2, %v5130_v16, %v5132_v20  ;;  %v5135_v37 = vsel %vm2794_vm2, %v5132_v20, %v5134_v36  ;;  %v10031_v20 = vld [vmem:[%s16012_s7 + $0x78] ss:$20 sps:$4 sm:$0xff]  }
 0x44c   :  { %v14345_v60 = vpop.permute.xlu0 %3506 }
 0x44d   :  { %16609 = vst [vmem:[#allocation26_spill] sm:$0xff] %v14345_v60  ;;  %5256 = vrot.lane.b32.xlu0 %v14348_v38, %s10357_s16  ;;  %v14353_v27 = vpop.permute.xlu1 %3508 }
 0x44e   :  { %16611 = vst [vmem:[#allocation16_spill] sm:$0xff] %v14353_v27  ;;  %5258 = vrot.lane.b32.xlu1 %v14356_v44, %s10357_s16  ;;  %v14381_v1 = vld [vmem:[#allocation7 + $0x18] sm:$0xff]   ;;  %v10280_v27 = vld [vmem:[#allocation3 + $0x540] sm:$0xff] }
 0x44f   :  { %16618 = vst [vmem:[#allocation85_spill] sm:$0xff] %v14381_v1  ;;  %v10043_v44 = vld [vmem:[%s16012_s7 + $0x4] ss:$20 sps:$4 sm:$0xff]   ;;  %v3210_v60 = vadd.f32 %v10280_v27, %v14183_v54 }
 0x450   :  { %v14361_v55 = vpop.permute.xlu0 %3510  ;;  %v14374_v0 = vld [vmem:[#allocation7 + $0x10] sm:$0xff]   ;;  %v10281_v54 = vld [vmem:[#allocation3 + $0x558] sm:$0xff] }
 0x451   :  { %16613 = vst [vmem:[#allocation15_spill] sm:$0xff] %v14361_v55  ;;  %5260 = vrot.lane.b32.xlu0 %v14364_v47, %s10357_s16  ;;  %v14369_v42 = vpop.permute.xlu1 %3512  ;;  %16617 = vst [vmem:[#allocation49_spill] sm:$0xff] %v14374_v0  ;;  %9938 = vmatprep.mubr.msk.bf16.mxu0 %vm7036_vm6, %v14374_v0  ;;  %v5490_v55 = vld [vmem:[#allocation3 + $0x700] sm:$0xff]  ;;  %v3211_v27 = vadd.f32 %v10281_v54, %v14197_v61 }
 0x452   :  { %16615 = vst [vmem:[#allocation67_spill] sm:$0xff] %v14369_v42  ;;  %5262 = vrot.lane.b32.xlu1 %v14372_v32, %s10357_s16  ;;  %9939 = vmatmul.mubr.msk.bf16.gmra.mxu0 %vm7036_vm6, %v14381_v1  ;;  %v5491_v42 = vld [vmem:[#allocation3 + $0x718] sm:$0xff] }
 0x454   :  { %v14383_v56 = vpop.permute.xlu0 %3514 }
 0x455   :  { %16619 = vst [vmem:[#allocation84_spill] sm:$0xff] %v14383_v56  ;;  %5264 = vrot.lane.b32.xlu0 %v14388_v18, %s10357_s16  ;;  %v14395_v45 = vpop.permute.xlu1 %3516  ;;  %v5486_v56 = vld [vmem:[#allocation3 + $0x6a0] sm:$0xff] }
 0x456   :  { %16621 = vst [vmem:[#allocation100_spill] sm:$0xff] %v14395_v45  ;;  %5266 = vrot.lane.b32.xlu1 %v14399_v40, %s10357_s16  ;;  %v5485_v45 = vld [vmem:[#allocation3 + $0x688] sm:$0xff] }
 0x458   :  { %v14404_v11 = vpop.permute.xlu0 %3782 }
 0x459   :  { %5268 = vrot.lane.b32.xlu0 %v5127_v8, %s10357_s16  ;;  %v14411_v9 = vpop.permute.xlu1 %3784 }
 0x45a   :  { %5270 = vrot.lane.b32.xlu1 %v5129_v17, %s10357_s16 }
 0x45c   :  { %v14415_v41 = vpop.permute.xlu0 %3786 }
 0x45d   :  { %5272 = vrot.lane.b32.xlu0 %v5131_v22, %s10357_s16  ;;  %v14419_v35 = vpop.permute.xlu1 %3788 }
 0x45e   :  { %5274 = vrot.lane.b32.xlu1 %v5133_v25, %s10357_s16 }
 0x460   :  { %v14423_v8 = vpop.permute.xlu0 %3790 }
 0x461   :  { %5276 = vrot.lane.b32.xlu0 %v5135_v37, %s10357_s16  ;;  %v14427_v17 = vpop.permute.xlu1 %3792 }
 0x462   :  { %5278 = vrot.lane.b32.xlu1 %v5134_v36, %s10357_s16  ;;  %v10033_v36 = vld [vmem:[%s16012_s7 + $0x7c] ss:$20 sps:$4 sm:$0xff]  }
 0x463   :  { %7069 = vmatprep.subr.bf16.mxu1 %v10033_v36 }
 0x464   :  { %v14430_v7 = vpop.permute.xlu0 %3794  ;;  %7070 = vmatpush1.bf16.msra.mxu1 %v10031_v20  ;;  %v10040_v20 = vld [vmem:[%s16012_s7 + $0x2c] ss:$20 sps:$4 sm:$0xff]  }
 0x465   :  { %16623 = vst [vmem:[#allocation50_spill] sm:$0xff] %v14430_v7  ;;  %v14432_v23 = vpop.permute.xlu1 %3796  ;;  %7071 = vmatprep.subr.bf16.mxu1 %v10036_v53  ;;  %v10038_v53 = vld [vmem:[%s16012_s7 + $0x28] ss:$20 sps:$4 sm:$0xff]   ;;  %v5701_v7 = vrot.slane %v5491_v42, 2 }
 0x466   :  { %16624 = vst [vmem:[#allocation60_spill] sm:$0xff] %v14432_v23  ;;  %v5488_v23 = vld [vmem:[#allocation3 + $0x6d0] sm:$0xff] }
 0x468   :  { %v14434_v22 = vpop.permute.xlu0 %3798  ;;  %7072 = vmatpush1.bf16.msra.mxu1 %v10034_v50 }
 0x469   :  { %16625 = vst [vmem:[#allocation87_spill] sm:$0xff] %v14434_v22  ;;  %v14436_v3 = vpop.permute.xlu1 %3800  ;;  %7073 = vmatprep.subr.bf16.mxu1 %v10040_v20 }
 0x46a   :  { %16626 = vst [vmem:[#allocation59_spill] sm:$0xff] %v14436_v3 }
 0x46c   :  { %v14438_v16 = vpop.permute.xlu0 %3802  ;;  %7074 = vmatpush1.bf16.msra.mxu1 %v10038_v53 }
 0x46d   :  { %16627 = vst [vmem:[#allocation101_spill] sm:$0xff] %v14438_v16  ;;  %v14440_v25 = vpop.permute.xlu1 %3804  ;;  %7075 = vmatprep.subr.bf16.mxu1 %v10043_v44 }
 0x46e   :  { %16628 = vst [vmem:[#allocation69_spill] sm:$0xff] %v14440_v25 }
 0x470   :  { %v14448_v37 = vpop.permute.xlu0 %3806 }
 0x471   :  { %16629 = vst [vmem:[#allocation51_spill] sm:$0xff] %v14448_v37  ;;  %v14453_v59 = vpop.permute.xlu1 %3808 }
 0x472   :  { %16630 = vst [vmem:[#allocation88_spill] sm:$0xff] %v14453_v59 }
 0x474   :  { %v14458_v1 = vpop.permute.xlu0 %3810 }
 0x475   :  { %16631 = vst [vmem:[#allocation90_spill] sm:$0xff] %v14458_v1  ;;  %v14460_v0 = vpop.permute.xlu1 %3812 }
 0x476   :  { %16632 = vst [vmem:[#allocation65_spill] sm:$0xff] %v14460_v0  ;;  %v10041_v0 = vld [vmem:[%s16012_s7] ss:$20 sps:$4 sm:$0xff]  }
 0x477   :  { %7076 = vmatpush1.bf16.msra.mxu1 %v10041_v0 }
 0x478   :  { %v14462_v40 = vpop.permute.xlu0 %4648 }
 0x479   :  { %v14464_v18 = vpop.permute.xlu1 %4650 }
 0x47c   :  { %v14466_v32 = vpop.permute.xlu0 %4652 }
 0x47d   :  { %v14468_v36 = vpop.permute.xlu1 %4654 }
 0x47e   :  { %16633 = vst [vmem:[#allocation103_spill] sm:$0xff] %v14468_v36  ;;  %v5691_v36 = vrot.slane %v5486_v56, 2 }
 0x480   :  { %v14476_v47 = vpop.permute.xlu0 %4656 }
 0x481   :  { %16634 = vst [vmem:[#allocation112_spill] sm:$0xff] %v14476_v47  ;;  %v14478_v50 = vpop.permute.xlu1 %4658  ;;  %v9936_v1 = vpop.f32.mrf.mxu0 }
 0x482   :  { %16635 = vst [vmem:[#allocation52_spill] sm:$0xff] %v14478_v50 }
 0x483   :  { %v7321_v37 = vpop.f32.mrf.mxu0 }
 0x484   :  { %v14486_v38 = vpop.permute.xlu0 %4660 }
 0x485   :  { %16636 = vst [vmem:[#allocation78_spill] sm:$0xff] %v14486_v38  ;;  %v14488_v59 = vpop.permute.xlu1 %4662  ;;  %v9937_v53 = vpop.f32.mrf.mxu0 }
 0x486   :  { %16637 = vst [vmem:[#allocation93_spill] sm:$0xff] %v14488_v59  ;;  %v5487_v59 = vld [vmem:[#allocation3 + $0x6b8] sm:$0xff] }
 0x487   :  { %v7324_v25 = vpop.f32.mrf.mxu0 }
 0x488   :  { %v14490_v20 = vpop.permute.xlu0 %4664 }
 0x489   :  { %16638 = vst [vmem:[#allocation70_spill] sm:$0xff] %v14490_v20  ;;  %v14492_v12 = vpop.permute.xlu1 %4666 }
 0x48a   :  { %16639 = vst [vmem:[#allocation102_spill] sm:$0xff] %v14492_v12 }
 0x48c   :  { %v14494_v16 = vpop.permute.xlu0 %4668 }
 0x48d   :  { %16640 = vst [vmem:[#allocation117_spill] sm:$0xff] %v14494_v16  ;;  %v14496_v3 = vpop.permute.xlu1 %4670 }
 0x48e   :  { %16641 = vst [vmem:[#allocation56_spill] sm:$0xff] %v14496_v3  ;;  %v5483_v3 = vld [vmem:[#allocation3 + $0x658] sm:$0xff] }
 0x490   :  { %v14498_v50 = vpop.permute.xlu0 %4672 }
 0x491   :  { %16642 = vst [vmem:[#allocation111_spill] sm:$0xff] %v14498_v50  ;;  %v14500_v62 = vpop.permute.xlu1 %4674  ;;  %v5481_v50 = vld [vmem:[#allocation3 + $0x628] sm:$0xff] }
 0x492   :  { %16643 = vst [vmem:[#allocation81_spill] sm:$0xff] %v14500_v62  ;;  %v5482_v62 = vld [vmem:[#allocation3 + $0x640] sm:$0xff]  ;;  %v5681_v22 = vrot.slane %v5481_v50, 2  ;;  %v14529_v50 = vld [vmem:[#allocation3 + $0x748] sm:$0xff] }
 0x493   :  { %v5683_v47 = vrot.slane %v5482_v62, 2  ;;  %16654 = vst [vmem:[#allocation58_spill] sm:$0xff] %v14529_v50 }
 0x494   :  { %v14502_v44 = vpop.permute.xlu0 %4676 }
 0x495   :  { %16644 = vst [vmem:[#allocation104_spill] sm:$0xff] %v14502_v44  ;;  %v14504_v0 = vpop.permute.xlu1 %4678  ;;  %v5484_v44 = vld [vmem:[#allocation3 + $0x670] sm:$0xff] }
 0x496   :  { %16645 = vst [vmem:[#allocation118_spill] sm:$0xff] %v14504_v0  ;;  %v5685_v0 = vrot.slane %v5483_v3, 2  ;;  %v5687_v4 = vrot.slane %v5484_v44, 2  ;;  %v5689_v3 = vrot.slane %v5485_v45, 2  ;;  %v5695_v44 = vrot.slane %v5488_v23, 2 }
 0x497   :  { %v5699_v23 = vrot.slane %v5490_v55, 2 }
 0x498   :  { %v14506_v1 = vpop.permute.xlu0 %4944  ;;  %v14543_v56 = vsel %vm3230_vm3, %v5685_v0, %v5687_v4 }
 0x499   :  { %v14508_v37 = vpop.permute.xlu1 %4946  ;;  %v14573_v61 = vsel %vm3230_vm3, %v5699_v23, %v5701_v7 }
 0x49c   :  { %v14510_v53 = vpop.permute.xlu0 %4948 }
 0x49d   :  { %16646 = vst [vmem:[#allocation61_spill] sm:$0xff] %v14510_v53  ;;  %v14512_v12 = vpop.permute.xlu1 %4950  ;;  %v14524_v53 = vld [vmem:[#allocation3 + $0x710] sm:$0x7f] }
 0x49e   :  { %16647 = vst [vmem:[#allocation115_spill] sm:$0xff] %v14512_v12  ;;  %v5693_v12 = vrot.slane %v5487_v59, 2  ;;  %v16656_v59 = vrot.slane %v13883_v58, 2 }
 0x4a0   :  { %v14514_v25 = vpop.permute.xlu0 %4952  ;;  %v14536_v62 = vsel %vm3230_vm3, %v16656_v59, %v5681_v22  ;;  %v14546_v45 = vsel %vm3230_vm3, %v5691_v36, %v5693_v12  ;;  %v14567_v55 = vsel %vm3230_vm3, %v5693_v12, %v5695_v44 }
 0x4a1   :  { %16648 = vst [vmem:[#allocation72_spill] sm:$0xff] %v14514_v25  ;;  %v14516_v16 = vpop.permute.xlu1 %4954  ;;  %v5489_v25 = vld [vmem:[#allocation3 + $0x6e8] sm:$0xff]  ;;  %16657 = vst [vmem:[#allocation124_spill] sm:$0xff] %v14546_v45  ;;  %v14562_v45 = vld [vmem:[#allocation3 + $0x778] sm:$0xff] }
 0x4a2   :  { %16649 = vst [vmem:[#allocation62_spill] sm:$0xff] %v14516_v16  ;;  %16659 = vst [vmem:[#allocation74_spill] sm:$0xff] %v14562_v45 }
 0x4a4   :  { %v14518_v20 = vpop.permute.xlu0 %4956 }
 0x4a5   :  { %16650 = vst [vmem:[#allocation123_spill] sm:$0xff] %v14518_v20  ;;  %v14520_v38 = vpop.permute.xlu1 %4958  ;;  %v14527_v20 = vsel %vm3230_vm3, %v5683_v47, %v5685_v0  ;;  %v14560_v0 = vsel %vm3230_vm3, %v5689_v3, %v5691_v36 }
 0x4a6   :  { %16651 = vst [vmem:[#allocation125_spill] sm:$0xff] %v14520_v38  ;;  %16653 = vst [vmem:[#allocation82_spill] sm:$0xff] %v14527_v20  ;;  %v5492_v38 = vld [vmem:[#allocation3 + $0x730] sm:$0xff]  ;;  %v14540_v20 = vsel %vm3230_vm3, %v5681_v22, %v5683_v47  ;;  %v3646_v47 = vadd.f32 %v14272_v43, %v3210_v60  ;;  %v14557_v22 = vsel %vm3230_vm3, %v5687_v4, %v5689_v3  ;;  %v10048_v4 = vld [vmem:[%s16012_s7 + $0x84] ss:$20 sps:$4 sm:$0xff]  }
 0x4a7   :  { %v5703_v42 = vrot.slane %v5492_v38, 2  ;;  %v10282_v60 = vld [vmem:[#allocation3 + $0x570] sm:$0xff]  ;;  %v3647_v3 = vadd.f32 %v14276_v2, %v3211_v27  ;;  %7182 = vmatprep.subr.bf16.mxu1 %v10048_v4  ;;  %v10284_v27 = vld [vmem:[#allocation3 + $0x5a0] sm:$0xff] }
 0x4a8   :  { %v14522_v16 = vpop.permute.xlu0 %4960  ;;  %v3212_v36 = vadd.f32 %v10282_v60, %v14206_v26  ;;  %v3942_v12 = vadd.f32 %v14404_v11, %v3646_v47  ;;  %v16661_v26 = vrot.slane %v14529_v50, 2  ;;  %v10286_v50 = vld [vmem:[#allocation3 + $0x5d0] sm:$0xff]  ;;  %v10288_v4 = vld [vmem:[#allocation3 + $0x600] sm:$0xff] }
 0x4a9   :  { %16652 = vst [vmem:[#allocation68_spill] sm:$0xff] %v14522_v16  ;;  %v14531_v10 = vpop.permute.xlu1 %4962  ;;  %v5697_v16 = vrot.slane %v5489_v25, 2  ;;  %v3943_v60 = vadd.f32 %v14411_v9, %v3647_v3  ;;  %v3218_v45 = vadd.f32 %v10288_v4, %v14235_v19  ;;  %v10290_v3 = vld [vmem:[#allocation3 + $0x630] sm:$0xff] }
 0x4aa   :  { %16655 = vst [vmem:[#allocation107_spill] sm:$0xff] %v14531_v10  ;;  %v14548_v10 = vld [vmem:[#allocation3 + $0x760] sm:$0xff]  ;;  %v14599_v2 = vsel %vm3230_vm3, %v5703_v42, %v16661_v26  ;;  %v3648_v47 = vadd.f32 %v14280_v49, %v3212_v36  ;;  %v10287_v26 = vld [vmem:[#allocation3 + $0x5e8] sm:$0xff]  ;;  %v10294_v4 = vld [vmem:[#allocation3 + $0x690] sm:$0xff] }
 0x4ab   :  { %16658 = vst [vmem:[#allocation44_spill] sm:$0xff] %v14548_v10  ;;  %v14570_v38 = vsel %vm3230_vm3, %v5695_v44, %v5697_v16  ;;  %v14583_v54 = vsel %vm3230_vm3, %v5697_v16, %v5699_v23  ;;  %v16660_v44 = vrot.slane %v14524_v53, 1  ;;  %v14594_v10 = vsel %vm3230_vm3, %v5701_v7, %v5703_v42  ;;  %v10283_v16 = vld [vmem:[#allocation3 + $0x588] sm:$0xff]  ;;  %v10285_v7 = vld [vmem:[#allocation3 + $0x5b8] sm:$0xff] }
 0x4ac   :  { %v14551_v59 = vpop.permute.xlu0 %4964  ;;  %v3213_v23 = vadd.f32 %v10283_v16, %v14211_v57  ;;  %v3216_v42 = vadd.f32 %v10286_v50, %v14224_v48  ;;  %v3217_v11 = vadd.f32 %v10287_v26, %v14229_v5  ;;  %v10289_v16 = vld [vmem:[#allocation3 + $0x618] sm:$0xff]  ;;  %v3944_v9 = vadd.f32 %v14415_v41, %v3648_v47  ;;  %v16662_v36 = vld [vmem:[#allocation80_spill] sm:$0xff] }
 0x4ad   :  { %v14564_v58 = vpop.permute.xlu1 %4966  ;;  %v14589_v25 = vsel %vm2794_vm2, %v14377_v14, %v16660_v44  ;;  %v3214_v14 = vadd.f32 %v10284_v27, %v14215_v39  ;;  %v3215_v44 = vadd.f32 %v10285_v7, %v14219_v51  ;;  %v3219_v39 = vadd.f32 %v10289_v16, %v14240_v63  ;;  %v10291_v50 = vld [vmem:[#allocation3 + $0x648] sm:$0xff]  ;;  %v10292_v27 = vld [vmem:[#allocation3 + $0x660] sm:$0xff]  ;;  %v10293_v63 = vld [vmem:[#allocation3 + $0x678] sm:$0xff] }
 0x4ae   :  { %v3649_v49 = vadd.f32 %v14286_v52, %v3213_v23  ;;  %v4373_v51 = vadd.f32 %v16662_v36, %v3942_v12  ;;  %v3220_v48 = vadd.f32 %v10290_v3, %v14245_v34  ;;  %v3221_v5 = vadd.f32 %v10291_v50, %v14249_v46  ;;  %v2719_v23 = vld [vmem:[#allocation3 + $0x6a8] sm:$0x3f]  ;;  %v16663_v47 = vld [vmem:[#allocation86_spill] sm:$0xff] }
 0x4af   :  { %v3222_v19 = vadd.f32 %v10292_v27, %v14254_v21  ;;  %v3650_v7 = vadd.f32 %v14296_v31, %v3214_v14  ;;  %v3223_v52 = vadd.f32 %v10293_v63, %v14258_v24  ;;  %v4374_v34 = vadd.f32 %v16663_v47, %v3943_v60  ;;  %v16667_v50 = vld [vmem:[#allocation16_spill] sm:$0xff]  ;;  %v16668_v27 = vld [vmem:[#allocation50_spill] sm:$0xff] }
 0x4b0   :  { %v14591_v43 = vpop.permute.xlu0 %4968  ;;  %v3945_v41 = vadd.f32 %v14419_v35, %v3649_v49  ;;  %v4808_v12 = vadd.f32 %v14462_v40, %v4373_v51  ;;  %v3224_v46 = vadd.f32 %v10294_v4, %v14262_v6  ;;  %v3225_v16 = vadd.f32 %v14267_v15, %v2719_v23  ;;  %v16664_v35 = vld [vmem:[#allocation94_spill] sm:$0xff]  ;;  %v16665_v51 = vld [vmem:[#allocation83_spill] sm:$0xff]  ;;  %v16674_v47 = vld [vmem:[#allocation60_spill] sm:$0xff] }
 0x4b1   :  { %v14610_v57 = vpop.permute.xlu1 %4970  ;;  %v3651_v21 = vadd.f32 %v14303_v28, %v3215_v44  ;;  %v3946_v31 = vadd.f32 %v14423_v8, %v3650_v7  ;;  %v3652_v24 = vadd.f32 %v14307_v29, %v3216_v42  ;;  %v4809_v36 = vadd.f32 %v14464_v18, %v4374_v34  ;;  %v16666_v42 = vld [vmem:[#allocation26_spill] sm:$0xff]  ;;  %v16672_v23 = vld [vmem:[#allocation15_spill] sm:$0xff] }
 0x4b2   :  { %v4375_v49 = vadd.f32 %v16664_v35, %v3944_v9  ;;  %v5104_v40 = vadd.f32 %v14506_v1, %v4808_v12  ;;  %v3653_v60 = vadd.f32 %v14318_v30, %v3217_v11  ;;  %v3654_v6 = vadd.f32 %v14327_v13, %v3218_v45  ;;  %v16669_v11 = vld [vmem:[#allocation54_spill] sm:$0xff] }
 0x4b3   :  { %v3655_v15 = vadd.f32 %v14336_v33, %v3219_v39  ;;  %v3947_v28 = vadd.f32 %v14427_v17, %v3651_v21  ;;  %v4376_v3 = vadd.f32 %v16665_v51, %v3945_v41  ;;  %v5105_v29 = vadd.f32 %v14508_v37, %v4809_v36  ;;  %v16670_v33 = vld [vmem:[#allocation103_spill] sm:$0xff]  ;;  %v16671_v17 = vld [vmem:[#allocation61_spill] sm:$0xff]  ;;  %v16675_v34 = vld [vmem:[#allocation14_spill] sm:$0xff] }
 0x4b4   :  { %v14620_v26 = vpop.permute.xlu0 %4972  ;;  %v4810_v8 = vadd.f32 %v14466_v32, %v4375_v49  ;;  %v3656_v9 = vadd.f32 %v16666_v42, %v3220_v48  ;;  %v3657_v1 = vadd.f32 %v16667_v50, %v3221_v5  ;;  %v3948_v30 = vadd.f32 %v16668_v27, %v3652_v24  ;;  %v16673_v37 = vld [vmem:[#allocation67_spill] sm:$0xff]  ;;  %v16676_v21 = vld [vmem:[#allocation112_spill] sm:$0xff]  ;;  %v16684_v50 = vld [vmem:[#allocation82_spill] sm:$0xff] }
 0x4b5   :  { %v14630_v14 = vpop.permute.xlu1 %4974  ;;  %v4377_v13 = vadd.f32 %v16669_v11, %v3946_v31  ;;  %v4811_v39 = vadd.f32 %v16670_v33, %v4376_v3  ;;  %v3658_v41 = vadd.f32 %v16672_v23, %v3222_v19  ;;  %v3659_v12 = vadd.f32 %v16673_v37, %v3223_v52  ;;  %v16677_v31 = vld [vmem:[#allocation115_spill] sm:$0xff]  ;;  %v16681_v51 = vld [vmem:[#allocation96_spill] sm:$0xff]  ;;  %v16687_v33 = vld [vmem:[#allocation69_spill] sm:$0xff] }
 0x4b6   :  { %v5106_v7 = vadd.f32 %v16671_v17, %v4810_v8  ;;  %v3949_v48 = vadd.f32 %v16674_v47, %v3653_v60  ;;  %v4378_v5 = vadd.f32 %v16675_v34, %v3947_v28  ;;  %v16680_v8 = vld [vmem:[#allocation87_spill] sm:$0xff]  ;;  %v4379_v60 = vadd.f32 %v16681_v51, %v3948_v30  ;;  %v16682_v28 = vld [vmem:[#allocation52_spill] sm:$0xff]  ;;  %v16689_v30 = vld [vmem:[#allocation78_spill] sm:$0xff] }
 0x4b7   :  { %v4812_v24 = vadd.f32 %v16676_v21, %v4377_v13  ;;  %v5107_v36 = vadd.f32 %v16677_v31, %v4811_v39  ;;  %v3950_v52 = vadd.f32 %v16680_v8, %v3654_v6  ;;  %v16688_v39 = vld [vmem:[#allocation106_spill] sm:$0xff]  ;;  %v16691_v47 = vld [vmem:[#allocation51_spill] sm:$0xff]  ;;  %v16694_v21 = vld [vmem:[#allocation57_spill] sm:$0xff] }
 0x4b8   :  { %v5249_v44 = vpop.permute.xlu0 %5248  ;;  %v4380_v6 = vadd.f32 %v16688_v39, %v3949_v48  ;;  %v3954_v34 = vadd.f32 %v16691_v47, %v3658_v41  ;;  %v16695_v48 = vld [vmem:[#allocation93_spill] sm:$0xff]  ;;  %v16698_v8 = vld [vmem:[#allocation55_spill] sm:$0xff]  ;;  %v16699_v51 = vld [vmem:[#allocation108_spill] sm:$0xff] }
 0x4b9   :  { %v5408_v18 = vadd.f32 %v5249_v44, %v5104_v40  ;;  %v5251_v45 = vpop.permute.xlu1 %5250  ;;  %v16679_v44 = vld [vmem:[#allocation100_spill] sm:$0xff] }
 0x4ba   :  { %v5409_v63 = vadd.f32 %v5251_v45, %v5105_v29  ;;  %v3661_v19 = vadd.f32 %v16679_v44, %v3225_v16  ;;  %v4813_v29 = vadd.f32 %v16682_v28, %v4378_v5  ;;  %v16686_v45 = vld [vmem:[#allocation101_spill] sm:$0xff]  ;;  %v3953_v16 = vadd.f32 %v16687_v33, %v3657_v1  ;;  %v16692_v5 = vld [vmem:[#allocation88_spill] sm:$0xff] }
 0x4bb   :  { %v5839_v32 = vadd.f32 %v14536_v62, %v5408_v18  ;;  %v16678_v62 = vld [vmem:[#allocation84_spill] sm:$0xff]  ;;  %v4381_v1 = vadd.f32 %v16694_v21, %v3950_v52  ;;  %v4815_v31 = vadd.f32 %v16695_v48, %v4380_v6  ;;  %v16701_v28 = vld [vmem:[#allocation125_spill] sm:$0xff]  ;;  %v16712_v48 = vld [vmem:[#allocation107_spill] sm:$0xff] }
 0x4bc   :  { %v5253_v4 = vpop.permute.xlu0 %5252  ;;  %v5840_v35 = vadd.f32 %v14540_v20, %v5409_v63  ;;  %v3660_v40 = vadd.f32 %v16678_v62, %v3224_v46  ;;  %v16683_v18 = vld [vmem:[#allocation72_spill] sm:$0xff]  ;;  %v16685_v20 = vld [vmem:[#allocation59_spill] sm:$0xff]  ;;  %v3952_v46 = vadd.f32 %v16686_v45, %v3656_v9 }
 0x4bd   :  { %5911 = vst.msk [vmem:[#allocation4 + $0x1c0] sm:$0xff] %vm1501_vm1, %v5839_v32  ;;  %v5410_v49 = vadd.f32 %v5253_v4, %v5106_v7  ;;  %v5255_v3 = vpop.permute.xlu1 %5254  ;;  %v5108_v42 = vadd.f32 %v16683_v18, %v4812_v24  ;;  %v3951_v13 = vadd.f32 %v16685_v20, %v3655_v15  ;;  %v4814_v7 = vadd.f32 %v16689_v30, %v4379_v60  ;;  %v16690_v32 = vld [vmem:[#allocation62_spill] sm:$0xff] }
 0x4be   :  { %5912 = vst.msk [vmem:[#allocation4 + $0x1c8] sm:$0xff] %vm1501_vm1, %v5840_v35  ;;  %v5411_v11 = vadd.f32 %v5255_v3, %v5107_v36  ;;  %v5109_v63 = vadd.f32 %v16690_v32, %v4813_v29  ;;  %v3955_v15 = vadd.f32 %v16692_v5, %v3659_v12  ;;  %v16693_v4 = vld [vmem:[#allocation90_spill] sm:$0xff]  ;;  %v16696_v36 = vld [vmem:[#allocation123_spill] sm:$0xff]  ;;  %v4383_v12 = vadd.f32 %v16699_v51, %v3952_v46 }
 0x4bf   :  { %v5841_v27 = vadd.f32 %v16684_v50, %v5410_v49  ;;  %v3956_v9 = vadd.f32 %v16693_v4, %v3660_v40  ;;  %v5110_v35 = vadd.f32 %v16696_v36, %v4814_v7  ;;  %v4382_v41 = vadd.f32 %v16698_v8, %v3951_v13  ;;  %v16700_v60 = vld [vmem:[#allocation66_spill] sm:$0xff] }
 0x4c0   :  { %v5257_v17 = vpop.permute.xlu0 %5256  ;;  %v5842_v23 = vadd.f32 %v14543_v56, %v5411_v11  ;;  %v16697_v56 = vld [vmem:[#allocation65_spill] sm:$0xff]  ;;  %v4384_v40 = vadd.f32 %v16700_v60, %v3953_v16  ;;  %v5111_v29 = vadd.f32 %v16701_v28, %v4815_v31  ;;  %v16702_v50 = vld [vmem:[#allocation70_spill] sm:$0xff]  ;;  %v16705_v16 = vld [vmem:[#allocation124_spill] sm:$0xff]  ;;  %v16708_v32 = vrot.slane %v14524_v53, 1 }
 0x4c1   :  { %5913 = vst.msk [vmem:[#allocation4 + $0x1d0] sm:$0xff] %vm1501_vm1, %v5841_v27  ;;  %v5412_v37 = vadd.f32 %v5257_v17, %v5108_v42  ;;  %v5259_v24 = vpop.permute.xlu1 %5258  ;;  %v3957_v44 = vadd.f32 %v16697_v56, %v3661_v19  ;;  %v16703_v27 = vld [vmem:[#allocation63_spill] sm:$0xff]  ;;  %v16704_v19 = vld [vmem:[#allocation109_spill] sm:$0xff]  ;;  %v4387_v13 = vadd.f32 %v14589_v25, %v3956_v9  ;;  %v16706_v17 = vld [vmem:[#allocation102_spill] sm:$0xff] }
 0x4c2   :  { %5914 = vst.msk [vmem:[#allocation4 + $0x1d8] sm:$0xff] %vm1501_vm1, %v5842_v23  ;;  %v5413_v62 = vadd.f32 %v5259_v24, %v5109_v63  ;;  %v4385_v11 = vadd.f32 %v16703_v27, %v3954_v34  ;;  %v4386_v20 = vadd.f32 %v16704_v19, %v3955_v15  ;;  %v4817_v30 = vadd.f32 %v16706_v17, %v4382_v41  ;;  %v16709_v23 = vld [vmem:[#allocation68_spill] sm:$0xff]  ;;  %v16713_v56 = vld [vmem:[#allocation81_spill] sm:$0xff] }
 0x4c3   :  { %v5843_v49 = vadd.f32 %v14557_v22, %v5412_v37  ;;  %v4816_v22 = vadd.f32 %v16702_v50, %v4381_v1  ;;  %v4388_v63 = vadd.f32 %v16708_v32, %v3957_v44  ;;  %v16710_v9 = vld [vmem:[#allocation56_spill] sm:$0xff]  ;;  %v16711_v1 = vld [vmem:[#allocation111_spill] sm:$0xff]  ;;  %v16715_v50 = vld [vmem:[#allocation118_spill] sm:$0xff] }
 0x4c4   :  { %v5984_v3 = vld [vmem:[#allocation4 + $0x1c0] sm:$0xff]  ;;  %v5261_v52 = vpop.permute.xlu0 %5260  ;;  %v5844_v18 = vadd.f32 %v14560_v0, %v5413_v62  ;;  %v16707_v0 = vld [vmem:[#allocation117_spill] sm:$0xff]  ;;  %v4819_v21 = vadd.f32 %v16710_v9, %v4384_v40  ;;  %v4820_v24 = vadd.f32 %v16711_v1, %v4385_v11  ;;  %v5113_v31 = vadd.f32 %v16712_v48, %v4817_v30 }
 0x4c5   :  { %5915 = vst.msk [vmem:[#allocation4 + $0x1e0] sm:$0xff] %vm1501_vm1, %v5843_v49  ;;  %v5414_v42 = vadd.f32 %v5261_v52, %v5110_v35  ;;  %v6052_v45 = vld [vmem:[#allocation4 + $0x1c1] sm:$0xff]  ;;  %v5263_v46 = vpop.permute.xlu1 %5262  ;;  %v4818_v7 = vadd.f32 %v16707_v0, %v4383_v12  ;;  %v5112_v37 = vadd.f32 %v16709_v23, %v4816_v22  ;;  %v14708_v49 = vld [vmem:[%s16009_s4] ss:$0 sm:$0xff]  ;;  %v4821_v44 = vadd.f32 %v16713_v56, %v4386_v20 }
 0x4c6   :  { %v6120_v33 = vmax.f32 %v5984_v3, %v6052_v45  ;;  %5916 = vst.msk [vmem:[#allocation4 + $0x1e8] sm:$0xff] %vm1501_vm1, %v5844_v18  ;;  %v5415_v6 = vadd.f32 %v5263_v46, %v5111_v29  ;;  %v5985_v47 = vld [vmem:[#allocation4 + $0x1c8] sm:$0xff]  ;;  %v5115_v3 = vadd.f32 %v14564_v58, %v4819_v21  ;;  %v4823_v22 = vadd.f32 %v16715_v50, %v4388_v63 }
 0x4c7   :  { %v5845_v39 = vadd.f32 %v16705_v16, %v5414_v42  ;;  %v16714_v60 = vld [vmem:[#allocation104_spill] sm:$0xff] }
 0x4c8   :  { %v5986_v34 = vld [vmem:[#allocation4 + $0x1d0] sm:$0xff]  ;;  %v5265_v5 = vpop.permute.xlu0 %5264  ;;  %v5846_v4 = vadd.f32 %v14567_v55, %v5415_v6  ;;  %v5114_v55 = vadd.f32 %v14551_v59, %v4818_v7  ;;  %v4822_v40 = vadd.f32 %v16714_v60, %v4387_v13  ;;  %v5116_v59 = vadd.f32 %v14591_v43, %v4820_v24 }
 0x4c9   :  { %v6053_v25 = vld [vmem:[#allocation4 + $0x1c9] sm:$0xff]  ;;  %5917 = vst.msk [vmem:[#allocation4 + $0x1f0] sm:$0xff] %vm1501_vm1, %v5845_v39  ;;  %v6054_v36 = vld [vmem:[#allocation4 + $0x1d1] sm:$0xff]  ;;  %v5416_v53 = vadd.f32 %v5265_v5, %v5112_v37  ;;  %v5267_v35 = vpop.permute.xlu1 %5266 }
 0x4ca   :  { %v6121_v15 = vmax.f32 %v5985_v47, %v6053_v25  ;;  %v6122_v62 = vmax.f32 %v5986_v34, %v6054_v36  ;;  %5918 = vst.msk [vmem:[#allocation4 + $0x1f8] sm:$0xff] %vm1501_vm1, %v5846_v4  ;;  %v5417_v51 = vadd.f32 %v5267_v35, %v5113_v31  ;;  %v5118_v46 = vadd.f32 %v14620_v26, %v4822_v40  ;;  %v16718_v26 = vld [vmem:[#allocation58_spill] sm:$0xff] }
 0x4cb   :  { %v5847_v41 = vadd.f32 %v14570_v38, %v5416_v53  ;;  %v16719_v32 = vrot.slane %v16718_v26, 2 }
 0x4cc   :  { %v5988_v8 = vld [vmem:[#allocation4 + $0x1e0] sm:$0xff]  ;;  %v5269_v12 = vpop.permute.xlu0 %5268  ;;  %v5848_v28 = vadd.f32 %v14583_v54, %v5417_v51  ;;  %v5117_v54 = vadd.f32 %v14610_v57, %v4821_v44 }
 0x4cd   :  { %v6056_v52 = vld [vmem:[#allocation4 + $0x1e1] sm:$0xff]  ;;  %5919 = vst.msk [vmem:[#allocation4 + $0x200] sm:$0xff] %vm1501_vm1, %v5847_v41  ;;  %v5418_v29 = vadd.f32 %v5269_v12, %v5114_v55  ;;  %v5271_v18 = vpop.permute.xlu1 %5270 }
 0x4ce   :  { %v6124_v42 = vmax.f32 %v5988_v8, %v6056_v52  ;;  %v5989_v27 = vld [vmem:[#allocation4 + $0x1e8] sm:$0xff]  ;;  %5920 = vst.msk [vmem:[#allocation4 + $0x208] sm:$0xff] %vm1501_vm1, %v5848_v28  ;;  %v5419_v58 = vadd.f32 %v5271_v18, %v5115_v3 }
 0x4cf   :  { %v5849_v19 = vadd.f32 %v14573_v61, %v5418_v29  ;;  %v5119_v61 = vadd.f32 %v14630_v14, %v4823_v22  ;;  %v16716_v57 = vld [vmem:[#allocation44_spill] sm:$0xff] }
 0x4d0   :  { %v5990_v38 = vld [vmem:[#allocation4 + $0x1f0] sm:$0xff]  ;;  %v5273_v20 = vpop.permute.xlu0 %5272  ;;  %v6203_v13 = vmax.f32 %v6120_v33, %v6124_v42  ;;  %v5850_v43 = vadd.f32 %v14594_v10, %v5419_v58  ;;  %v16717_v7 = vrot.slane %v16716_v57, 2 }
 0x4d1   :  { %v6057_v11 = vld [vmem:[#allocation4 + $0x1e9] sm:$0xff]  ;;  %v6058_v16 = vld [vmem:[#allocation4 + $0x1f1] sm:$0xff]  ;;  %5921 = vst.msk [vmem:[#allocation4 + $0x210] sm:$0xff] %vm1501_vm1, %v5849_v19  ;;  %v5420_v39 = vadd.f32 %v5273_v20, %v5116_v59  ;;  %v5275_v6 = vpop.permute.xlu1 %5274 }
 0x4d2   :  { %v6125_v45 = vmax.f32 %v5989_v27, %v6057_v11  ;;  %v6278_v17 = vadd.f32 %v14708_v49, %v6203_v13  ;;  %v6126_v0 = vmax.f32 %v5990_v38, %v6058_v16  ;;  %5922 = vst.msk [vmem:[#allocation4 + $0x218] sm:$0xff] %vm1501_vm1, %v5850_v43  ;;  %v5708_v63 = vsel %vm3230_vm3, %v16719_v32, %v16717_v7 }
 0x4d3   :  { %v5851_v33 = vadd.f32 %v14599_v2, %v5420_v39  ;;  %v5421_v23 = vadd.f32 %v5275_v6, %v5117_v54  ;;  %v16722_v2 = vmov %v16717_v7 }
 0x4d4   :  { %v6204_v30 = vmax.f32 %v6121_v15, %v6125_v45  ;;  %v5277_v10 = vpop.permute.xlu0 %5276  ;;  %v6346_v37 = vmax.f32 %v6278_v17, 0.0  ;;  %v6205_v34 = vmax.f32 %v6122_v62, %v6126_v0  ;;  %v5992_v25 = vld [vmem:[#allocation4 + $0x200] sm:$0xff]  ;;  %v16720_v15 = vld [vmem:[#allocation74_spill] sm:$0xff] }
 0x4d5   :  { %v5422_v5 = vadd.f32 %v5277_v10, %v5118_v46  ;;  %5923 = vst.msk [vmem:[#allocation4 + $0x220] sm:$0xff] %vm1501_vm1, %v5851_v33  ;;  %v5852_v14 = vadd.f32 %v5708_v63, %v5421_v23  ;;  %v16721_v4 = vrot.slane %v16720_v15, 2  ;;  %v5279_v21 = vpop.permute.xlu1 %5278  ;;  %v6060_v48 = vld [vmem:[#allocation4 + $0x201] sm:$0xff]  ;;  %v14766_v33 = vld [vmem:[%s16011_s6] ss:$0 sm:$0xff] }
 0x4d6   :  { %v6279_v47 = vadd.f32 %v14708_v49, %v6204_v30  ;;  %6414 = vst.msk [vmem:[#allocation5 + $0x1c0] sm:$0xff] %vm1501_vm1, %v6346_v37  ;;  %v6280_v24 = vadd.f32 %v14708_v49, %v6205_v34  ;;  %v5423_v36 = vadd.f32 %v5279_v21, %v5119_v61  ;;  %v6128_v53 = vmax.f32 %v5992_v25, %v6060_v48  ;;  %v5993_v62 = vld [vmem:[#allocation4 + $0x208] sm:$0xff]  ;;  %v10046_v23 = vld [vmem:[%s16012_s7 + $0x80] ss:$20 sps:$4 sm:$0xff]   ;;  %v10051_v34 = vld [vmem:[%s16012_s7 + $0x5c] ss:$20 sps:$4 sm:$0xff]  }
 0x4d7   :  { %v5710_v9 = vsel %vm3230_vm3, %v16722_v2, %v16721_v4  ;;  %5924 = vst.msk [vmem:[#allocation4 + $0x228] sm:$0xff] %vm1501_vm1, %v5852_v14  ;;  %v16723_v55 = vmov %v16721_v4  ;;  %v16724_v61 = vmov 0   ;;  %v14779_v4 = vld [vmem:[#allocation7] sm:$0xff]   ;;  %v10049_v2 = vld [vmem:[%s16012_s7 + $0x58] ss:$20 sps:$4 sm:$0xff]  }
 0x4d8   :  { %v6347_v1 = vmax.f32 %v6279_v47, 0.0  ;;  %v5853_v31 = vadd.f32 %v5710_v9, %v5422_v5  ;;  %v6348_v35 = vmax.f32 %v6280_v24, 0.0  ;;  %v5994_v56 = vld [vmem:[#allocation4 + $0x210] sm:$0xff]  ;;  %v5854_v8 = vadd.f32 %v16723_v55, %v5423_v36  ;;  %v14790_v24 = vld [vmem:[#allocation7 + $0x8] sm:$0xff]  }
 0x4d9   :  { %v6061_v44 = vld [vmem:[#allocation4 + $0x209] sm:$0xff]  ;;  %v6062_v51 = vld [vmem:[#allocation4 + $0x211] sm:$0xff] }
 0x4da   :  { %6415 = vst.msk [vmem:[#allocation5 + $0x1c8] sm:$0xff] %vm1501_vm1, %v6347_v1  ;;  %5925 = vst.msk [vmem:[#allocation4 + $0x230] sm:$0xff] %vm1501_vm1, %v5853_v31  ;;  %v6129_v41 = vmax.f32 %v5993_v62, %v6061_v44  ;;  %v6130_v12 = vmax.f32 %v5994_v56, %v6062_v51  ;;  %v16726_v44 = vld [vmem:[#allocation85_spill] sm:$0xff] }
 0x4db   :  { %6416 = vst.msk [vmem:[#allocation5 + $0x1d0] sm:$0xff] %vm1501_vm1, %v6348_v35  ;;  %v10052_v55 = vld [vmem:[%s16012_s7 + $0x30] ss:$20 sps:$4 sm:$0xff]   ;;  %v10057_v51 = vld [vmem:[%s16012_s7 + $0xc] ss:$20 sps:$4 sm:$0xff]  }
 0x4dc   :  { %5927 = vst.msk [vmem:[#allocation4 + $0x238] sm:$0x3f] %vm5926_vm7, %v5854_v8  ;;  %v6133_v60 = vld [vmem:[#allocation4 + $0x220] sm:$0xff]  ;;  %v10054_v8 = vld [vmem:[%s16012_s7 + $0x34] ss:$20 sps:$4 sm:$0xff]  }
 0x4de   :  { %v6134_v40 = vld [vmem:[#allocation4 + $0x228] sm:$0xff] }
 0x4df   :  { %v6138_v3 = vld [vmem:[#allocation4 + $0x221] sm:$0xff] }
 0x4e0   :  { %v6143_v52 = vmax.f32 %v6133_v60, %v6138_v3 }
 0x4e1   :  { %v6135_v28 = vld [vmem:[#allocation4 + $0x230] sm:$0xff]  ;;  %v6528_v18 = vld [vmem:[#allocation5 + $0x1c0] ss:$2 sm:$0xff] }
 0x4e2   :  { %v6139_v29 = vld [vmem:[#allocation4 + $0x229] sm:$0xff]  ;;  %v9694_v50 = vpack.c.bf16 %v6528_v18, %v6528_v18  ;;  %v6211_v22 = vmax.f32 %v6128_v53, %v6143_v52 }
 0x4e3   :  { %v6144_v42 = vmax.f32 %v6134_v40, %v6139_v29  ;;  %v6140_v59 = vld [vmem:[#allocation4 + $0x231] sm:$0xff] }
 0x4e4   :  { %v6145_v38 = vmax.f32 %v6135_v28, %v6140_v59  ;;  %v6530_v11 = vld [vmem:[#allocation5 + $0x1d0] ss:$2 sm:$0xf]  ;;  %6539 = vst.msk [vmem:[#allocation6 + $0x30] sm:$0xf] %vm1100_vm0, %v9694_v50  ;;  %v6286_v19 = vadd.f32 %v14708_v49, %v6211_v22 }
 0x4e5   :  { %v6212_v27 = vmax.f32 %v6129_v41, %v6144_v42  ;;  %v9695_v58 = vpack.c.bf16 %v6530_v11, %v6530_v11  ;;  %v16725_v53 = vld [vmem:[#allocation49_spill] sm:$0xff] }
 0x4e6   :  { %v6213_v13 = vmax.f32 %v6130_v12, %v6145_v38  ;;  %v6354_v45 = vmax.f32 %v6286_v19, 0.0  ;;  %v10055_v41 = vld [vmem:[%s16012_s7 + $0x8] ss:$20 sps:$4 sm:$0xff]  }
 0x4e7   :  { %v6287_v20 = vadd.f32 %v14708_v49, %v6212_v27  ;;  %6540 = vst.msk [vmem:[#allocation6 + $0x34] sm:$0x3] %vm6455_vm4, %v9695_v58 }
 0x4e8   :  { %v6288_v46 = vadd.f32 %v14708_v49, %v6213_v13  ;;  %6422 = vst.msk [vmem:[#allocation5 + $0x200] sm:$0xff] %vm1501_vm1, %v6354_v45 }
 0x4e9   :  { %v6355_v54 = vmax.f32 %v6287_v20, 0.0 }
 0x4ea   :  { %v6356_v16 = vmax.f32 %v6288_v46, 0.0 }
 0x4eb   :  { %6423 = vst.msk [vmem:[#allocation5 + $0x208] sm:$0xff] %vm1501_vm1, %v6355_v54 }
 0x4ec   :  { %6424 = vst.msk [vmem:[#allocation5 + $0x210] sm:$0xff] %vm1501_vm1, %v6356_v16 }
 0x4ee   :  { %v10030_v43 = vld [vmem:[#allocation6 + $0x30] sm:$0xff]  }
 0x4ef   :  { %9922 = vmatprep.mubr.msk.bf16.mxu1 %vm1501_vm1, %v10030_v43 }
 0x4f2   :  { %v6542_v39 = vld [vmem:[#allocation5 + $0x200] ss:$2 sm:$0xff] }
 0x4f3   :  { %v9696_v6 = vpack.c.bf16 %v6542_v39, %v6542_v39  ;;  %v6544_v17 = vld [vmem:[#allocation5 + $0x210] ss:$2 sm:$0xf] }
 0x4f4   :  { %v9697_v30 = vpack.c.bf16 %v6544_v17, %v6544_v17 }
 0x4f5   :  { %6553 = vst.msk [vmem:[#allocation6 + $0x38] sm:$0xf] %vm1100_vm0, %v9696_v6 }
 0x4f6   :  { %6554 = vst.msk [vmem:[#allocation6 + $0x3c] sm:$0x3] %vm6455_vm4, %v9697_v30 }
 0x4fd   :  { %v10037_v0 = vld [vmem:[#allocation6 + $0x38] sm:$0xff]  }
 0x4fe   :  { %9923 = vmatmul.mubr.msk.bf16.gmra.mxu1 %vm1501_vm1, %v10037_v0 }
 0x4ff   :  { %7093 = vmatprep.mubr.bf16.mxu1 %v16724_v61 }
 0x500   :  { %v9920_v49 = vpop.f32.mrf.mxu1 }
 0x501   :  { %v6733_v57 = vadd.f32 %v14766_v33, %v9920_v49 }
 0x502   :  { %v6724_v7 = vpop.f32.mrf.mxu1 }
 0x503   :  { %v6765_v26 = vmax.f32 %v6733_v57, 0.0  ;;  %v6725_v32 = vadd.f32 %v14766_v33, %v6724_v7 }
 0x504   :  { %v9921_v63 = vpop.f32.mrf.mxu1 }
 0x505   :  { %v9708_v10 = vpack.c.bf16 %v6765_v26, %v6765_v26  ;;  %v6763_v37 = vmax.f32 %v6725_v32, 0.0  ;;  %v6736_v47 = vadd.f32 %v14766_v33, %v9921_v63 }
 0x506   :  { %v6727_v25 = vpop.f32.mrf.mxu1  ;;  %9462 = vmatmul.mubr.msk.bf16.vlgmr.msra.gmra.mxu1 %vm7036_vm6, %v14779_v4 }
 0x507   :  { %6846 = vst.msk [vmem:[#allocation7 + $0x28] sm:$0xf] %vm6835_vm5, %v9708_v10  ;;  %v9706_v5 = vpack.c.bf16 %v6763_v37, %v6763_v37  ;;  %v6766_v14 = vmax.f32 %v6736_v47, 0.0  ;;  %v6728_v15 = vadd.f32 %v14766_v33, %v6727_v25  ;;  %7103 = vmatprep.mubr.bf16.mxu1 %v16724_v61  ;;  %7183 = vmatpush1.bf16.msra.mxu1 %v10046_v23 }
 0x508   :  { %7184 = vmatprep.subr.bf16.mxu1 %v10051_v34 }
 0x509   :  { %6844 = vst.msk [vmem:[#allocation7 + $0x20] sm:$0xf] %vm6835_vm5, %v9706_v5  ;;  %v9709_v9 = vpack.c.bf16 %v6766_v14, %v6766_v14  ;;  %v6764_v21 = vmax.f32 %v6728_v15, 0.0 }
 0x50b   :  { %6847 = vst.msk [vmem:[#allocation7 + $0x2c] sm:$0xf] %vm6835_vm5, %v9709_v9  ;;  %v9707_v1 = vpack.c.bf16 %v6764_v21, %v6764_v21  ;;  %7185 = vmatpush1.bf16.msra.mxu1 %v10049_v2 }
 0x50c   :  { %7186 = vmatprep.subr.bf16.mxu1 %v10054_v8 }
 0x50d   :  { %6845 = vst.msk [vmem:[#allocation7 + $0x24] sm:$0xf] %vm6835_vm5, %v9707_v1 }
 0x50e   :  { %9463 = vmatmul.mubr.msk.bf16.gmra.mxu1 %vm7036_vm6, %v14790_v24 }
 0x50f   :  { %7113 = vmatprep.mubr.bf16.mxu1 %v16724_v61  ;;  %7187 = vmatpush1.bf16.msra.mxu1 %v10052_v55 }
 0x510   :  { %7188 = vmatprep.subr.bf16.mxu1 %v10057_v51 }
 0x512   :  { %v14797_v31 = vld [vmem:[#allocation7 + $0x28] sm:$0xff]   ;;  %v9940_v36 = vpop.f32.mrf.mxu0 }
 0x513   :  { %7418 = vst.msk [vmem:[#allocation8 + $0x110] sm:$0xff] %vm7036_vm6, %v9940_v36  ;;  %7189 = vmatpush1.bf16.msra.mxu1 %v10055_v41 }
 0x514   :  { %v14795_v48 = vld [vmem:[#allocation7 + $0x20] sm:$0xff]   ;;  %v7337_v35 = vpop.f32.mrf.mxu0 }
 0x515   :  { %9942 = vmatprep.mubr.msk.bf16.mxu0 %vm7036_vm6, %v14795_v48  ;;  %7408 = vst.msk [vmem:[#allocation8 + $0xc0] sm:$0xff] %vm7036_vm6, %v7337_v35 }
 0x516   :  { %9464 = vmatmul.mubr.msk.bf16.gmra.mxu1 %vm7036_vm6, %v16725_v53  ;;  %9943 = vmatmul.mubr.msk.bf16.gmra.mxu0 %vm7036_vm6, %v14797_v31  ;;  %v9941_v62 = vpop.f32.mrf.mxu0 }
 0x517   :  { %7123 = vmatprep.mubr.bf16.mxu1 %v16724_v61  ;;  %7423 = vst.msk [vmem:[#allocation8 + $0x138] sm:$0xff] %vm7036_vm6, %v9941_v62 }
 0x518   :  { %v7340_v56 = vpop.f32.mrf.mxu0 }
 0x519   :  { %7413 = vst.msk [vmem:[#allocation8 + $0xe8] sm:$0xff] %vm7036_vm6, %v7340_v56 }
 0x51e   :  { %9465 = vmatmul.mubr.msk.bf16.gmra.mxu1 %vm7036_vm6, %v16726_v44 }
 0x51f   :  { %7133 = vmatprep.mubr.bf16.mxu1 %v16724_v61 }
 0x526   :  { %9466 = vmatmul.mubr.msk.bf16.gmra.mxu1 %vm7036_vm6, %v14795_v48 }
 0x527   :  { %7143 = vmatprep.mubr.bf16.mxu1 %v16724_v61 }
 0x52e   :  { %9467 = vmatmul.mubr.msk.bf16.gmra.mxu1 %vm7036_vm6, %v14797_v31 }
 0x52f   :  { %7153 = vmatprep.mubr.bf16.mxu1 %v16724_v61 }
 0x5be   :  { %v9924_v12 = vpop.f32.mrf.mxu1 }
 0x5bf   :  { %v6749_v60 = vadd.f32 %v14766_v33, %v9924_v12 }
 0x5c0   :  { %v6740_v40 = vpop.f32.mrf.mxu1 }
 0x5c1   :  { %v6769_v3 = vmax.f32 %v6749_v60, 0.0  ;;  %v6741_v52 = vadd.f32 %v14766_v33, %v6740_v40 }
 0x5c2   :  { %v9925_v28 = vpop.f32.mrf.mxu1 }
 0x5c3   :  { %v9712_v29 = vpack.c.bf16 %v6769_v3, %v6769_v3  ;;  %v6767_v18 = vmax.f32 %v6741_v52, 0.0  ;;  %v6752_v42 = vadd.f32 %v14766_v33, %v9925_v28 }
 0x5c4   :  { %v6743_v50 = vpop.f32.mrf.mxu1 }
 0x5c5   :  { %6850 = vst.msk [vmem:[#allocation7 + $0x38] sm:$0xf] %vm6835_vm5, %v9712_v29  ;;  %v9710_v22 = vpack.c.bf16 %v6767_v18, %v6767_v18  ;;  %v6770_v59 = vmax.f32 %v6752_v42, 0.0  ;;  %v6744_v27 = vadd.f32 %v14766_v33, %v6743_v50 }
 0x5c6   :  { %v14836_v38 = vpop.f32.mrf.mxu1 }
 0x5c7   :  { %6848 = vst.msk [vmem:[#allocation7 + $0x30] sm:$0xf] %vm6835_vm5, %v9710_v22  ;;  %v9713_v11 = vpack.c.bf16 %v6770_v59, %v6770_v59  ;;  %v6768_v19 = vmax.f32 %v6744_v27, 0.0  ;;  %7384 = vst [vmem:[#allocation8] sm:$0xff] %v14836_v38 }
 0x5c8   :  { %v7097_v58 = vpop.f32.mrf.mxu1 }
 0x5c9   :  { %6851 = vst.msk [vmem:[#allocation7 + $0x3c] sm:$0xf] %vm6835_vm5, %v9713_v11  ;;  %v9711_v20 = vpack.c.bf16 %v6768_v19, %v6768_v19  ;;  %7385 = vst [vmem:[#allocation8 + $0x8] sm:$0xff] %v7097_v58  ;;  %v10299_v19 = vld [vmem:[#allocation7 + $0x10] sm:$0xff]  }
 0x5ca   :  { %v14841_v13 = vpop.f32.mrf.mxu1 }
 0x5cb   :  { %6849 = vst.msk [vmem:[#allocation7 + $0x34] sm:$0xf] %vm6835_vm5, %v9711_v20  ;;  %v7491_v43 = vrot.slane %v14841_v13, 1 }
 0x5cc   :  { %v14844_v45 = vpop.f32.mrf.mxu1 }
 0x5cd   :  { %v7586_v49 = vrot.slane %v14844_v45, 2 }
 0x5ce   :  { %v14846_v54 = vpop.f32.mrf.mxu1  ;;  %v7476_v46 = vld [vmem:[#allocation8] sm:$0xfe] }
 0x5cf   :  { %v7490_v16 = vrot.slane %v7476_v46, 1  ;;  %v7493_v39 = vrot.slane %v14846_v54, 1  ;;  %v10300_v46 = vld [vmem:[#allocation7 + $0x18] sm:$0xff]  }
 0x5d0   :  { %v7107_v6 = vpop.f32.mrf.mxu1  ;;  %v14859_v7 = vld [vmem:[#allocation7 + $0x38] sm:$0xff]  }
 0x5d1   :  { %v7492_v17 = vsel %vm2794_vm2, %v7490_v16, %v7491_v43  ;;  %v7494_v30 = vsel %vm2794_vm2, %v7491_v43, %v7493_v39  ;;  %v7588_v0 = vrot.slane %v7107_v6, 2 }
 0x5d2   :  { %v14853_v33 = vpop.f32.mrf.mxu1  ;;  %v14855_v57 = vld [vmem:[#allocation7 + $0x30] sm:$0xff]   ;;  %7513 = vrot.lane.b32.xlu0 %v7492_v17, %s10356_s2  ;;  %7515 = vrot.lane.b32.xlu1 %v7494_v30, %s10356_s2 }
 0x5d3   :  { %v14864_v26 = vsel %vm3230_vm3, %v7586_v49, %v7588_v0  ;;  %9468 = vmatmul.mubr.msk.bf16.gmra.mxu1 %vm7036_vm6, %v14855_v57  ;;  %9946 = vmatprep.mubr.msk.bf16.mxu0 %vm7036_vm6, %v14855_v57  ;;  %v7495_v63 = vrot.slane %v14853_v33, 1 }
 0x5d4   :  { %v7111_v32 = vpop.f32.mrf.mxu1  ;;  %9947 = vmatmul.mubr.msk.bf16.gmra.mxu0 %vm7036_vm6, %v14859_v7  ;;  %7163 = vmatprep.mubr.bf16.mxu1 %v16724_v61 }
 0x5d5   :  { %v7590_v23 = vrot.slane %v7111_v32, 2  ;;  %v7496_v14 = vsel %vm2794_vm2, %v7493_v39, %v7495_v63 }
 0x5d6   :  { %v9944_v10 = vpop.f32.mrf.mxu0  ;;  %v14874_v37 = vpop.f32.mrf.mxu1  ;;  %7636 = vrot.lane.b32.xlu0 %v7107_v6, %s10356_s2  ;;  %7638 = vrot.lane.b32.xlu1 %v7111_v32, %s10356_s2 }
 0x5d7   :  { %7438 = vst.msk [vmem:[#allocation8 + $0x1b0] sm:$0xff] %vm7036_vm6, %v9944_v10  ;;  %7404 = vst [vmem:[#allocation8 + $0xa0] sm:$0xff] %v14874_v37  ;;  %v7497_v47 = vrot.slane %v14874_v37, 1  ;;  %v14882_v34 = vsel %vm3230_vm3, %v7588_v0, %v7590_v23  ;;  %v16727_v37 = vld [vmem:[#allocation17_spill] sm:$0xff] }
 0x5d8   :  { %v7117_v25 = vpop.f32.mrf.mxu1  ;;  %v7353_v5 = vpop.f32.mrf.mxu0 }
 0x5d9   :  { %7428 = vst.msk [vmem:[#allocation8 + $0x160] sm:$0xff] %vm7036_vm6, %v7353_v5  ;;  %v7498_v15 = vsel %vm2794_vm2, %v7495_v63, %v7497_v47  ;;  %v7592_v2 = vrot.slane %v7117_v25, 2 }
 0x5da   :  { %v9945_v9 = vpop.f32.mrf.mxu0  ;;  %v14889_v21 = vpop.f32.mrf.mxu1  ;;  %7517 = vrot.lane.b32.xlu0 %v7496_v14, %s10356_s2  ;;  %7519 = vrot.lane.b32.xlu1 %v7498_v15, %s10356_s2 }
 0x5db   :  { %7443 = vst.msk [vmem:[#allocation8 + $0x1d8] sm:$0xff] %vm7036_vm6, %v9945_v9  ;;  %7409 = vst [vmem:[#allocation8 + $0xc8] sm:$0xff] %v14889_v21  ;;  %v14896_v1 = vsel %vm3230_vm3, %v7590_v23, %v7592_v2  ;;  %9469 = vmatmul.mubr.msk.bf16.gmra.mxu1 %vm7036_vm6, %v14859_v7  ;;  %v7499_v56 = vrot.slane %v14889_v21, 1  ;;  %v7561_v9 = vld [vmem:[#allocation8 + $0x8] sm:$0xfc] }
 0x5dc   :  { %v14898_v36 = vpop.f32.mrf.mxu1  ;;  %v7356_v53 = vpop.f32.mrf.mxu0  ;;  %7206 = vmatprep.mubr.bf16.mxu1 %v16724_v61 }
 0x5dd   :  { %7433 = vst.msk [vmem:[#allocation8 + $0x188] sm:$0xff] %vm7036_vm6, %v7356_v53  ;;  %v16188_v35 = vrot.slane %v14898_v36, 2 }
 0x5de   :  { %v14905_v62 = vpop.f32.mrf.mxu1  ;;  %7640 = vrot.lane.b32.xlu0 %v7117_v25, %s10356_s2  ;;  %7642 = vrot.lane.b32.xlu1 %v14898_v36, %s10356_s2 }
 0x5df   :  { %7414 = vst [vmem:[#allocation8 + $0xf0] sm:$0xff] %v14905_v62  ;;  %v16192_v44 = vrot.slane %v14905_v62, 1  ;;  %v14916_v55 = vsel %vm3230_vm3, %v7592_v2, %v16188_v35 }
 0x5e0   :  { %v14918_v8 = vpop.f32.mrf.mxu1 }
 0x5e1   :  { %7415 = vst [vmem:[#allocation8 + $0xf8] sm:$0xff] %v14918_v8  ;;  %v14926_v41 = vsel %vm2794_vm2, %v7499_v56, %v16192_v44 }
 0x5e2   :  { %v14928_v51 = vpop.f32.mrf.mxu1 }
 0x5e3   :  { %7419 = vst [vmem:[#allocation8 + $0x118] sm:$0xff] %v14928_v51  ;;  %9470 = vmatmul.mubr.msk.bf16.vlgmr.msra.gmra.mxu1 %vm7036_vm6, %v14779_v4  ;;  %v7503_v3 = vrot.slane %v14928_v51, 1  ;;  %v10303_v51 = vld [vmem:[#allocation3 + $0x3d8] sm:$0xff] }
 0x5e4   :  { %v7131_v12 = vpop.f32.mrf.mxu1  ;;  %7216 = vmatprep.mubr.bf16.mxu1 %v16724_v61 }
 0x5e5   :  { %7420 = vst [vmem:[#allocation8 + $0x120] sm:$0xff] %v7131_v12 }
 0x5e6   :  { %v14934_v60 = vpop.f32.mrf.mxu1 }
 0x5e7   :  { %v7505_v40 = vrot.slane %v14934_v60, 1 }
 0x5e8   :  { %v14938_v52 = vpop.f32.mrf.mxu1 }
 0x5e9   :  { %v14943_v28 = vsel %vm2794_vm2, %v7503_v3, %v7505_v40 }
 0x5ea   :  { %v14945_v29 = vpop.f32.mrf.mxu1 }
 0x5eb   :  { %v7507_v4 = vrot.slane %v14945_v29, 1  ;;  %9471 = vmatmul.mubr.msk.bf16.gmra.mxu1 %vm7036_vm6, %v14790_v24 }
 0x5ec   :  { %v14948_v18 = vpop.f32.mrf.mxu1  ;;  %7226 = vmatprep.mubr.bf16.mxu1 %v16724_v61 }
 0x5ed   :  { %7430 = vst [vmem:[#allocation8 + $0x170] sm:$0xff] %v14948_v18  ;;  %v7508_v42 = vsel %vm2794_vm2, %v7505_v40, %v7507_v4  ;;  %v7585_v40 = vrot.slane %v7561_v9, 2 }
 0x5ee   :  { %v14955_v50 = vpop.f32.mrf.mxu1  ;;  %7529 = vrot.lane.b32.xlu0 %v7508_v42, %s10356_s2 }
 0x5ef   :  { %v7509_v22 = vrot.slane %v14955_v50, 1 }
 0x5f0   :  { %v14959_v59 = vpop.f32.mrf.mxu1 }
 0x5f1   :  { %v7510_v27 = vsel %vm2794_vm2, %v7507_v4, %v7509_v22 }
 0x5f2   :  { %v7149_v11 = vpop.f32.mrf.mxu1  ;;  %7531 = vrot.lane.b32.xlu1 %v7510_v27, %s10356_s2  ;;  %7652 = vrot.lane.b32.xlu0 %v14959_v59, %s10356_s2 }
 0x5f3   :  { %7439 = vst [vmem:[#allocation8 + $0x1b8] sm:$0xff] %v7149_v11  ;;  %9472 = vmatmul.mubr.msk.bf16.gmra.mxu1 %vm7036_vm6, %v10299_v19 }
 0x5f4   :  { %v14965_v24 = vpop.f32.mrf.mxu1  ;;  %7236 = vmatprep.mubr.bf16.mxu1 %v16724_v61 }
 0x5fa   :  { %v7477_v58 = vld [vmem:[#allocation8 + $0x1b8] sm:$0x7f] }
 0x5fb   :  { %v7511_v20 = vrot.slane %v7477_v58, 1  ;;  %9473 = vmatmul.mubr.msk.bf16.gmra.mxu1 %vm7036_vm6, %v10300_v46  ;;  %v7587_v58 = vsel %vm3230_vm3, %v7585_v40, %v7586_v49 }
 0x5fc   :  { %7246 = vmatprep.mubr.bf16.mxu1 %v16724_v61 }
 0x5fd   :  { %7535 = vrot.lane.b32.xlu1 %v7511_v20, %s10356_s2  ;;  %v7512_v16 = vsel %vm2794_vm2, %v7509_v22, %v7511_v20 }
 0x5fe   :  { %7533 = vrot.lane.b32.xlu0 %v7512_v16, %s10356_s2 }
 0x601   :  { %7654 = vrot.lane.b32.xlu1 %v14965_v24, %s10356_s2 }
 0x603   :  { %9474 = vmatmul.mubr.msk.bf16.gmra.mxu1 %vm7036_vm6, %v14795_v48 }
 0x604   :  { %7256 = vmatprep.mubr.bf16.mxu1 %v16724_v61 }
 0x60b   :  { %9475 = vmatmul.mubr.msk.bf16.gmra.mxu1 %vm7036_vm6, %v14797_v31 }
 0x60c   :  { %7266 = vmatprep.mubr.bf16.mxu1 %v16724_v61 }
 0x613   :  { %9476 = vmatmul.mubr.msk.bf16.gmra.mxu1 %vm7036_vm6, %v14855_v57 }
 0x614   :  { %7276 = vmatprep.mubr.bf16.mxu1 %v16724_v61 }
 0x61b   :  { %9477 = vmatmul.mubr.msk.bf16.gmra.mxu1 %vm7036_vm6, %v14859_v7 }
 0x644   :  { %v7514_v10 = vpop.permute.xlu0 %7513  ;;  %v7516_v14 = vpop.permute.xlu1 %7515 }
 0x645   :  { %v7549_v42 = vadd.f32 %v7514_v10, %v14836_v38  ;;  %v7550_v22 = vadd.f32 %v7516_v14, %v14841_v13 }
 0x647   :  { %v7620_v20 = vadd.f32 %v7587_v58, %v7549_v42  ;;  %v7621_v16 = vadd.f32 %v14864_v26, %v7550_v22 }
 0x648   :  { %v7637_v2 = vpop.permute.xlu0 %7636  ;;  %v7639_v4 = vpop.permute.xlu1 %7638 }
 0x649   :  { %v7673_v45 = vadd.f32 %v7639_v4, %v7621_v16 }
 0x64c   :  { %v7518_v11 = vpop.permute.xlu0 %7517 }
 0x64d   :  { %v7551_v46 = vadd.f32 %v7518_v11, %v14846_v54 }
 0x650   :  { %v7641_v26 = vpop.permute.xlu0 %7640 }
 0x660   :  { %v15164_v21 = vpop.permute.xlu0 %7529 }
 0x693   :  { %v7155_v43 = vpop.f32.mrf.mxu1 }
 0x694   :  { %v9948_v39 = vpop.f32.mrf.mxu0 }
 0x695   :  { %7458 = vst.msk [vmem:[#allocation8 + $0x250] sm:$0xff] %vm7036_vm6, %v9948_v39  ;;  %v7157_v48 = vpop.f32.mrf.mxu1  ;;  %v7520_v39 = vpop.permute.xlu1 %7519 }
 0x696   :  { %v7369_v6 = vpop.f32.mrf.mxu0  ;;  %7656 = vrot.lane.b32.xlu0 %v7157_v48, %s10356_s2  ;;  %v7552_v49 = vadd.f32 %v7520_v39, %v14853_v33 }
 0x697   :  { %7448 = vst.msk [vmem:[#allocation8 + $0x200] sm:$0xff] %vm7036_vm6, %v7369_v6  ;;  %v7159_v31 = vpop.f32.mrf.mxu1 }
 0x698   :  { %v9949_v17 = vpop.f32.mrf.mxu0  ;;  %v7623_v9 = vadd.f32 %v14896_v1, %v7552_v49 }
 0x699   :  { %7463 = vst.msk [vmem:[#allocation8 + $0x278] sm:$0xff] %vm7036_vm6, %v9949_v17  ;;  %v7161_v30 = vpop.f32.mrf.mxu1 }
 0x69a   :  { %7450 = vst [vmem:[#allocation8 + $0x210] sm:$0xff] %v7161_v30  ;;  %v7372_v0 = vpop.f32.mrf.mxu0 }
 0x69b   :  { %7453 = vst.msk [vmem:[#allocation8 + $0x228] sm:$0xff] %vm7036_vm6, %v7372_v0  ;;  %v7165_v57 = vpop.f32.mrf.mxu1 }
 0x69d   :  { %v7167_v7 = vpop.f32.mrf.mxu1 }
 0x69e   :  { %v7672_v7 = vadd.f32 %v7637_v2, %v7620_v20 }
 0x69f   :  { %v7169_v32 = vpop.f32.mrf.mxu1 }
 0x6a0   :  { %v7622_v32 = vadd.f32 %v14882_v34, %v7551_v46 }
 0x6a1   :  { %v7171_v63 = vpop.f32.mrf.mxu1  ;;  %v7633_v23 = vld [vmem:[#allocation8 + $0x210] sm:$0x3f] }
 0x6a2   :  { %7658 = vrot.lane.b32.xlu1 %v7633_v23, %s10356_s2  ;;  %v7674_v2 = vadd.f32 %v7641_v26, %v7622_v32 }
 0x6a3   :  { %v7208_v25 = vpop.f32.mrf.mxu1 }
 0x6a5   :  { %v7210_v5 = vpop.f32.mrf.mxu1 }
 0x6a7   :  { %v7212_v15 = vpop.f32.mrf.mxu1 }
 0x6a9   :  { %v7214_v53 = vpop.f32.mrf.mxu1 }
 0x6ab   :  { %v7218_v12 = vpop.f32.mrf.mxu1 }
 0x6ac   :  { %7396 = vst [vmem:[#allocation8 + $0x60] sm:$0xff] %v7218_v12  ;;  %v7643_v12 = vpop.permute.xlu1 %7642 }
 0x6ad   :  { %v7220_v27 = vpop.f32.mrf.mxu1 }
 0x6af   :  { %v7222_v19 = vpop.f32.mrf.mxu1 }
 0x6b0   :  { %v7760_v31 = vrot.slane %v7222_v19, 2  ;;  %v7709_v17 = vrot.slane %v7222_v19, 1  ;;  %v7675_v19 = vadd.f32 %v7643_v12, %v7623_v9 }
 0x6b1   :  { %v7224_v43 = vpop.f32.mrf.mxu1 }
 0x6b3   :  { %v7228_v48 = vpop.f32.mrf.mxu1  ;;  %v7755_v6 = vld [vmem:[#allocation8 + $0x60] sm:$0xfc] }
 0x6b4   :  { %v7684_v38 = vld [vmem:[#allocation8 + $0x60] sm:$0xfe]  ;;  %v7759_v13 = vrot.slane %v7755_v6, 2  ;;  %v7762_v30 = vrot.slane %v7228_v48, 2  ;;  %v7711_v57 = vrot.slane %v7228_v48, 1 }
 0x6b5   :  { %v7708_v0 = vrot.slane %v7684_v38, 1  ;;  %v15002_v54 = vpop.f32.mrf.mxu1 }
 0x6b6   :  { %7407 = vst [vmem:[#allocation8 + $0xb8] sm:$0xff] %v15002_v54  ;;  %v7761_v63 = vsel %vm3230_vm3, %v7759_v13, %v7760_v31  ;;  %v7763_v23 = vsel %vm3230_vm3, %v7760_v31, %v7762_v30  ;;  %v7712_v25 = vsel %vm2794_vm2, %v7709_v17, %v7711_v57 }
 0x6b7   :  { %v7710_v10 = vsel %vm2794_vm2, %v7708_v0, %v7709_v17  ;;  %v7232_v5 = vpop.f32.mrf.mxu1  ;;  %7782 = vrot.lane.b32.xlu0 %v7761_v63, %s10356_s2  ;;  %7784 = vrot.lane.b32.xlu1 %v7763_v23, %s10356_s2  ;;  %v15013_v34 = vadd.f32 %v7712_v25, %v7673_v45 }
 0x6b8   :  { %v15011_v33 = vadd.f32 %v7710_v10, %v7672_v7  ;;  %v7764_v14 = vrot.slane %v7232_v5, 2  ;;  %v7713_v15 = vrot.slane %v7232_v5, 1  ;;  %v7532_v5 = vpop.permute.xlu1 %7531 }
 0x6b9   :  { %v15016_v53 = vpop.f32.mrf.mxu1 }
 0x6ba   :  { %v7765_v40 = vsel %vm3230_vm3, %v7762_v30, %v7764_v14  ;;  %v7714_v4 = vsel %vm2794_vm2, %v7711_v57, %v7713_v15  ;;  %v7869_v20 = vrot.slane %v15016_v53, 1 }
 0x6bb   :  { %v15020_v42 = vpop.f32.mrf.mxu1  ;;  %7786 = vrot.lane.b32.xlu0 %v7765_v40, %s10356_s2  ;;  %v15023_v22 = vadd.f32 %v7714_v4, %v7674_v2 }
 0x6bc   :  { %v7766_v27 = vrot.slane %v15020_v42, 2  ;;  %v7715_v11 = vrot.slane %v15020_v42, 1 }
 0x6bd   :  { %v15027_v58 = vpop.f32.mrf.mxu1  ;;  %v7854_v1 = vld [vmem:[#allocation8 + $0xb8] sm:$0xfe] }
 0x6be   :  { %v7868_v46 = vrot.slane %v7854_v1, 1  ;;  %v7767_v16 = vsel %vm3230_vm3, %v7764_v14, %v7766_v27  ;;  %v7871_v43 = vrot.slane %v15027_v58, 1  ;;  %v7716_v39 = vsel %vm2794_vm2, %v7713_v15, %v7715_v11 }
 0x6bf   :  { %v15035_v48 = vpop.f32.mrf.mxu1  ;;  %7788 = vrot.lane.b32.xlu1 %v7767_v16, %s10356_s2  ;;  %v15038_v6 = vadd.f32 %v7716_v39, %v7675_v19 }
 0x6c0   :  { %v7870_v31 = vsel %vm2794_vm2, %v7868_v46, %v7869_v20  ;;  %v7717_v38 = vrot.slane %v15035_v48, 1  ;;  %v7872_v13 = vsel %vm2794_vm2, %v7869_v20, %v7871_v43  ;;  %v7768_v45 = vrot.slane %v15035_v48, 2 }
 0x6c1   :  { %v15042_v17 = vpop.f32.mrf.mxu1  ;;  %7891 = vrot.lane.b32.xlu0 %v7870_v31, %s10356_s2  ;;  %v7604_v20 = vrot.slane %v14959_v59, 2 }
 0x6c2   :  { %v7873_v30 = vrot.slane %v15042_v17, 1  ;;  %v15048_v0 = vsel %vm2794_vm2, %v7715_v11, %v7717_v38  ;;  %v15078_v11 = vpop.permute.xlu1 %7535 }
 0x6c3   :  { %v7248_v57 = vpop.f32.mrf.mxu1  ;;  %7893 = vrot.lane.b32.xlu1 %v7872_v13, %s10356_s2 }
 0x6c4   :  { %v7874_v7 = vsel %vm2794_vm2, %v7871_v43, %v7873_v30  ;;  %v7770_v49 = vrot.slane %v7248_v57, 2  ;;  %v7719_v32 = vrot.slane %v7248_v57, 1 }
 0x6c5   :  { %v15053_v26 = vpop.f32.mrf.mxu1  ;;  %7895 = vrot.lane.b32.xlu0 %v7874_v7, %s10356_s2 }
 0x6c6   :  { %v7875_v63 = vrot.slane %v15053_v26, 1  ;;  %v15060_v23 = vsel %vm3230_vm3, %v7768_v45, %v7770_v49  ;;  %v15063_v10 = vsel %vm2794_vm2, %v7717_v38, %v7719_v32  ;;  %v7558_v38 = vadd.f32 %v7532_v5, %v14945_v29 }
 0x6c7   :  { %v7252_v25 = vpop.f32.mrf.mxu1 }
 0x6c8   :  { %v7876_v14 = vsel %vm2794_vm2, %v7873_v30, %v7875_v63  ;;  %v7772_v15 = vrot.slane %v7252_v25, 2  ;;  %v7721_v2 = vrot.slane %v7252_v25, 1  ;;  %v16190_v30 = vrot.slane %v14948_v18, 2 }
 0x6c9   :  { %v15068_v9 = vpop.f32.mrf.mxu1  ;;  %7897 = vrot.lane.b32.xlu1 %v7876_v14, %s10356_s2  ;;  %v7655_v14 = vpop.permute.xlu1 %7654 }
 0x6ca   :  { %7432 = vst [vmem:[#allocation8 + $0x180] sm:$0xff] %v15068_v9  ;;  %v15073_v12 = vsel %vm3230_vm3, %v7770_v49, %v7772_v15  ;;  %v15076_v40 = vsel %vm2794_vm2, %v7719_v32, %v7721_v2  ;;  %v7877_v16 = vrot.slane %v15068_v9, 1  ;;  %v7605_v25 = vsel %vm3230_vm3, %v16190_v30, %v7604_v20 }
 0x6cb   :  { %v7258_v4 = vpop.f32.mrf.mxu1 }
 0x6cc   :  { %v7774_v19 = vrot.slane %v7258_v4, 2  ;;  %v7723_v1 = vrot.slane %v7258_v4, 1 }
 0x6cd   :  { %v15081_v46 = vpop.f32.mrf.mxu1 }
 0x6ce   :  { %7437 = vst [vmem:[#allocation8 + $0x1a8] sm:$0xff] %v15081_v46  ;;  %v15086_v43 = vsel %vm3230_vm3, %v7772_v15, %v7774_v19  ;;  %v16189_v39 = vrot.slane %v15081_v46, 1  ;;  %v15090_v31 = vsel %vm2794_vm2, %v7721_v2, %v7723_v1  ;;  %v7629_v15 = vadd.f32 %v7605_v25, %v7558_v38 }
 0x6cf   :  { %v7262_v13 = vpop.f32.mrf.mxu1 }
 0x6d0   :  { %v7776_v57 = vrot.slane %v7262_v13, 2  ;;  %v7725_v7 = vrot.slane %v7262_v13, 1  ;;  %v15097_v49 = vsel %vm2794_vm2, %v7877_v16, %v16189_v39  ;;  %v7681_v13 = vadd.f32 %v7655_v14, %v7629_v15 }
 0x6d1   :  { %v15099_v32 = vpop.f32.mrf.mxu1 }
 0x6d2   :  { %7442 = vst [vmem:[#allocation8 + $0x1d0] sm:$0xff] %v15099_v32  ;;  %v7777_v29 = vsel %vm3230_vm3, %v7774_v19, %v7776_v57  ;;  %v15109_v5 = vsel %vm2794_vm2, %v7723_v1, %v7725_v7  ;;  %v16191_v1 = vrot.slane %v15099_v32, 1 }
 0x6d3   :  { %v15111_v2 = vpop.f32.mrf.mxu1  ;;  %7798 = vrot.lane.b32.xlu0 %v7777_v29, %s10356_s2 }
 0x6d4   :  { %v7778_v9 = vrot.slane %v15111_v2, 2  ;;  %v7727_v4 = vrot.slane %v15111_v2, 1 }
 0x6d5   :  { %v15116_v35 = vpop.f32.mrf.mxu1 }
 0x6d6   :  { %v7779_v39 = vsel %vm3230_vm3, %v7776_v57, %v7778_v9  ;;  %v7883_v30 = vrot.slane %v15116_v35, 1  ;;  %v7728_v19 = vsel %vm2794_vm2, %v7725_v7, %v7727_v4 }
 0x6d7   :  { %v7272_v38 = vpop.f32.mrf.mxu1  ;;  %7800 = vrot.lane.b32.xlu1 %v7779_v39, %s10356_s2  ;;  %v15123_v25 = vadd.f32 %v7728_v19, %v7681_v13 }
 0x6d8   :  { %7451 = vst [vmem:[#allocation8 + $0x218] sm:$0xff] %v7272_v38  ;;  %v7780_v29 = vrot.slane %v7272_v38, 2  ;;  %v15128_v14 = vsel %vm2794_vm2, %v16191_v1, %v7883_v30 }
 0x6d9   :  { %v15130_v15 = vpop.f32.mrf.mxu1 }
 0x6da   :  { %v7781_v57 = vsel %vm3230_vm3, %v7778_v9, %v7780_v29  ;;  %v7885_v7 = vrot.slane %v15130_v15, 1 }
 0x6db   :  { %v7278_v2 = vpop.f32.mrf.mxu1  ;;  %7804 = vrot.lane.b32.xlu1 %v7780_v29, %s10356_s2  ;;  %7802 = vrot.lane.b32.xlu0 %v7781_v57, %s10356_s2 }
 0x6dc   :  { %v7886_v13 = vsel %vm2794_vm2, %v7883_v30, %v7885_v7  ;;  %v7500_v30 = vsel %vm2794_vm2, %v7497_v47, %v7499_v56  ;;  %v16728_v47 = vrot.slane %v16727_v37, 1  ;;  %v16729_v56 = vld [vmem:[#allocation53_spill] sm:$0xff] }
 0x6dd   :  { %v15136_v39 = vpop.f32.mrf.mxu1 }
 0x6de   :  { %v7887_v19 = vrot.slane %v15136_v39, 1 }
 0x6df   :  { %v7282_v38 = vpop.f32.mrf.mxu1  ;;  %7907 = vrot.lane.b32.xlu0 %v7886_v13, %s10356_s2  ;;  %v15177_v13 = vpop.permute.xlu0 %7652 }
 0x6e0   :  { %v7888_v1 = vsel %vm2794_vm2, %v7885_v7, %v7887_v19  ;;  %v16733_v7 = vld [vmem:[#allocation18_spill] sm:$0xff] }
 0x6e1   :  { %v7284_v44 = vpop.f32.mrf.mxu1  ;;  %7909 = vrot.lane.b32.xlu1 %v7888_v1, %s10356_s2  ;;  %v16730_v1 = vrot.slane %v16729_v56, 1  ;;  %v16734_v48 = vrot.slane %v16733_v7, 1 }
 0x6e2   :  { %7462 = vst [vmem:[#allocation8 + $0x270] sm:$0xff] %v7284_v44  ;;  %v7878_v44 = vsel %vm2794_vm2, %v7875_v63, %v7877_v16  ;;  %v16731_v63 = vld [vmem:[#allocation21_spill] sm:$0xff] }
 0x6e3   :  { %v2861_v57 = vsel %vm2794_vm2, %v16730_v1, %v16728_v47  ;;  %v16732_v16 = vrot.slane %v16731_v63, 1  ;;  %v16741_v47 = vld [vmem:[#allocation28_spill] sm:$0xff]  ;;  %v16745_v59 = vrot.slane %v16731_v63, 2 }
 0x6e4   :  { %v16742_v1 = vrot.slane %v16741_v47, 1  ;;  %v16749_v63 = vrot.slane %v16741_v47, 2  ;;  %v10304_v47 = vld [vmem:[#allocation3 + $0x408] sm:$0xff] }
 0x6e5   :  { %v2865_v42 = vsel %vm2794_vm2, %v16734_v48, %v16732_v16  ;;  %v15193_v16 = vld [vmem:[#allocation8 + $0x218] sm:$0x7f] }
 0x6e9   :  { %v7855_v9 = vld [vmem:[#allocation8 + $0x270] sm:$0x7f] }
 0x6ea   :  { %v7889_v2 = vrot.slane %v7855_v9, 1 }
 0x6ec   :  { %7913 = vrot.lane.b32.xlu1 %v7889_v2, %s10356_s2  ;;  %v7890_v29 = vsel %vm2794_vm2, %v7887_v19, %v7889_v2  ;;  %v16737_v19 = vld [vmem:[#allocation22_spill] sm:$0xff]  ;;  %v7534_v2 = vpop.permute.xlu0 %7533 }
 0x6ed   :  { %7911 = vrot.lane.b32.xlu0 %v7890_v29, %s10356_s2  ;;  %v16738_v38 = vrot.slane %v16737_v19, 1  ;;  %v7606_v29 = vrot.slane %v14965_v24, 2  ;;  %v10102_v24 = vld [vmem:[%s16014_s9] ss:$16 sps:$4 sm:$0xff]  }
 0x6ef   :  { %v7607_v48 = vsel %vm3230_vm3, %v7604_v20, %v7606_v29  ;;  %v16746_v20 = vrot.slane %v16733_v7, 2 }
 0x6f0   :  { %7644 = vrot.lane.b32.xlu1 %v14918_v8, %s10356_s2  ;;  %v7769_v8 = vsel %vm3230_vm3, %v7766_v27, %v7768_v45  ;;  %v16735_v27 = vld [vmem:[#allocation27_spill] sm:$0xff] }
 0x6f1   :  { %7521 = vrot.lane.b32.xlu0 %v7500_v30, %s10356_s2  ;;  %v16736_v45 = vrot.slane %v16735_v27, 1  ;;  %v7559_v30 = vadd.f32 %v7534_v2, %v14955_v50  ;;  %v16743_v50 = vrot.slane %v16727_v37, 2 }
 0x6f3   :  { %v2869_v9 = vsel %vm2794_vm2, %v16738_v38, %v16736_v45  ;;  %v16744_v45 = vrot.slane %v16729_v56, 2  ;;  %v16747_v56 = vrot.slane %v16735_v27, 2  ;;  %v16750_v27 = vrot.slane %v14905_v62, 1 }
 0x6f4   :  { %7899 = vrot.lane.b32.xlu1 %v7878_v44, %s10356_s2  ;;  %v16739_v44 = vld [vmem:[#allocation33_spill] sm:$0xff] }
 0x6f5   :  { %7790 = vrot.lane.b32.xlu0 %v7769_v8, %s10356_s2  ;;  %v16740_v8 = vrot.slane %v16739_v44, 1  ;;  %v3297_v38 = vsel %vm3230_vm3, %v16744_v45, %v16743_v50  ;;  %v16751_v50 = vld [vmem:[#allocation98_spill] sm:$0xff] }
 0x6f6   :  { %v16752_v45 = vrot.slane %v16751_v50, 2  ;;  %v16755_v50 = vld [vmem:[#allocation42_spill] sm:$0xff] }
 0x6f8   :  { %3002 = vrot.lane.b32.xlu1 %v2861_v57, %s10355_s1  ;;  %v2873_v57 = vsel %vm2794_vm2, %v16742_v1, %v16740_v8  ;;  %v3301_v1 = vsel %vm3230_vm3, %v16746_v20, %v16745_v59 }
 0x6fc   :  { %3006 = vrot.lane.b32.xlu1 %v2865_v42, %s10355_s1  ;;  %v7729_v42 = vrot.slane %v15193_v16, 1 }
 0x6fe   :  { %v7730_v8 = vsel %vm2794_vm2, %v7727_v4, %v7729_v42 }
 0x700   :  { %3010 = vrot.lane.b32.xlu1 %v2869_v9, %s10355_s1  ;;  %v7630_v9 = vadd.f32 %v7607_v48, %v7559_v30  ;;  %v16748_v30 = vrot.slane %v16737_v19, 2  ;;  %v15224_v48 = vld [vmem:[#allocation3 + $0x3a8] sm:$0xff]  ;;  %v7504_v19 = vsel %vm2794_vm2, %v16750_v27, %v7503_v3 }
 0x701   :  { %v3308_v4 = vrot.slane %v15224_v48, 2  ;;  %v16753_v27 = vld [vmem:[#allocation29_spill] sm:$0xff] }
 0x703   :  { %v3309_v7 = vsel %vm3230_vm3, %v16749_v63, %v3308_v4  ;;  %v7941_v63 = vld [vmem:[#allocation8 + $0x110] sm:$0xff] }
 0x704   :  { %3014 = vrot.lane.b32.xlu1 %v2873_v57, %s10355_s1  ;;  %v3305_v57 = vsel %vm3230_vm3, %v16748_v30, %v16747_v56 }
 0x708   :  { %3438 = vrot.lane.b32.xlu1 %v3297_v38, %s10356_s2  ;;  %v7657_v2 = vpop.permute.xlu0 %7656  ;;  %v3311_v38 = vsel %vm3230_vm3, %v3308_v4, %v16752_v45 }
 0x709   :  { %v7682_v44 = vadd.f32 %v7657_v2, %v7630_v9  ;;  %v15242_v9 = vld [vmem:[#allocation3 + $0x378] sm:$0xff] }
 0x70b   :  { %v15216_v37 = vadd.f32 %v7730_v8, %v7682_v44  ;;  %v7940_v8 = vld [vmem:[#allocation8 + $0xe8] sm:$0xff] }
 0x70c   :  { %3442 = vrot.lane.b32.xlu1 %v3301_v1, %s10356_s2  ;;  %v7939_v1 = vld [vmem:[#allocation8 + $0xc0] sm:$0xfc]  ;;  %v7964_v56 = vrot.slane %v7940_v8, 2 }
 0x710   :  { %3446 = vrot.lane.b32.xlu1 %v3305_v57, %s10356_s2 }
 0x714   :  { %3450 = vrot.lane.b32.xlu1 %v3309_v7, %s10356_s2  ;;  %v15249_v62 = vpop.permute.xlu1 %7658  ;;  %v7942_v7 = vld [vmem:[#allocation8 + $0x138] sm:$0xff] }
 0x718   :  { %7525 = vrot.lane.b32.xlu1 %v7504_v19, %s10356_s2  ;;  %v16754_v19 = vrot.slane %v16753_v27, 2 }
 0x71c   :  { %3452 = vrot.lane.b32.xlu1 %v3311_v38, %s10356_s2  ;;  %v7963_v38 = vrot.slane %v7939_v1, 2  ;;  %v10060_v1 = vld [vmem:[%s16014_s9 + $0xe0] ss:$16 sps:$4 sm:$0xff]  }
 0x720   :  { %3736 = vrot.lane.b32.xlu1 %v15242_v9, %s10357_s16 }
 0x724   :  { %3740 = vrot.lane.b32.xlu1 %v15224_v48, %s10357_s16 }
 0x728   :  { %3744 = vrot.lane.b32.xlu1 %v10303_v51, %s10357_s16 }
 0x729   :  { %v7783_v3 = vpop.permute.xlu0 %7782  ;;  %v7785_v2 = vpop.permute.xlu1 %7784 }
 0x72a   :  { %v7818_v44 = vadd.f32 %v7783_v3, %v15011_v33  ;;  %v7819_v20 = vadd.f32 %v7785_v2, %v15013_v34  ;;  %v16756_v33 = vrot.slane %v16755_v50, 2  ;;  %v15268_v50 = vld [vmem:[#allocation8 + $0x160] sm:$0xff] }
 0x72c   :  { %3748 = vrot.lane.b32.xlu1 %v10304_v47, %s10357_s16  ;;  %v7842_v4 = vadd.f32 %v7818_v44, %v15002_v54  ;;  %v4459_v45 = vsel %vm3230_vm3, %v16756_v33, %v16754_v19  ;;  %v7843_v3 = vadd.f32 %v7819_v20, %v15016_v53  ;;  %v7965_v47 = vsel %vm3230_vm3, %v7963_v38, %v7964_v56  ;;  %v10062_v53 = vld [vmem:[%s16014_s9 + $0xe4] ss:$16 sps:$4 sm:$0xff]   ;;  %v10063_v38 = vld [vmem:[%s16014_s9 + $0xe8] ss:$16 sps:$4 sm:$0xff]  }
 0x72d   :  { %v7787_v59 = vpop.permute.xlu0 %7786  ;;  %v7968_v54 = vrot.slane %v7942_v7, 2  ;;  %v16757_v20 = vld [vmem:[#allocation36_spill] sm:$0xff]  ;;  %8647 = vmatprep.subr.bf16.mxu1 %v10062_v53 }
 0x72e   :  { %v7820_v57 = vadd.f32 %v7787_v59, %v15023_v22  ;;  %v7966_v22 = vrot.slane %v7941_v63, 2  ;;  %v16759_v63 = vld [vmem:[#allocation30_spill] sm:$0xff]  ;;  %8648 = vmatpush1.bf16.msra.mxu1 %v10060_v1 }
 0x72f   :  { %v16760_v7 = vrot.slane %v16759_v63, 2  ;;  %v10069_v53 = vld [vmem:[%s16014_s9 + $0xc8] ss:$16 sps:$4 sm:$0xff]   ;;  %v10072_v63 = vld [vmem:[%s16014_s9 + $0xa0] ss:$16 sps:$4 sm:$0xff]  }
 0x730   :  { %7648 = vrot.lane.b32.xlu1 %v14938_v52, %s10356_s2  ;;  %v7844_v27 = vadd.f32 %v7820_v57, %v15027_v58  ;;  %v7969_v33 = vsel %vm3230_vm3, %v7966_v22, %v7968_v54 }
 0x731   :  { %v7789_v30 = vpop.permute.xlu1 %7788 }
 0x732   :  { %v7821_v8 = vadd.f32 %v7789_v30, %v15038_v6  ;;  %v7967_v6 = vsel %vm3230_vm3, %v7964_v56, %v7966_v22  ;;  %v10065_v56 = vld [vmem:[%s16014_s9 + $0xec] ss:$16 sps:$4 sm:$0xff]   ;;  %v16761_v22 = vld [vmem:[#allocation40_spill] sm:$0xff] }
 0x733   :  { %v7892_v34 = vpop.permute.xlu0 %7891  ;;  %8729 = vmatprep.subr.bf16.mxu0 %v10065_v56  ;;  %v10077_v56 = vld [vmem:[%s16014_s9 + $0xac] ss:$16 sps:$4 sm:$0xff]  }
 0x734   :  { %4600 = vrot.lane.b32.xlu1 %v4459_v45, %s10355_s1  ;;  %v7927_v51 = vadd.f32 %v7892_v34, %v7842_v4  ;;  %v16758_v4 = vrot.slane %v16757_v20, 2  ;;  %v7970_v45 = vrot.slane %v15268_v50, 2  ;;  %8730 = vmatpush1.bf16.msra.mxu0 %v10063_v38  ;;  %v10071_v20 = vld [vmem:[%s16014_s9 + $0xcc] ss:$16 sps:$4 sm:$0xff]   ;;  %v10075_v38 = vld [vmem:[%s16014_s9 + $0xa8] ss:$16 sps:$4 sm:$0xff]  }
 0x735   :  { %v7894_v2 = vpop.permute.xlu1 %7893  ;;  %8731 = vmatprep.subr.bf16.mxu0 %v10071_v20  ;;  %v15369_v20 = vld [vmem:[%s16013_s8] ss:$0 sm:$0xff]  ;;  %v10152_v50 = vld [vmem:[%s16014_s9 + $0x104] ss:$16 sps:$4 sm:$0xff]  }
 0x736   :  { %v7998_v44 = vadd.f32 %v7965_v47, %v7927_v51  ;;  %v7928_v59 = vadd.f32 %v7894_v2, %v7843_v3  ;;  %v4463_v19 = vsel %vm3230_vm3, %v16760_v7, %v16758_v4  ;;  %v7845_v51 = vadd.f32 %v7821_v8, %v15042_v17  ;;  %v10066_v3 = vld [vmem:[%s16014_s9 + $0xc0] ss:$16 sps:$4 sm:$0xff]   ;;  %v10068_v47 = vld [vmem:[%s16014_s9 + $0xc4] ss:$16 sps:$4 sm:$0xff]  }
 0x737   :  { %v7896_v30 = vpop.permute.xlu0 %7895  ;;  %v16762_v2 = vrot.slane %v16761_v22, 2  ;;  %v7971_v8 = vsel %vm3230_vm3, %v7968_v54, %v7970_v45  ;;  %8649 = vmatprep.subr.bf16.mxu1 %v10068_v47  ;;  %v10074_v7 = vld [vmem:[%s16014_s9 + $0xa4] ss:$16 sps:$4 sm:$0xff]   ;;  %v16765_v54 = vld [vmem:[#allocation45_spill] sm:$0xff] }
 0x738   :  { %8010 = vst.msk [vmem:[#allocation9] sm:$0xff] %vm7036_vm6, %v7998_v44  ;;  %4604 = vrot.lane.b32.xlu1 %v4463_v19, %s10355_s1  ;;  %v7999_v58 = vadd.f32 %v7967_v6, %v7928_v59  ;;  %v7929_v57 = vadd.f32 %v7896_v30, %v7844_v27  ;;  %v16763_v44 = vld [vmem:[#allocation37_spill] sm:$0xff]  ;;  %8650 = vmatpush1.bf16.msra.mxu1 %v10066_v3  ;;  %v16766_v19 = vrot.slane %v16765_v54, 2 }
 0x739   :  { %v16764_v59 = vrot.slane %v16763_v44, 2  ;;  %v16767_v6 = vld [vmem:[#allocation41_spill] sm:$0xff]  ;;  %8732 = vmatpush1.bf16.msra.mxu0 %v10069_v53  ;;  %8651 = vmatprep.subr.bf16.mxu1 %v10074_v7 }
 0x73a   :  { %8011 = vst.msk [vmem:[#allocation9 + $0x8] sm:$0xff] %vm7036_vm6, %v7999_v58  ;;  %v8000_v34 = vadd.f32 %v7969_v33, %v7929_v57  ;;  %v16768_v30 = vrot.slane %v16767_v6, 2  ;;  %v7557_v57 = vadd.f32 %v15164_v21, %v14934_v60  ;;  %v7600_v33 = vrot.slane %v14938_v52, 2  ;;  %v10078_v60 = vld [vmem:[%s16014_s9 + $0x80] ss:$16 sps:$4 sm:$0xff]   ;;  %8733 = vmatprep.subr.bf16.mxu0 %v10077_v56 }
 0x73b   :  { %v4467_v27 = vsel %vm3230_vm3, %v16764_v59, %v16762_v2  ;;  %v7898_v1 = vpop.permute.xlu1 %7897  ;;  %v10080_v21 = vld [vmem:[%s16014_s9 + $0x84] ss:$16 sps:$4 sm:$0xff]   ;;  %v10081_v2 = vld [vmem:[%s16014_s9 + $0x88] ss:$16 sps:$4 sm:$0xff]   ;;  %v10084_v44 = vld [vmem:[%s16014_s9 + $0x60] ss:$16 sps:$4 sm:$0xff]  }
 0x73c   :  { %4608 = vrot.lane.b32.xlu1 %v4467_v27, %s10355_s1  ;;  %8012 = vst.msk [vmem:[#allocation9 + $0x10] sm:$0xff] %vm7036_vm6, %v8000_v34  ;;  %v7930_v17 = vadd.f32 %v7898_v1, %v7845_v51  ;;  %v4471_v58 = vsel %vm3230_vm3, %v16768_v30, %v16766_v19  ;;  %8652 = vmatpush1.bf16.msra.mxu1 %v10072_v63  ;;  %v16769_v34 = vrot.slane %v14948_v18, 2  ;;  %v10083_v18 = vld [vmem:[%s16014_s9 + $0x8c] ss:$16 sps:$4 sm:$0xff]   ;;  %v10087_v7 = vld [vmem:[%s16014_s9 + $0x68] ss:$16 sps:$4 sm:$0xff]  }
 0x73d   :  { %8734 = vmatpush1.bf16.msra.mxu0 %v10075_v38  ;;  %8653 = vmatprep.subr.bf16.mxu1 %v10080_v21  ;;  %v10090_v30 = vld [vmem:[%s16014_s9 + $0x40] ss:$16 sps:$4 sm:$0xff]   ;;  %v7948_v21 = vld [vmem:[#allocation8 + $0x228] sm:$0xff] }
 0x73e   :  { %v8001_v4 = vadd.f32 %v7971_v8, %v7930_v17  ;;  %v7603_v51 = vsel %vm3230_vm3, %v7600_v33, %v16769_v34  ;;  %8735 = vmatprep.subr.bf16.mxu0 %v10083_v18  ;;  %v15394_v18 = vld [vmem:[#allocation8 + $0x200] sm:$0xff] }
 0x73f   :  { %v7628_v3 = vadd.f32 %v7603_v51, %v7557_v57  ;;  %v8023_v59 = vld [vmem:[#allocation9] sm:$0xff]  ;;  %v7475_v57 = vld [vmem:[#allocation8 + $0x1b8] sm:$0x3f] }
 0x740   :  { %4612 = vrot.lane.b32.xlu1 %v4471_v58, %s10355_s1  ;;  %8013 = vst.msk [vmem:[#allocation9 + $0x18] sm:$0xff] %vm7036_vm6, %v8001_v4  ;;  %8654 = vmatpush1.bf16.msra.mxu1 %v10078_v60  ;;  %v10092_v58 = vld [vmem:[%s16014_s9 + $0x44] ss:$16 sps:$4 sm:$0xff]   ;;  %v10093_v51 = vld [vmem:[%s16014_s9 + $0x48] ss:$16 sps:$4 sm:$0xff]  }
 0x741   :  { %v8033_v47 = vld [vmem:[#allocation9 + $0x1] sm:$0xff]  ;;  %v7680_v17 = vadd.f32 %v15177_v13, %v7628_v3  ;;  %8736 = vmatpush1.bf16.msra.mxu0 %v10081_v2  ;;  %v10089_v13 = vld [vmem:[%s16014_s9 + $0x6c] ss:$16 sps:$4 sm:$0xff]  }
 0x742   :  { %v8043_v8 = vmax.f32 %v8023_v59, %v8033_v47  ;;  %8737 = vmatprep.subr.bf16.mxu0 %v10089_v13  ;;  %v10305_v60 = vld [vmem:[#allocation3 + $0x3e0] sm:$0xff]  ;;  %v10095_v3 = vld [vmem:[%s16014_s9 + $0x4c] ss:$16 sps:$4 sm:$0xff]   ;;  %v7980_v59 = vrot.slane %v7948_v21, 2 }
 0x743   :  { %v8025_v27 = vld [vmem:[#allocation9 + $0x10] sm:$0xff] }
 0x744   :  { %7792 = vrot.lane.b32.xlu1 %v15060_v23, %s10356_s2  ;;  %v10086_v23 = vld [vmem:[%s16014_s9 + $0x64] ss:$16 sps:$4 sm:$0xff]   ;;  %v10108_v21 = vld [vmem:[%s16014_s9 + $0x1e0] ss:$16 sps:$4 sm:$0xff]  }
 0x745   :  { %8655 = vmatprep.subr.bf16.mxu1 %v10086_v23  ;;  %v7799_v4 = vpop.permute.xlu0 %7798  ;;  %8738 = vmatpush1.bf16.msra.mxu0 %v10087_v7 }
 0x746   :  { %8656 = vmatpush1.bf16.msra.mxu1 %v10084_v44  ;;  %v10098_v44 = vld [vmem:[%s16014_s9 + $0x24] ss:$16 sps:$4 sm:$0xff]   ;;  %8739 = vmatprep.subr.bf16.mxu0 %v10095_v3 }
 0x747   :  { %v8035_v1 = vld [vmem:[#allocation9 + $0x11] sm:$0xff]  ;;  %8657 = vmatprep.subr.bf16.mxu1 %v10092_v58 }
 0x748   :  { %v8045_v53 = vmax.f32 %v8025_v27, %v8035_v1  ;;  %7796 = vrot.lane.b32.xlu1 %v15086_v43, %s10356_s2  ;;  %v7751_v43 = vadd.f32 %v15109_v5, %v7680_v17  ;;  %v7560_v5 = vadd.f32 %v15078_v11, %v7475_v57  ;;  %v10096_v11 = vld [vmem:[%s16014_s9 + $0x20] ss:$16 sps:$4 sm:$0xff]  }
 0x749   :  { %v7801_v63 = vpop.permute.xlu1 %7800  ;;  %v10306_v27 = vld [vmem:[#allocation3 + $0x410] sm:$0xff]  ;;  %8740 = vmatpush1.bf16.msra.mxu0 %v10093_v51 }
 0x74a   :  { %v8062_v19 = vmax.f32 %v8043_v8, %v8045_v53  ;;  %v7826_v56 = vadd.f32 %v7799_v4, %v7751_v43  ;;  %v7827_v2 = vadd.f32 %v7801_v63, %v15123_v25  ;;  %8658 = vmatpush1.bf16.msra.mxu1 %v10090_v30  ;;  %v15405_v1 = vld [vmem:[#allocation8 + $0x250] sm:$0xff]  ;;  %v7631_v17 = vadd.f32 %v7606_v29, %v7560_v5  ;;  %v10099_v4 = vld [vmem:[%s16014_s9 + $0x28] ss:$16 sps:$4 sm:$0xff]   ;;  %v10101_v63 = vld [vmem:[%s16014_s9 + $0x2c] ss:$16 sps:$4 sm:$0xff]  }
 0x74b   :  { %8659 = vmatprep.subr.bf16.mxu1 %v10098_v44  ;;  %v7978_v8 = vrot.slane %v15394_v18, 2  ;;  %v10104_v29 = vld [vmem:[%s16014_s9 + $0x4] ss:$16 sps:$4 sm:$0xff]   ;;  %v7982_v43 = vrot.slane %v15405_v1, 2  ;;  %8741 = vmatprep.subr.bf16.mxu0 %v10101_v63  ;;  %v10114_v44 = vld [vmem:[%s16014_s9 + $0x1c0] ss:$16 sps:$4 sm:$0xff]  }
 0x74c   :  { %v8079_v38 = vadd.f32 %v15369_v20, %v8062_v19  ;;  %4898 = vrot.lane.b32.xlu1 %v10305_v60, %s10356_s2  ;;  %v7850_v25 = vadd.f32 %v7826_v56, %v15116_v35  ;;  %v7851_v35 = vadd.f32 %v7827_v2, %v15130_v15  ;;  %v7683_v13 = vadd.f32 %v15249_v62, %v7631_v17  ;;  %v10307_v15 = vld [vmem:[#allocation3 + $0x440] sm:$0xff]  ;;  %v10105_v62 = vld [vmem:[%s16014_s9 + $0x8] ss:$16 sps:$4 sm:$0xff]   ;;  %v10107_v56 = vld [vmem:[%s16014_s9 + $0xc] ss:$16 sps:$4 sm:$0xff]  }
 0x74d   :  { %v7803_v34 = vpop.permute.xlu0 %7802  ;;  %v7805_v23 = vpop.permute.xlu1 %7804  ;;  %v7981_v19 = vsel %vm3230_vm3, %v7978_v8, %v7980_v59  ;;  %8742 = vmatpush1.bf16.msra.mxu0 %v10099_v4  ;;  %v10110_v5 = vld [vmem:[%s16014_s9 + $0x1e4] ss:$16 sps:$4 sm:$0xff]   ;;  %v10111_v2 = vld [vmem:[%s16014_s9 + $0x1e8] ss:$16 sps:$4 sm:$0xff]   ;;  %v10120_v4 = vld [vmem:[%s16014_s9 + $0x1a0] ss:$16 sps:$4 sm:$0xff]  }
 0x74e   :  { %v8089_v47 = vmax.f32 %v8079_v38, 0.0  ;;  %8660 = vmatpush1.bf16.msra.mxu1 %v10096_v11  ;;  %v7983_v38 = vsel %vm3230_vm3, %v7980_v59, %v7982_v43  ;;  %v7754_v51 = vadd.f32 %v7729_v42, %v7683_v13  ;;  %8743 = vmatprep.subr.bf16.mxu0 %v10107_v56  ;;  %v10308_v3 = vld [vmem:[#allocation3 + $0x470] sm:$0xff]  ;;  %v10113_v11 = vld [vmem:[%s16014_s9 + $0x1ec] ss:$16 sps:$4 sm:$0xff]   ;;  %v7828_v16 = vadd.f32 %v7803_v34, %v15216_v37  ;;  %v10117_v17 = vld [vmem:[%s16014_s9 + $0x1c8] ss:$16 sps:$4 sm:$0xff]  }
 0x74f   :  { %8661 = vmatprep.subr.bf16.mxu1 %v10104_v29  ;;  %v7950_v42 = vld [vmem:[#allocation8 + $0x278] sm:$0xff]  ;;  %v16770_v59 = vrot.slane %v16767_v6, 1  ;;  %v7841_v37 = vld [vmem:[#allocation8 + $0x270] sm:$0x3f]  ;;  %v16774_v13 = vrot.slane %v16765_v54, 1 }
 0x750   :  { %8099 = vst.msk [vmem:[#allocation10] sm:$0xff] %vm7036_vm6, %v8089_v47  ;;  %4902 = vrot.lane.b32.xlu1 %v10306_v27, %s10356_s2  ;;  %v7829_v47 = vadd.f32 %v7805_v23, %v7754_v51  ;;  %v10116_v23 = vld [vmem:[%s16014_s9 + $0x1c4] ss:$16 sps:$4 sm:$0xff]   ;;  %v16771_v27 = vrot.slane %v16761_v22, 1  ;;  %v7984_v34 = vrot.slane %v7950_v42, 2 }
 0x751   :  { %v7908_v53 = vpop.permute.xlu0 %7907  ;;  %8744 = vmatpush1.bf16.msra.mxu0 %v10105_v62  ;;  %v10119_v22 = vld [vmem:[%s16014_s9 + $0x1cc] ss:$16 sps:$4 sm:$0xff]   ;;  %v10122_v63 = vld [vmem:[%s16014_s9 + $0x1a4] ss:$16 sps:$4 sm:$0xff]   ;;  %v10126_v62 = vld [vmem:[%s16014_s9 + $0x180] ss:$16 sps:$4 sm:$0xff]  }
 0x752   :  { %v7935_v7 = vadd.f32 %v7908_v53, %v7850_v25  ;;  %8662 = vmatpush1.bf16.msra.mxu1 %v10102_v24  ;;  %v15465_v25 = vsel %vm2794_vm2, %v16771_v27, %v16770_v59  ;;  %8745 = vmatprep.subr.bf16.mxu0 %v10113_v11  ;;  %v7853_v1 = vadd.f32 %v7841_v37, %v7829_v47  ;;  %v16772_v24 = vld [vmem:[#allocation113_spill] sm:$0xff]  ;;  %v16776_v37 = vld [vmem:[#allocation122_spill] sm:$0xff]  ;;  %v8222_v18 = vld [vmem:[%s16015_s10] sm:$0xf] }
 0x753   :  { %v7910_v30 = vpop.permute.xlu1 %7909  ;;  %8663 = vmatprep.subr.bf16.mxu1 %v10110_v5  ;;  %v7852_v53 = vadd.f32 %v7828_v16, %v15136_v39  ;;  %v16773_v29 = vrot.slane %v16772_v24, 1  ;;  %v10125_v54 = vld [vmem:[%s16014_s9 + $0x1ac] ss:$16 sps:$4 sm:$0xff]   ;;  %v16775_v5 = vld [vmem:[#allocation116_spill] sm:$0xff] }
 0x754   :  { %4906 = vrot.lane.b32.xlu1 %v10307_v15, %s10356_s2  ;;  %v8006_v58 = vadd.f32 %v7981_v19, %v7935_v7  ;;  %v7936_v57 = vadd.f32 %v7910_v30, %v7851_v35  ;;  %v7985_v15 = vsel %vm3230_vm3, %v7982_v43, %v7984_v34  ;;  %v10128_v43 = vld [vmem:[%s16014_s9 + $0x184] ss:$16 sps:$4 sm:$0xff]   ;;  %v10129_v51 = vld [vmem:[%s16014_s9 + $0x188] ss:$16 sps:$4 sm:$0xff]   ;;  %v10132_v11 = vld [vmem:[%s16014_s9 + $0x160] ss:$16 sps:$4 sm:$0xff]  }
 0x755   :  { %8746 = vmatpush2.bf16.msra.mxu0 %v10111_v2  ;;  %v15487_v19 = vsel %vm2794_vm2, %v16774_v13, %v16773_v29  ;;  %v10134_v16 = vld [vmem:[%s16014_s9 + $0x164] ss:$16 sps:$4 sm:$0xff]   ;;  %v15520_v27 = vld [vmem:[#allocation8 + $0x188] sm:$0xff] }
 0x756   :  { %8018 = vst.msk [vmem:[#allocation9 + $0x40] sm:$0xff] %vm7036_vm6, %v8006_v58  ;;  %v8007_v60 = vadd.f32 %v7983_v38, %v7936_v57  ;;  %8664 = vmatpush2.bf16.msra.mxu1 %v10108_v21  ;;  %8747 = vmatprep.subr.bf16.mxu0 %v10119_v22  ;;  %v10123_v58 = vld [vmem:[%s16014_s9 + $0x1a8] ss:$16 sps:$4 sm:$0xff]  }
 0x757   :  { %8665 = vmatprep.subr.bf16.mxu1 %v10116_v23 }
 0x758   :  { %4910 = vrot.lane.b32.xlu1 %v10308_v3, %s10356_s2  ;;  %8019 = vst.msk [vmem:[#allocation9 + $0x48] sm:$0xff] %vm7036_vm6, %v8007_v60  ;;  %v10309_v60 = vld [vmem:[#allocation8 + $0xa0] sm:$0xff]  ;;  %v10131_v3 = vld [vmem:[%s16014_s9 + $0x18c] ss:$16 sps:$4 sm:$0xff]  }
 0x759   :  { %8748 = vmatpush2.bf16.msra.mxu0 %v10117_v17 }
 0x75a   :  { %8666 = vmatpush2.bf16.msra.mxu1 %v10114_v44  ;;  %8749 = vmatprep.subr.bf16.mxu0 %v10125_v54 }
 0x75b   :  { %8667 = vmatprep.subr.bf16.mxu1 %v10122_v63 }
 0x75c   :  { %5202 = vrot.lane.b32.xlu1 %v15465_v25, %s10357_s16 }
 0x75d   :  { %8750 = vmatpush2.bf16.msra.mxu0 %v10123_v58  ;;  %v8031_v63 = vld [vmem:[#allocation9 + $0x40] sm:$0xff] }
 0x75e   :  { %v7914_v6 = vpop.permute.xlu1 %7913  ;;  %8668 = vmatpush2.bf16.msra.mxu1 %v10120_v4  ;;  %8751 = vmatprep.subr.bf16.mxu0 %v10131_v3  ;;  %v10140_v4 = vld [vmem:[%s16014_s9 + $0x144] ss:$16 sps:$4 sm:$0xff]  }
 0x75f   :  { %v7938_v7 = vadd.f32 %v7914_v6, %v7853_v1  ;;  %v7912_v35 = vpop.permute.xlu0 %7911  ;;  %8669 = vmatprep.subr.bf16.mxu1 %v10128_v43  ;;  %v8032_v42 = vld [vmem:[#allocation9 + $0x48] sm:$0x1f]  ;;  %v10138_v1 = vld [vmem:[%s16014_s9 + $0x140] ss:$16 sps:$4 sm:$0xff]  }
 0x760   :  { %v7937_v39 = vadd.f32 %v7912_v35, %v7852_v53  ;;  %5206 = vrot.lane.b32.xlu1 %v15487_v19, %s10357_s16  ;;  %v8041_v44 = vld [vmem:[#allocation9 + $0x41] sm:$0xff]  ;;  %v8042_v23 = vld [vmem:[#allocation9 + $0x49] sm:$0x1f] }
 0x761   :  { %v8009_v30 = vadd.f32 %v7984_v34, %v7938_v7  ;;  %8752 = vmatpush2.bf16.msra.mxu0 %v10129_v51  ;;  %v10137_v34 = vld [vmem:[%s16014_s9 + $0x16c] ss:$16 sps:$4 sm:$0xff]   ;;  %v8052_v7 = vmax.f32 %v8032_v42, %v8042_v23 }
 0x762   :  { %v8008_v57 = vadd.f32 %v7985_v15, %v7937_v39  ;;  %v7645_v38 = vpop.permute.xlu1 %7644  ;;  %8670 = vmatpush2.bf16.msra.mxu1 %v10126_v62  ;;  %v16777_v39 = vrot.slane %v15099_v32, 1  ;;  %8753 = vmatprep.subr.bf16.mxu0 %v10137_v34  ;;  %v10141_v62 = vld [vmem:[%s16014_s9 + $0x148] ss:$16 sps:$4 sm:$0xff]   ;;  %v10155_v23 = vld [vmem:[%s16014_s9 + $0x10c] ss:$16 sps:$4 sm:$0xff]  }
 0x763   :  { %8022 = vst.msk [vmem:[#allocation9 + $0x58] sm:$0x3f] %vm8021_vm8, %v8009_v30  ;;  %v7522_v56 = vpop.permute.xlu0 %7521  ;;  %8671 = vmatprep.subr.bf16.mxu1 %v10134_v16  ;;  %v16778_v30 = vrot.slane %v15081_v46, 1  ;;  %v10143_v46 = vld [vmem:[%s16014_s9 + $0x14c] ss:$16 sps:$4 sm:$0xff]  }
 0x764   :  { %8020 = vst.msk [vmem:[#allocation9 + $0x50] sm:$0xff] %vm7036_vm6, %v8008_v57  ;;  %v7553_v21 = vadd.f32 %v10309_v60, %v7522_v56  ;;  %5210 = vrot.lane.b32.xlu1 %v16775_v5, %s10357_s16  ;;  %v10144_v60 = vld [vmem:[%s16014_s9 + $0x120] ss:$16 sps:$4 sm:$0xff]   ;;  %v10149_v16 = vld [vmem:[%s16014_s9 + $0x12c] ss:$16 sps:$4 sm:$0xff]  }
 0x765   :  { %v7882_v15 = vsel %vm2794_vm2, %v16778_v30, %v16777_v39  ;;  %v8034_v34 = vld [vmem:[#allocation9 + $0x9] sm:$0xff]  ;;  %v8122_v30 = vld [vmem:[#allocation10 + $0x6] ss:$64 sm:$0x1] }
 0x766   :  { %v7624_v47 = vadd.f32 %v14916_v55, %v7553_v21  ;;  %v7900_v2 = vpop.permute.xlu1 %7899  ;;  %v10135_v55 = vld [vmem:[%s16014_s9 + $0x168] ss:$16 sps:$4 sm:$0xff]   ;;  %8672 = vmatpush2.bf16.msra.mxu1 %v10132_v11  ;;  %v10146_v21 = vld [vmem:[%s16014_s9 + $0x124] ss:$16 sps:$4 sm:$0xff]  }
 0x767   :  { %v7791_v13 = vpop.permute.xlu0 %7790  ;;  %8673 = vmatprep.subr.bf16.mxu1 %v10140_v4  ;;  %8754 = vmatpush2.bf16.msra.mxu0 %v10135_v55  ;;  %v10147_v11 = vld [vmem:[%s16014_s9 + $0x128] ss:$16 sps:$4 sm:$0xff]   ;;  %v10158_v55 = vld [vmem:[%s16014_s9 + $0x264] ss:$16 sps:$4 sm:$0xff]  }
 0x768   :  { %v7676_v59 = vadd.f32 %v7645_v38, %v7624_v47  ;;  %5214 = vrot.lane.b32.xlu1 %v16776_v37, %s10357_s16  ;;  %v7972_v38 = vrot.slane %v15520_v27, 2  ;;  %8755 = vmatprep.subr.bf16.mxu0 %v10143_v46  ;;  %v10153_v37 = vld [vmem:[%s16014_s9 + $0x108] ss:$16 sps:$4 sm:$0xff]   ;;  %v8114_v4 = vld [vmem:[#allocation10 + $0x2] ss:$64 sm:$0x1]  ;;  %v8224_v27 = vlaneseq }
 0x76a   :  { %v8055_v17 = vld [vmem:[#allocation9 + $0x58] sm:$0x1f]  ;;  %v7747_v6 = vadd.f32 %v15048_v0, %v7676_v59  ;;  %v3003_v53 = vpop.permute.xlu1 %3002  ;;  %v8051_v0 = vmax.f32 %v8031_v63, %v8041_v44  ;;  %8674 = vmatpush2.bf16.msra.mxu1 %v10138_v1  ;;  %v10310_v1 = vld [vmem:[#allocation3 + $0x300] sm:$0xff] }
 0x76b   :  { %v8058_v22 = vld [vmem:[#allocation9 + $0x59] sm:$0x1f]  ;;  %v8054_v24 = vld [vmem:[#allocation9 + $0x50] sm:$0xff]  ;;  %8675 = vmatprep.subr.bf16.mxu1 %v10146_v21  ;;  %8756 = vmatpush2.bf16.msra.mxu0 %v10141_v62 }
 0x76c   :  { %v8061_v35 = vmax.f32 %v8055_v17, %v8058_v22  ;;  %v8057_v29 = vld [vmem:[#allocation9 + $0x51] sm:$0xff]  ;;  %v7822_v54 = vadd.f32 %v7791_v13, %v7747_v6  ;;  %7903 = vrot.lane.b32.xlu1 %v7882_v15, %s10356_s2  ;;  %8757 = vmatprep.subr.bf16.mxu0 %v10149_v16  ;;  %v3186_v17 = vadd.f32 %v10310_v1, %v3003_v53  ;;  %v8024_v22 = vld [vmem:[#allocation9 + $0x8] sm:$0xff] }
 0x76d   :  { %v8060_v58 = vmax.f32 %v8054_v24, %v8057_v29  ;;  %v8026_v63 = vld [vmem:[#allocation9 + $0x18] sm:$0xff]  ;;  %v8044_v29 = vmax.f32 %v8024_v22, %v8034_v34  ;;  %v10314_v1 = vld [vmem:[#allocation8 + $0xf0] sm:$0xff]  ;;  %v16785_v22 = vld [vmem:[#allocation32_spill] sm:$0xff] }
 0x76e   :  { %v8071_v57 = vmax.f32 %v8052_v7, %v8061_v35  ;;  %v7846_v43 = vadd.f32 %v7822_v54, %v15053_v26  ;;  %v3007_v56 = vpop.permute.xlu1 %3006  ;;  %v7973_v26 = vsel %vm3230_vm3, %v7970_v45, %v7972_v38  ;;  %8676 = vmatpush2.bf16.msra.mxu1 %v10144_v60  ;;  %v10150_v45 = vld [vmem:[%s16014_s9 + $0x100] ss:$16 sps:$4 sm:$0xff]  }
 0x76f   :  { %v8070_v32 = vmax.f32 %v8051_v0, %v8060_v58  ;;  %8758 = vmatpush2.bf16.msra.mxu0 %v10147_v11  ;;  %8677 = vmatprep.subr.bf16.mxu1 %v10152_v50  ;;  %v10311_v0 = vld [vmem:[#allocation3 + $0x330] sm:$0xff] }
 0x770   :  { %v8088_v5 = vadd.f32 %v15369_v20, %v8071_v57  ;;  %v7931_v3 = vadd.f32 %v7900_v2, %v7846_v43  ;;  %8759 = vmatprep.subr.bf16.mxu0 %v10155_v23  ;;  %v3188_v58 = vadd.f32 %v10311_v0, %v3007_v56  ;;  %v10312_v43 = vld [vmem:[#allocation3 + $0x360] sm:$0xff]  ;;  %v16788_v0 = vld [vmem:[#allocation46_spill] sm:$0xff] }
 0x771   :  { %v8087_v51 = vadd.f32 %v15369_v20, %v8070_v32 }
 0x772   :  { %v8098_v47 = vmax.f32 %v8088_v5, 0.0  ;;  %v8002_v44 = vadd.f32 %v7973_v26, %v7931_v3  ;;  %v3011_v2 = vpop.permute.xlu1 %3010  ;;  %8678 = vmatpush2.bf16.msra.mxu1 %v10150_v45  ;;  %v10313_v3 = vld [vmem:[#allocation3 + $0x390] sm:$0xff]  ;;  %v16783_v45 = vld [vmem:[#allocation20_spill] sm:$0xff] }
 0x773   :  { %v8097_v42 = vmax.f32 %v8087_v51, 0.0  ;;  %8760 = vmatpush2.bf16.msra.mxu0 %v10153_v37  ;;  %8696 = vmatprep.subr.bf16.mxu1 %v10158_v55  ;;  %v3190_v60 = vadd.f32 %v10312_v43, %v3011_v2  ;;  %v16782_v2 = vld [vmem:[#allocation38_spill] sm:$0xff]  ;;  %v15616_v37 = vld [vmem:[#allocation8 + $0x120] sm:$0xff] }
 0x774   :  { %8109 = vst.msk [vmem:[#allocation10 + $0x48] sm:$0x1f] %vm8108_vm9, %v8098_v47  ;;  %v16779_v47 = vld [vmem:[#allocation19_spill] sm:$0xff]  ;;  %v7598_v34 = vrot.slane %v15616_v37, 2 }
 0x775   :  { %8107 = vst.msk [vmem:[#allocation10 + $0x40] sm:$0xff] %vm7036_vm6, %v8097_v42  ;;  %8014 = vst.msk [vmem:[#allocation9 + $0x20] sm:$0xff] %vm7036_vm6, %v8002_v44  ;;  %v16781_v42 = vld [vmem:[#allocation31_spill] sm:$0xff] }
 0x776   :  { %v3015_v59 = vpop.permute.xlu1 %3014 }
 0x777   :  { %v3192_v56 = vadd.f32 %v10313_v3, %v3015_v59  ;;  %v16784_v59 = vld [vmem:[#allocation25_spill] sm:$0xff] }
 0x77a   :  { %v3439_v6 = vpop.permute.xlu1 %3438 }
 0x77b   :  { %v15587_v35 = vadd.f32 %v3439_v6, %v3186_v17  ;;  %v15623_v6 = vld [vmem:[#allocation8 + $0xf8] sm:$0xff] }
 0x77c   :  { %v8036_v7 = vld [vmem:[#allocation9 + $0x19] sm:$0xff]  ;;  %v8115_v24 = vld [vmem:[#allocation10 + $0x2] ss:$64 sm:$0x2] }
 0x77d   :  { %v8046_v13 = vmax.f32 %v8026_v63, %v8036_v7  ;;  %v8116_v39 = vor.u32 %v8115_v24, %v8114_v4  ;;  %v8123_v15 = vld [vmem:[#allocation10 + $0x6] ss:$64 sm:$0x2]  ;;  %v7596_v4 = vrot.slane %v15623_v6, 2 }
 0x77e   :  { %v8124_v54 = vor.u32 %v8123_v15, %v8122_v30  ;;  %v3443_v53 = vpop.permute.xlu1 %3442  ;;  %v10316_v30 = vld [vmem:[#allocation3 + $0x3c0] sm:$0xff]  ;;  %v10317_v15 = vld [vmem:[#allocation3 + $0x3f0] sm:$0xff] }
 0x77f   :  { %v8063_v57 = vmax.f32 %v8044_v29, %v8046_v13  ;;  %v15589_v62 = vadd.f32 %v3443_v53, %v3188_v58  ;;  %v7599_v7 = vsel %vm3230_vm3, %v7596_v4, %v7598_v34  ;;  %v16789_v58 = vld [vmem:[#allocation48_spill] sm:$0xff] }
 0x780   :  { %v9961_v46 = vpack.i.bf16 %v8116_v39, %v8124_v54  ;;  %v10319_v54 = vld [vmem:[#allocation3 + $0x3c8] sm:$0xff] }
 0x781   :  { %v8080_v32 = vadd.f32 %v15369_v20, %v8063_v57  ;;  %v16780_v20 = vld [vmem:[#allocation24_spill] sm:$0xff]  ;;  %v10320_v57 = vld [vmem:[#allocation3 + $0x3f8] sm:$0xff] }
 0x782   :  { %9962 = vrot.lane.b32.xlu0 %v9961_v46, %s10356_s2  ;;  %v3447_v5 = vpop.permute.xlu1 %3446  ;;  %v10321_v53 = vld [vmem:[#allocation3 + $0x428] sm:$0xff]  ;;  %v10322_v46 = vld [vmem:[#allocation3 + $0x458] sm:$0xff] }
 0x783   :  { %v8090_v21 = vmax.f32 %v8080_v32, 0.0  ;;  %v15593_v51 = vadd.f32 %v3447_v5, %v3190_v60  ;;  %v16790_v32 = vld [vmem:[#allocation43_spill] sm:$0xff]  ;;  %v8119_v5 = vld [vmem:[#allocation10 + $0x4] ss:$64 sm:$0x2] }
 0x784   :  { %v16793_v60 = vld [vmem:[#allocation119_spill] sm:$0xff] }
 0x785   :  { %8100 = vst.msk [vmem:[#allocation10 + $0x8] sm:$0xff] %vm7036_vm6, %v8090_v21  ;;  %v8111_v21 = vld [vmem:[#allocation10] ss:$64 sm:$0x2] }
 0x786   :  { %3004 = vrot.lane.b32.xlu0 %v16779_v47, %s10355_s1  ;;  %v3451_v26 = vpop.permute.xlu1 %3450 }
 0x787   :  { %v15598_v11 = vadd.f32 %v3451_v26, %v3192_v56  ;;  %v8110_v56 = vld [vmem:[#allocation10] ss:$64 sm:$0x1]  ;;  %v8118_v26 = vld [vmem:[#allocation10 + $0x4] ss:$64 sm:$0x1] }
 0x78a   :  { %3008 = vrot.lane.b32.xlu0 %v16780_v20, %s10355_s1  ;;  %v7526_v16 = vpop.permute.xlu1 %7525 }
 0x78b   :  { %v7555_v17 = vadd.f32 %v10314_v1, %v7526_v16 }
 0x78d   :  { %v7626_v24 = vadd.f32 %v7599_v7, %v7555_v17 }
 0x78e   :  { %3012 = vrot.lane.b32.xlu0 %v16781_v42, %s10355_s1  ;;  %v15604_v44 = vpop.permute.xlu1 %3452  ;;  %v8112_v42 = vor.u32 %v8111_v21, %v8110_v56 }
 0x792   :  { %3016 = vrot.lane.b32.xlu0 %v16782_v2, %s10355_s1  ;;  %v15608_v50 = vpop.permute.xlu1 %3736  ;;  %v8120_v2 = vor.u32 %v8119_v5, %v8118_v26  ;;  %v10173_v5 = vld [vmem:[%s16014_s9 + $0x24c] ss:$16 sps:$4 sm:$0xff]   ;;  %v10171_v26 = vld [vmem:[%s16014_s9 + $0x248] ss:$16 sps:$4 sm:$0xff]  }
 0x796   :  { %3440 = vrot.lane.b32.xlu0 %v16783_v45, %s10356_s2  ;;  %v15612_v23 = vpop.permute.xlu1 %3740 }
 0x79a   :  { %3444 = vrot.lane.b32.xlu0 %v16784_v59, %s10356_s2  ;;  %v15618_v55 = vpop.permute.xlu1 %3744 }
 0x79e   :  { %3448 = vrot.lane.b32.xlu0 %v16785_v22, %s10356_s2  ;;  %v15626_v63 = vpop.permute.xlu1 %3748  ;;  %v10156_v22 = vld [vmem:[%s16014_s9 + $0x260] ss:$16 sps:$4 sm:$0xff]  }
 0x7a2   :  { %7523 = vrot.lane.b32.xlu0 %v14926_v41, %s10356_s2  ;;  %v7649_v29 = vpop.permute.xlu1 %7648  ;;  %v10318_v41 = vld [vmem:[#allocation8 + $0x170] sm:$0xff] }
 0x7a3   :  { %v7678_v13 = vadd.f32 %v7649_v29, %v7626_v24  ;;  %v10161_v24 = vld [vmem:[%s16014_s9 + $0x244] ss:$16 sps:$4 sm:$0xff]  }
 0x7a5   :  { %v15638_v39 = vadd.f32 %v15076_v40, %v7678_v13  ;;  %v16787_v40 = vld [vmem:[#allocation39_spill] sm:$0xff] }
 0x7a6   :  { %7527 = vrot.lane.b32.xlu0 %v14943_v28, %s10356_s2  ;;  %v16786_v28 = vld [vmem:[#allocation34_spill] sm:$0xff] }
 0x7a7   :  { %v10159_v13 = vld [vmem:[%s16014_s9 + $0x240] ss:$16 sps:$4 sm:$0xff]  }
 0x7aa   :  { %3734 = vrot.lane.b32.xlu0 %v10312_v43, %s10357_s16  ;;  %v16791_v43 = vld [vmem:[#allocation47_spill] sm:$0xff] }
 0x7ae   :  { %3738 = vrot.lane.b32.xlu0 %v10313_v3, %s10357_s16  ;;  %v15669_v3 = vpop.permute.xlu1 %4600 }
 0x7b2   :  { %3742 = vrot.lane.b32.xlu0 %v10316_v30, %s10357_s16  ;;  %v15683_v29 = vpop.permute.xlu1 %4604  ;;  %v10164_v30 = vld [vmem:[%s16014_s9 + $0x224] ss:$16 sps:$4 sm:$0xff]  }
 0x7b6   :  { %3746 = vrot.lane.b32.xlu0 %v10317_v15, %s10357_s16  ;;  %v15696_v15 = vpop.permute.xlu1 %4608 }
 0x7ba   :  { %7646 = vrot.lane.b32.xlu0 %v15616_v37, %s10356_s2 }
 0x7be   :  { %7650 = vrot.lane.b32.xlu0 %v10318_v41, %s10356_s2  ;;  %v10162_v41 = vld [vmem:[%s16014_s9 + $0x220] ss:$16 sps:$4 sm:$0xff]  }
 0x7c2   :  { %4602 = vrot.lane.b32.xlu0 %v16786_v28, %s10355_s1  ;;  %v10167_v28 = vld [vmem:[%s16014_s9 + $0x204] ss:$16 sps:$4 sm:$0xff]  }
 0x7c6   :  { %4606 = vrot.lane.b32.xlu0 %v16787_v40, %s10355_s1  ;;  %v8126_v40 = vld [vmem:[#allocation10 + $0x8] ss:$64 sm:$0x1] }
 0x7ca   :  { %4610 = vrot.lane.b32.xlu0 %v16788_v0, %s10355_s1 }
 0x7ce   :  { %4614 = vrot.lane.b32.xlu0 %v16789_v58, %s10355_s1  ;;  %v10165_v58 = vld [vmem:[%s16014_s9 + $0x200] ss:$16 sps:$4 sm:$0xff]  }
 0x7d2   :  { %7794 = vrot.lane.b32.xlu0 %v15073_v12, %s10356_s2  ;;  %v16792_v12 = vld [vmem:[#allocation120_spill] sm:$0xff] }
 0x7d6   :  { %4896 = vrot.lane.b32.xlu0 %v10319_v54, %s10356_s2  ;;  %v8127_v54 = vld [vmem:[#allocation10 + $0x8] ss:$64 sm:$0x2] }
 0x7da   :  { %4900 = vrot.lane.b32.xlu0 %v10320_v57, %s10356_s2  ;;  %v8128_v57 = vor.u32 %v8127_v54, %v8126_v40  ;;  %v10181_v40 = vld [vmem:[%s16016_s11 + $0x38] sm:$0xff]  }
 0x7dc   :  { %v8141_v21 = vpack.c.bf16 %v8128_v57, %v8128_v57  ;;  %v10182_v57 = vld [vmem:[%s16016_s11 + $0x70] sm:$0xff]  }
 0x7de   :  { %4904 = vrot.lane.b32.xlu0 %v10321_v53, %s10356_s2  ;;  %v10170_v53 = vld [vmem:[%s16014_s9 + $0x26c] ss:$16 sps:$4 sm:$0xff]  }
 0x7e2   :  { %4908 = vrot.lane.b32.xlu0 %v10322_v46, %s10356_s2  ;;  %v15714_v46 = vpop.permute.xlu1 %4612 }
 0x7e6   :  { %5200 = vrot.lane.b32.xlu0 %v16790_v32, %s10357_s16  ;;  %v15723_v56 = vpop.permute.xlu1 %7792 }
 0x7ea   :  { %5204 = vrot.lane.b32.xlu0 %v16791_v43, %s10357_s16 }
 0x7ee   :  { %5208 = vrot.lane.b32.xlu0 %v16792_v12, %s10357_s16 }
 0x7f2   :  { %5212 = vrot.lane.b32.xlu0 %v16793_v60, %s10357_s16  ;;  %v10168_v60 = vld [vmem:[%s16014_s9 + $0x268] ss:$16 sps:$4 sm:$0xff]  }
 0x7f4   :  { %v9963_v47 = vpop.permute.xlu0 %9962 }
 0x7f5   :  { %v9965_v20 = vunpack.i.h.bf16 %v9963_v47  ;;  %v9964_v16 = vunpack.i.l.bf16 %v9963_v47 }
 0x7f6   :  { %7901 = vrot.lane.b32.xlu0 %v15097_v49, %s10356_s2 }
 0x7f7   :  { %v8137_v45 = vsel %vm7036_vm6, %v8112_v42, %v9965_v20  ;;  %v8138_v59 = vsel %vm7036_vm6, %v8120_v2, %v9964_v16  ;;  %v10176_v20 = vld [vmem:[%s16014_s9 + $0x22c] ss:$16 sps:$4 sm:$0xff]   ;;  %v10174_v42 = vld [vmem:[%s16014_s9 + $0x228] ss:$16 sps:$4 sm:$0xff]  }
 0x7f8   :  { %v8139_v1 = vpack.c.bf16 %v8137_v45, %v8137_v45  ;;  %v15675_v17 = vpop.permute.xlu0 %3004  ;;  %v8140_v7 = vpack.c.bf16 %v8138_v59, %v8138_v59  ;;  %v10179_v2 = vld [vmem:[%s16014_s9 + $0x20c] ss:$16 sps:$4 sm:$0xff]   ;;  %v15738_v45 = vpop.permute.xlu1 %7796  ;;  %v10177_v59 = vld [vmem:[%s16014_s9 + $0x208] ss:$16 sps:$4 sm:$0xff]  }
 0x7fa   :  { %7905 = vrot.lane.b32.xlu0 %v15128_v14, %s10356_s2  ;;  %8679 = vmatprep.mubr.bf16.mxu1 %v8140_v7 }
 0x7fb   :  { %8761 = vmatprep.mubr.bf16.mxu0 %v8140_v7  ;;  %8680 = vmatmul.mubr.bf16.vlgmr.msra.gmra.mxu1 %v8139_v1  ;;  %v10180_v7 = vld [vmem:[%s16016_s11 + $0x78] sm:$0xff]  }
 0x7fc   :  { %8697 = vmatpush1.bf16.msra.mxu1 %v10156_v22  ;;  %8762 = vmatmul.mubr.bf16.vlgmr.msra.gmra.mxu0 %v8139_v1  ;;  %v15687_v49 = vpop.permute.xlu0 %3008  ;;  %v10323_v1 = vld [vmem:[#allocation8 + $0xc8] sm:$0xff] }
 0x7fd   :  { %8698 = vmatprep.subr.bf16.mxu1 %v10161_v24  ;;  %8720 = vmatprep.mubr.bf16.mxu1 %v16724_v61  ;;  %v16794_v24 = vrot.slane %v14898_v36, 2  ;;  %v7601_v36 = vsel %vm3230_vm3, %v7598_v34, %v7600_v33 }
 0x800   :  { %8699 = vmatpush1.bf16.msra.mxu1 %v10159_v13  ;;  %v15698_v14 = vpop.permute.xlu0 %3012  ;;  %v7597_v13 = vsel %vm3230_vm3, %v16794_v24, %v7596_v4 }
 0x801   :  { %8700 = vmatprep.subr.bf16.mxu1 %v10164_v30 }
 0x804   :  { %8701 = vmatpush1.bf16.msra.mxu1 %v10162_v41  ;;  %v15706_v0 = vpop.permute.xlu0 %3016  ;;  %v4899_v41 = vpop.permute.xlu1 %4898 }
 0x805   :  { %8702 = vmatprep.subr.bf16.mxu1 %v10167_v28 }
 0x808   :  { %8703 = vmatpush1.bf16.msra.mxu1 %v10165_v58  ;;  %v3441_v12 = vpop.permute.xlu0 %3440  ;;  %v10324_v58 = vld [vmem:[#allocation8 + $0x118] sm:$0xff]  ;;  %v4903_v52 = vpop.permute.xlu1 %4902 }
 0x809   :  { %8778 = vmatprep.subr.bf16.mxu1 %v10170_v53  ;;  %v10183_v53 = vld [vmem:[%s16016_s11 + $0x30] sm:$0xff]  }
 0x80b   :  { %9567 = vmatmul.mubr.msk.bf16.vlgmr.msra.gmra.mxu1 %vm7036_vm6, %v8141_v21 }
 0x80c   :  { %8779 = vmatpush1.bf16.msra.mxu1 %v10168_v60  ;;  %v3445_v47 = vpop.permute.xlu0 %3444  ;;  %8802 = vmatprep.mubr.bf16.mxu1 %v16724_v61  ;;  %v10184_v60 = vld [vmem:[%s16016_s11 + $0x68] sm:$0xff]   ;;  %v4907_v33 = vpop.permute.xlu1 %4906 }
 0x80d   :  { %8780 = vmatprep.subr.bf16.mxu1 %v10173_v5 }
 0x810   :  { %8781 = vmatpush1.bf16.msra.mxu1 %v10171_v26  ;;  %v3449_v16 = vpop.permute.xlu0 %3448 }
 0x811   :  { %8782 = vmatprep.subr.bf16.mxu1 %v10176_v20  ;;  %v15778_v20 = vpop.permute.xlu1 %4910 }
 0x814   :  { %8783 = vmatpush1.bf16.msra.mxu1 %v10174_v42  ;;  %v7524_v61 = vpop.permute.xlu0 %7523 }
 0x815   :  { %v7554_v22 = vadd.f32 %v10323_v1, %v7524_v61  ;;  %8784 = vmatprep.subr.bf16.mxu1 %v10179_v2  ;;  %v10326_v61 = vld [vmem:[#allocation3 + $0x348] sm:$0xff] }
 0x817   :  { %v7625_v30 = vadd.f32 %v7597_v13, %v7554_v22  ;;  %v5203_v13 = vpop.permute.xlu1 %5202 }
 0x818   :  { %8785 = vmatpush1.bf16.msra.mxu1 %v10177_v59  ;;  %v7528_v28 = vpop.permute.xlu0 %7527  ;;  %v3189_v59 = vadd.f32 %v10326_v61, %v15687_v49 }
 0x819   :  { %v7556_v54 = vadd.f32 %v10324_v58, %v7528_v28  ;;  %9778 = vmatprep.subr.bf16.mxu1 %v10180_v7 }
 0x81a   :  { %v3625_v7 = vadd.f32 %v3445_v47, %v3189_v59  ;;  %v15814_v59 = vld [vmem:[#allocation3 + $0x448] sm:$0xff] }
 0x81b   :  { %9568 = vmatmul.mubr.msk.bf16.vlgmr.msra.gmra.mxu1 %vm7036_vm6, %v8141_v21  ;;  %v7627_v6 = vadd.f32 %v7601_v36, %v7556_v54  ;;  %v10325_v21 = vld [vmem:[#allocation3 + $0x318] sm:$0xff] }
 0x81c   :  { %v15763_v4 = vpop.permute.xlu0 %3734  ;;  %9779 = vmatpush3.bf16.msra.mxu1 %v10181_v40  ;;  %v3187_v26 = vadd.f32 %v10325_v21, %v15675_v17  ;;  %v3191_v40 = vadd.f32 %v15242_v9, %v15698_v14  ;;  %v3921_v58 = vadd.f32 %v15612_v23, %v3625_v7 }
 0x81d   :  { %9780 = vmatprep.subr.bf16.mxu1 %v10182_v57  ;;  %v15796_v57 = vld [vmem:[#allocation3 + $0x400] sm:$0xff] }
 0x81e   :  { %v3623_v42 = vadd.f32 %v3441_v12, %v3187_v26  ;;  %v3193_v12 = vadd.f32 %v15224_v48, %v15706_v0  ;;  %v3627_v54 = vadd.f32 %v3449_v16, %v3191_v40  ;;  %v16796_v0 = vld [vmem:[#allocation77_spill] sm:$0xff]  ;;  %v15805_v26 = vld [vmem:[#allocation3 + $0x418] sm:$0xff] }
 0x81f   :  { %v4352_v16 = vadd.f32 %v16796_v0, %v3921_v58  ;;  %v10188_v0 = vld [vmem:[%s16016_s11 + $0x58] sm:$0xff]  }
 0x820   :  { %v15771_v5 = vpop.permute.xlu0 %3738  ;;  %9781 = vmatpush3.bf16.msra.mxu1 %v10183_v53  ;;  %v3919_v22 = vadd.f32 %v15608_v50, %v3623_v42  ;;  %v16795_v50 = vld [vmem:[#allocation73_spill] sm:$0xff]  ;;  %v5207_v53 = vpop.permute.xlu1 %5206  ;;  %v3629_v14 = vadd.f32 %v15604_v44, %v3193_v12  ;;  %v3923_v48 = vadd.f32 %v15618_v55, %v3627_v54  ;;  %v10186_v12 = vld [vmem:[%s16016_s11 + $0x60] sm:$0xff]  }
 0x821   :  { %9782 = vmatprep.subr.bf16.mxu1 %v10184_v60 }
 0x822   :  { %v4350_v47 = vadd.f32 %v16795_v50, %v3919_v22  ;;  %v4354_v61 = vadd.f32 %v15465_v25, %v3923_v48  ;;  %v10185_v22 = vld [vmem:[%s16016_s11 + $0x28] sm:$0xff]  }
 0x824   :  { %v15773_v37 = vpop.permute.xlu0 %3742  ;;  %v5211_v7 = vpop.permute.xlu1 %5210  ;;  %9783 = vmatpush3.bf16.msra.mxu1 %v10185_v22  ;;  %v15869_v22 = vld [vmem:[#allocation8 + $0x1b0] sm:$0xff] }
 0x825   :  { %9784 = vmatprep.subr.bf16.mxu1 %v10186_v12 }
 0x828   :  { %v15775_v34 = vpop.permute.xlu0 %3746 }
 0x82c   :  { %v7647_v2 = vpop.permute.xlu0 %7646 }
 0x82d   :  { %v7677_v1 = vadd.f32 %v7647_v2, %v7625_v30  ;;  %v15794_v30 = vld [vmem:[#allocation3 + $0x3e8] sm:$0xff] }
 0x82e   :  { %v5633_v9 = vrot.slane %v15794_v30, 2 }
 0x82f   :  { %v15783_v24 = vadd.f32 %v15063_v10, %v7677_v1  ;;  %v3925_v1 = vadd.f32 %v15626_v63, %v3629_v14  ;;  %v5641_v63 = vrot.slane %v15814_v59, 2  ;;  %v15839_v14 = vld [vmem:[#allocation3 + $0x478] sm:$0xff] }
 0x830   :  { %v7651_v28 = vpop.permute.xlu0 %7650 }
 0x831   :  { %v7679_v17 = vadd.f32 %v7651_v28, %v7627_v6  ;;  %v5635_v6 = vrot.slane %v15796_v57, 2  ;;  %v4356_v50 = vadd.f32 %v15487_v19, %v3925_v1 }
 0x833   :  { %v15791_v49 = vadd.f32 %v15090_v31, %v7679_v17  ;;  %v15802_v31 = vld [vmem:[#allocation3 + $0x430] sm:$0xff]  ;;  %v5636_v44 = vsel %vm3230_vm3, %v5633_v9, %v5635_v6  ;;  %v15822_v17 = vld [vmem:[#allocation3 + $0x460] sm:$0xff] }
 0x834   :  { %v4603_v10 = vpop.permute.xlu0 %4602  ;;  %v5639_v55 = vrot.slane %v15802_v31, 2 }
 0x835   :  { %v4785_v36 = vadd.f32 %v4603_v10, %v4350_v47  ;;  %v10187_v47 = vld [vmem:[%s16016_s11 + $0x20] sm:$0xff]   ;;  %v5643_v10 = vrot.slane %v15822_v17, 2  ;;  %v10330_v17 = vld [vmem:[#allocation8 + $0x1d0] sm:$0xff] }
 0x836   :  { %9785 = vmatpush3.bf16.msra.mxu1 %v10187_v47  ;;  %v5642_v57 = vsel %vm3230_vm3, %v5639_v55, %v5641_v63 }
 0x837   :  { %v5081_v23 = vadd.f32 %v4899_v41, %v4785_v36  ;;  %v5644_v19 = vsel %vm3230_vm3, %v5641_v63, %v5643_v10  ;;  %9786 = vmatprep.subr.bf16.mxu1 %v10188_v0  ;;  %v10197_v0 = vld [vmem:[%s16016_s11 + $0xe8] sm:$0xff]  }
 0x838   :  { %v4607_v60 = vpop.permute.xlu0 %4606 }
 0x839   :  { %v5385_v21 = vadd.f32 %v5203_v13, %v5081_v23  ;;  %v4787_v42 = vadd.f32 %v4607_v60, %v4352_v16  ;;  %v5637_v13 = vrot.slane %v15805_v26, 2  ;;  %v15841_v23 = vld [vmem:[#allocation8 + $0x1d8] sm:$0xff] }
 0x83a   :  { %v10189_v16 = vld [vmem:[%s16016_s11 + $0xf8] sm:$0xff]  }
 0x83b   :  { %v5816_v41 = vadd.f32 %v5636_v44, %v5385_v21  ;;  %v5083_v2 = vadd.f32 %v4903_v52, %v4787_v42  ;;  %v5640_v25 = vsel %vm3230_vm3, %v5637_v13, %v5639_v55  ;;  %v10190_v60 = vld [vmem:[%s16016_s11 + $0x18] sm:$0xff]   ;;  %9800 = vmatprep.subr.bf16.mxu0 %v10189_v16  ;;  %v7825_v55 = vadd.f32 %v15738_v45, %v15791_v49 }
 0x83c   :  { %v4611_v28 = vpop.permute.xlu0 %4610  ;;  %v10191_v44 = vld [vmem:[%s16016_s11 + $0xb8] sm:$0xff]   ;;  %9787 = vmatpush3.bf16.msra.mxu1 %v10190_v60  ;;  %v10198_v60 = vld [vmem:[%s16016_s11 + $0x8] sm:$0xff]  }
 0x83d   :  { %5888 = vst.msk [vmem:[#allocation4 + $0x108] sm:$0xff] %vm1501_vm1, %v5816_v41  ;;  %v5387_v40 = vadd.f32 %v5207_v53, %v5083_v2  ;;  %v4789_v52 = vadd.f32 %v4611_v28, %v4354_v61  ;;  %v10192_v41 = vld [vmem:[%s16016_s11 + $0x50] sm:$0xff]   ;;  %v5645_v61 = vrot.slane %v15839_v14, 2  ;;  %9801 = vmatpush3.bf16.msra.mxu0 %v10191_v44  ;;  %v3918_v44 = vadd.f32 %v15763_v4, %v15587_v35  ;;  %v10203_v35 = vld [vmem:[%s16016_s11 + $0xa0] sm:$0xff]  }
 0x83e   :  { %v10193_v2 = vld [vmem:[%s16016_s11 + $0xf0] sm:$0xff]   ;;  %9788 = vmatprep.subr.bf16.mxu1 %v10192_v41  ;;  %v10200_v41 = vld [vmem:[%s16016_s11 + $0x40] sm:$0xff]   ;;  %v7849_v14 = vadd.f32 %v10330_v17, %v7825_v55 }
 0x83f   :  { %v5818_v58 = vadd.f32 %v5640_v25, %v5387_v40  ;;  %v5085_v54 = vadd.f32 %v4907_v33, %v4789_v52  ;;  %v5215_v33 = vpop.permute.xlu1 %5214  ;;  %v10194_v28 = vld [vmem:[%s16016_s11 + $0x10] sm:$0xff]   ;;  %9802 = vmatprep.subr.bf16.mxu0 %v10193_v2  ;;  %v10201_v2 = vld [vmem:[%s16016_s11 + $0xe0] sm:$0xff]  }
 0x840   :  { %v4615_v36 = vpop.permute.xlu0 %4614  ;;  %v10195_v40 = vld [vmem:[%s16016_s11 + $0xb0] sm:$0xff]   ;;  %9789 = vmatpush3.bf16.msra.mxu1 %v10194_v28  ;;  %v3920_v28 = vadd.f32 %v15771_v5, %v15589_v62  ;;  %v3922_v62 = vadd.f32 %v15773_v37, %v15593_v51  ;;  %v16801_v51 = vld [vmem:[#allocation23_spill] sm:$0xff] }
 0x841   :  { %5890 = vst.msk [vmem:[#allocation4 + $0x118] sm:$0xff] %vm1501_vm1, %v5818_v58  ;;  %v5389_v53 = vadd.f32 %v5211_v7, %v5085_v54  ;;  %v4791_v48 = vadd.f32 %v4615_v36, %v4356_v50  ;;  %v16797_v52 = vld [vmem:[#allocation121_spill] sm:$0xff]  ;;  %v7976_v58 = vrot.slane %v15841_v23, 2  ;;  %v7974_v36 = vrot.slane %v15869_v22, 2  ;;  %9803 = vmatpush3.bf16.msra.mxu0 %v10195_v40  ;;  %v10204_v40 = vld [vmem:[%s16016_s11 + $0xd8] sm:$0xff]  }
 0x842   :  { %v16798_v25 = vrot.slane %v16797_v52, 2  ;;  %v10327_v54 = vld [vmem:[#allocation8 + $0x1a8] sm:$0xff]  ;;  %9804 = vmatprep.subr.bf16.mxu0 %v10197_v0  ;;  %v10205_v52 = vld [vmem:[%s16016_s11 + $0x98] sm:$0xff]  }
 0x843   :  { %v5820_v21 = vadd.f32 %v5644_v19, %v5389_v53  ;;  %v5087_v42 = vadd.f32 %v15778_v20, %v4791_v48  ;;  %v7904_v47 = vpop.permute.xlu1 %7903  ;;  %v10196_v19 = vld [vmem:[%s16016_s11 + $0x48] sm:$0xff]   ;;  %v7979_v45 = vsel %vm3230_vm3, %v7976_v58, %v7978_v8 }
 0x844   :  { %v7795_v1 = vpop.permute.xlu0 %7794  ;;  %v5648_v12 = vsel %vm3230_vm3, %v5645_v61, %v16798_v25  ;;  %9790 = vmatprep.subr.bf16.mxu1 %v10196_v19  ;;  %v10206_v25 = vld [vmem:[%s16016_s11 + $0xd0] sm:$0xff]   ;;  %v3924_v19 = vadd.f32 %v15775_v34, %v15598_v11  ;;  %v10209_v11 = vld [vmem:[%s16016_s11 + $0x88] sm:$0xff]  }
 0x845   :  { %5892 = vst.msk [vmem:[#allocation4 + $0x128] sm:$0xff] %vm1501_vm1, %v5820_v21  ;;  %v5391_v20 = vadd.f32 %v5215_v33, %v5087_v42  ;;  %v7824_v7 = vadd.f32 %v7795_v1, %v15638_v39  ;;  %v7977_v33 = vsel %vm3230_vm3, %v7974_v36, %v7976_v58  ;;  %v10199_v21 = vld [vmem:[%s16016_s11 + $0xa8] sm:$0xff]   ;;  %9791 = vmatpush3.bf16.msra.mxu1 %v10198_v60  ;;  %v10202_v1 = vld [vmem:[%s16016_s11] sm:$0xff]  }
 0x846   :  { %9805 = vmatpush3.bf16.msra.mxu0 %v10199_v21  ;;  %9792 = vmatprep.subr.bf16.mxu1 %v10200_v41 }
 0x847   :  { %v5822_v39 = vadd.f32 %v5648_v12, %v5391_v20  ;;  %v7848_v50 = vadd.f32 %v10327_v54, %v7824_v7  ;;  %9806 = vmatprep.subr.bf16.mxu0 %v10201_v2  ;;  %v16799_v20 = vld [vmem:[#allocation71_spill] sm:$0xff] }
 0x848   :  { %v4897_v53 = vpop.permute.xlu0 %4896  ;;  %v4349_v7 = vadd.f32 %v16799_v20, %v3918_v44  ;;  %v10329_v20 = vld [vmem:[#allocation8 + $0x180] sm:$0xff] }
 0x849   :  { %5894 = vst.msk [vmem:[#allocation4 + $0x138] sm:$0xff] %vm1501_vm1, %v5822_v39  ;;  %v7933_v48 = vadd.f32 %v7904_v47, %v7848_v50  ;;  %9793 = vmatpush3.bf16.msra.mxu1 %v10202_v1  ;;  %v16800_v39 = vld [vmem:[#allocation75_spill] sm:$0xff]  ;;  %v10207_v50 = vld [vmem:[%s16016_s11 + $0x90] sm:$0xff]  }
 0x84a   :  { %9807 = vmatpush3.bf16.msra.mxu0 %v10203_v35  ;;  %v4351_v54 = vadd.f32 %v16800_v39, %v3920_v28  ;;  %v4784_v5 = vadd.f32 %v15669_v3, %v4349_v7  ;;  %v16802_v3 = vrot.slane %v16801_v51, 2  ;;  %v7823_v35 = vadd.f32 %v15723_v56, %v15783_v24 }
 0x84b   :  { %v8004_v16 = vadd.f32 %v7977_v33, %v7933_v48  ;;  %9808 = vmatprep.subr.bf16.mxu0 %v10204_v40  ;;  %v4353_v33 = vadd.f32 %v16790_v32, %v3922_v62  ;;  %v7975_v56 = vsel %vm3230_vm3, %v7972_v38, %v7974_v36  ;;  %v8225_v40 = vshrl.u32 %v8224_v27, 7 }
 0x84c   :  { %v4901_v42 = vpop.permute.xlu0 %4900  ;;  %v5080_v47 = vadd.f32 %v4897_v53, %v4784_v5  ;;  %v4786_v0 = vadd.f32 %v15683_v29, %v4351_v54  ;;  %v5634_v37 = vsel %vm3230_vm3, %v16802_v3, %v5633_v9  ;;  %v10208_v53 = vld [vmem:[%s16016_s11 + $0xc8] sm:$0xff]   ;;  %v4355_v29 = vadd.f32 %v16791_v43, %v3924_v19  ;;  %v10211_v43 = vld [vmem:[%s16016_s11 + $0x80] sm:$0xff]  }
 0x84d   :  { %8016 = vst.msk [vmem:[#allocation9 + $0x30] sm:$0xff] %vm7036_vm6, %v8004_v16  ;;  %v4788_v34 = vadd.f32 %v15696_v15, %v4353_v33  ;;  %v5638_v9 = vsel %vm3230_vm3, %v5635_v6, %v5637_v13  ;;  %v7847_v31 = vadd.f32 %v10329_v20, %v7823_v35  ;;  %v8226_v54 = vsub.s32 0, %v8225_v40 }
 0x84e   :  { %9809 = vmatpush3.bf16.msra.mxu0 %v10205_v52  ;;  %v5082_v60 = vadd.f32 %v4901_v42, %v4786_v0  ;;  %v10210_v42 = vld [vmem:[%s16016_s11 + $0xc0] sm:$0xff]   ;;  %v4790_v2 = vadd.f32 %v15714_v46, %v4355_v29  ;;  %v5646_v46 = vsel %vm3230_vm3, %v5643_v10, %v5645_v61  ;;  %v8230_v8 = vsub.s32 1, %v8225_v40 }
 0x84f   :  { %9810 = vmatprep.subr.bf16.mxu0 %v10206_v25  ;;  %v8227_v23 = vrot.slane %v8222_v18, %v8226_v54  ;;  %v8234_v3 = vsub.s32 2, %v8225_v40 }
 0x850   :  { %v4905_v4 = vpop.permute.xlu0 %4904  ;;  %v8231_v58 = vrot.slane %v8222_v18, %v8230_v8 }
 0x851   :  { %v5084_v44 = vadd.f32 %v4905_v4, %v4788_v34 }
 0x852   :  { %9811 = vmatpush3.bf16.msra.mxu0 %v10207_v50 }
 0x853   :  { %9812 = vmatprep.subr.bf16.mxu0 %v10208_v53  ;;  %v8235_v53 = vrot.slane %v8222_v18, %v8234_v3 }
 0x854   :  { %v4909_v12 = vpop.permute.xlu0 %4908 }
 0x855   :  { %v5086_v6 = vadd.f32 %v4909_v12, %v4790_v2 }
 0x856   :  { %9813 = vmatpush3.bf16.msra.mxu0 %v10209_v11 }
 0x857   :  { %9814 = vmatprep.subr.bf16.mxu0 %v10210_v42 }
 0x858   :  { %v5201_v48 = vpop.permute.xlu0 %5200 }
 0x859   :  { %v5384_v16 = vadd.f32 %v5201_v48, %v5080_v47 }
 0x85a   :  { %9815 = vmatpush3.bf16.msra.mxu0 %v10211_v43 }
 0x85b   :  { %v5815_v21 = vadd.f32 %v5634_v37, %v5384_v16  ;;  %v8238_v37 = vsub.s32 3, %v8225_v40 }
 0x85c   :  { %v5205_v32 = vpop.permute.xlu0 %5204 }
 0x85d   :  { %5887 = vst.msk [vmem:[#allocation4 + $0x100] sm:$0xff] %vm1501_vm1, %v5815_v21  ;;  %v5386_v30 = vadd.f32 %v5205_v32, %v5082_v60  ;;  %v8239_v60 = vrot.slane %v8222_v18, %v8238_v37 }
 0x85f   :  { %v5817_v41 = vadd.f32 %v5638_v9, %v5386_v30 }
 0x860   :  { %v5209_v15 = vpop.permute.xlu0 %5208 }
 0x861   :  { %5889 = vst.msk [vmem:[#allocation4 + $0x110] sm:$0xff] %vm1501_vm1, %v5817_v41  ;;  %v5388_v26 = vadd.f32 %v5209_v15, %v5084_v44 }
 0x863   :  { %v5819_v13 = vadd.f32 %v5642_v57, %v5388_v26 }
 0x864   :  { %v5213_v1 = vpop.permute.xlu0 %5212 }
 0x865   :  { %5891 = vst.msk [vmem:[#allocation4 + $0x120] sm:$0xff] %vm1501_vm1, %v5819_v13  ;;  %v5390_v4 = vadd.f32 %v5213_v1, %v5086_v6  ;;  %v9569_v6 = vld [vmem:[%s16017_s12] ss:$0 sm:$0xff] }
 0x867   :  { %v5821_v59 = vadd.f32 %v5646_v46, %v5390_v4 }
 0x868   :  { %v7902_v7 = vpop.permute.xlu0 %7901 }
 0x869   :  { %5893 = vst.msk [vmem:[#allocation4 + $0x130] sm:$0xff] %vm1501_vm1, %v5821_v59  ;;  %v7932_v24 = vadd.f32 %v7902_v7, %v7847_v31 }
 0x86b   :  { %v8003_v63 = vadd.f32 %v7975_v56, %v7932_v24 }
 0x86c   :  { %v7906_v10 = vpop.permute.xlu0 %7905 }
 0x86d   :  { %8015 = vst.msk [vmem:[#allocation9 + $0x28] sm:$0xff] %vm7036_vm6, %v8003_v63  ;;  %v7934_v49 = vadd.f32 %v7906_v10, %v7849_v14 }
 0x86f   :  { %v8005_v61 = vadd.f32 %v7979_v45, %v7934_v49 }
 0x871   :  { %8017 = vst.msk [vmem:[#allocation9 + $0x38] sm:$0xff] %vm7036_vm6, %v8005_v61 }
 0x8bb   :  { %v8681_v22 = vpop.f32.mrf.mxu1 }
 0x8bc   :  { %v8763_v38 = vpop.f32.mrf.mxu0  ;;  %v8682_v62 = vadd.f32 %v8681_v22, %v8227_v23 }
 0x8bd   :  { %v8683_v36 = vpop.f32.mrf.mxu1  ;;  %v8764_v21 = vadd.f32 %v8763_v38, %v8235_v53 }
 0x8be   :  { %v8765_v28 = vpop.f32.mrf.mxu0  ;;  %v8684_v50 = vadd.f32 %v8683_v36, %v8231_v58 }
 0x8bf   :  { %v8685_v52 = vpop.f32.mrf.mxu1  ;;  %v8766_v32 = vadd.f32 %v8765_v28, %v8239_v60 }
 0x8c0   :  { %v8767_v25 = vpop.f32.mrf.mxu0 }
 0x8c1   :  { %v8686_v12 = vpop.f32.mrf.mxu1 }
 0x8c2   :  { %v8768_v39 = vpop.f32.mrf.mxu0 }
 0x8cb   :  { %v8722_v5 = vpop.f32.mrf.mxu1 }
 0x8cc   :  { %v8723_v47 = vadd.f32 %v8722_v5, %v8682_v62 }
 0x8cd   :  { %v8724_v48 = vpop.f32.mrf.mxu1 }
 0x8ce   :  { %v8725_v33 = vadd.f32 %v8724_v48, %v8684_v50  ;;  %v8811_v16 = vpack.c.bf16 %v8723_v47, %v8723_v47 }
 0x8cf   :  { %v8726_v19 = vpop.f32.mrf.mxu1 }
 0x8d0   :  { %v8812_v0 = vpack.c.bf16 %v8725_v33, %v8725_v33 }
 0x8d1   :  { %v8727_v51 = vpop.f32.mrf.mxu1 }
 0x8d2   :  { %9110 = vmatprep.mubr.bf16.mxu1 %v8812_v0 }
 0x8d3   :  { %9111 = vmatmul.mubr.bf16.vlgmr.msra.gmra.mxu1 %v8811_v16 }
 0x8db   :  { %v8804_v11 = vpop.f32.mrf.mxu1 }
 0x8dc   :  { %v8805_v29 = vadd.f32 %v8804_v11, %v8764_v21 }
 0x8dd   :  { %v8806_v34 = vpop.f32.mrf.mxu1 }
 0x8de   :  { %v8807_v30 = vadd.f32 %v8806_v34, %v8766_v32  ;;  %v8813_v44 = vpack.c.bf16 %v8805_v29, %v8805_v29 }
 0x8df   :  { %v8808_v9 = vpop.f32.mrf.mxu1 }
 0x8e0   :  { %v8814_v42 = vpack.c.bf16 %v8807_v30, %v8807_v30 }
 0x8e1   :  { %v8809_v41 = vpop.f32.mrf.mxu1 }
 0x8e2   :  { %9150 = vmatprep.mubr.bf16.mxu0 %v8814_v42 }
 0x8e3   :  { %9151 = vmatmul.mubr.bf16.vlgmr.msra.gmra.mxu0 %v8813_v44 }
 0x993   :  { %v9794_v43 = vpop.f32.mrf.mxu1 }
 0x995   :  { %v9795_v15 = vpop.f32.mrf.mxu1 }
 0x996   :  { %v9796_v57 = vadd.f32 %v9795_v15, %v9794_v43 }
 0x997   :  { %v9797_v2 = vpop.f32.mrf.mxu1 }
 0x998   :  { %v9113_v35 = vadd.f32 %v9796_v57, %v9569_v6 }
 0x999   :  { %v9798_v26 = vpop.f32.mrf.mxu1 }
 0x9a3   :  { %v9816_v13 = vpop.f32.mrf.mxu0 }
 0x9a5   :  { %v9817_v1 = vpop.f32.mrf.mxu0 }
 0x9a6   :  { %v9818_v4 = vadd.f32 %v9817_v1, %v9816_v13 }
 0x9a7   :  { %v9819_v46 = vpop.f32.mrf.mxu0 }
 0x9a8   :  { %v9153_v59 = vadd.f32 %v9818_v4, %v9113_v35 }
 0x9a9   :  { %v9820_v20 = vpop.f32.mrf.mxu0 }
 0x9aa   :  { %9159 = vst.msk [vmem:[#allocation11] sm:$0x3] %vm9158_vm10, %v9153_v59 }
 0x9ab   :  { %10343 = shalt.err (!%p10340_p4)
}
 0x9ac   :  { %9169 = dma.vmem_to_hbm [thread:$0]  %s9167_s22, 32, %s16018_s13, [#allocation12]  }
 0x9ad   :  { %10352 = dma.done.wait [#allocation12], 32  }
 0x9ae   :  { %10353 = vsyncadd [#allocation12], 4294967264 }
 0x9af   :  { %9173 = vsyncpa [#allocation12], 1 }

</bundles_post_ra>
